<compile_context>
chip_gen: v6e
topology: v6e:2x2x1
jax: 0.10.0
libtpu: 0.0.40
codegen_flags: <defaults>
</compile_context>

<pallas_src>
import math

import jax
import jax.numpy as jnp
from jax.experimental import pallas as pl
from jax.experimental.pallas import tpu as pltpu

# ----------------------------- configuration --------------------------------
BS = 2
C_IN = 4
CONTEXT = 32
TARGET = 16
PATCH_LEN = 8
STRIDE = 4
N_LAYERS = 2
D_MODEL = 32
N_HEADS = 4
D_FF = 64
PATCH_NUM = (CONTEXT - PATCH_LEN) // STRIDE + 1       # 7  (padding_patch=None)
Q_PAD = 8                                             # patch axis padded to 8
D_K = D_MODEL // N_HEADS                              # 8
D_V = D_MODEL // N_HEADS                              # 8
HEAD_NF = D_MODEL * PATCH_NUM                         # 224
BN = BS * C_IN                                        # 8 (batch*channel) rows
ROWS = BN * Q_PAD                                     # 64 padded token rows
N_VALID = BN * PATCH_NUM                              # 56 real token rows
OUT_PAD = 128                                         # lane-dense output width
REVIN_EPS = 1e-5
BN_EPS = 1e-5
SCALE = float(D_K) ** (-0.5)
SQRT1_2 = 0.7071067811865476

# ------------------------- packed weight-slab layouts ------------------------
# width-32 slab
W32_SPECS = [
    ("w_eff", PATCH_NUM * CONTEXT),      # per-patch shifted embed weights (32,32) each
    ("posb", N_VALID),                   # patch-embed bias + positional enc (q-major rows)
    ("wqT", N_LAYERS * N_HEADS * D_K),   # per-head W_Q^T blocks (8,32)
    ("wkT", N_LAYERS * N_HEADS * D_K),   # per-head W_K^T blocks (8,32)
    ("wvo", N_LAYERS * N_HEADS * D_MODEL),  # per-head fused W_V @ W_O blocks (32,32)
    ("w2", N_LAYERS * D_FF),             # FFN second linear (64,32) per layer
    ("vec", N_LAYERS * 8),               # rows: b_attn, g1, be1, b2, g2, be2, 0, 0
    ("qkb", N_LAYERS * 2 * N_HEADS),     # per-head q/k biases in lanes 0:8
]
# width-64 slab
W64_SPECS = [
    ("mask", ROWS),                      # (64,64) additive attention mask
    ("w1", N_LAYERS * D_MODEL),          # FFN first linear (32,64) per layer
    ("b1", N_LAYERS * 8),                # b1 in row 0 of each 8-row block
]
# width-128 slab
W128_SPECS = [
    ("whead", HEAD_NF),                  # flatten-head weight, q-major rows, cols padded
    ("bhead", 8),                        # head bias in row 0
    ("rw", 8),                           # RevIN affine weight, broadcast to 128 lanes
    ("rb", 8),                           # RevIN affine bias, broadcast to 128 lanes
]


def _layout(specs):
    offs, off = {}, 0
    for name, rows in specs:
        offs[name] = off
        off += rows
    return offs, off


OFF32, ROWS32 = _layout(W32_SPECS)
OFF64, ROWS64 = _layout(W64_SPECS)
OFF128, ROWS128 = _layout(W128_SPECS)


def _full(shape):
    """BlockSpec covering the whole array (trivial grid)."""
    n = len(shape)
    return pl.BlockSpec(shape, lambda *_, n=n: (0,) * n)


# ------------------------------- fused kernel --------------------------------
def _batchnorm(x, gamma, beta):
    """BatchNorm1d(d_model), training-mode stats over the 56 real rows."""
    xv = x[:N_VALID, :]
    mu = jnp.sum(xv, axis=0, keepdims=True) * (1.0 / N_VALID)
    d = xv - mu
    var = jnp.sum(d * d, axis=0, keepdims=True) * (1.0 / N_VALID)
    a = jax.lax.rsqrt(var + BN_EPS) * gamma              # fused scale
    return x * a + (beta - mu * a)                        # single FMA-style apply


def patchtst_kernel(z_ref, w32_ref, w64_ref, w128_ref, out_ref, prev_ref):
    f32 = jnp.float32
    TRANS_B = (((1,), (1,)), ((), ()))                    # contract last dims

    def r32(name, start, rows, cols=D_MODEL):
        o = OFF32[name] + start
        return w32_ref[o:o + rows, :cols]

    def r64(name, start, rows):
        o = OFF64[name] + start
        return w64_ref[o:o + rows, :]

    def r128(name, start, rows):
        o = OFF128[name] + start
        return w128_ref[o:o + rows, :]

    # ---- RevIN 'norm': per (batch, channel) stats over the time axis --------
    z = z_ref[...]                                        # (BN, CONTEXT)
    mean = jnp.mean(z, axis=-1, keepdims=True)
    var = jnp.mean((z - mean) ** 2, axis=-1, keepdims=True)   # biased
    std = jnp.sqrt(var + REVIN_EPS)
    rw = r128("rw", 0, BN)                                # (BN, 128), lane-broadcast
    rb = r128("rb", 0, BN)
    zn = (z - mean) / std * rw[:, :CONTEXT] + rb[:, :CONTEXT]

    # ---- unfold + patch embedding + positional encoding, q-major rows -------
    # src[q*BN+bn, :] = zn[bn, q*STRIDE:q*STRIDE+PATCH_LEN] @ W_P + b_P + W_pos[q]
    # realized as one (8,32)@(32,32) matmul per patch against a shifted weight.
    blocks = []
    for q in range(PATCH_NUM):
        w_eff_q = r32("w_eff", q * CONTEXT, CONTEXT)      # (32, 32)
        pos_q = r32("posb", q * BN, BN)                   # (8, 32)
        blocks.append(jnp.dot(zn, w_eff_q, preferred_element_type=f32) + pos_q)
    blocks.append(jnp.zeros((ROWS - N_VALID, D_MODEL), f32))   # padded q=7 rows
    src = jnp.concatenate(blocks, axis=0)                 # (ROWS, D_MODEL)

    mask = r64("mask", 0, ROWS)                           # (64, 64) additive mask

    # ---- encoder layers ------------------------------------------------------
    for l in range(N_LAYERS):
        vec = r32("vec", l * 8, 8)                        # (8, 32) per-layer vectors
        b_attn, g1, be1 = vec[0:1, :], vec[1:2, :], vec[2:3, :]
        b2, g2, be2 = vec[3:4, :], vec[4:5, :], vec[5:6, :]

        # -- multi-head self-attention, full-row per-head matmuls -------------
        attn_acc = jnp.zeros((ROWS, D_MODEL), f32)
        for h in range(N_HEADS):
            wq_t = r32("wqT", (l * N_HEADS + h) * D_K, D_K)       # (8, 32)
            wk_t = r32("wkT", (l * N_HEADS + h) * D_K, D_K)
            bq = r32("qkb", l * 2 * N_HEADS + h, 1, D_K)          # (1, 8)
            bk = r32("qkb", l * 2 * N_HEADS + N_HEADS + h, 1, D_K)
            qh = jax.lax.dot_general(src, wq_t, TRANS_B,
                                     preferred_element_type=f32) + bq   # (64, 8)
            kh = jax.lax.dot_general(src, wk_t, TRANS_B,
                                     preferred_element_type=f32) + bk   # (64, 8)
            s = jax.lax.dot_general(qh, kh, TRANS_B,
                                    preferred_element_type=f32) * SCALE  # (64, 64)
            if l > 0:
                s = s + prev_ref[h]                       # residual attention
            if l < N_LAYERS - 1:
                prev_ref[h] = s                           # raw (pre-mask) scores
            sm = s + mask                                 # pad + cross-group mask
            m = jnp.max(sm, axis=-1, keepdims=True)
            e = jnp.exp(sm - m)
            p = e * pl.reciprocal(jnp.sum(e, axis=-1, keepdims=True), approx=False)
            wvo = r32("wvo", (l * N_HEADS + h) * D_MODEL, D_MODEL)       # (32, 32)
            vo = jnp.dot(src, wvo, preferred_element_type=f32)           # (64, 32)
            attn_acc = attn_acc + jnp.dot(p, vo, preferred_element_type=f32)
        src = _batchnorm(src + attn_acc + b_attn, g1, be1)               # norm_attn

        # -- position-wise feed-forward with exact erf-GELU --------------------
        w1 = r64("w1", l * D_MODEL, D_MODEL)              # (32, 64)
        b1 = r64("b1", l * 8, 1)                          # (1, 64)
        hdn = jnp.dot(src, w1, preferred_element_type=f32) + b1
        hdn = 0.5 * hdn * (1.0 + jax.lax.erf(hdn * SQRT1_2))
        w2 = r32("w2", l * D_FF, D_FF)                    # (64, 32)
        ff = jnp.dot(hdn, w2, preferred_element_type=f32) + b2
        src = _batchnorm(src + ff, g2, be2)                               # norm_ffn

    # ---- flatten head: 7 aligned sublane-block matmuls (q-major) -------------
    y = r128("bhead", 0, 1)                               # (1, 128)
    for q in range(PATCH_NUM):
        y = y + jnp.dot(src[q * BN:(q + 1) * BN, :],
                        r128("whead", q * D_MODEL, D_MODEL),
                        preferred_element_type=f32)       # (8, 128)

    # ---- RevIN 'denorm' (reference divides by (weight + eps*eps)) ------------
    x = (y - rb) / (rw + REVIN_EPS * REVIN_EPS)
    out_ref[...] = x * std + mean                         # lane-dense (8, 128) store


# ------------------------------ parameters -----------------------------------
def _pack(specs, sections, width):
    parts = []
    for name, rows in specs:
        a = sections[name].astype(jnp.float32)
        assert a.shape == (rows, width), (name, a.shape, rows, width)
        parts.append(a)
    return jnp.concatenate(parts, axis=0)


def init_params(key):
    keys = iter(jax.random.split(key, 32))
    f32 = jnp.float32

    def unif(shape, bound):
        return jax.random.uniform(next(keys), shape, f32, -bound, bound)

    def inv(n):
        return 1.0 / math.sqrt(n)

    # --- patch embedding (Linear(patch_len -> d_model)) + positional enc -----
    W_P = unif((PATCH_LEN, D_MODEL), inv(PATCH_LEN))
    b_P = unif((1, D_MODEL), inv(PATCH_LEN))
    W_pos = jax.random.uniform(next(keys), (PATCH_NUM, D_MODEL), f32, -0.02, 0.02)

    w_eff = jnp.zeros((PATCH_NUM, CONTEXT, D_MODEL), f32)
    for q in range(PATCH_NUM):
        w_eff = w_eff.at[q, q * STRIDE:q * STRIDE + PATCH_LEN, :].set(W_P)
    w_eff = w_eff.reshape(PATCH_NUM * CONTEXT, D_MODEL)

    posb = jnp.repeat(b_P + W_pos, BN, axis=0)            # (N_VALID, D_MODEL), q-major

    # --- attention: per-head Q/K weights (transposed), fused V@O, biases -----
    wqT = unif((N_LAYERS, N_HEADS * D_K, D_MODEL), inv(D_MODEL))
    wkT = unif((N_LAYERS, N_HEADS * D_K, D_MODEL), inv(D_MODEL))
    bq = unif((N_LAYERS, N_HEADS, D_K), inv(D_MODEL))
    bk = unif((N_LAYERS, N_HEADS, D_K), inv(D_MODEL))
    Wv = unif((N_LAYERS, D_MODEL, N_HEADS * D_V), inv(D_MODEL))
    bv = unif((N_LAYERS, 1, N_HEADS * D_V), inv(D_MODEL))
    Wo = unif((N_LAYERS, N_HEADS * D_V, D_MODEL), inv(N_HEADS * D_V))
    bo = unif((N_LAYERS, 1, D_MODEL), inv(N_HEADS * D_V))

    wvo_blocks, b_attn = [], []
    for l in range(N_LAYERS):
        for h in range(N_HEADS):
            wvo_blocks.append(Wv[l][:, h * D_V:(h + 1) * D_V]
                              @ Wo[l][h * D_V:(h + 1) * D_V, :])
        b_attn.append(bo[l] + bv[l] @ Wo[l])              # softmax rows sum to 1
    wvo = jnp.concatenate(wvo_blocks, axis=0)             # (N_LAYERS*N_HEADS*32, 32)
    b_attn = jnp.concatenate(b_attn, axis=0)              # (N_LAYERS, 32)

    qkb = jnp.zeros((N_LAYERS, 2, N_HEADS, D_MODEL), f32)
    qkb = qkb.at[:, 0, :, :D_K].set(bq)
    qkb = qkb.at[:, 1, :, :D_K].set(bk)
    qkb = qkb.reshape(N_LAYERS * 2 * N_HEADS, D_MODEL)

    # --- FFN + BatchNorm affine ----------------------------------------------
    W1 = unif((N_LAYERS, D_MODEL, D_FF), inv(D_MODEL))
    b1 = unif((N_LAYERS, 1, D_FF), inv(D_MODEL))
    W2 = unif((N_LAYERS, D_FF, D_MODEL), inv(D_FF))
    b2 = unif((N_LAYERS, 1, D_MODEL), inv(D_FF))
    g1 = jnp.ones((N_LAYERS, D_MODEL), f32)
    be1 = jnp.zeros((N_LAYERS, D_MODEL), f32)
    g2 = jnp.ones((N_LAYERS, D_MODEL), f32)
    be2 = jnp.zeros((N_LAYERS, D_MODEL), f32)

    vec = jnp.zeros((N_LAYERS, 8, D_MODEL), f32)
    vec = vec.at[:, 0, :].set(b_attn)
    vec = vec.at[:, 1, :].set(g1)
    vec = vec.at[:, 2, :].set(be1)
    vec = vec.at[:, 3, :].set(b2[:, 0, :])
    vec = vec.at[:, 4, :].set(g2)
    vec = vec.at[:, 5, :].set(be2)
    vec = vec.reshape(N_LAYERS * 8, D_MODEL)

    sec32 = {
        "w_eff": w_eff, "posb": posb,
        "wqT": wqT.reshape(N_LAYERS * N_HEADS * D_K, D_MODEL),
        "wkT": wkT.reshape(N_LAYERS * N_HEADS * D_K, D_MODEL),
        "wvo": wvo,
        "w2": W2.reshape(N_LAYERS * D_FF, D_MODEL),
        "vec": vec, "qkb": qkb,
    }

    # --- width-64 slab: attention mask, W1, b1 --------------------------------
    r = jnp.arange(ROWS)
    same_bn = (r[:, None] % BN) == (r[None, :] % BN)      # same (batch,channel) group
    key_valid = r[None, :] < N_VALID                      # real (non-padded) patch key
    mask64 = jnp.where(same_bn & key_valid, 0.0, -1e30).astype(f32)

    b1_sec = jnp.zeros((N_LAYERS, 8, D_FF), f32).at[:, 0, :].set(b1[:, 0, :])
    sec64 = {
        "mask": mask64,
        "w1": W1.reshape(N_LAYERS * D_MODEL, D_FF),
        "b1": b1_sec.reshape(N_LAYERS * 8, D_FF),
    }

    # --- width-128 slab: flatten head (q-major rows, padded cols) + RevIN -----
    W_head_t = unif((HEAD_NF, TARGET), inv(HEAD_NF))      # rows = d*PATCH_NUM + q
    W_head_q = (W_head_t.reshape(D_MODEL, PATCH_NUM, TARGET)
                .transpose(1, 0, 2).reshape(HEAD_NF, TARGET))
    whead = jnp.zeros((HEAD_NF, OUT_PAD), f32).at[:, :TARGET].set(W_head_q)
    b_head = unif((1, TARGET), inv(HEAD_NF))
    bhead = jnp.zeros((8, OUT_PAD), f32).at[0, :TARGET].set(b_head[0])

    rev_w = jnp.ones((C_IN,), f32)                        # RevIN affine defaults
    rev_b = jnp.zeros((C_IN,), f32)
    rw = jnp.broadcast_to(jnp.tile(rev_w, (BS,))[:, None], (BN, OUT_PAD))
    rb = jnp.broadcast_to(jnp.tile(rev_b, (BS,))[:, None], (BN, OUT_PAD))

    sec128 = {"whead": whead, "bhead": bhead, "rw": rw, "rb": rb}

    return {
        "w32": _pack(W32_SPECS, sec32, D_MODEL),
        "w64": _pack(W64_SPECS, sec64, 64),
        "w128": _pack(W128_SPECS, sec128, OUT_PAD),
    }


# ------------------------------ forward pass ---------------------------------
def patchtst_forward(z, params):
    bs, c_in, _ = z.shape
    z2 = z.reshape(bs * c_in, CONTEXT)                    # free XLA reshape
    inputs = (z2, params["w32"], params["w64"], params["w128"])
    out = pl.pallas_call(
        patchtst_kernel,
        out_shape=jax.ShapeDtypeStruct((BN, OUT_PAD), jnp.float32),
        grid=(1,),
        in_specs=[_full(x.shape) for x in inputs],
        out_specs=_full((BN, OUT_PAD)),
        scratch_shapes=[pltpu.VMEM((N_HEADS, ROWS, ROWS), jnp.float32)],
        compiler_params=pltpu.CompilerParams(
            dimension_semantics=("arbitrary",)),
    )(*inputs)
    return out[:, :TARGET].reshape(bs, c_in, TARGET)


if __name__ == "__main__":
    key = jax.random.PRNGKey(0)
    x = jax.random.normal(key, (BS, C_IN, CONTEXT), jnp.float32)
    params = init_params(jax.random.PRNGKey(42))

    out = jax.jit(patchtst_forward)(x, params)
    jax.block_until_ready(out)
    assert out.shape == (BS, C_IN, TARGET), out.shape
    assert bool(jnp.all(jnp.isfinite(out)))
    print("KERNEL_OK")
</pallas_src>

<mosaic_0001>
module attributes {stable_mosaic.version = 11 : i64} {
  func.func @patchtst_kernel(%arg0: i32, %arg1: memref<8x32xf32, #tpu.memory_space<vmem>>, %arg2: memref<824x32xf32, #tpu.memory_space<vmem>>, %arg3: memref<144x64xf32, #tpu.memory_space<vmem>>, %arg4: memref<248x128xf32, #tpu.memory_space<vmem>>, %arg5: memref<8x128xf32, #tpu.memory_space<vmem>>, %arg6: memref<4x64x64xf32, #tpu.memory_space<vmem>>) attributes {dimension_semantics = [#tpu.dimension_semantics<arbitrary>], iteration_bounds = array<i64: 1>, scalar_prefetch = 0 : i64, scratch_operands = 1 : i64, tpu.core_type = #tpu.core_type<tc>, window_params = [{pipeline_mode = #tpu.pipeline_mode<synchronous>, transform_indices = @transform_0, window_bounds = array<i64: 8, 32>}, {pipeline_mode = #tpu.pipeline_mode<synchronous>, transform_indices = @transform_1, window_bounds = array<i64: 824, 32>}, {pipeline_mode = #tpu.pipeline_mode<synchronous>, transform_indices = @transform_2, window_bounds = array<i64: 144, 64>}, {pipeline_mode = #tpu.pipeline_mode<synchronous>, transform_indices = @transform_3, window_bounds = array<i64: 248, 128>}, {pipeline_mode = #tpu.pipeline_mode<synchronous>, transform_indices = @transform_4, window_bounds = array<i64: 8, 128>}]} {
    %c0 = arith.constant 0 : index
    %c0_0 = arith.constant 0 : index
    %0 = vector.load %arg1[%c0, %c0_0] : memref<8x32xf32, #tpu.memory_space<vmem>>, vector<8x32xf32>
    %cst = arith.constant dense<0.000000e+00> : vector<8xf32>
    %1 = vector.multi_reduction <add>, %0, %cst [1] : vector<8x32xf32> to vector<8xf32>
    %2 = vector.shape_cast %1 : vector<8xf32> to vector<8x1xf32>
    %cst_1 = arith.constant 3.200000e+01 : f32
    %3 = vector.broadcast %cst_1 : f32 to vector<8x1xf32>
    %4 = arith.divf %2, %3 : vector<8x1xf32>
    %5 = vector.broadcast %4 : vector<8x1xf32> to vector<8x32xf32>
    %6 = arith.subf %0, %5 : vector<8x32xf32>
    %7 = arith.mulf %6, %6 : vector<8x32xf32>
    %cst_2 = arith.constant dense<0.000000e+00> : vector<8xf32>
    %8 = vector.multi_reduction <add>, %7, %cst_2 [1] : vector<8x32xf32> to vector<8xf32>
    %9 = vector.shape_cast %8 : vector<8xf32> to vector<8x1xf32>
    %cst_3 = arith.constant 3.200000e+01 : f32
    %10 = vector.broadcast %cst_3 : f32 to vector<8x1xf32>
    %11 = arith.divf %9, %10 : vector<8x1xf32>
    %cst_4 = arith.constant 9.99999974E-6 : f32
    %12 = vector.broadcast %cst_4 : f32 to vector<8x1xf32>
    %13 = arith.addf %11, %12 : vector<8x1xf32>
    %14 = math.sqrt %13 : vector<8x1xf32>
    %c232 = arith.constant 232 : index
    %c0_5 = arith.constant 0 : index
    %15 = vector.load %arg4[%c232, %c0_5] : memref<248x128xf32, #tpu.memory_space<vmem>>, vector<8x128xf32>
    %c240 = arith.constant 240 : index
    %c0_6 = arith.constant 0 : index
    %16 = vector.load %arg4[%c240, %c0_6] : memref<248x128xf32, #tpu.memory_space<vmem>>, vector<8x128xf32>
    %17 = vector.broadcast %4 : vector<8x1xf32> to vector<8x32xf32>
    %18 = arith.subf %0, %17 : vector<8x32xf32>
    %19 = vector.broadcast %14 : vector<8x1xf32> to vector<8x32xf32>
    %20 = arith.divf %18, %19 : vector<8x32xf32>
    %21 = vector.extract_strided_slice %15 {offsets = [0, 0], sizes = [8, 32], strides = [1, 1]} : vector<8x128xf32> to vector<8x32xf32>
    %22 = arith.mulf %20, %21 : vector<8x32xf32>
    %23 = vector.extract_strided_slice %16 {offsets = [0, 0], sizes = [8, 32], strides = [1, 1]} : vector<8x128xf32> to vector<8x32xf32>
    %24 = arith.addf %22, %23 : vector<8x32xf32>
    %c0_7 = arith.constant 0 : index
    %c0_8 = arith.constant 0 : index
    %25 = vector.load %arg2[%c0_7, %c0_8] : memref<824x32xf32, #tpu.memory_space<vmem>>, vector<32x32xf32>
    %c224 = arith.constant 224 : index
    %c0_9 = arith.constant 0 : index
    %26 = vector.load %arg2[%c224, %c0_9] : memref<824x32xf32, #tpu.memory_space<vmem>>, vector<8x32xf32>
    %cst_10 = arith.constant dense<0.000000e+00> : vector<8x32xf32>
    %27 = tpu.matmul %24, %25, %cst_10 {dimension_numbers = #tpu.dot_dimension_numbers<[1], [0], [0], [1], [0, 0, 1, 1], [], []>} : vector<8x32xf32>, vector<32x32xf32>, vector<8x32xf32> -> vector<8x32xf32>
    %28 = arith.addf %27, %26 : vector<8x32xf32>
    %c32 = arith.constant 32 : index
    %c0_11 = arith.constant 0 : index
    %29 = vector.load %arg2[%c32, %c0_11] : memref<824x32xf32, #tpu.memory_space<vmem>>, vector<32x32xf32>
    %c232_12 = arith.constant 232 : index
    %c0_13 = arith.constant 0 : index
    %30 = vector.load %arg2[%c232_12, %c0_13] : memref<824x32xf32, #tpu.memory_space<vmem>>, vector<8x32xf32>
    %cst_14 = arith.constant dense<0.000000e+00> : vector<8x32xf32>
    %31 = tpu.matmul %24, %29, %cst_14 {dimension_numbers = #tpu.dot_dimension_numbers<[1], [0], [0], [1], [0, 0, 1, 1], [], []>} : vector<8x32xf32>, vector<32x32xf32>, vector<8x32xf32> -> vector<8x32xf32>
    %32 = arith.addf %31, %30 : vector<8x32xf32>
    %c64 = arith.constant 64 : index
    %c0_15 = arith.constant 0 : index
    %33 = vector.load %arg2[%c64, %c0_15] : memref<824x32xf32, #tpu.memory_space<vmem>>, vector<32x32xf32>
    %c240_16 = arith.constant 240 : index
    %c0_17 = arith.constant 0 : index
    %34 = vector.load %arg2[%c240_16, %c0_17] : memref<824x32xf32, #tpu.memory_space<vmem>>, vector<8x32xf32>
    %cst_18 = arith.constant dense<0.000000e+00> : vector<8x32xf32>
    %35 = tpu.matmul %24, %33, %cst_18 {dimension_numbers = #tpu.dot_dimension_numbers<[1], [0], [0], [1], [0, 0, 1, 1], [], []>} : vector<8x32xf32>, vector<32x32xf32>, vector<8x32xf32> -> vector<8x32xf32>
    %36 = arith.addf %35, %34 : vector<8x32xf32>
    %c96 = arith.constant 96 : index
    %c0_19 = arith.constant 0 : index
    %37 = vector.load %arg2[%c96, %c0_19] : memref<824x32xf32, #tpu.memory_space<vmem>>, vector<32x32xf32>
    %c248 = arith.constant 248 : index
    %c0_20 = arith.constant 0 : index
    %38 = vector.load %arg2[%c248, %c0_20] : memref<824x32xf32, #tpu.memory_space<vmem>>, vector<8x32xf32>
    %cst_21 = arith.constant dense<0.000000e+00> : vector<8x32xf32>
    %39 = tpu.matmul %24, %37, %cst_21 {dimension_numbers = #tpu.dot_dimension_numbers<[1], [0], [0], [1], [0, 0, 1, 1], [], []>} : vector<8x32xf32>, vector<32x32xf32>, vector<8x32xf32> -> vector<8x32xf32>
    %40 = arith.addf %39, %38 : vector<8x32xf32>
    %c128 = arith.constant 128 : index
    %c0_22 = arith.constant 0 : index
    %41 = vector.load %arg2[%c128, %c0_22] : memref<824x32xf32, #tpu.memory_space<vmem>>, vector<32x32xf32>
    %c256 = arith.constant 256 : index
    %c0_23 = arith.constant 0 : index
    %42 = vector.load %arg2[%c256, %c0_23] : memref<824x32xf32, #tpu.memory_space<vmem>>, vector<8x32xf32>
    %cst_24 = arith.constant dense<0.000000e+00> : vector<8x32xf32>
    %43 = tpu.matmul %24, %41, %cst_24 {dimension_numbers = #tpu.dot_dimension_numbers<[1], [0], [0], [1], [0, 0, 1, 1], [], []>} : vector<8x32xf32>, vector<32x32xf32>, vector<8x32xf32> -> vector<8x32xf32>
    %44 = arith.addf %43, %42 : vector<8x32xf32>
    %c160 = arith.constant 160 : index
    %c0_25 = arith.constant 0 : index
    %45 = vector.load %arg2[%c160, %c0_25] : memref<824x32xf32, #tpu.memory_space<vmem>>, vector<32x32xf32>
    %c264 = arith.constant 264 : index
    %c0_26 = arith.constant 0 : index
    %46 = vector.load %arg2[%c264, %c0_26] : memref<824x32xf32, #tpu.memory_space<vmem>>, vector<8x32xf32>
    %cst_27 = arith.constant dense<0.000000e+00> : vector<8x32xf32>
    %47 = tpu.matmul %24, %45, %cst_27 {dimension_numbers = #tpu.dot_dimension_numbers<[1], [0], [0], [1], [0, 0, 1, 1], [], []>} : vector<8x32xf32>, vector<32x32xf32>, vector<8x32xf32> -> vector<8x32xf32>
    %48 = arith.addf %47, %46 : vector<8x32xf32>
    %c192 = arith.constant 192 : index
    %c0_28 = arith.constant 0 : index
    %49 = vector.load %arg2[%c192, %c0_28] : memref<824x32xf32, #tpu.memory_space<vmem>>, vector<32x32xf32>
    %c272 = arith.constant 272 : index
    %c0_29 = arith.constant 0 : index
    %50 = vector.load %arg2[%c272, %c0_29] : memref<824x32xf32, #tpu.memory_space<vmem>>, vector<8x32xf32>
    %cst_30 = arith.constant dense<0.000000e+00> : vector<8x32xf32>
    %51 = tpu.matmul %24, %49, %cst_30 {dimension_numbers = #tpu.dot_dimension_numbers<[1], [0], [0], [1], [0, 0, 1, 1], [], []>} : vector<8x32xf32>, vector<32x32xf32>, vector<8x32xf32> -> vector<8x32xf32>
    %52 = arith.addf %51, %50 : vector<8x32xf32>
    %cst_31 = arith.constant 0.000000e+00 : f32
    %53 = vector.broadcast %cst_31 : f32 to vector<8x32xf32>
    %54 = tpu.concatenate %28, %32, %36, %40, %44, %48, %52, %53 in 0 : vector<8x32xf32>, vector<8x32xf32>, vector<8x32xf32>, vector<8x32xf32>, vector<8x32xf32>, vector<8x32xf32>, vector<8x32xf32>, vector<8x32xf32> -> vector<64x32xf32>
    %c0_32 = arith.constant 0 : index
    %c0_33 = arith.constant 0 : index
    %55 = vector.load %arg3[%c0_32, %c0_33] : memref<144x64xf32, #tpu.memory_space<vmem>>, vector<64x64xf32>
    %c792 = arith.constant 792 : index
    %c0_34 = arith.constant 0 : index
    %56 = vector.load %arg2[%c792, %c0_34] : memref<824x32xf32, #tpu.memory_space<vmem>>, vector<8x32xf32>
    %57 = vector.extract_strided_slice %56 {offsets = [0, 0], sizes = [1, 32], strides = [1, 1]} : vector<8x32xf32> to vector<1x32xf32>
    %58 = vector.extract_strided_slice %56 {offsets = [1, 0], sizes = [1, 32], strides = [1, 1]} : vector<8x32xf32> to vector<1x32xf32>
    %59 = vector.extract_strided_slice %56 {offsets = [2, 0], sizes = [1, 32], strides = [1, 1]} : vector<8x32xf32> to vector<1x32xf32>
    %60 = vector.extract_strided_slice %56 {offsets = [3, 0], sizes = [1, 32], strides = [1, 1]} : vector<8x32xf32> to vector<1x32xf32>
    %61 = vector.extract_strided_slice %56 {offsets = [4, 0], sizes = [1, 32], strides = [1, 1]} : vector<8x32xf32> to vector<1x32xf32>
    %62 = vector.extract_strided_slice %56 {offsets = [5, 0], sizes = [1, 32], strides = [1, 1]} : vector<8x32xf32> to vector<1x32xf32>
    %cst_35 = arith.constant 0.000000e+00 : f32
    %63 = vector.broadcast %cst_35 : f32 to vector<64x32xf32>
    %c280 = arith.constant 280 : index
    %c0_36 = arith.constant 0 : index
    %64 = vector.load %arg2[%c280, %c0_36] : memref<824x32xf32, #tpu.memory_space<vmem>>, vector<8x32xf32>
    %c344 = arith.constant 344 : index
    %c0_37 = arith.constant 0 : index
    %65 = vector.load %arg2[%c344, %c0_37] : memref<824x32xf32, #tpu.memory_space<vmem>>, vector<8x32xf32>
    %c808 = arith.constant 808 : index
    %c0_38 = arith.constant 0 : index
    %66 = vector.load %arg2[%c808, %c0_38] : memref<824x32xf32, #tpu.memory_space<vmem>>, vector<1x8xf32>
    %c812 = arith.constant 812 : index
    %c0_39 = arith.constant 0 : index
    %67 = vector.load %arg2[%c812, %c0_39] : memref<824x32xf32, #tpu.memory_space<vmem>>, vector<1x8xf32>
    %cst_40 = arith.constant dense<0.000000e+00> : vector<64x8xf32>
    %68 = tpu.matmul %54, %64, %cst_40 {dimension_numbers = #tpu.dot_dimension_numbers<[1], [1], [0], [0], [0, 0, 1, 0], [], []>} : vector<64x32xf32>, vector<8x32xf32>, vector<64x8xf32> -> vector<64x8xf32>
    %69 = vector.broadcast %66 : vector<1x8xf32> to vector<64x8xf32>
    %70 = arith.addf %68, %69 : vector<64x8xf32>
    %cst_41 = arith.constant dense<0.000000e+00> : vector<64x8xf32>
    %71 = tpu.matmul %54, %65, %cst_41 {dimension_numbers = #tpu.dot_dimension_numbers<[1], [1], [0], [0], [0, 0, 1, 0], [], []>} : vector<64x32xf32>, vector<8x32xf32>, vector<64x8xf32> -> vector<64x8xf32>
    %72 = vector.broadcast %67 : vector<1x8xf32> to vector<64x8xf32>
    %73 = arith.addf %71, %72 : vector<64x8xf32>
    %cst_42 = arith.constant dense<0.000000e+00> : vector<64x64xf32>
    %74 = tpu.matmul %70, %73, %cst_42 {dimension_numbers = #tpu.dot_dimension_numbers<[1], [1], [0], [0], [0, 0, 1, 0], [], []>} : vector<64x8xf32>, vector<64x8xf32>, vector<64x64xf32> -> vector<64x64xf32>
    %cst_43 = arith.constant 0.353553385 : f32
    %75 = vector.broadcast %cst_43 : f32 to vector<64x64xf32>
    %76 = arith.mulf %74, %75 : vector<64x64xf32>
    %c0_44 = arith.constant 0 : index
    %c0_45 = arith.constant 0 : index
    %c0_46 = arith.constant 0 : index
    %77 = vector.load %arg6[%c0_44, %c0_45, %c0_46] : memref<4x64x64xf32, #tpu.memory_space<vmem>>, vector<1x64x64xf32>
    %78 = vector.shape_cast %77 : vector<1x64x64xf32> to vector<64x64xf32>
    %79 = vector.shape_cast %76 : vector<64x64xf32> to vector<1x64x64xf32>
    tpu.vector_store %arg6[%c0_44, %c0_45, %c0_46], %79 {strides = array<i32>} : memref<4x64x64xf32, #tpu.memory_space<vmem>>, vector<1x64x64xf32>,
    %80 = arith.addf %76, %55 : vector<64x64xf32>
    %cst_47 = arith.constant dense<0xFF800000> : vector<64xf32>
    %81 = vector.multi_reduction <maximumf>, %80, %cst_47 [1] : vector<64x64xf32> to vector<64xf32>
    %82 = vector.shape_cast %81 : vector<64xf32> to vector<64x1xf32>
    %83 = vector.broadcast %82 : vector<64x1xf32> to vector<64x64xf32>
    %84 = arith.subf %80, %83 : vector<64x64xf32>
    %85 = math.exp %84 : vector<64x64xf32>
    %cst_48 = arith.constant dense<0.000000e+00> : vector<64xf32>
    %86 = vector.multi_reduction <add>, %85, %cst_48 [1] : vector<64x64xf32> to vector<64xf32>
    %87 = vector.shape_cast %86 : vector<64xf32> to vector<64x1xf32>
    %88 = tpu.reciprocal %87 : vector<64x1xf32> -> vector<64x1xf32>
    %89 = vector.broadcast %88 : vector<64x1xf32> to vector<64x64xf32>
    %90 = arith.mulf %85, %89 : vector<64x64xf32>
    %c408 = arith.constant 408 : index
    %c0_49 = arith.constant 0 : index
    %91 = vector.load %arg2[%c408, %c0_49] : memref<824x32xf32, #tpu.memory_space<vmem>>, vector<32x32xf32>
    %cst_50 = arith.constant dense<0.000000e+00> : vector<64x32xf32>
    %92 = tpu.matmul %54, %91, %cst_50 {dimension_numbers = #tpu.dot_dimension_numbers<[1], [0], [0], [1], [0, 0, 1, 1], [], []>} : vector<64x32xf32>, vector<32x32xf32>, vector<64x32xf32> -> vector<64x32xf32>
    %cst_51 = arith.constant dense<0.000000e+00> : vector<64x32xf32>
    %93 = tpu.matmul %90, %92, %cst_51 {dimension_numbers = #tpu.dot_dimension_numbers<[1], [0], [0], [1], [0, 0, 1, 1], [], []>} : vector<64x64xf32>, vector<64x32xf32>, vector<64x32xf32> -> vector<64x32xf32>
    %94 = arith.addf %63, %93 : vector<64x32xf32>
    %c288 = arith.constant 288 : index
    %c0_52 = arith.constant 0 : index
    %95 = vector.load %arg2[%c288, %c0_52] : memref<824x32xf32, #tpu.memory_space<vmem>>, vector<8x32xf32>
    %c352 = arith.constant 352 : index
    %c0_53 = arith.constant 0 : index
    %96 = vector.load %arg2[%c352, %c0_53] : memref<824x32xf32, #tpu.memory_space<vmem>>, vector<8x32xf32>
    %c809 = arith.constant 809 : index
    %c0_54 = arith.constant 0 : index
    %97 = vector.load %arg2[%c809, %c0_54] : memref<824x32xf32, #tpu.memory_space<vmem>>, vector<1x8xf32>
    %c813 = arith.constant 813 : index
    %c0_55 = arith.constant 0 : index
    %98 = vector.load %arg2[%c813, %c0_55] : memref<824x32xf32, #tpu.memory_space<vmem>>, vector<1x8xf32>
    %cst_56 = arith.constant dense<0.000000e+00> : vector<64x8xf32>
    %99 = tpu.matmul %54, %95, %cst_56 {dimension_numbers = #tpu.dot_dimension_numbers<[1], [1], [0], [0], [0, 0, 1, 0], [], []>} : vector<64x32xf32>, vector<8x32xf32>, vector<64x8xf32> -> vector<64x8xf32>
    %100 = vector.broadcast %97 : vector<1x8xf32> to vector<64x8xf32>
    %101 = arith.addf %99, %100 : vector<64x8xf32>
    %cst_57 = arith.constant dense<0.000000e+00> : vector<64x8xf32>
    %102 = tpu.matmul %54, %96, %cst_57 {dimension_numbers = #tpu.dot_dimension_numbers<[1], [1], [0], [0], [0, 0, 1, 0], [], []>} : vector<64x32xf32>, vector<8x32xf32>, vector<64x8xf32> -> vector<64x8xf32>
    %103 = vector.broadcast %98 : vector<1x8xf32> to vector<64x8xf32>
    %104 = arith.addf %102, %103 : vector<64x8xf32>
    %cst_58 = arith.constant dense<0.000000e+00> : vector<64x64xf32>
    %105 = tpu.matmul %101, %104, %cst_58 {dimension_numbers = #tpu.dot_dimension_numbers<[1], [1], [0], [0], [0, 0, 1, 0], [], []>} : vector<64x8xf32>, vector<64x8xf32>, vector<64x64xf32> -> vector<64x64xf32>
    %cst_59 = arith.constant 0.353553385 : f32
    %106 = vector.broadcast %cst_59 : f32 to vector<64x64xf32>
    %107 = arith.mulf %105, %106 : vector<64x64xf32>
    %c1 = arith.constant 1 : index
    %c0_60 = arith.constant 0 : index
    %c0_61 = arith.constant 0 : index
    %108 = vector.load %arg6[%c1, %c0_60, %c0_61] : memref<4x64x64xf32, #tpu.memory_space<vmem>>, vector<1x64x64xf32>
    %109 = vector.shape_cast %108 : vector<1x64x64xf32> to vector<64x64xf32>
    %110 = vector.shape_cast %107 : vector<64x64xf32> to vector<1x64x64xf32>
    tpu.vector_store %arg6[%c1, %c0_60, %c0_61], %110 {strides = array<i32>} : memref<4x64x64xf32, #tpu.memory_space<vmem>>, vector<1x64x64xf32>,
    %111 = arith.addf %107, %55 : vector<64x64xf32>
    %cst_62 = arith.constant dense<0xFF800000> : vector<64xf32>
    %112 = vector.multi_reduction <maximumf>, %111, %cst_62 [1] : vector<64x64xf32> to vector<64xf32>
    %113 = vector.shape_cast %112 : vector<64xf32> to vector<64x1xf32>
    %114 = vector.broadcast %113 : vector<64x1xf32> to vector<64x64xf32>
    %115 = arith.subf %111, %114 : vector<64x64xf32>
    %116 = math.exp %115 : vector<64x64xf32>
    %cst_63 = arith.constant dense<0.000000e+00> : vector<64xf32>
    %117 = vector.multi_reduction <add>, %116, %cst_63 [1] : vector<64x64xf32> to vector<64xf32>
    %118 = vector.shape_cast %117 : vector<64xf32> to vector<64x1xf32>
    %119 = tpu.reciprocal %118 : vector<64x1xf32> -> vector<64x1xf32>
    %120 = vector.broadcast %119 : vector<64x1xf32> to vector<64x64xf32>
    %121 = arith.mulf %116, %120 : vector<64x64xf32>
    %c440 = arith.constant 440 : index
    %c0_64 = arith.constant 0 : index
    %122 = vector.load %arg2[%c440, %c0_64] : memref<824x32xf32, #tpu.memory_space<vmem>>, vector<32x32xf32>
    %cst_65 = arith.constant dense<0.000000e+00> : vector<64x32xf32>
    %123 = tpu.matmul %54, %122, %cst_65 {dimension_numbers = #tpu.dot_dimension_numbers<[1], [0], [0], [1], [0, 0, 1, 1], [], []>} : vector<64x32xf32>, vector<32x32xf32>, vector<64x32xf32> -> vector<64x32xf32>
    %cst_66 = arith.constant dense<0.000000e+00> : vector<64x32xf32>
    %124 = tpu.matmul %121, %123, %cst_66 {dimension_numbers = #tpu.dot_dimension_numbers<[1], [0], [0], [1], [0, 0, 1, 1], [], []>} : vector<64x64xf32>, vector<64x32xf32>, vector<64x32xf32> -> vector<64x32xf32>
    %125 = arith.addf %94, %124 : vector<64x32xf32>
    %c296 = arith.constant 296 : index
    %c0_67 = arith.constant 0 : index
    %126 = vector.load %arg2[%c296, %c0_67] : memref<824x32xf32, #tpu.memory_space<vmem>>, vector<8x32xf32>
    %c360 = arith.constant 360 : index
    %c0_68 = arith.constant 0 : index
    %127 = vector.load %arg2[%c360, %c0_68] : memref<824x32xf32, #tpu.memory_space<vmem>>, vector<8x32xf32>
    %c810 = arith.constant 810 : index
    %c0_69 = arith.constant 0 : index
    %128 = vector.load %arg2[%c810, %c0_69] : memref<824x32xf32, #tpu.memory_space<vmem>>, vector<1x8xf32>
    %c814 = arith.constant 814 : index
    %c0_70 = arith.constant 0 : index
    %129 = vector.load %arg2[%c814, %c0_70] : memref<824x32xf32, #tpu.memory_space<vmem>>, vector<1x8xf32>
    %cst_71 = arith.constant dense<0.000000e+00> : vector<64x8xf32>
    %130 = tpu.matmul %54, %126, %cst_71 {dimension_numbers = #tpu.dot_dimension_numbers<[1], [1], [0], [0], [0, 0, 1, 0], [], []>} : vector<64x32xf32>, vector<8x32xf32>, vector<64x8xf32> -> vector<64x8xf32>
    %131 = vector.broadcast %128 : vector<1x8xf32> to vector<64x8xf32>
    %132 = arith.addf %130, %131 : vector<64x8xf32>
    %cst_72 = arith.constant dense<0.000000e+00> : vector<64x8xf32>
    %133 = tpu.matmul %54, %127, %cst_72 {dimension_numbers = #tpu.dot_dimension_numbers<[1], [1], [0], [0], [0, 0, 1, 0], [], []>} : vector<64x32xf32>, vector<8x32xf32>, vector<64x8xf32> -> vector<64x8xf32>
    %134 = vector.broadcast %129 : vector<1x8xf32> to vector<64x8xf32>
    %135 = arith.addf %133, %134 : vector<64x8xf32>
    %cst_73 = arith.constant dense<0.000000e+00> : vector<64x64xf32>
    %136 = tpu.matmul %132, %135, %cst_73 {dimension_numbers = #tpu.dot_dimension_numbers<[1], [1], [0], [0], [0, 0, 1, 0], [], []>} : vector<64x8xf32>, vector<64x8xf32>, vector<64x64xf32> -> vector<64x64xf32>
    %cst_74 = arith.constant 0.353553385 : f32
    %137 = vector.broadcast %cst_74 : f32 to vector<64x64xf32>
    %138 = arith.mulf %136, %137 : vector<64x64xf32>
    %c2 = arith.constant 2 : index
    %c0_75 = arith.constant 0 : index
    %c0_76 = arith.constant 0 : index
    %139 = vector.load %arg6[%c2, %c0_75, %c0_76] : memref<4x64x64xf32, #tpu.memory_space<vmem>>, vector<1x64x64xf32>
    %140 = vector.shape_cast %139 : vector<1x64x64xf32> to vector<64x64xf32>
    %141 = vector.shape_cast %138 : vector<64x64xf32> to vector<1x64x64xf32>
    tpu.vector_store %arg6[%c2, %c0_75, %c0_76], %141 {strides = array<i32>} : memref<4x64x64xf32, #tpu.memory_space<vmem>>, vector<1x64x64xf32>,
    %142 = arith.addf %138, %55 : vector<64x64xf32>
    %cst_77 = arith.constant dense<0xFF800000> : vector<64xf32>
    %143 = vector.multi_reduction <maximumf>, %142, %cst_77 [1] : vector<64x64xf32> to vector<64xf32>
    %144 = vector.shape_cast %143 : vector<64xf32> to vector<64x1xf32>
    %145 = vector.broadcast %144 : vector<64x1xf32> to vector<64x64xf32>
    %146 = arith.subf %142, %145 : vector<64x64xf32>
    %147 = math.exp %146 : vector<64x64xf32>
    %cst_78 = arith.constant dense<0.000000e+00> : vector<64xf32>
    %148 = vector.multi_reduction <add>, %147, %cst_78 [1] : vector<64x64xf32> to vector<64xf32>
    %149 = vector.shape_cast %148 : vector<64xf32> to vector<64x1xf32>
    %150 = tpu.reciprocal %149 : vector<64x1xf32> -> vector<64x1xf32>
    %151 = vector.broadcast %150 : vector<64x1xf32> to vector<64x64xf32>
    %152 = arith.mulf %147, %151 : vector<64x64xf32>
    %c472 = arith.constant 472 : index
    %c0_79 = arith.constant 0 : index
    %153 = vector.load %arg2[%c472, %c0_79] : memref<824x32xf32, #tpu.memory_space<vmem>>, vector<32x32xf32>
    %cst_80 = arith.constant dense<0.000000e+00> : vector<64x32xf32>
    %154 = tpu.matmul %54, %153, %cst_80 {dimension_numbers = #tpu.dot_dimension_numbers<[1], [0], [0], [1], [0, 0, 1, 1], [], []>} : vector<64x32xf32>, vector<32x32xf32>, vector<64x32xf32> -> vector<64x32xf32>
    %cst_81 = arith.constant dense<0.000000e+00> : vector<64x32xf32>
    %155 = tpu.matmul %152, %154, %cst_81 {dimension_numbers = #tpu.dot_dimension_numbers<[1], [0], [0], [1], [0, 0, 1, 1], [], []>} : vector<64x64xf32>, vector<64x32xf32>, vector<64x32xf32> -> vector<64x32xf32>
    %156 = arith.addf %125, %155 : vector<64x32xf32>
    %c304 = arith.constant 304 : index
    %c0_82 = arith.constant 0 : index
    %157 = vector.load %arg2[%c304, %c0_82] : memref<824x32xf32, #tpu.memory_space<vmem>>, vector<8x32xf32>
    %c368 = arith.constant 368 : index
    %c0_83 = arith.constant 0 : index
    %158 = vector.load %arg2[%c368, %c0_83] : memref<824x32xf32, #tpu.memory_space<vmem>>, vector<8x32xf32>
    %c811 = arith.constant 811 : index
    %c0_84 = arith.constant 0 : index
    %159 = vector.load %arg2[%c811, %c0_84] : memref<824x32xf32, #tpu.memory_space<vmem>>, vector<1x8xf32>
    %c815 = arith.constant 815 : index
    %c0_85 = arith.constant 0 : index
    %160 = vector.load %arg2[%c815, %c0_85] : memref<824x32xf32, #tpu.memory_space<vmem>>, vector<1x8xf32>
    %cst_86 = arith.constant dense<0.000000e+00> : vector<64x8xf32>
    %161 = tpu.matmul %54, %157, %cst_86 {dimension_numbers = #tpu.dot_dimension_numbers<[1], [1], [0], [0], [0, 0, 1, 0], [], []>} : vector<64x32xf32>, vector<8x32xf32>, vector<64x8xf32> -> vector<64x8xf32>
    %162 = vector.broadcast %159 : vector<1x8xf32> to vector<64x8xf32>
    %163 = arith.addf %161, %162 : vector<64x8xf32>
    %cst_87 = arith.constant dense<0.000000e+00> : vector<64x8xf32>
    %164 = tpu.matmul %54, %158, %cst_87 {dimension_numbers = #tpu.dot_dimension_numbers<[1], [1], [0], [0], [0, 0, 1, 0], [], []>} : vector<64x32xf32>, vector<8x32xf32>, vector<64x8xf32> -> vector<64x8xf32>
    %165 = vector.broadcast %160 : vector<1x8xf32> to vector<64x8xf32>
    %166 = arith.addf %164, %165 : vector<64x8xf32>
    %cst_88 = arith.constant dense<0.000000e+00> : vector<64x64xf32>
    %167 = tpu.matmul %163, %166, %cst_88 {dimension_numbers = #tpu.dot_dimension_numbers<[1], [1], [0], [0], [0, 0, 1, 0], [], []>} : vector<64x8xf32>, vector<64x8xf32>, vector<64x64xf32> -> vector<64x64xf32>
    %cst_89 = arith.constant 0.353553385 : f32
    %168 = vector.broadcast %cst_89 : f32 to vector<64x64xf32>
    %169 = arith.mulf %167, %168 : vector<64x64xf32>
    %c3 = arith.constant 3 : index
    %c0_90 = arith.constant 0 : index
    %c0_91 = arith.constant 0 : index
    %170 = vector.load %arg6[%c3, %c0_90, %c0_91] : memref<4x64x64xf32, #tpu.memory_space<vmem>>, vector<1x64x64xf32>
    %171 = vector.shape_cast %170 : vector<1x64x64xf32> to vector<64x64xf32>
    %172 = vector.shape_cast %169 : vector<64x64xf32> to vector<1x64x64xf32>
    tpu.vector_store %arg6[%c3, %c0_90, %c0_91], %172 {strides = array<i32>} : memref<4x64x64xf32, #tpu.memory_space<vmem>>, vector<1x64x64xf32>,
    %173 = arith.addf %169, %55 : vector<64x64xf32>
    %cst_92 = arith.constant dense<0xFF800000> : vector<64xf32>
    %174 = vector.multi_reduction <maximumf>, %173, %cst_92 [1] : vector<64x64xf32> to vector<64xf32>
    %175 = vector.shape_cast %174 : vector<64xf32> to vector<64x1xf32>
    %176 = vector.broadcast %175 : vector<64x1xf32> to vector<64x64xf32>
    %177 = arith.subf %173, %176 : vector<64x64xf32>
    %178 = math.exp %177 : vector<64x64xf32>
    %cst_93 = arith.constant dense<0.000000e+00> : vector<64xf32>
    %179 = vector.multi_reduction <add>, %178, %cst_93 [1] : vector<64x64xf32> to vector<64xf32>
    %180 = vector.shape_cast %179 : vector<64xf32> to vector<64x1xf32>
    %181 = tpu.reciprocal %180 : vector<64x1xf32> -> vector<64x1xf32>
    %182 = vector.broadcast %181 : vector<64x1xf32> to vector<64x64xf32>
    %183 = arith.mulf %178, %182 : vector<64x64xf32>
    %c504 = arith.constant 504 : index
    %c0_94 = arith.constant 0 : index
    %184 = vector.load %arg2[%c504, %c0_94] : memref<824x32xf32, #tpu.memory_space<vmem>>, vector<32x32xf32>
    %cst_95 = arith.constant dense<0.000000e+00> : vector<64x32xf32>
    %185 = tpu.matmul %54, %184, %cst_95 {dimension_numbers = #tpu.dot_dimension_numbers<[1], [0], [0], [1], [0, 0, 1, 1], [], []>} : vector<64x32xf32>, vector<32x32xf32>, vector<64x32xf32> -> vector<64x32xf32>
    %cst_96 = arith.constant dense<0.000000e+00> : vector<64x32xf32>
    %186 = tpu.matmul %183, %185, %cst_96 {dimension_numbers = #tpu.dot_dimension_numbers<[1], [0], [0], [1], [0, 0, 1, 1], [], []>} : vector<64x64xf32>, vector<64x32xf32>, vector<64x32xf32> -> vector<64x32xf32>
    %187 = arith.addf %156, %186 : vector<64x32xf32>
    %188 = arith.addf %54, %187 : vector<64x32xf32>
    %189 = vector.broadcast %57 : vector<1x32xf32> to vector<64x32xf32>
    %190 = arith.addf %188, %189 : vector<64x32xf32>
    %191 = vector.extract_strided_slice %190 {offsets = [0, 0], sizes = [56, 32], strides = [1, 1]} : vector<64x32xf32> to vector<56x32xf32>
    %cst_97 = arith.constant dense<0.000000e+00> : vector<32xf32>
    %192 = vector.multi_reduction <add>, %191, %cst_97 [0] : vector<56x32xf32> to vector<32xf32>
    %193 = vector.shape_cast %192 : vector<32xf32> to vector<1x32xf32>
    %cst_98 = arith.constant 0.0178571437 : f32
    %194 = vector.broadcast %cst_98 : f32 to vector<1x32xf32>
    %195 = arith.mulf %193, %194 : vector<1x32xf32>
    %196 = vector.broadcast %195 : vector<1x32xf32> to vector<56x32xf32>
    %197 = arith.subf %191, %196 : vector<56x32xf32>
    %198 = arith.mulf %197, %197 : vector<56x32xf32>
    %cst_99 = arith.constant dense<0.000000e+00> : vector<32xf32>
    %199 = vector.multi_reduction <add>, %198, %cst_99 [0] : vector<56x32xf32> to vector<32xf32>
    %200 = vector.shape_cast %199 : vector<32xf32> to vector<1x32xf32>
    %cst_100 = arith.constant 0.0178571437 : f32
    %201 = vector.broadcast %cst_100 : f32 to vector<1x32xf32>
    %202 = arith.mulf %200, %201 : vector<1x32xf32>
    %cst_101 = arith.constant 9.99999974E-6 : f32
    %203 = vector.broadcast %cst_101 : f32 to vector<1x32xf32>
    %204 = arith.addf %202, %203 : vector<1x32xf32>
    %205 = math.rsqrt %204 : vector<1x32xf32>
    %206 = arith.mulf %205, %58 : vector<1x32xf32>
    %207 = vector.broadcast %206 : vector<1x32xf32> to vector<64x32xf32>
    %208 = arith.mulf %190, %207 : vector<64x32xf32>
    %209 = arith.mulf %195, %206 : vector<1x32xf32>
    %210 = arith.subf %59, %209 : vector<1x32xf32>
    %211 = vector.broadcast %210 : vector<1x32xf32> to vector<64x32xf32>
    %212 = arith.addf %208, %211 : vector<64x32xf32>
    %c64_102 = arith.constant 64 : index
    %c0_103 = arith.constant 0 : index
    %213 = vector.load %arg3[%c64_102, %c0_103] : memref<144x64xf32, #tpu.memory_space<vmem>>, vector<32x64xf32>
    %c128_104 = arith.constant 128 : index
    %c0_105 = arith.constant 0 : index
    %214 = vector.load %arg3[%c128_104, %c0_105] : memref<144x64xf32, #tpu.memory_space<vmem>>, vector<1x64xf32>
    %cst_106 = arith.constant dense<0.000000e+00> : vector<64x64xf32>
    %215 = tpu.matmul %212, %213, %cst_106 {dimension_numbers = #tpu.dot_dimension_numbers<[1], [0], [0], [1], [0, 0, 1, 1], [], []>} : vector<64x32xf32>, vector<32x64xf32>, vector<64x64xf32> -> vector<64x64xf32>
    %216 = vector.broadcast %214 : vector<1x64xf32> to vector<64x64xf32>
    %217 = arith.addf %215, %216 : vector<64x64xf32>
    %cst_107 = arith.constant 5.000000e-01 : f32
    %218 = vector.broadcast %cst_107 : f32 to vector<64x64xf32>
    %219 = arith.mulf %218, %217 : vector<64x64xf32>
    %cst_108 = arith.constant 0.707106769 : f32
    %220 = vector.broadcast %cst_108 : f32 to vector<64x64xf32>
    %221 = arith.mulf %217, %220 : vector<64x64xf32>
    %222 = math.erf %221 : vector<64x64xf32>
    %cst_109 = arith.constant 1.000000e+00 : f32
    %223 = vector.broadcast %cst_109 : f32 to vector<64x64xf32>
    %224 = arith.addf %223, %222 : vector<64x64xf32>
    %225 = arith.mulf %219, %224 : vector<64x64xf32>
    %c664 = arith.constant 664 : index
    %c0_110 = arith.constant 0 : index
    %226 = vector.load %arg2[%c664, %c0_110] : memref<824x32xf32, #tpu.memory_space<vmem>>, vector<64x32xf32>
    %cst_111 = arith.constant dense<0.000000e+00> : vector<64x32xf32>
    %227 = tpu.matmul %225, %226, %cst_111 {dimension_numbers = #tpu.dot_dimension_numbers<[1], [0], [0], [1], [0, 0, 1, 1], [], []>} : vector<64x64xf32>, vector<64x32xf32>, vector<64x32xf32> -> vector<64x32xf32>
    %228 = vector.broadcast %60 : vector<1x32xf32> to vector<64x32xf32>
    %229 = arith.addf %227, %228 : vector<64x32xf32>
    %230 = arith.addf %212, %229 : vector<64x32xf32>
    %231 = vector.extract_strided_slice %230 {offsets = [0, 0], sizes = [56, 32], strides = [1, 1]} : vector<64x32xf32> to vector<56x32xf32>
    %cst_112 = arith.constant dense<0.000000e+00> : vector<32xf32>
    %232 = vector.multi_reduction <add>, %231, %cst_112 [0] : vector<56x32xf32> to vector<32xf32>
    %233 = vector.shape_cast %232 : vector<32xf32> to vector<1x32xf32>
    %cst_113 = arith.constant 0.0178571437 : f32
    %234 = vector.broadcast %cst_113 : f32 to vector<1x32xf32>
    %235 = arith.mulf %233, %234 : vector<1x32xf32>
    %236 = vector.broadcast %235 : vector<1x32xf32> to vector<56x32xf32>
    %237 = arith.subf %231, %236 : vector<56x32xf32>
    %238 = arith.mulf %237, %237 : vector<56x32xf32>
    %cst_114 = arith.constant dense<0.000000e+00> : vector<32xf32>
    %239 = vector.multi_reduction <add>, %238, %cst_114 [0] : vector<56x32xf32> to vector<32xf32>
    %240 = vector.shape_cast %239 : vector<32xf32> to vector<1x32xf32>
    %cst_115 = arith.constant 0.0178571437 : f32
    %241 = vector.broadcast %cst_115 : f32 to vector<1x32xf32>
    %242 = arith.mulf %240, %241 : vector<1x32xf32>
    %cst_116 = arith.constant 9.99999974E-6 : f32
    %243 = vector.broadcast %cst_116 : f32 to vector<1x32xf32>
    %244 = arith.addf %242, %243 : vector<1x32xf32>
    %245 = math.rsqrt %244 : vector<1x32xf32>
    %246 = arith.mulf %245, %61 : vector<1x32xf32>
    %247 = vector.broadcast %246 : vector<1x32xf32> to vector<64x32xf32>
    %248 = arith.mulf %230, %247 : vector<64x32xf32>
    %249 = arith.mulf %235, %246 : vector<1x32xf32>
    %250 = arith.subf %62, %249 : vector<1x32xf32>
    %251 = vector.broadcast %250 : vector<1x32xf32> to vector<64x32xf32>
    %252 = arith.addf %248, %251 : vector<64x32xf32>
    %c800 = arith.constant 800 : index
    %c0_117 = arith.constant 0 : index
    %253 = vector.load %arg2[%c800, %c0_117] : memref<824x32xf32, #tpu.memory_space<vmem>>, vector<8x32xf32>
    %254 = vector.extract_strided_slice %253 {offsets = [0, 0], sizes = [1, 32], strides = [1, 1]} : vector<8x32xf32> to vector<1x32xf32>
    %255 = vector.extract_strided_slice %253 {offsets = [1, 0], sizes = [1, 32], strides = [1, 1]} : vector<8x32xf32> to vector<1x32xf32>
    %256 = vector.extract_strided_slice %253 {offsets = [2, 0], sizes = [1, 32], strides = [1, 1]} : vector<8x32xf32> to vector<1x32xf32>
    %257 = vector.extract_strided_slice %253 {offsets = [3, 0], sizes = [1, 32], strides = [1, 1]} : vector<8x32xf32> to vector<1x32xf32>
    %258 = vector.extract_strided_slice %253 {offsets = [4, 0], sizes = [1, 32], strides = [1, 1]} : vector<8x32xf32> to vector<1x32xf32>
    %259 = vector.extract_strided_slice %253 {offsets = [5, 0], sizes = [1, 32], strides = [1, 1]} : vector<8x32xf32> to vector<1x32xf32>
    %cst_118 = arith.constant 0.000000e+00 : f32
    %260 = vector.broadcast %cst_118 : f32 to vector<64x32xf32>
    %c312 = arith.constant 312 : index
    %c0_119 = arith.constant 0 : index
    %261 = vector.load %arg2[%c312, %c0_119] : memref<824x32xf32, #tpu.memory_space<vmem>>, vector<8x32xf32>
    %c376 = arith.constant 376 : index
    %c0_120 = arith.constant 0 : index
    %262 = vector.load %arg2[%c376, %c0_120] : memref<824x32xf32, #tpu.memory_space<vmem>>, vector<8x32xf32>
    %c816 = arith.constant 816 : index
    %c0_121 = arith.constant 0 : index
    %263 = vector.load %arg2[%c816, %c0_121] : memref<824x32xf32, #tpu.memory_space<vmem>>, vector<1x8xf32>
    %c820 = arith.constant 820 : index
    %c0_122 = arith.constant 0 : index
    %264 = vector.load %arg2[%c820, %c0_122] : memref<824x32xf32, #tpu.memory_space<vmem>>, vector<1x8xf32>
    %cst_123 = arith.constant dense<0.000000e+00> : vector<64x8xf32>
    %265 = tpu.matmul %252, %261, %cst_123 {dimension_numbers = #tpu.dot_dimension_numbers<[1], [1], [0], [0], [0, 0, 1, 0], [], []>} : vector<64x32xf32>, vector<8x32xf32>, vector<64x8xf32> -> vector<64x8xf32>
    %266 = vector.broadcast %263 : vector<1x8xf32> to vector<64x8xf32>
    %267 = arith.addf %265, %266 : vector<64x8xf32>
    %cst_124 = arith.constant dense<0.000000e+00> : vector<64x8xf32>
    %268 = tpu.matmul %252, %262, %cst_124 {dimension_numbers = #tpu.dot_dimension_numbers<[1], [1], [0], [0], [0, 0, 1, 0], [], []>} : vector<64x32xf32>, vector<8x32xf32>, vector<64x8xf32> -> vector<64x8xf32>
    %269 = vector.broadcast %264 : vector<1x8xf32> to vector<64x8xf32>
    %270 = arith.addf %268, %269 : vector<64x8xf32>
    %cst_125 = arith.constant dense<0.000000e+00> : vector<64x64xf32>
    %271 = tpu.matmul %267, %270, %cst_125 {dimension_numbers = #tpu.dot_dimension_numbers<[1], [1], [0], [0], [0, 0, 1, 0], [], []>} : vector<64x8xf32>, vector<64x8xf32>, vector<64x64xf32> -> vector<64x64xf32>
    %cst_126 = arith.constant 0.353553385 : f32
    %272 = vector.broadcast %cst_126 : f32 to vector<64x64xf32>
    %273 = arith.mulf %271, %272 : vector<64x64xf32>
    %c0_127 = arith.constant 0 : index
    %c0_128 = arith.constant 0 : index
    %c0_129 = arith.constant 0 : index
    %274 = vector.load %arg6[%c0_127, %c0_128, %c0_129] : memref<4x64x64xf32, #tpu.memory_space<vmem>>, vector<1x64x64xf32>
    %275 = vector.shape_cast %274 : vector<1x64x64xf32> to vector<64x64xf32>
    %276 = arith.addf %273, %275 : vector<64x64xf32>
    %277 = arith.addf %276, %55 : vector<64x64xf32>
    %cst_130 = arith.constant dense<0xFF800000> : vector<64xf32>
    %278 = vector.multi_reduction <maximumf>, %277, %cst_130 [1] : vector<64x64xf32> to vector<64xf32>
    %279 = vector.shape_cast %278 : vector<64xf32> to vector<64x1xf32>
    %280 = vector.broadcast %279 : vector<64x1xf32> to vector<64x64xf32>
    %281 = arith.subf %277, %280 : vector<64x64xf32>
    %282 = math.exp %281 : vector<64x64xf32>
    %cst_131 = arith.constant dense<0.000000e+00> : vector<64xf32>
    %283 = vector.multi_reduction <add>, %282, %cst_131 [1] : vector<64x64xf32> to vector<64xf32>
    %284 = vector.shape_cast %283 : vector<64xf32> to vector<64x1xf32>
    %285 = tpu.reciprocal %284 : vector<64x1xf32> -> vector<64x1xf32>
    %286 = vector.broadcast %285 : vector<64x1xf32> to vector<64x64xf32>
    %287 = arith.mulf %282, %286 : vector<64x64xf32>
    %c536 = arith.constant 536 : index
    %c0_132 = arith.constant 0 : index
    %288 = vector.load %arg2[%c536, %c0_132] : memref<824x32xf32, #tpu.memory_space<vmem>>, vector<32x32xf32>
    %cst_133 = arith.constant dense<0.000000e+00> : vector<64x32xf32>
    %289 = tpu.matmul %252, %288, %cst_133 {dimension_numbers = #tpu.dot_dimension_numbers<[1], [0], [0], [1], [0, 0, 1, 1], [], []>} : vector<64x32xf32>, vector<32x32xf32>, vector<64x32xf32> -> vector<64x32xf32>
    %cst_134 = arith.constant dense<0.000000e+00> : vector<64x32xf32>
    %290 = tpu.matmul %287, %289, %cst_134 {dimension_numbers = #tpu.dot_dimension_numbers<[1], [0], [0], [1], [0, 0, 1, 1], [], []>} : vector<64x64xf32>, vector<64x32xf32>, vector<64x32xf32> -> vector<64x32xf32>
    %291 = arith.addf %260, %290 : vector<64x32xf32>
    %c320 = arith.constant 320 : index
    %c0_135 = arith.constant 0 : index
    %292 = vector.load %arg2[%c320, %c0_135] : memref<824x32xf32, #tpu.memory_space<vmem>>, vector<8x32xf32>
    %c384 = arith.constant 384 : index
    %c0_136 = arith.constant 0 : index
    %293 = vector.load %arg2[%c384, %c0_136] : memref<824x32xf32, #tpu.memory_space<vmem>>, vector<8x32xf32>
    %c817 = arith.constant 817 : index
    %c0_137 = arith.constant 0 : index
    %294 = vector.load %arg2[%c817, %c0_137] : memref<824x32xf32, #tpu.memory_space<vmem>>, vector<1x8xf32>
    %c821 = arith.constant 821 : index
    %c0_138 = arith.constant 0 : index
    %295 = vector.load %arg2[%c821, %c0_138] : memref<824x32xf32, #tpu.memory_space<vmem>>, vector<1x8xf32>
    %cst_139 = arith.constant dense<0.000000e+00> : vector<64x8xf32>
    %296 = tpu.matmul %252, %292, %cst_139 {dimension_numbers = #tpu.dot_dimension_numbers<[1], [1], [0], [0], [0, 0, 1, 0], [], []>} : vector<64x32xf32>, vector<8x32xf32>, vector<64x8xf32> -> vector<64x8xf32>
    %297 = vector.broadcast %294 : vector<1x8xf32> to vector<64x8xf32>
    %298 = arith.addf %296, %297 : vector<64x8xf32>
    %cst_140 = arith.constant dense<0.000000e+00> : vector<64x8xf32>
    %299 = tpu.matmul %252, %293, %cst_140 {dimension_numbers = #tpu.dot_dimension_numbers<[1], [1], [0], [0], [0, 0, 1, 0], [], []>} : vector<64x32xf32>, vector<8x32xf32>, vector<64x8xf32> -> vector<64x8xf32>
    %300 = vector.broadcast %295 : vector<1x8xf32> to vector<64x8xf32>
    %301 = arith.addf %299, %300 : vector<64x8xf32>
    %cst_141 = arith.constant dense<0.000000e+00> : vector<64x64xf32>
    %302 = tpu.matmul %298, %301, %cst_141 {dimension_numbers = #tpu.dot_dimension_numbers<[1], [1], [0], [0], [0, 0, 1, 0], [], []>} : vector<64x8xf32>, vector<64x8xf32>, vector<64x64xf32> -> vector<64x64xf32>
    %cst_142 = arith.constant 0.353553385 : f32
    %303 = vector.broadcast %cst_142 : f32 to vector<64x64xf32>
    %304 = arith.mulf %302, %303 : vector<64x64xf32>
    %c1_143 = arith.constant 1 : index
    %c0_144 = arith.constant 0 : index
    %c0_145 = arith.constant 0 : index
    %305 = vector.load %arg6[%c1_143, %c0_144, %c0_145] : memref<4x64x64xf32, #tpu.memory_space<vmem>>, vector<1x64x64xf32>
    %306 = vector.shape_cast %305 : vector<1x64x64xf32> to vector<64x64xf32>
    %307 = arith.addf %304, %306 : vector<64x64xf32>
    %308 = arith.addf %307, %55 : vector<64x64xf32>
    %cst_146 = arith.constant dense<0xFF800000> : vector<64xf32>
    %309 = vector.multi_reduction <maximumf>, %308, %cst_146 [1] : vector<64x64xf32> to vector<64xf32>
    %310 = vector.shape_cast %309 : vector<64xf32> to vector<64x1xf32>
    %311 = vector.broadcast %310 : vector<64x1xf32> to vector<64x64xf32>
    %312 = arith.subf %308, %311 : vector<64x64xf32>
    %313 = math.exp %312 : vector<64x64xf32>
    %cst_147 = arith.constant dense<0.000000e+00> : vector<64xf32>
    %314 = vector.multi_reduction <add>, %313, %cst_147 [1] : vector<64x64xf32> to vector<64xf32>
    %315 = vector.shape_cast %314 : vector<64xf32> to vector<64x1xf32>
    %316 = tpu.reciprocal %315 : vector<64x1xf32> -> vector<64x1xf32>
    %317 = vector.broadcast %316 : vector<64x1xf32> to vector<64x64xf32>
    %318 = arith.mulf %313, %317 : vector<64x64xf32>
    %c568 = arith.constant 568 : index
    %c0_148 = arith.constant 0 : index
    %319 = vector.load %arg2[%c568, %c0_148] : memref<824x32xf32, #tpu.memory_space<vmem>>, vector<32x32xf32>
    %cst_149 = arith.constant dense<0.000000e+00> : vector<64x32xf32>
    %320 = tpu.matmul %252, %319, %cst_149 {dimension_numbers = #tpu.dot_dimension_numbers<[1], [0], [0], [1], [0, 0, 1, 1], [], []>} : vector<64x32xf32>, vector<32x32xf32>, vector<64x32xf32> -> vector<64x32xf32>
    %cst_150 = arith.constant dense<0.000000e+00> : vector<64x32xf32>
    %321 = tpu.matmul %318, %320, %cst_150 {dimension_numbers = #tpu.dot_dimension_numbers<[1], [0], [0], [1], [0, 0, 1, 1], [], []>} : vector<64x64xf32>, vector<64x32xf32>, vector<64x32xf32> -> vector<64x32xf32>
    %322 = arith.addf %291, %321 : vector<64x32xf32>
    %c328 = arith.constant 328 : index
    %c0_151 = arith.constant 0 : index
    %323 = vector.load %arg2[%c328, %c0_151] : memref<824x32xf32, #tpu.memory_space<vmem>>, vector<8x32xf32>
    %c392 = arith.constant 392 : index
    %c0_152 = arith.constant 0 : index
    %324 = vector.load %arg2[%c392, %c0_152] : memref<824x32xf32, #tpu.memory_space<vmem>>, vector<8x32xf32>
    %c818 = arith.constant 818 : index
    %c0_153 = arith.constant 0 : index
    %325 = vector.load %arg2[%c818, %c0_153] : memref<824x32xf32, #tpu.memory_space<vmem>>, vector<1x8xf32>
    %c822 = arith.constant 822 : index
    %c0_154 = arith.constant 0 : index
    %326 = vector.load %arg2[%c822, %c0_154] : memref<824x32xf32, #tpu.memory_space<vmem>>, vector<1x8xf32>
    %cst_155 = arith.constant dense<0.000000e+00> : vector<64x8xf32>
    %327 = tpu.matmul %252, %323, %cst_155 {dimension_numbers = #tpu.dot_dimension_numbers<[1], [1], [0], [0], [0, 0, 1, 0], [], []>} : vector<64x32xf32>, vector<8x32xf32>, vector<64x8xf32> -> vector<64x8xf32>
    %328 = vector.broadcast %325 : vector<1x8xf32> to vector<64x8xf32>
    %329 = arith.addf %327, %328 : vector<64x8xf32>
    %cst_156 = arith.constant dense<0.000000e+00> : vector<64x8xf32>
    %330 = tpu.matmul %252, %324, %cst_156 {dimension_numbers = #tpu.dot_dimension_numbers<[1], [1], [0], [0], [0, 0, 1, 0], [], []>} : vector<64x32xf32>, vector<8x32xf32>, vector<64x8xf32> -> vector<64x8xf32>
    %331 = vector.broadcast %326 : vector<1x8xf32> to vector<64x8xf32>
    %332 = arith.addf %330, %331 : vector<64x8xf32>
    %cst_157 = arith.constant dense<0.000000e+00> : vector<64x64xf32>
    %333 = tpu.matmul %329, %332, %cst_157 {dimension_numbers = #tpu.dot_dimension_numbers<[1], [1], [0], [0], [0, 0, 1, 0], [], []>} : vector<64x8xf32>, vector<64x8xf32>, vector<64x64xf32> -> vector<64x64xf32>
    %cst_158 = arith.constant 0.353553385 : f32
    %334 = vector.broadcast %cst_158 : f32 to vector<64x64xf32>
    %335 = arith.mulf %333, %334 : vector<64x64xf32>
    %c2_159 = arith.constant 2 : index
    %c0_160 = arith.constant 0 : index
    %c0_161 = arith.constant 0 : index
    %336 = vector.load %arg6[%c2_159, %c0_160, %c0_161] : memref<4x64x64xf32, #tpu.memory_space<vmem>>, vector<1x64x64xf32>
    %337 = vector.shape_cast %336 : vector<1x64x64xf32> to vector<64x64xf32>
    %338 = arith.addf %335, %337 : vector<64x64xf32>
    %339 = arith.addf %338, %55 : vector<64x64xf32>
    %cst_162 = arith.constant dense<0xFF800000> : vector<64xf32>
    %340 = vector.multi_reduction <maximumf>, %339, %cst_162 [1] : vector<64x64xf32> to vector<64xf32>
    %341 = vector.shape_cast %340 : vector<64xf32> to vector<64x1xf32>
    %342 = vector.broadcast %341 : vector<64x1xf32> to vector<64x64xf32>
    %343 = arith.subf %339, %342 : vector<64x64xf32>
    %344 = math.exp %343 : vector<64x64xf32>
    %cst_163 = arith.constant dense<0.000000e+00> : vector<64xf32>
    %345 = vector.multi_reduction <add>, %344, %cst_163 [1] : vector<64x64xf32> to vector<64xf32>
    %346 = vector.shape_cast %345 : vector<64xf32> to vector<64x1xf32>
    %347 = tpu.reciprocal %346 : vector<64x1xf32> -> vector<64x1xf32>
    %348 = vector.broadcast %347 : vector<64x1xf32> to vector<64x64xf32>
    %349 = arith.mulf %344, %348 : vector<64x64xf32>
    %c600 = arith.constant 600 : index
    %c0_164 = arith.constant 0 : index
    %350 = vector.load %arg2[%c600, %c0_164] : memref<824x32xf32, #tpu.memory_space<vmem>>, vector<32x32xf32>
    %cst_165 = arith.constant dense<0.000000e+00> : vector<64x32xf32>
    %351 = tpu.matmul %252, %350, %cst_165 {dimension_numbers = #tpu.dot_dimension_numbers<[1], [0], [0], [1], [0, 0, 1, 1], [], []>} : vector<64x32xf32>, vector<32x32xf32>, vector<64x32xf32> -> vector<64x32xf32>
    %cst_166 = arith.constant dense<0.000000e+00> : vector<64x32xf32>
    %352 = tpu.matmul %349, %351, %cst_166 {dimension_numbers = #tpu.dot_dimension_numbers<[1], [0], [0], [1], [0, 0, 1, 1], [], []>} : vector<64x64xf32>, vector<64x32xf32>, vector<64x32xf32> -> vector<64x32xf32>
    %353 = arith.addf %322, %352 : vector<64x32xf32>
    %c336 = arith.constant 336 : index
    %c0_167 = arith.constant 0 : index
    %354 = vector.load %arg2[%c336, %c0_167] : memref<824x32xf32, #tpu.memory_space<vmem>>, vector<8x32xf32>
    %c400 = arith.constant 400 : index
    %c0_168 = arith.constant 0 : index
    %355 = vector.load %arg2[%c400, %c0_168] : memref<824x32xf32, #tpu.memory_space<vmem>>, vector<8x32xf32>
    %c819 = arith.constant 819 : index
    %c0_169 = arith.constant 0 : index
    %356 = vector.load %arg2[%c819, %c0_169] : memref<824x32xf32, #tpu.memory_space<vmem>>, vector<1x8xf32>
    %c823 = arith.constant 823 : index
    %c0_170 = arith.constant 0 : index
    %357 = vector.load %arg2[%c823, %c0_170] : memref<824x32xf32, #tpu.memory_space<vmem>>, vector<1x8xf32>
    %cst_171 = arith.constant dense<0.000000e+00> : vector<64x8xf32>
    %358 = tpu.matmul %252, %354, %cst_171 {dimension_numbers = #tpu.dot_dimension_numbers<[1], [1], [0], [0], [0, 0, 1, 0], [], []>} : vector<64x32xf32>, vector<8x32xf32>, vector<64x8xf32> -> vector<64x8xf32>
    %359 = vector.broadcast %356 : vector<1x8xf32> to vector<64x8xf32>
    %360 = arith.addf %358, %359 : vector<64x8xf32>
    %cst_172 = arith.constant dense<0.000000e+00> : vector<64x8xf32>
    %361 = tpu.matmul %252, %355, %cst_172 {dimension_numbers = #tpu.dot_dimension_numbers<[1], [1], [0], [0], [0, 0, 1, 0], [], []>} : vector<64x32xf32>, vector<8x32xf32>, vector<64x8xf32> -> vector<64x8xf32>
    %362 = vector.broadcast %357 : vector<1x8xf32> to vector<64x8xf32>
    %363 = arith.addf %361, %362 : vector<64x8xf32>
    %cst_173 = arith.constant dense<0.000000e+00> : vector<64x64xf32>
    %364 = tpu.matmul %360, %363, %cst_173 {dimension_numbers = #tpu.dot_dimension_numbers<[1], [1], [0], [0], [0, 0, 1, 0], [], []>} : vector<64x8xf32>, vector<64x8xf32>, vector<64x64xf32> -> vector<64x64xf32>
    %cst_174 = arith.constant 0.353553385 : f32
    %365 = vector.broadcast %cst_174 : f32 to vector<64x64xf32>
    %366 = arith.mulf %364, %365 : vector<64x64xf32>
    %c3_175 = arith.constant 3 : index
    %c0_176 = arith.constant 0 : index
    %c0_177 = arith.constant 0 : index
    %367 = vector.load %arg6[%c3_175, %c0_176, %c0_177] : memref<4x64x64xf32, #tpu.memory_space<vmem>>, vector<1x64x64xf32>
    %368 = vector.shape_cast %367 : vector<1x64x64xf32> to vector<64x64xf32>
    %369 = arith.addf %366, %368 : vector<64x64xf32>
    %370 = arith.addf %369, %55 : vector<64x64xf32>
    %cst_178 = arith.constant dense<0xFF800000> : vector<64xf32>
    %371 = vector.multi_reduction <maximumf>, %370, %cst_178 [1] : vector<64x64xf32> to vector<64xf32>
    %372 = vector.shape_cast %371 : vector<64xf32> to vector<64x1xf32>
    %373 = vector.broadcast %372 : vector<64x1xf32> to vector<64x64xf32>
    %374 = arith.subf %370, %373 : vector<64x64xf32>
    %375 = math.exp %374 : vector<64x64xf32>
    %cst_179 = arith.constant dense<0.000000e+00> : vector<64xf32>
    %376 = vector.multi_reduction <add>, %375, %cst_179 [1] : vector<64x64xf32> to vector<64xf32>
    %377 = vector.shape_cast %376 : vector<64xf32> to vector<64x1xf32>
    %378 = tpu.reciprocal %377 : vector<64x1xf32> -> vector<64x1xf32>
    %379 = vector.broadcast %378 : vector<64x1xf32> to vector<64x64xf32>
    %380 = arith.mulf %375, %379 : vector<64x64xf32>
    %c632 = arith.constant 632 : index
    %c0_180 = arith.constant 0 : index
    %381 = vector.load %arg2[%c632, %c0_180] : memref<824x32xf32, #tpu.memory_space<vmem>>, vector<32x32xf32>
    %cst_181 = arith.constant dense<0.000000e+00> : vector<64x32xf32>
    %382 = tpu.matmul %252, %381, %cst_181 {dimension_numbers = #tpu.dot_dimension_numbers<[1], [0], [0], [1], [0, 0, 1, 1], [], []>} : vector<64x32xf32>, vector<32x32xf32>, vector<64x32xf32> -> vector<64x32xf32>
    %cst_182 = arith.constant dense<0.000000e+00> : vector<64x32xf32>
    %383 = tpu.matmul %380, %382, %cst_182 {dimension_numbers = #tpu.dot_dimension_numbers<[1], [0], [0], [1], [0, 0, 1, 1], [], []>} : vector<64x64xf32>, vector<64x32xf32>, vector<64x32xf32> -> vector<64x32xf32>
    %384 = arith.addf %353, %383 : vector<64x32xf32>
    %385 = arith.addf %252, %384 : vector<64x32xf32>
    %386 = vector.broadcast %254 : vector<1x32xf32> to vector<64x32xf32>
    %387 = arith.addf %385, %386 : vector<64x32xf32>
    %388 = vector.extract_strided_slice %387 {offsets = [0, 0], sizes = [56, 32], strides = [1, 1]} : vector<64x32xf32> to vector<56x32xf32>
    %cst_183 = arith.constant dense<0.000000e+00> : vector<32xf32>
    %389 = vector.multi_reduction <add>, %388, %cst_183 [0] : vector<56x32xf32> to vector<32xf32>
    %390 = vector.shape_cast %389 : vector<32xf32> to vector<1x32xf32>
    %cst_184 = arith.constant 0.0178571437 : f32
    %391 = vector.broadcast %cst_184 : f32 to vector<1x32xf32>
    %392 = arith.mulf %390, %391 : vector<1x32xf32>
    %393 = vector.broadcast %392 : vector<1x32xf32> to vector<56x32xf32>
    %394 = arith.subf %388, %393 : vector<56x32xf32>
    %395 = arith.mulf %394, %394 : vector<56x32xf32>
    %cst_185 = arith.constant dense<0.000000e+00> : vector<32xf32>
    %396 = vector.multi_reduction <add>, %395, %cst_185 [0] : vector<56x32xf32> to vector<32xf32>
    %397 = vector.shape_cast %396 : vector<32xf32> to vector<1x32xf32>
    %cst_186 = arith.constant 0.0178571437 : f32
    %398 = vector.broadcast %cst_186 : f32 to vector<1x32xf32>
    %399 = arith.mulf %397, %398 : vector<1x32xf32>
    %cst_187 = arith.constant 9.99999974E-6 : f32
    %400 = vector.broadcast %cst_187 : f32 to vector<1x32xf32>
    %401 = arith.addf %399, %400 : vector<1x32xf32>
    %402 = math.rsqrt %401 : vector<1x32xf32>
    %403 = arith.mulf %402, %255 : vector<1x32xf32>
    %404 = vector.broadcast %403 : vector<1x32xf32> to vector<64x32xf32>
    %405 = arith.mulf %387, %404 : vector<64x32xf32>
    %406 = arith.mulf %392, %403 : vector<1x32xf32>
    %407 = arith.subf %256, %406 : vector<1x32xf32>
    %408 = vector.broadcast %407 : vector<1x32xf32> to vector<64x32xf32>
    %409 = arith.addf %405, %408 : vector<64x32xf32>
    %c96_188 = arith.constant 96 : index
    %c0_189 = arith.constant 0 : index
    %410 = vector.load %arg3[%c96_188, %c0_189] : memref<144x64xf32, #tpu.memory_space<vmem>>, vector<32x64xf32>
    %c136 = arith.constant 136 : index
    %c0_190 = arith.constant 0 : index
    %411 = vector.load %arg3[%c136, %c0_190] : memref<144x64xf32, #tpu.memory_space<vmem>>, vector<1x64xf32>
    %cst_191 = arith.constant dense<0.000000e+00> : vector<64x64xf32>
    %412 = tpu.matmul %409, %410, %cst_191 {dimension_numbers = #tpu.dot_dimension_numbers<[1], [0], [0], [1], [0, 0, 1, 1], [], []>} : vector<64x32xf32>, vector<32x64xf32>, vector<64x64xf32> -> vector<64x64xf32>
    %413 = vector.broadcast %411 : vector<1x64xf32> to vector<64x64xf32>
    %414 = arith.addf %412, %413 : vector<64x64xf32>
    %cst_192 = arith.constant 5.000000e-01 : f32
    %415 = vector.broadcast %cst_192 : f32 to vector<64x64xf32>
    %416 = arith.mulf %415, %414 : vector<64x64xf32>
    %cst_193 = arith.constant 0.707106769 : f32
    %417 = vector.broadcast %cst_193 : f32 to vector<64x64xf32>
    %418 = arith.mulf %414, %417 : vector<64x64xf32>
    %419 = math.erf %418 : vector<64x64xf32>
    %cst_194 = arith.constant 1.000000e+00 : f32
    %420 = vector.broadcast %cst_194 : f32 to vector<64x64xf32>
    %421 = arith.addf %420, %419 : vector<64x64xf32>
    %422 = arith.mulf %416, %421 : vector<64x64xf32>
    %c728 = arith.constant 728 : index
    %c0_195 = arith.constant 0 : index
    %423 = vector.load %arg2[%c728, %c0_195] : memref<824x32xf32, #tpu.memory_space<vmem>>, vector<64x32xf32>
    %cst_196 = arith.constant dense<0.000000e+00> : vector<64x32xf32>
    %424 = tpu.matmul %422, %423, %cst_196 {dimension_numbers = #tpu.dot_dimension_numbers<[1], [0], [0], [1], [0, 0, 1, 1], [], []>} : vector<64x64xf32>, vector<64x32xf32>, vector<64x32xf32> -> vector<64x32xf32>
    %425 = vector.broadcast %257 : vector<1x32xf32> to vector<64x32xf32>
    %426 = arith.addf %424, %425 : vector<64x32xf32>
    %427 = arith.addf %409, %426 : vector<64x32xf32>
    %428 = vector.extract_strided_slice %427 {offsets = [0, 0], sizes = [56, 32], strides = [1, 1]} : vector<64x32xf32> to vector<56x32xf32>
    %cst_197 = arith.constant dense<0.000000e+00> : vector<32xf32>
    %429 = vector.multi_reduction <add>, %428, %cst_197 [0] : vector<56x32xf32> to vector<32xf32>
    %430 = vector.shape_cast %429 : vector<32xf32> to vector<1x32xf32>
    %cst_198 = arith.constant 0.0178571437 : f32
    %431 = vector.broadcast %cst_198 : f32 to vector<1x32xf32>
    %432 = arith.mulf %430, %431 : vector<1x32xf32>
    %433 = vector.broadcast %432 : vector<1x32xf32> to vector<56x32xf32>
    %434 = arith.subf %428, %433 : vector<56x32xf32>
    %435 = arith.mulf %434, %434 : vector<56x32xf32>
    %cst_199 = arith.constant dense<0.000000e+00> : vector<32xf32>
    %436 = vector.multi_reduction <add>, %435, %cst_199 [0] : vector<56x32xf32> to vector<32xf32>
    %437 = vector.shape_cast %436 : vector<32xf32> to vector<1x32xf32>
    %cst_200 = arith.constant 0.0178571437 : f32
    %438 = vector.broadcast %cst_200 : f32 to vector<1x32xf32>
    %439 = arith.mulf %437, %438 : vector<1x32xf32>
    %cst_201 = arith.constant 9.99999974E-6 : f32
    %440 = vector.broadcast %cst_201 : f32 to vector<1x32xf32>
    %441 = arith.addf %439, %440 : vector<1x32xf32>
    %442 = math.rsqrt %441 : vector<1x32xf32>
    %443 = arith.mulf %442, %258 : vector<1x32xf32>
    %444 = vector.broadcast %443 : vector<1x32xf32> to vector<64x32xf32>
    %445 = arith.mulf %427, %444 : vector<64x32xf32>
    %446 = arith.mulf %432, %443 : vector<1x32xf32>
    %447 = arith.subf %259, %446 : vector<1x32xf32>
    %448 = vector.broadcast %447 : vector<1x32xf32> to vector<64x32xf32>
    %449 = arith.addf %445, %448 : vector<64x32xf32>
    %c224_202 = arith.constant 224 : index
    %c0_203 = arith.constant 0 : index
    %450 = vector.load %arg4[%c224_202, %c0_203] : memref<248x128xf32, #tpu.memory_space<vmem>>, vector<1x128xf32>
    %451 = vector.extract_strided_slice %449 {offsets = [0, 0], sizes = [8, 32], strides = [1, 1]} : vector<64x32xf32> to vector<8x32xf32>
    %c0_204 = arith.constant 0 : index
    %c0_205 = arith.constant 0 : index
    %452 = vector.load %arg4[%c0_204, %c0_205] : memref<248x128xf32, #tpu.memory_space<vmem>>, vector<32x128xf32>
    %cst_206 = arith.constant dense<0.000000e+00> : vector<8x128xf32>
    %453 = tpu.matmul %451, %452, %cst_206 {dimension_numbers = #tpu.dot_dimension_numbers<[1], [0], [0], [1], [0, 0, 1, 1], [], []>} : vector<8x32xf32>, vector<32x128xf32>, vector<8x128xf32> -> vector<8x128xf32>
    %454 = vector.broadcast %450 : vector<1x128xf32> to vector<8x128xf32>
    %455 = arith.addf %454, %453 : vector<8x128xf32>
    %456 = vector.extract_strided_slice %449 {offsets = [8, 0], sizes = [8, 32], strides = [1, 1]} : vector<64x32xf32> to vector<8x32xf32>
    %c32_207 = arith.constant 32 : index
    %c0_208 = arith.constant 0 : index
    %457 = vector.load %arg4[%c32_207, %c0_208] : memref<248x128xf32, #tpu.memory_space<vmem>>, vector<32x128xf32>
    %cst_209 = arith.constant dense<0.000000e+00> : vector<8x128xf32>
    %458 = tpu.matmul %456, %457, %cst_209 {dimension_numbers = #tpu.dot_dimension_numbers<[1], [0], [0], [1], [0, 0, 1, 1], [], []>} : vector<8x32xf32>, vector<32x128xf32>, vector<8x128xf32> -> vector<8x128xf32>
    %459 = arith.addf %455, %458 : vector<8x128xf32>
    %460 = vector.extract_strided_slice %449 {offsets = [16, 0], sizes = [8, 32], strides = [1, 1]} : vector<64x32xf32> to vector<8x32xf32>
    %c64_210 = arith.constant 64 : index
    %c0_211 = arith.constant 0 : index
    %461 = vector.load %arg4[%c64_210, %c0_211] : memref<248x128xf32, #tpu.memory_space<vmem>>, vector<32x128xf32>
    %cst_212 = arith.constant dense<0.000000e+00> : vector<8x128xf32>
    %462 = tpu.matmul %460, %461, %cst_212 {dimension_numbers = #tpu.dot_dimension_numbers<[1], [0], [0], [1], [0, 0, 1, 1], [], []>} : vector<8x32xf32>, vector<32x128xf32>, vector<8x128xf32> -> vector<8x128xf32>
    %463 = arith.addf %459, %462 : vector<8x128xf32>
    %464 = vector.extract_strided_slice %449 {offsets = [24, 0], sizes = [8, 32], strides = [1, 1]} : vector<64x32xf32> to vector<8x32xf32>
    %c96_213 = arith.constant 96 : index
    %c0_214 = arith.constant 0 : index
    %465 = vector.load %arg4[%c96_213, %c0_214] : memref<248x128xf32, #tpu.memory_space<vmem>>, vector<32x128xf32>
    %cst_215 = arith.constant dense<0.000000e+00> : vector<8x128xf32>
    %466 = tpu.matmul %464, %465, %cst_215 {dimension_numbers = #tpu.dot_dimension_numbers<[1], [0], [0], [1], [0, 0, 1, 1], [], []>} : vector<8x32xf32>, vector<32x128xf32>, vector<8x128xf32> -> vector<8x128xf32>
    %467 = arith.addf %463, %466 : vector<8x128xf32>
    %468 = vector.extract_strided_slice %449 {offsets = [32, 0], sizes = [8, 32], strides = [1, 1]} : vector<64x32xf32> to vector<8x32xf32>
    %c128_216 = arith.constant 128 : index
    %c0_217 = arith.constant 0 : index
    %469 = vector.load %arg4[%c128_216, %c0_217] : memref<248x128xf32, #tpu.memory_space<vmem>>, vector<32x128xf32>
    %cst_218 = arith.constant dense<0.000000e+00> : vector<8x128xf32>
    %470 = tpu.matmul %468, %469, %cst_218 {dimension_numbers = #tpu.dot_dimension_numbers<[1], [0], [0], [1], [0, 0, 1, 1], [], []>} : vector<8x32xf32>, vector<32x128xf32>, vector<8x128xf32> -> vector<8x128xf32>
    %471 = arith.addf %467, %470 : vector<8x128xf32>
    %472 = vector.extract_strided_slice %449 {offsets = [40, 0], sizes = [8, 32], strides = [1, 1]} : vector<64x32xf32> to vector<8x32xf32>
    %c160_219 = arith.constant 160 : index
    %c0_220 = arith.constant 0 : index
    %473 = vector.load %arg4[%c160_219, %c0_220] : memref<248x128xf32, #tpu.memory_space<vmem>>, vector<32x128xf32>
    %cst_221 = arith.constant dense<0.000000e+00> : vector<8x128xf32>
    %474 = tpu.matmul %472, %473, %cst_221 {dimension_numbers = #tpu.dot_dimension_numbers<[1], [0], [0], [1], [0, 0, 1, 1], [], []>} : vector<8x32xf32>, vector<32x128xf32>, vector<8x128xf32> -> vector<8x128xf32>
    %475 = arith.addf %471, %474 : vector<8x128xf32>
    %476 = vector.extract_strided_slice %449 {offsets = [48, 0], sizes = [8, 32], strides = [1, 1]} : vector<64x32xf32> to vector<8x32xf32>
    %c192_222 = arith.constant 192 : index
    %c0_223 = arith.constant 0 : index
    %477 = vector.load %arg4[%c192_222, %c0_223] : memref<248x128xf32, #tpu.memory_space<vmem>>, vector<32x128xf32>
    %cst_224 = arith.constant dense<0.000000e+00> : vector<8x128xf32>
    %478 = tpu.matmul %476, %477, %cst_224 {dimension_numbers = #tpu.dot_dimension_numbers<[1], [0], [0], [1], [0, 0, 1, 1], [], []>} : vector<8x32xf32>, vector<32x128xf32>, vector<8x128xf32> -> vector<8x128xf32>
    %479 = arith.addf %475, %478 : vector<8x128xf32>
    %480 = arith.subf %479, %16 : vector<8x128xf32>
    %cst_225 = arith.constant 1.000000e-10 : f32
    %481 = vector.broadcast %cst_225 : f32 to vector<8x128xf32>
    %482 = arith.addf %15, %481 : vector<8x128xf32>
    %483 = arith.divf %480, %482 : vector<8x128xf32>
    %484 = vector.broadcast %14 : vector<8x1xf32> to vector<8x128xf32>
    %485 = arith.mulf %483, %484 : vector<8x128xf32>
    %486 = vector.broadcast %4 : vector<8x1xf32> to vector<8x128xf32>
    %487 = arith.addf %485, %486 : vector<8x128xf32>
    %c0_226 = arith.constant 0 : index
    %c0_227 = arith.constant 0 : index
    %488 = vector.load %arg5[%c0_226, %c0_227] : memref<8x128xf32, #tpu.memory_space<vmem>>, vector<8x128xf32>
    tpu.vector_store %arg5[%c0_226, %c0_227], %487 {strides = array<i32>} : memref<8x128xf32, #tpu.memory_space<vmem>>, vector<8x128xf32>,
    return
  }
  func.func @transform_0(%arg0: i32) -> (i32, i32) {
    %c0_i32 = arith.constant 0 : i32
    %c0_i32_0 = arith.constant 0 : i32
    %c0_i32_1 = arith.constant 0 : i32
    return %c0_i32, %c0_i32_0 : i32, i32
  }
  func.func @transform_1(%arg0: i32) -> (i32, i32) {
    %c0_i32 = arith.constant 0 : i32
    %c0_i32_0 = arith.constant 0 : i32
    %c0_i32_1 = arith.constant 0 : i32
    return %c0_i32, %c0_i32_0 : i32, i32
  }
  func.func @transform_2(%arg0: i32) -> (i32, i32) {
    %c0_i32 = arith.constant 0 : i32
    %c0_i32_0 = arith.constant 0 : i32
    %c0_i32_1 = arith.constant 0 : i32
    return %c0_i32, %c0_i32_0 : i32, i32
  }
  func.func @transform_3(%arg0: i32) -> (i32, i32) {
    %c0_i32 = arith.constant 0 : i32
    %c0_i32_0 = arith.constant 0 : i32
    %c0_i32_1 = arith.constant 0 : i32
    return %c0_i32, %c0_i32_0 : i32, i32
  }
  func.func @transform_4(%arg0: i32) -> (i32, i32) {
    %c0_i32 = arith.constant 0 : i32
    %c0_i32_0 = arith.constant 0 : i32
    %c0_i32_1 = arith.constant 0 : i32
    return %c0_i32, %c0_i32_0 : i32, i32
  }
}

</mosaic_0001>

<bundles_post_ra>
// kernel: patchtst_forward.1
= control target key start
LH: loop header
LB: loop body
LE: loop exit
PB: predicated region body
PF: predicated region fallthrough
CT: control target
= control target key end

     0   :  { %vm19_vm0 = vcmask 261120   ;;  %s13283_s0 = inlined_call_operand.vmem [shape: f32[8,32], index: 0, kind: input, shape index: {}]   ;;  %s13284_s1 = inlined_call_operand.vmem [shape: f32[824,32], index: 1, kind: input, shape index: {}]   ;;  %s13285_s2 = inlined_call_operand.vmem [shape: f32[144,64], index: 2, kind: input, shape index: {}]   ;;  %s13286_s3 = inlined_call_operand.vmem [shape: f32[248,128], index: 3, kind: input, shape index: {}]   ;;  %s13287_s4 = inlined_call_operand.hbm [shape: f32[8,128], index: 4, kind: output, shape index: {}]  }
   0x1   :  { %v18_v0 = vld [vmem:[%s13283_s0] sm:$0xff] }
   0x2   :  { %9 = vsyncpa [#allocation4], 0  ;;  %v20_v1 = vsel %vm19_vm0, %v18_v0, 0.0  ;;  %v48_v7 = vld [vmem:[%s13284_s1 + $0x18] sm:$0xff]  ;;  %v10664_v9 = vmov 0.0   ;;  %v47_v10 = vld [vmem:[%s13284_s1 + $0x10] sm:$0xff] }
   0x3   :  { %21 = vadd.xlane.f32.xlu0 %v20_v1  ;;  %v126_v8 = vld [vmem:[%s13284_s1 + $0x38] sm:$0xff]  ;;  %9229 = vmatprep.subr.mxu0 %v10664_v9  ;;  %v125_v11 = vld [vmem:[%s13284_s1 + $0x30] sm:$0xff]  ;;  %v46_v12 = vld [vmem:[%s13284_s1 + $0x8] sm:$0xff]  ;;  %vm10665_vm1 = vmmov 0   ;;  %vm834_vm4 = vcmask 64512   ;;  %vm996_vm5 = vcmask 523264  }
   0x4   :  { %9240 = vmatprep.subr.mxu1 %v10664_v9  ;;  %9230 = vmatpush3.msra.mxu0 %v48_v7  ;;  %v124_v13 = vld [vmem:[%s13284_s1 + $0x28] sm:$0xff]  ;;  %v45_v14 = vld [vmem:[%s13284_s1] sm:$0xff]  ;;  %v40_v27 = vld [vmem:[%s13286_s3 + $0xf0] sm:$0xff]  ;;  %s10666_s17 = smov [#allocation3]  }
   0x5   :  { %9241 = vmatpush3.msra.mxu1 %v126_v8  ;;  %9231 = vmatprep.subr.mxu0 %v10664_v9  ;;  %v123_v15 = vld [vmem:[%s13284_s1 + $0x20] sm:$0xff]  ;;  %v39_v25 = vld [vmem:[%s13286_s3 + $0xe8] sm:$0xff]  ;;  %v201_v30 = vld [vmem:[%s13284_s1 + $0x58] sm:$0xff]  ;;  %s8146_s18 = sshll.u32 %s10666_s17, 4  ;;  %s8147_s18 = int_to_ptr.vmem [resolvable:$true] %s8146_s18 }
   0x6   :  { %9242 = vmatprep.subr.mxu1 %v10664_v9  ;;  %9232 = vmatpush3.msra.mxu0 %v47_v10  ;;  %v276_v31 = vld [vmem:[%s13284_s1 + $0x78] sm:$0xff]  ;;  %v200_v32 = vld [vmem:[%s13284_s1 + $0x50] sm:$0xff]  ;;  %v199_v34 = vld [vmem:[%s13284_s1 + $0x48] sm:$0xff]  ;;  %s10642_s19 = scalar_lea.vmem %s8147_s18, 128  ;;  %p10647_p1 = scmp.lt.s32.totalorder %s8147_s18, %s8147_s18 }
   0x7   :  { %9243 = vmatpush3.msra.mxu1 %v125_v11  ;;  %9233 = vmatprep.subr.mxu0 %v10664_v9  ;;  %v275_v33 = vld [vmem:[%s13284_s1 + $0x70] sm:$0xff]  ;;  %v274_v35 = vld [vmem:[%s13284_s1 + $0x68] sm:$0xff]  ;;  %v198_v36 = vld [vmem:[%s13284_s1 + $0x40] sm:$0xff]  ;;  %p10643_p0 = scmp.ne.s32.totalorder %s8147_s18, %s10642_s19  ;;  %p10648_p2 = scmp.lt.s32.totalorder %s10642_s19, %s10642_s19 }
   0x8   :  { %9244 = vmatprep.subr.mxu1 %v10664_v9  ;;  %9234 = vmatpush3.msra.mxu0 %v46_v12  ;;  %v273_v37 = vld [vmem:[%s13284_s1 + $0x60] sm:$0xff]  ;;  %v351_v38 = vld [vmem:[%s13284_s1 + $0x98] sm:$0xff]  ;;  %v350_v40 = vld [vmem:[%s13284_s1 + $0x90] sm:$0xff] }
   0x9   :  { %9245 = vmatpush3.msra.mxu1 %v124_v13  ;;  %9235 = vmatprep.subr.mxu0 %v10664_v9  ;;  %v426_v39 = vld [vmem:[%s13284_s1 + $0xb8] sm:$0xff]  ;;  %v425_v41 = vld [vmem:[%s13284_s1 + $0xb0] sm:$0xff]  ;;  %v349_v42 = vld [vmem:[%s13284_s1 + $0x88] sm:$0xff]  ;;  %p10649_p3 = por %p10648_p2, %p10647_p1 }
   0xa   :  { %9246 = vmatprep.subr.mxu1 %v10664_v9  ;;  %9236 = vmatpush3.msra.mxu0 %v45_v14  ;;  %v424_v43 = vld [vmem:[%s13284_s1 + $0xa8] sm:$0xff]  ;;  %v348_v44 = vld [vmem:[%s13284_s1 + $0x80] sm:$0xff]  ;;  %v501_v46 = vld [vmem:[%s13284_s1 + $0xd8] sm:$0xff] }
   0xb   :  { %9247 = vmatpush3.msra.mxu1 %v123_v15  ;;  %9237 = vmatprep.mubr.msk.f32.mxu0 %vm10665_vm1, %v10664_v9  ;;  %v423_v45 = vld [vmem:[%s13284_s1 + $0xa0] sm:$0xff]  ;;  %v500_v47 = vld [vmem:[%s13284_s1 + $0xd0] sm:$0xff]  ;;  %v499_v48 = vld [vmem:[%s13284_s1 + $0xc8] sm:$0xff]  ;;  %p10650_p4 = pnand %p10649_p3, %p10643_p0 }
   0xc   :  { %9248 = vmatprep.mubr.msk.f32.mxu1 %vm10665_vm1, %v10664_v9  ;;  %9251 = vmatprep.subr.mxu0 %v10664_v9  ;;  %v498_v49 = vld [vmem:[%s13284_s1 + $0xc0] sm:$0xff]  ;;  %v582_v50 = vld [vmem:[%s13284_s1 + $0x118] sm:$0xff]  ;;  %v1104_v52 = vld [vmem:[%s13284_s1 + $0x1b0] sm:$0xff] }
   0xd   :  { %9262 = vmatprep.subr.mxu1 %v10664_v9  ;;  %v583_v51 = vld [vmem:[%s13284_s1 + $0x158] sm:$0xff]  ;;  %v49_v53 = vld [vmem:[%s13284_s1 + $0xe0] sm:$0xff]  ;;  %v127_v54 = vld [vmem:[%s13284_s1 + $0xe8] sm:$0xff] }
   0xe   :  { %v1103_v61 = vld [vmem:[%s13284_s1 + $0x1a8] sm:$0xff]  ;;  %v1102_v62 = vld [vmem:[%s13284_s1 + $0x1a0] sm:$0xff]  ;;  %v202_v63 = vld [vmem:[%s13284_s1 + $0xf0] sm:$0xff] }
   0xf   :  { %v1101_v1 = vld [vmem:[%s13284_s1 + $0x198] sm:$0xff]  ;;  %v1210_v10 = vld [vmem:[%s13284_s1 + $0x120] sm:$0xff]  ;;  %v427_v12 = vld [vmem:[%s13284_s1 + $0x108] sm:$0xff] }
  0x10   :  { %v352_v11 = vld [vmem:[%s13284_s1 + $0x100] sm:$0xff] }
  0x8c   :  { %v22_v2 = vpop.xlane.xlu0 %21 }
  0x8d   :  { %v10696_v3 = vmul.f32 0.03125, %v22_v2 }
  0x8f   :  { %v25_v4 = vsub.f32 %v18_v0, %v10696_v3  ;;  %v277_v0 = vld [vmem:[%s13284_s1 + $0xf8] sm:$0xff] }
  0x91   :  { %v26_v5 = vmul.f32 %v25_v4, %v25_v4 }
  0x93   :  { %v27_v6 = vsel %vm19_vm0, %v26_v5, 0.0 }
  0x94   :  { %28 = vadd.xlane.f32.xlu0 %v27_v6 }
 0x11d   :  { %v29_v16 = vpop.xlane.xlu0 %28 }
 0x11e   :  { %v30_v17 = vmul.f32 0.03125, %v29_v16 }
 0x120   :  { %v31_v18 = vadd.f32 1e-05, %v30_v17 }
 0x122   :  { %10314 = vrsqrt.f32 %v31_v18  ;;  %vm34_vm2 = vcmp.eq.f32.partialorder %v31_v18, inf  ;;  %v37_v21 = vand.u32 2147483648, %v31_v18  ;;  %vm36_vm3 = vcmp.eq.f32.partialorder %v31_v18, 0.0 }
 0x12f   :  { %v10315_v19 = vpop.eup %10314 }
 0x130   :  { %v33_v20 = vmul.f32 %v10315_v19, %v31_v18  ;;  %v502_v19 = vld [vmem:[%s13284_s1 + $0x110] sm:$0xff] }
 0x132   :  { %v35_v22 = vsel %vm34_vm2, %v31_v18, %v33_v20 }
 0x133   :  { %v10738_v23 = vsel %vm36_vm3, %v37_v21, %v35_v22 }
 0x134   :  { %10316 = vrcp.f32 %v10738_v23 }
 0x141   :  { %v10317_v24 = vpop.eup %10316 }
 0x142   :  { %v42_v26 = vmul.f32 %v10317_v24, %v25_v4 }
 0x144   :  { %v43_v28 = vmul.f32 %v42_v26, %v39_v25  ;;  %v10976_v25 = vld [vmem:[%s13284_s1 + $0x328] ss:$0 sm:$0xff] }
 0x146   :  { %v10747_v29 = vadd.f32 %v43_v28, %v40_v27 }
 0x148   :  { %9238 = vmatmul.mubr.msk.f32.vlgmr.msra.gmra.mxu0 %vm19_vm0, %v10747_v29  ;;  %9249 = vmatmul.mubr.msk.f32.vlgmr.msra.gmra.mxu1 %vm19_vm0, %v10747_v29 }
 0x149   :  { %9252 = vmatpush3.msra.mxu0 %v201_v30  ;;  %9263 = vmatpush3.msra.mxu1 %v276_v31 }
 0x14a   :  { %9253 = vmatprep.subr.mxu0 %v10664_v9  ;;  %9264 = vmatprep.subr.mxu1 %v10664_v9 }
 0x14b   :  { %9254 = vmatpush3.msra.mxu0 %v200_v32  ;;  %9265 = vmatpush3.msra.mxu1 %v275_v33 }
 0x14c   :  { %9255 = vmatprep.subr.mxu0 %v10664_v9  ;;  %9266 = vmatprep.subr.mxu1 %v10664_v9 }
 0x14d   :  { %9256 = vmatpush3.msra.mxu0 %v199_v34  ;;  %9267 = vmatpush3.msra.mxu1 %v274_v35  ;;  %v8170_v34 = vld [vmem:[%s13284_s1 + $0x32c] ss:$0 sm:$0xff] }
 0x14e   :  { %9257 = vmatprep.subr.mxu0 %v10664_v9  ;;  %9268 = vmatprep.subr.mxu1 %v10664_v9 }
 0x14f   :  { %9258 = vmatpush3.msra.mxu0 %v198_v36  ;;  %9259 = vmatprep.mubr.msk.f32.mxu0 %vm10665_vm1, %v10664_v9 }
 0x150   :  { %9269 = vmatpush3.msra.mxu1 %v273_v37  ;;  %9270 = vmatprep.mubr.msk.f32.mxu1 %vm10665_vm1, %v10664_v9 }
 0x151   :  { %9260 = vmatmul.mubr.msk.f32.vlgmr.msra.gmra.mxu0 %vm19_vm0, %v10747_v29  ;;  %9271 = vmatmul.mubr.msk.f32.vlgmr.msra.gmra.mxu1 %vm19_vm0, %v10747_v29 }
 0x152   :  { %9273 = vmatprep.subr.mxu0 %v10664_v9  ;;  %9284 = vmatprep.subr.mxu1 %v10664_v9 }
 0x153   :  { %9274 = vmatpush3.msra.mxu0 %v351_v38  ;;  %9285 = vmatpush3.msra.mxu1 %v426_v39 }
 0x154   :  { %9275 = vmatprep.subr.mxu0 %v10664_v9  ;;  %9286 = vmatprep.subr.mxu1 %v10664_v9 }
 0x155   :  { %9276 = vmatpush3.msra.mxu0 %v350_v40  ;;  %9287 = vmatpush3.msra.mxu1 %v425_v41 }
 0x156   :  { %9277 = vmatprep.subr.mxu0 %v10664_v9  ;;  %9288 = vmatprep.subr.mxu1 %v10664_v9 }
 0x157   :  { %9278 = vmatpush3.msra.mxu0 %v349_v42  ;;  %9289 = vmatpush3.msra.mxu1 %v424_v43 }
 0x158   :  { %9279 = vmatprep.subr.mxu0 %v10664_v9  ;;  %9290 = vmatprep.subr.mxu1 %v10664_v9 }
 0x159   :  { %9280 = vmatpush3.msra.mxu0 %v348_v44  ;;  %9281 = vmatprep.mubr.msk.f32.mxu0 %vm10665_vm1, %v10664_v9 }
 0x15a   :  { %9291 = vmatpush3.msra.mxu1 %v423_v45  ;;  %9292 = vmatprep.mubr.msk.f32.mxu1 %vm10665_vm1, %v10664_v9 }
 0x15b   :  { %9282 = vmatmul.mubr.msk.f32.vlgmr.msra.gmra.mxu0 %vm19_vm0, %v10747_v29  ;;  %9293 = vmatmul.mubr.msk.f32.vlgmr.msra.gmra.mxu1 %vm19_vm0, %v10747_v29 }
 0x15c   :  { %9295 = vmatprep.subr.mxu0 %v10664_v9  ;;  %9303 = vmatprep.mubr.msk.f32.mxu0 %vm10665_vm1, %v10664_v9 }
 0x15d   :  { %9296 = vmatpush3.msra.mxu0 %v501_v46  ;;  %9306 = vmatprep.subr.msk.mxu1 %vm19_vm0, %v582_v50 }
 0x15e   :  { %9297 = vmatprep.subr.mxu0 %v10664_v9  ;;  %9307 = vmatpush3.xpose.msk.msra.mxu1 %vm19_vm0, %v582_v50 }
 0x15f   :  { %9298 = vmatpush3.msra.mxu0 %v500_v47 }
 0x160   :  { %9299 = vmatprep.subr.mxu0 %v10664_v9 }
 0x161   :  { %9300 = vmatpush3.msra.mxu0 %v499_v48 }
 0x162   :  { %9301 = vmatprep.subr.mxu0 %v10664_v9 }
 0x163   :  { %9302 = vmatpush3.msra.mxu0 %v498_v49 }
 0x164   :  { %9304 = vmatmul.mubr.msk.f32.vlgmr.msra.gmra.mxu0 %vm19_vm0, %v10747_v29  ;;  %9320 = vmatprep.subr.msk.mxu0 %vm19_vm0, %v583_v51 }
 0x165   :  { %9321 = vmatpush3.xpose.msk.msra.mxu0 %vm19_vm0, %v583_v51 }
 0x166   :  { %9362 = vmatprep.subr.mxu0 %v1104_v52 }
 0x208   :  { %v119_v55 = vpop.f32.mrf.mxu0  ;;  %v194_v56 = vpop.f32.mrf.mxu1 }
 0x209   :  { %v10870_v57 = vadd.f32 %v119_v55, %v49_v53  ;;  %v10872_v58 = vadd.f32 %v194_v56, %v127_v54  ;;  %v11015_v53 = vld [vmem:[%s13284_s1 + $0x329] ss:$0 sm:$0xff] }
 0x20a   :  { %v9239_v59 = vpop.f32.mrf.mxu0  ;;  %v9250_v60 = vpop.f32.mrf.mxu1 }
 0x20b   :  { %9308 = vmatprep.mubr.msk.f32.mxu1 %vm19_vm0, %v10870_v57  ;;  %9322 = vmatprep.mubr.msk.f32.mxu0 %vm19_vm0, %v10870_v57 }
 0x20c   :  { %9309 = vmatmul.mubr.msk.f32.vlgmr.msra.gmra.mxu1 %vm19_vm0, %v10872_v58  ;;  %9323 = vmatmul.mubr.msk.f32.vlgmr.msra.gmra.mxu0 %vm19_vm0, %v10872_v58 }
 0x20d   :  { %9363 = vmatpush3.msra.mxu0 %v1104_v52 }
 0x20e   :  { %9364 = vmatprep.subr.mxu0 %v1103_v61 }
 0x20f   :  { %9365 = vmatpush3.msra.mxu0 %v1103_v61 }
 0x210   :  { %9366 = vmatprep.subr.mxu0 %v1102_v62 }
 0x211   :  { %v269_v2 = vpop.f32.mrf.mxu0  ;;  %v344_v4 = vpop.f32.mrf.mxu1  ;;  %9367 = vmatpush3.msra.mxu0 %v1102_v62  ;;  %v1211_v62 = vld [vmem:[%s13284_s1 + $0x160] sm:$0xff] }
 0x212   :  { %v10897_v5 = vadd.f32 %v269_v2, %v202_v63  ;;  %v10899_v6 = vadd.f32 %v344_v4, %v277_v0  ;;  %9368 = vmatprep.subr.mxu0 %v1101_v1  ;;  %v1707_v4 = vld [vmem:[%s13284_s1 + $0x1d0] sm:$0xff] }
 0x213   :  { %v9261_v7 = vpop.f32.mrf.mxu0  ;;  %v9272_v8 = vpop.f32.mrf.mxu1  ;;  %9369 = vmatpush3.msra.mxu0 %v1101_v1 }
 0x214   :  { %9311 = vmatprep.mubr.msk.f32.mxu1 %vm19_vm0, %v10897_v5  ;;  %9325 = vmatprep.mubr.msk.f32.mxu0 %vm19_vm0, %v10897_v5 }
 0x215   :  { %9312 = vmatmul.mubr.msk.f32.gmra.mxu1 %vm19_vm0, %v10899_v6  ;;  %9326 = vmatmul.mubr.msk.f32.gmra.mxu0 %vm19_vm0, %v10899_v6 }
 0x216   :  { %9382 = vmatprep.subr.msk.mxu0 %vm19_vm0, %v1210_v10 }
 0x21b   :  { %v419_v13 = vpop.f32.mrf.mxu0  ;;  %v494_v14 = vpop.f32.mrf.mxu1 }
 0x21c   :  { %v10919_v15 = vadd.f32 %v419_v13, %v352_v11  ;;  %v10921_v16 = vadd.f32 %v494_v14, %v427_v12  ;;  %v1706_v14 = vld [vmem:[%s13284_s1 + $0x1c8] sm:$0xff] }
 0x21d   :  { %v9283_v17 = vpop.f32.mrf.mxu0  ;;  %v9294_v18 = vpop.f32.mrf.mxu1 }
 0x21e   :  { %9314 = vmatprep.mubr.msk.f32.mxu1 %vm19_vm0, %v10919_v15  ;;  %9328 = vmatprep.mubr.msk.f32.mxu0 %vm19_vm0, %v10919_v15  ;;  %v1705_v17 = vld [vmem:[%s13284_s1 + $0x1c0] sm:$0xff]  ;;  %v1704_v18 = vld [vmem:[%s13284_s1 + $0x1b8] sm:$0xff] }
 0x21f   :  { %9315 = vmatmul.mubr.msk.f32.gmra.mxu1 %vm19_vm0, %v10921_v16  ;;  %9329 = vmatmul.mubr.msk.f32.gmra.mxu0 %vm19_vm0, %v10921_v16 }
 0x224   :  { %v569_v20 = vpop.f32.mrf.mxu0 }
 0x225   :  { %v10934_v21 = vadd.f32 %v569_v20, %v502_v19 }
 0x226   :  { %v9305_v22 = vpop.f32.mrf.mxu0 }
 0x227   :  { %9317 = vmatprep.mubr.msk.f32.mxu1 %vm19_vm0, %v10934_v21  ;;  %9331 = vmatprep.mubr.msk.f32.mxu0 %vm19_vm0, %v10934_v21 }
 0x228   :  { %9332 = vmatmul.mubr.f32.gmra.mxu0 %v10664_v9  ;;  %9318 = vmatmul.mubr.f32.gmra.mxu1 %v10664_v9 }
 0x229   :  { %9370 = vmatprep.mubr.msk.f32.mxu0 %vm19_vm0, %v10870_v57 }
 0x22c   :  { %9371 = vmatmul.mubr.msk.f32.vlgmr.msra.gmra.mxu0 %vm19_vm0, %v10872_v58 }
 0x22d   :  { %9373 = vmatprep.mubr.msk.f32.mxu0 %vm19_vm0, %v10897_v5  ;;  %9383 = vmatpush3.xpose.msk.msra.mxu0 %vm19_vm0, %v1210_v10 }
 0x230   :  { %9374 = vmatmul.mubr.msk.f32.gmra.mxu0 %vm19_vm0, %v10899_v6 }
 0x231   :  { %9376 = vmatprep.mubr.msk.f32.mxu0 %vm19_vm0, %v10919_v15 }
 0x234   :  { %9377 = vmatmul.mubr.msk.f32.gmra.mxu0 %vm19_vm0, %v10921_v16 }
 0x235   :  { %9379 = vmatprep.mubr.msk.f32.mxu0 %vm19_vm0, %v10934_v21 }
 0x238   :  { %9380 = vmatmul.mubr.f32.gmra.mxu0 %v10664_v9 }
 0x239   :  { %9384 = vmatprep.mubr.msk.f32.mxu0 %vm19_vm0, %v10870_v57 }
 0x23c   :  { %9385 = vmatmul.mubr.msk.f32.vlgmr.msra.gmra.mxu0 %vm19_vm0, %v10872_v58 }
 0x23d   :  { %9387 = vmatprep.mubr.msk.f32.mxu0 %vm19_vm0, %v10897_v5 }
 0x240   :  { %9388 = vmatmul.mubr.msk.f32.gmra.mxu0 %vm19_vm0, %v10899_v6 }
 0x241   :  { %9390 = vmatprep.mubr.msk.f32.mxu0 %vm19_vm0, %v10919_v15 }
 0x244   :  { %9391 = vmatmul.mubr.msk.f32.gmra.mxu0 %vm19_vm0, %v10921_v16 }
 0x245   :  { %9393 = vmatprep.mubr.msk.f32.mxu0 %vm19_vm0, %v10934_v21 }
 0x248   :  { %9394 = vmatmul.mubr.f32.gmra.mxu0 %v10664_v9 }
 0x2cc   :  { %v9310_v24 = vpop.f32.mrf.mxu1  ;;  %v9324_v28 = vpop.f32.mrf.mxu0 }
 0x2cd   :  { %v801_v55 = vadd.f32 %v9324_v28, %v8170_v34  ;;  %v689_v0 = vadd.f32 %v9310_v24, %v10976_v25  ;;  %v11088_v24 = vld [vmem:[%s13285_s2] sm:$0xff] }
 0x2ce   :  { %v683_v26 = vpop.f32.mrf.mxu1  ;;  %v795_v29 = vpop.f32.mrf.mxu0 }
 0x2cf   :  { %v684_v27 = vadd.f32 %v10976_v25, %v683_v26  ;;  %v796_v60 = vadd.f32 %v8170_v34, %v795_v29 }
 0x2d1   :  { %9350 = vmatprep.mubr.msk.f32.mxu1 %vm834_vm4, %v684_v27  ;;  %v11094_v27 = vld [vmem:[%s13285_s2 + $0x8] sm:$0xff] }
 0x2d5   :  { %v9327_v30 = vpop.f32.mrf.mxu0  ;;  %v9313_v52 = vpop.f32.mrf.mxu1 }
 0x2d6   :  { %v811_v47 = vadd.f32 %v9327_v30, %v8170_v34  ;;  %v699_v7 = vadd.f32 %v9313_v52, %v10976_v25 }
 0x2d7   :  { %v805_v31 = vpop.f32.mrf.mxu0  ;;  %v693_v59 = vpop.f32.mrf.mxu1 }
 0x2d8   :  { %v806_v50 = vadd.f32 %v8170_v34, %v805_v31  ;;  %v694_v2 = vadd.f32 %v10976_v25, %v693_v59  ;;  %v11103_v31 = vld [vmem:[%s13285_s2 + $0x10] sm:$0xff] }
 0x2df   :  { %v9330_v32 = vpop.f32.mrf.mxu0  ;;  %v9316_v61 = vpop.f32.mrf.mxu1 }
 0x2e0   :  { %v821_v41 = vadd.f32 %v9330_v32, %v8170_v34  ;;  %v709_v12 = vadd.f32 %v9316_v61, %v10976_v25 }
 0x2e1   :  { %v815_v33 = vpop.f32.mrf.mxu0  ;;  %v703_v63 = vpop.f32.mrf.mxu1 }
 0x2e2   :  { %v816_v44 = vadd.f32 %v8170_v34, %v815_v33  ;;  %v704_v10 = vadd.f32 %v10976_v25, %v703_v63 }
 0x2e8   :  { %v9333_v35 = vpop.f32.mrf.mxu0  ;;  %v9319_v1 = vpop.f32.mrf.mxu1 }
 0x2e9   :  { %v831_v36 = vadd.f32 %v9333_v35, %v8170_v34  ;;  %v719_v13 = vadd.f32 %v9319_v1, %v10976_v25 }
 0x2ea   :  { %v825_v37 = vpop.f32.mrf.mxu0  ;;  %v713_v8 = vpop.f32.mrf.mxu1 }
 0x2eb   :  { %v826_v38 = vadd.f32 %v8170_v34, %v825_v37  ;;  %9334 = vmatprep.subr.msk.mxu1 %vm834_vm4, %v831_v36  ;;  %v714_v11 = vadd.f32 %v10976_v25, %v713_v8 }
 0x2ec   :  { %9335 = vmatpush3.xpose.msk.msra.mxu1 %vm834_vm4, %v831_v36  ;;  %v10985_v39 = vpop.f32.mrf.mxu0  ;;  %v11114_v36 = vld [vmem:[%s13285_s2 + $0x18] sm:$0xff] }
 0x2ed   :  { %9336 = vmatprep.subr.msk.mxu1 %vm834_vm4, %v826_v38 }
 0x2ee   :  { %v10988_v40 = vpop.f32.mrf.mxu0 }
 0x2f0   :  { %9337 = vmatpush3.xpose.msk.msra.mxu1 %vm834_vm4, %v826_v38  ;;  %v10991_v42 = vpop.f32.mrf.mxu0 }
 0x2f1   :  { %9338 = vmatprep.subr.msk.mxu1 %vm834_vm4, %v821_v41 }
 0x2f2   :  { %v10994_v43 = vpop.f32.mrf.mxu0 }
 0x2f4   :  { %9339 = vmatpush3.xpose.msk.msra.mxu1 %vm834_vm4, %v821_v41  ;;  %v10997_v45 = vpop.f32.mrf.mxu0 }
 0x2f5   :  { %9340 = vmatprep.subr.msk.mxu1 %vm834_vm4, %v816_v44 }
 0x2f6   :  { %v11000_v46 = vpop.f32.mrf.mxu0 }
 0x2f8   :  { %9341 = vmatpush3.xpose.msk.msra.mxu1 %vm834_vm4, %v816_v44  ;;  %v11003_v48 = vpop.f32.mrf.mxu0  ;;  %v11123_v44 = vld [vmem:[%s13285_s2 + $0x20] sm:$0xff] }
 0x2f9   :  { %9342 = vmatprep.subr.msk.mxu1 %vm834_vm4, %v811_v47 }
 0x2fa   :  { %v11006_v49 = vpop.f32.mrf.mxu0 }
 0x2fc   :  { %9343 = vmatpush3.xpose.msk.msra.mxu1 %vm834_vm4, %v811_v47  ;;  %v11009_v51 = vpop.f32.mrf.mxu0 }
 0x2fd   :  { %9344 = vmatprep.subr.msk.mxu1 %vm834_vm4, %v806_v50 }
 0x2fe   :  { %v1287_v54 = vpop.f32.mrf.mxu0 }
 0x2ff   :  { %v1288_v56 = vadd.f32 %v11015_v53, %v1287_v54 }
 0x300   :  { %9345 = vmatpush3.xpose.msk.msra.mxu1 %vm834_vm4, %v806_v50 }
 0x301   :  { %9346 = vmatprep.subr.msk.mxu1 %vm834_vm4, %v801_v55  ;;  %9426 = vmatprep.mubr.msk.f32.mxu0 %vm834_vm4, %v1288_v56  ;;  %v11136_v56 = vld [vmem:[%s13285_s2 + $0x28] sm:$0xff] }
 0x304   :  { %9347 = vmatpush3.xpose.msk.msra.mxu1 %vm834_vm4, %v801_v55 }
 0x305   :  { %9348 = vmatprep.subr.msk.mxu1 %vm834_vm4, %v796_v60 }
 0x308   :  { %9349 = vmatpush3.xpose.msk.msra.mxu1 %vm834_vm4, %v796_v60 }
 0x309   :  { %9396 = vmatprep.subr.msk.mxu1 %vm19_vm0, %v1211_v62 }
 0x30b   :  { %9351 = vmatmul.mubr.msk.f32.vlgmr.msra.gmra.mxu1 %vm834_vm4, %v689_v0 }
 0x30c   :  { %9353 = vmatprep.mubr.msk.f32.mxu1 %vm834_vm4, %v694_v2  ;;  %9397 = vmatpush3.xpose.msk.msra.mxu1 %vm19_vm0, %v1211_v62  ;;  %v11145_v62 = vld [vmem:[%s13285_s2 + $0x30] sm:$0xff] }
 0x30d   :  { %9438 = vmatprep.subr.mxu1 %v1707_v4 }
 0x30f   :  { %9354 = vmatmul.mubr.msk.f32.gmra.mxu1 %vm834_vm4, %v699_v7  ;;  %v11158_v7 = vld [vmem:[%s13285_s2 + $0x38] sm:$0xff] }
 0x310   :  { %9356 = vmatprep.mubr.msk.f32.mxu1 %vm834_vm4, %v704_v10 }
 0x313   :  { %9357 = vmatmul.mubr.msk.f32.gmra.mxu1 %vm834_vm4, %v709_v12 }
 0x314   :  { %9359 = vmatprep.mubr.msk.f32.mxu1 %vm834_vm4, %v714_v11 }
 0x317   :  { %9360 = vmatmul.mubr.msk.f32.gmra.mxu1 %vm834_vm4, %v719_v13 }
 0x318   :  { %9398 = vmatprep.mubr.msk.f32.mxu1 %vm19_vm0, %v10870_v57 }
 0x31b   :  { %9399 = vmatmul.mubr.msk.f32.vlgmr.msra.gmra.mxu1 %vm19_vm0, %v10872_v58 }
 0x31c   :  { %9401 = vmatprep.mubr.msk.f32.mxu1 %vm19_vm0, %v10897_v5  ;;  %9439 = vmatpush3.msra.mxu1 %v1707_v4 }
 0x31d   :  { %9440 = vmatprep.subr.mxu1 %v1706_v14 }
 0x31e   :  { %9441 = vmatpush3.msra.mxu1 %v1706_v14 }
 0x31f   :  { %9402 = vmatmul.mubr.msk.f32.gmra.mxu1 %vm19_vm0, %v10899_v6  ;;  %9442 = vmatprep.subr.mxu1 %v1705_v17 }
 0x320   :  { %9404 = vmatprep.mubr.msk.f32.mxu1 %vm19_vm0, %v10919_v15  ;;  %9443 = vmatpush3.msra.mxu1 %v1705_v17 }
 0x321   :  { %9444 = vmatprep.subr.mxu1 %v1704_v18 }
 0x322   :  { %9445 = vmatpush3.msra.mxu1 %v1704_v18 }
 0x323   :  { %9405 = vmatmul.mubr.msk.f32.gmra.mxu1 %vm19_vm0, %v10921_v16 }
 0x324   :  { %9407 = vmatprep.mubr.msk.f32.mxu1 %vm19_vm0, %v10934_v21 }
 0x327   :  { %9408 = vmatmul.mubr.f32.gmra.mxu1 %v10664_v9 }
 0x328   :  { %9446 = vmatprep.mubr.msk.f32.mxu1 %vm19_vm0, %v10870_v57 }
 0x32b   :  { %9447 = vmatmul.mubr.msk.f32.vlgmr.msra.gmra.mxu1 %vm19_vm0, %v10872_v58 }
 0x32c   :  { %9449 = vmatprep.mubr.msk.f32.mxu1 %vm19_vm0, %v10897_v5 }
 0x32f   :  { %9450 = vmatmul.mubr.msk.f32.gmra.mxu1 %vm19_vm0, %v10899_v6 }
 0x330   :  { %9452 = vmatprep.mubr.msk.f32.mxu1 %vm19_vm0, %v10919_v15 }
 0x333   :  { %9453 = vmatmul.mubr.msk.f32.gmra.mxu1 %vm19_vm0, %v10921_v16 }
 0x334   :  { %9455 = vmatprep.mubr.msk.f32.mxu1 %vm19_vm0, %v10934_v21 }
 0x337   :  { %9456 = vmatmul.mubr.f32.gmra.mxu1 %v10664_v9 }
 0x3cb   :  { %v9352_v19 = vpop.f32.mrf.mxu1 }
 0x3cc   :  { %v989_v20 = vmul.f32 0.35355338, %v9352_v19 }
 0x3cd   :  { %v949_v22 = vpop.f32.mrf.mxu1 }
 0x3ce   :  { %998 = vst.msk [vmem:[#allocation2 + $0x8] sm:$0xff] %vm996_vm5, %v989_v20  ;;  %v988_v25 = vmul.f32 0.35355338, %v949_v22  ;;  %v11109_v34 = vadd.f32 %v989_v20, %v11094_v27  ;;  %v8211_v22 = vld [vmem:[%s13284_s1 + $0x32d] ss:$0 sm:$0xff] }
 0x3cf   :  { %v9355_v26 = vpop.f32.mrf.mxu1 }
 0x3d0   :  { %997 = vst.msk [vmem:[#allocation2] sm:$0xff] %vm996_vm5, %v988_v25  ;;  %v991_v28 = vmul.f32 0.35355338, %v9355_v26  ;;  %v11098_v29 = vadd.f32 %v988_v25, %v11088_v24  ;;  %v1016_v50 = vsel %vm996_vm5, %v11109_v34, -inf }
 0x3d1   :  { %v959_v30 = vpop.f32.mrf.mxu1 }
 0x3d2   :  { %1000 = vst.msk [vmem:[#allocation2 + $0x18] sm:$0xff] %vm996_vm5, %v991_v28  ;;  %v990_v32 = vmul.f32 0.35355338, %v959_v30  ;;  %v1013_v33 = vsel %vm996_vm5, %v11098_v29, -inf  ;;  %v11131_v54 = vadd.f32 %v991_v28, %v11114_v36 }
 0x3d3   :  { %1014 = vmax.xlane.f32.xlu1 %v1013_v33  ;;  %v9358_v35 = vpop.f32.mrf.mxu1 }
 0x3d4   :  { %999 = vst.msk [vmem:[#allocation2 + $0x10] sm:$0xff] %vm996_vm5, %v990_v32  ;;  %v993_v37 = vmul.f32 0.35355338, %v9358_v35  ;;  %v11118_v38 = vadd.f32 %v990_v32, %v11103_v31  ;;  %v1022_v0 = vsel %vm996_vm5, %v11131_v54, -inf }
 0x3d5   :  { %v969_v41 = vpop.f32.mrf.mxu1 }
 0x3d6   :  { %1002 = vst.msk [vmem:[#allocation2 + $0x28] sm:$0xff] %vm996_vm5, %v993_v37  ;;  %v992_v47 = vmul.f32 0.35355338, %v969_v41  ;;  %v1019_v52 = vsel %vm996_vm5, %v11118_v38, -inf  ;;  %v11153_v2 = vadd.f32 %v993_v37, %v11136_v56 }
 0x3d7   :  { %1017 = vmax.xlane.f32.xlu1 %v1016_v50  ;;  %1020 = vmax.xlane.f32.xlu0 %v1019_v52  ;;  %v9361_v55 = vpop.f32.mrf.mxu1 }
 0x3d8   :  { %1001 = vst.msk [vmem:[#allocation2 + $0x20] sm:$0xff] %vm996_vm5, %v992_v47  ;;  %v995_v59 = vmul.f32 0.35355338, %v9361_v55  ;;  %v11140_v60 = vadd.f32 %v992_v47, %v11123_v44  ;;  %v1028_v11 = vsel %vm996_vm5, %v11153_v2, -inf }
 0x3d9   :  { %v979_v61 = vpop.f32.mrf.mxu1 }
 0x3da   :  { %1004 = vst.msk [vmem:[#allocation2 + $0x38] sm:$0xff] %vm996_vm5, %v995_v59  ;;  %v994_v63 = vmul.f32 0.35355338, %v979_v61  ;;  %v1025_v1 = vsel %vm996_vm5, %v11140_v60, -inf  ;;  %v11169_v13 = vadd.f32 %v995_v59, %v11158_v7 }
 0x3db   :  { %1023 = vmax.xlane.f32.xlu1 %v1022_v0  ;;  %1026 = vmax.xlane.f32.xlu0 %v1025_v1  ;;  %v9400_v4 = vpop.f32.mrf.mxu1 }
 0x3dc   :  { %1003 = vst.msk [vmem:[#allocation2 + $0x30] sm:$0xff] %vm996_vm5, %v994_v63  ;;  %v11162_v8 = vadd.f32 %v994_v63, %v11145_v62  ;;  %v1034_v18 = vsel %vm996_vm5, %v11169_v13, -inf  ;;  %v9389_v63 = vpop.f32.mrf.mxu0 }
 0x3dd   :  { %v1399_v10 = vpop.f32.mrf.mxu1 }
 0x3de   :  { %v1031_v12 = vsel %vm996_vm5, %v11162_v8, -inf  ;;  %v1297_v1 = vpop.f32.mrf.mxu0 }
 0x3df   :  { %1029 = vmax.xlane.f32.xlu1 %v1028_v11  ;;  %v9403_v14 = vpop.f32.mrf.mxu1  ;;  %1032 = vmax.xlane.f32.xlu0 %v1031_v12  ;;  %v1405_v11 = vadd.f32 %v9400_v4, %v8211_v22  ;;  %v1293_v4 = vadd.f32 %v11009_v51, %v11015_v53 }
 0x3e0   :  { %v1415_v55 = vadd.f32 %v9403_v14, %v8211_v22  ;;  %v9392_v12 = vpop.f32.mrf.mxu0  ;;  %v1400_v14 = vadd.f32 %v8211_v22, %v1399_v10  ;;  %v1298_v10 = vadd.f32 %v11015_v53, %v1297_v1 }
 0x3e1   :  { %v1409_v17 = vpop.f32.mrf.mxu1 }
 0x3e2   :  { %v1410_v0 = vadd.f32 %v8211_v22, %v1409_v17  ;;  %v1307_v17 = vpop.f32.mrf.mxu0 }
 0x3e3   :  { %1035 = vmax.xlane.f32.xlu1 %v1034_v18  ;;  %v9406_v19 = vpop.f32.mrf.mxu1 }
 0x3e4   :  { %v1425_v35 = vadd.f32 %v9406_v19, %v8211_v22  ;;  %v9395_v18 = vpop.f32.mrf.mxu0  ;;  %v1303_v19 = vadd.f32 %v9389_v63, %v11015_v53 }
 0x3e5   :  { %v1419_v20 = vpop.f32.mrf.mxu1 }
 0x3e6   :  { %v1420_v47 = vadd.f32 %v8211_v22, %v1419_v20  ;;  %v1317_v20 = vpop.f32.mrf.mxu0 }
 0x3e7   :  { %v9409_v25 = vpop.f32.mrf.mxu1  ;;  %v1318_v51 = vadd.f32 %v11015_v53, %v1317_v20 }
 0x3e8   :  { %v1435_v26 = vadd.f32 %v9409_v25, %v8211_v22 }
 0x3e9   :  { %v1429_v28 = vpop.f32.mrf.mxu1 }
 0x3ea   :  { %v1430_v30 = vadd.f32 %v8211_v22, %v1429_v28  ;;  %9410 = vmatprep.subr.msk.mxu0 %vm834_vm4, %v1435_v26  ;;  %v1308_v22 = vadd.f32 %v11015_v53, %v1307_v17 }
 0x3eb   :  { %9411 = vmatpush3.xpose.msk.msra.mxu0 %vm834_vm4, %v1435_v26  ;;  %v9448_v32 = vpop.f32.mrf.mxu1 }
 0x3ec   :  { %9412 = vmatprep.subr.msk.mxu0 %vm834_vm4, %v1430_v30 }
 0x3ed   :  { %v1774_v33 = vpop.f32.mrf.mxu1 }
 0x3ef   :  { %9413 = vmatpush3.xpose.msk.msra.mxu0 %vm834_vm4, %v1430_v30  ;;  %v9451_v37 = vpop.f32.mrf.mxu1 }
 0x3f0   :  { %9414 = vmatprep.subr.msk.mxu0 %vm834_vm4, %v1425_v35 }
 0x3f1   :  { %v1784_v41 = vpop.f32.mrf.mxu1 }
 0x3f3   :  { %9415 = vmatpush3.xpose.msk.msra.mxu0 %vm834_vm4, %v1425_v35  ;;  %v9454_v50 = vpop.f32.mrf.mxu1 }
 0x3f4   :  { %9416 = vmatprep.subr.msk.mxu0 %vm834_vm4, %v1420_v47 }
 0x3f5   :  { %v1794_v52 = vpop.f32.mrf.mxu1 }
 0x3f7   :  { %9417 = vmatpush3.xpose.msk.msra.mxu0 %vm834_vm4, %v1420_v47  ;;  %v9457_v59 = vpop.f32.mrf.mxu1 }
 0x3f8   :  { %9418 = vmatprep.subr.msk.mxu0 %vm834_vm4, %v1415_v55  ;;  %9458 = vmatprep.subr.mxu1 %v9457_v59 }
 0x3f9   :  { %v1804_v61 = vpop.f32.mrf.mxu1  ;;  %9459 = vmatpush3.msra.mxu1 %v9457_v59 }
 0x3fa   :  { %9460 = vmatprep.subr.mxu1 %v1804_v61 }
 0x3fb   :  { %9419 = vmatpush3.xpose.msk.msra.mxu0 %vm834_vm4, %v1415_v55  ;;  %9461 = vmatpush3.msra.mxu1 %v1804_v61 }
 0x3fc   :  { %9420 = vmatprep.subr.msk.mxu0 %vm834_vm4, %v1410_v0  ;;  %9462 = vmatprep.subr.mxu1 %v9454_v50 }
 0x3fd   :  { %9463 = vmatpush3.msra.mxu1 %v9454_v50 }
 0x3fe   :  { %9464 = vmatprep.subr.mxu1 %v1794_v52 }
 0x3ff   :  { %9421 = vmatpush3.xpose.msk.msra.mxu0 %vm834_vm4, %v1410_v0  ;;  %9465 = vmatpush3.msra.mxu1 %v1794_v52 }
 0x400   :  { %9422 = vmatprep.subr.msk.mxu0 %vm834_vm4, %v1405_v11  ;;  %9466 = vmatprep.subr.mxu1 %v9451_v37 }
 0x401   :  { %9467 = vmatpush3.msra.mxu1 %v9451_v37 }
 0x402   :  { %9468 = vmatprep.subr.mxu1 %v1784_v41 }
 0x403   :  { %9423 = vmatpush3.xpose.msk.msra.mxu0 %vm834_vm4, %v1405_v11  ;;  %9469 = vmatpush3.msra.mxu1 %v1784_v41 }
 0x404   :  { %9424 = vmatprep.subr.msk.mxu0 %vm834_vm4, %v1400_v14  ;;  %9470 = vmatprep.subr.mxu1 %v9448_v32 }
 0x405   :  { %9471 = vmatpush3.msra.mxu1 %v9448_v32 }
 0x406   :  { %9472 = vmatprep.subr.mxu1 %v1774_v33 }
 0x407   :  { %9425 = vmatpush3.xpose.msk.msra.mxu0 %vm834_vm4, %v1400_v14  ;;  %9473 = vmatpush3.msra.mxu1 %v1774_v33 }
 0x408   :  { %9486 = vmatprep.subr.mxu0 %v11003_v48 }
 0x40a   :  { %9427 = vmatmul.mubr.msk.f32.vlgmr.msra.gmra.mxu0 %vm834_vm4, %v1293_v4 }
 0x40b   :  { %9429 = vmatprep.mubr.msk.f32.mxu0 %vm834_vm4, %v1298_v10  ;;  %9487 = vmatpush3.msra.mxu0 %v11003_v48  ;;  %v1313_v48 = vadd.f32 %v9392_v12, %v11015_v53 }
 0x40c   :  { %9488 = vmatprep.subr.mxu0 %v11006_v49 }
 0x40d   :  { %9489 = vmatpush3.msra.mxu0 %v11006_v49  ;;  %v1323_v49 = vadd.f32 %v9395_v18, %v11015_v53 }
 0x40e   :  { %9430 = vmatmul.mubr.msk.f32.gmra.mxu0 %vm834_vm4, %v1303_v19  ;;  %9490 = vmatprep.subr.mxu0 %v10997_v45 }
 0x40f   :  { %9432 = vmatprep.mubr.msk.f32.mxu0 %vm834_vm4, %v1308_v22  ;;  %9491 = vmatpush3.msra.mxu0 %v10997_v45 }
 0x410   :  { %9492 = vmatprep.subr.mxu0 %v11000_v46 }
 0x411   :  { %9493 = vmatpush3.msra.mxu0 %v11000_v46 }
 0x412   :  { %9433 = vmatmul.mubr.msk.f32.gmra.mxu0 %vm834_vm4, %v1313_v48  ;;  %9494 = vmatprep.subr.mxu0 %v10991_v42 }
 0x413   :  { %9435 = vmatprep.mubr.msk.f32.mxu0 %vm834_vm4, %v1318_v51  ;;  %9495 = vmatpush3.msra.mxu0 %v10991_v42 }
 0x414   :  { %9496 = vmatprep.subr.mxu0 %v10994_v43 }
 0x415   :  { %9497 = vmatpush3.msra.mxu0 %v10994_v43 }
 0x416   :  { %9436 = vmatmul.mubr.msk.f32.gmra.mxu0 %vm834_vm4, %v1323_v49  ;;  %9498 = vmatprep.subr.mxu0 %v10985_v39 }
 0x417   :  { %9499 = vmatpush3.msra.mxu0 %v10985_v39 }
 0x418   :  { %9500 = vmatprep.subr.mxu0 %v10988_v40 }
 0x419   :  { %9501 = vmatpush3.msra.mxu0 %v10988_v40 }
 0x45c   :  { %v1015_v45 = vpop.xlane.xlu1 %1014 }
 0x45d   :  { %v1037_v26 = vsub.f32 %v11098_v29, %v1015_v45 }
 0x45f   :  { %v1045_v41 = vmul.f32 1.442695, %v1037_v26 }
 0x460   :  { %v1018_v46 = vpop.xlane.xlu1 %1017  ;;  %v1021_v42 = vpop.xlane.xlu0 %1020 }
 0x461   :  { %v1038_v53 = vsub.f32 %v11109_v34, %v1018_v46  ;;  %v1039_v39 = vsub.f32 %v11118_v38, %v1021_v42 }
 0x463   :  { %v1047_v32 = vmul.f32 1.442695, %v1038_v53  ;;  %v1049_v55 = vmul.f32 1.442695, %v1039_v39 }
 0x464   :  { %v1024_v25 = vpop.xlane.xlu1 %1023  ;;  %v1027_v35 = vpop.xlane.xlu0 %1026 }
 0x465   :  { %v1040_v43 = vsub.f32 %v11131_v54, %v1024_v25  ;;  %10318 = vpow2.f32 %v1047_v32  ;;  %v1041_v59 = vsub.f32 %v11140_v60, %v1027_v35 }
 0x466   :  { %10320 = vpow2.f32 %v1045_v41 }
 0x467   :  { %v1051_v34 = vmul.f32 1.442695, %v1040_v43  ;;  %v1053_v4 = vmul.f32 1.442695, %v1041_v59 }
 0x468   :  { %v1030_v28 = vpop.xlane.xlu1 %1029 }
 0x469   :  { %v1042_v29 = vsub.f32 %v11153_v2, %v1030_v28  ;;  %10322 = vpow2.f32 %v1051_v34 }
 0x46a   :  { %10324 = vpow2.f32 %v1049_v55 }
 0x46b   :  { %v1055_v1 = vmul.f32 1.442695, %v1042_v29 }
 0x46c   :  { %v1036_v61 = vpop.xlane.xlu1 %1035 }
 0x46d   :  { %v1044_v60 = vsub.f32 %v11169_v13, %v1036_v61  ;;  %10326 = vpow2.f32 %v1055_v1 }
 0x46e   :  { %10328 = vpow2.f32 %v1053_v4 }
 0x472   :  { %v11275_v42 = vpop.eup %10318 }
 0x473   :  { %v11278_v26 = vpop.eup %10320  ;;  %v1064_v43 = vsel %vm996_vm5, %v11275_v42, 0.0 }
 0x4ca   :  { %v9428_v30 = vpop.f32.mrf.mxu0 }
 0x4cb   :  { %v1592_v33 = vmul.f32 0.35355338, %v9428_v30 }
 0x4cc   :  { %v1552_v37 = vpop.f32.mrf.mxu0 }
 0x4cd   :  { %1601 = vst.msk [vmem:[#allocation2 + $0x48] sm:$0xff] %vm996_vm5, %v1592_v33  ;;  %v1591_v40 = vmul.f32 0.35355338, %v1552_v37  ;;  %v11229_v47 = vadd.f32 %v1592_v33, %v11094_v27 }
 0x4ce   :  { %v9431_v50 = vpop.f32.mrf.mxu0 }
 0x4cf   :  { %1600 = vst.msk [vmem:[#allocation2 + $0x40] sm:$0xff] %vm996_vm5, %v1591_v40  ;;  %v1594_v54 = vmul.f32 0.35355338, %v9431_v50  ;;  %v1619_v38 = vsel %vm996_vm5, %v11229_v47, -inf  ;;  %v11236_v52 = vadd.f32 %v1591_v40, %v11088_v24  ;;  %v1033_v24 = vpop.xlane.xlu0 %1032  ;;  %v11311_v50 = vld [vmem:[%s13284_s1 + $0x168] sm:$0xff] }
 0x4d0   :  { %1620 = vmax.xlane.f32.xlu1 %v1619_v38  ;;  %v1562_v27 = vpop.f32.mrf.mxu0  ;;  %v1043_v18 = vsub.f32 %v11162_v8, %v1033_v24  ;;  %9528 = vmatprep.subr.msk.mxu0 %vm19_vm0, %v11311_v50 }
 0x4d1   :  { %1603 = vst.msk [vmem:[#allocation2 + $0x58] sm:$0xff] %vm996_vm5, %v1594_v54  ;;  %v1593_v2 = vmul.f32 0.35355338, %v1562_v27  ;;  %v1616_v63 = vsel %vm996_vm5, %v11236_v52, -inf  ;;  %v11243_v0 = vadd.f32 %v1594_v54, %v11114_v36 }
 0x4d2   :  { %v9434_v11 = vpop.f32.mrf.mxu0  ;;  %1617 = vmax.xlane.f32.xlu0 %v1616_v63  ;;  %v1057_v49 = vmul.f32 1.442695, %v1043_v18 }
 0x4d3   :  { %1602 = vst.msk [vmem:[#allocation2 + $0x50] sm:$0xff] %vm996_vm5, %v1593_v2  ;;  %v1596_v12 = vmul.f32 0.35355338, %v9434_v11  ;;  %v1625_v14 = vsel %vm996_vm5, %v11243_v0, -inf  ;;  %v11250_v17 = vadd.f32 %v1593_v2, %v11103_v31  ;;  %v1059_v31 = vmul.f32 1.442695, %v1044_v60 }
 0x4d4   :  { %1626 = vmax.xlane.f32.xlu1 %v1625_v14  ;;  %v1572_v36 = vpop.f32.mrf.mxu0 }
 0x4d5   :  { %1605 = vst.msk [vmem:[#allocation2 + $0x68] sm:$0xff] %vm996_vm5, %v1596_v12  ;;  %v1595_v10 = vmul.f32 0.35355338, %v1572_v36  ;;  %v1622_v13 = vsel %vm996_vm5, %v11250_v17, -inf  ;;  %v11257_v19 = vadd.f32 %v1596_v12, %v11136_v56  ;;  %10330 = vpow2.f32 %v1059_v31 }
 0x4d6   :  { %v9437_v20 = vpop.f32.mrf.mxu0  ;;  %1623 = vmax.xlane.f32.xlu0 %v1622_v13  ;;  %10332 = vpow2.f32 %v1057_v49 }
 0x4d7   :  { %1604 = vst.msk [vmem:[#allocation2 + $0x60] sm:$0xff] %vm996_vm5, %v1595_v10  ;;  %v1598_v22 = vmul.f32 0.35355338, %v9437_v20  ;;  %v1631_v51 = vsel %vm996_vm5, %v11257_v19, -inf  ;;  %v11263_v8 = vadd.f32 %v1595_v10, %v11123_v44 }
 0x4d8   :  { %1632 = vmax.xlane.f32.xlu1 %v1631_v51  ;;  %v1582_v48 = vpop.f32.mrf.mxu0 }
 0x4d9   :  { %1607 = vst.msk [vmem:[#allocation2 + $0x78] sm:$0xff] %vm996_vm5, %v1598_v22  ;;  %v1597_v56 = vmul.f32 0.35355338, %v1582_v48  ;;  %v1628_v45 = vsel %vm996_vm5, %v11263_v8, -inf  ;;  %v11269_v46 = vadd.f32 %v1598_v22, %v11158_v7  ;;  %v11280_v7 = vpop.eup %10322 }
 0x4da   :  { %1629 = vmax.xlane.f32.xlu0 %v1628_v45  ;;  %v11284_v28 = vpop.eup %10324  ;;  %v1070_v32 = vsel %vm996_vm5, %v11280_v7, 0.0 }
 0x4db   :  { %1606 = vst.msk [vmem:[#allocation2 + $0x70] sm:$0xff] %vm996_vm5, %v1597_v56  ;;  %v1637_v44 = vsel %vm996_vm5, %v11269_v46, -inf  ;;  %v1614_v25 = vadd.f32 %v1597_v56, %v11145_v62  ;;  %v1061_v62 = vsel %vm996_vm5, %v11278_v26, 0.0  ;;  %v11288_v30 = vpop.eup %10326  ;;  %v1067_v39 = vsel %vm996_vm5, %v11284_v28, 0.0 }
 0x4dc   :  { %1638 = vmax.xlane.f32.xlu1 %v1637_v44  ;;  %v11292_v33 = vpop.eup %10328  ;;  %v1076_v35 = vsel %vm996_vm5, %v11288_v30, 0.0 }
 0x4dd   :  { %v1634_v53 = vsel %vm996_vm5, %v1614_v25, -inf  ;;  %v1073_v41 = vsel %vm996_vm5, %v11292_v33, 0.0 }
 0x4de   :  { %1635 = vmax.xlane.f32.xlu0 %v1634_v53 }
 0x4e0   :  { %1065 = vadd.xlane.f32.xlu1 %v1064_v43 }
 0x4e2   :  { %1062 = vadd.xlane.f32.xlu0 %v1061_v62  ;;  %v11298_v37 = vpop.eup %10330 }
 0x4e3   :  { %v11302_v40 = vpop.eup %10332  ;;  %v1082_v34 = vsel %vm996_vm5, %v11298_v37, 0.0 }
 0x4e4   :  { %1071 = vadd.xlane.f32.xlu1 %v1070_v32  ;;  %v1079_v29 = vsel %vm996_vm5, %v11302_v40, 0.0 }
 0x4e6   :  { %1068 = vadd.xlane.f32.xlu0 %v1067_v39 }
 0x4e8   :  { %1077 = vadd.xlane.f32.xlu1 %v1076_v35 }
 0x4ea   :  { %1074 = vadd.xlane.f32.xlu0 %v1073_v41 }
 0x4ec   :  { %1083 = vadd.xlane.f32.xlu1 %v1082_v34 }
 0x4ee   :  { %1080 = vadd.xlane.f32.xlu0 %v1079_v29 }
 0x559   :  { %v1621_v54 = vpop.xlane.xlu1 %1620 }
 0x55a   :  { %v1641_v38 = vsub.f32 %v11229_v47, %v1621_v54 }
 0x55b   :  { %v1618_v55 = vpop.xlane.xlu0 %1617 }
 0x55c   :  { %v1650_v59 = vmul.f32 1.442695, %v1641_v38  ;;  %v1640_v61 = vsub.f32 %v11236_v52, %v1618_v55 }
 0x55d   :  { %v1627_v27 = vpop.xlane.xlu1 %1626 }
 0x55e   :  { %10334 = vpow2.f32 %v1650_v59  ;;  %v1648_v2 = vmul.f32 1.442695, %v1640_v61  ;;  %v1643_v63 = vsub.f32 %v11243_v0, %v1627_v27 }
 0x55f   :  { %v1624_v1 = vpop.xlane.xlu0 %1623 }
 0x560   :  { %10336 = vpow2.f32 %v1648_v2  ;;  %v1654_v24 = vmul.f32 1.442695, %v1643_v63  ;;  %v1642_v11 = vsub.f32 %v11250_v17, %v1624_v1 }
 0x561   :  { %v1633_v60 = vpop.xlane.xlu1 %1632 }
 0x562   :  { %10338 = vpow2.f32 %v1654_v24  ;;  %v1652_v12 = vmul.f32 1.442695, %v1642_v11  ;;  %v1645_v14 = vsub.f32 %v11257_v19, %v1633_v60  ;;  %v2568_v24 = vld [vmem:[%s13284_s1 + $0x1f0] sm:$0xff] }
 0x563   :  { %v1630_v47 = vpop.xlane.xlu0 %1629 }
 0x564   :  { %10340 = vpow2.f32 %v1652_v12  ;;  %v1658_v4 = vmul.f32 1.442695, %v1645_v14  ;;  %v1644_v52 = vsub.f32 %v11263_v8, %v1630_v47 }
 0x565   :  { %v1639_v36 = vpop.xlane.xlu1 %1638 }
 0x566   :  { %10342 = vpow2.f32 %v1658_v4  ;;  %v1656_v18 = vmul.f32 1.442695, %v1644_v52  ;;  %v1647_v0 = vsub.f32 %v11269_v46, %v1639_v36 }
 0x567   :  { %v1636_v10 = vpop.xlane.xlu0 %1635 }
 0x568   :  { %10344 = vpow2.f32 %v1656_v18  ;;  %v1662_v13 = vmul.f32 1.442695, %v1647_v0  ;;  %v1646_v20 = vsub.f32 %v1614_v25, %v1636_v10 }
 0x569   :  { %v1066_v17 = vpop.xlane.xlu1 %1065 }
 0x56a   :  { %10346 = vpow2.f32 %v1662_v13  ;;  %v1660_v31 = vmul.f32 1.442695, %v1646_v20 }
 0x56b   :  { %v11322_v22 = vpop.eup %10334  ;;  %10348 = vrcp.f32 %v1066_v17  ;;  %v1063_v19 = vpop.xlane.xlu0 %1062 }
 0x56c   :  { %10350 = vpow2.f32 %v1660_v31  ;;  %v1667_v51 = vsel %vm996_vm5, %v11322_v22, 0.0 }
 0x56d   :  { %v11326_v8 = vpop.eup %10336  ;;  %10352 = vrcp.f32 %v1063_v19  ;;  %1668 = vadd.xlane.f32.xlu1 %v1667_v51  ;;  %v1072_v48 = vpop.xlane.xlu1 %1071 }
 0x56e   :  { %v1664_v49 = vsel %vm996_vm5, %v11326_v8, 0.0  ;;  %10354 = vrcp.f32 %v1072_v48 }
 0x56f   :  { %v11330_v56 = vpop.eup %10338  ;;  %1665 = vadd.xlane.f32.xlu0 %v1664_v49  ;;  %v1069_v45 = vpop.xlane.xlu0 %1068 }
 0x570   :  { %10356 = vrcp.f32 %v1069_v45  ;;  %v1673_v46 = vsel %vm996_vm5, %v11330_v56, 0.0 }
 0x571   :  { %v11334_v44 = vpop.eup %10340  ;;  %1674 = vadd.xlane.f32.xlu1 %v1673_v46  ;;  %v1078_v25 = vpop.xlane.xlu1 %1077 }
 0x572   :  { %v1670_v53 = vsel %vm996_vm5, %v11334_v44, 0.0  ;;  %10358 = vrcp.f32 %v1078_v25 }
 0x573   :  { %v11338_v43 = vpop.eup %10342  ;;  %1671 = vadd.xlane.f32.xlu0 %v1670_v53  ;;  %v1075_v62 = vpop.xlane.xlu0 %1074 }
 0x574   :  { %10360 = vrcp.f32 %v1075_v62  ;;  %v1679_v32 = vsel %vm996_vm5, %v11338_v43, 0.0 }
 0x575   :  { %v11342_v39 = vpop.eup %10344  ;;  %1680 = vadd.xlane.f32.xlu1 %v1679_v32  ;;  %v1084_v35 = vpop.xlane.xlu1 %1083 }
 0x576   :  { %v1676_v41 = vsel %vm996_vm5, %v11342_v39, 0.0  ;;  %10362 = vrcp.f32 %v1084_v35 }
 0x577   :  { %v11346_v34 = vpop.eup %10346  ;;  %1677 = vadd.xlane.f32.xlu0 %v1676_v41  ;;  %v1081_v29 = vpop.xlane.xlu0 %1080 }
 0x578   :  { %v10349_v54 = vpop.eup %10348  ;;  %10364 = vrcp.f32 %v1081_v29  ;;  %v1685_v38 = vsel %vm996_vm5, %v11346_v34, 0.0 }
 0x579   :  { %v11350_v55 = vpop.eup %10350  ;;  %1686 = vadd.xlane.f32.xlu1 %v1685_v38  ;;  %v1094_v63 = vmul.f32 %v10349_v54, %v11275_v42 }
 0x57a   :  { %v10353_v59 = vpop.eup %10352  ;;  %v1682_v61 = vsel %vm996_vm5, %v11350_v55, 0.0 }
 0x57b   :  { %1683 = vadd.xlane.f32.xlu0 %v1682_v61  ;;  %v1093_v27 = vmul.f32 %v10353_v59, %v11278_v26  ;;  %v10355_v2 = vpop.eup %10354 }
 0x57c   :  { %v1096_v26 = vmul.f32 %v10355_v2, %v11280_v7 }
 0x57d   :  { %v10357_v1 = vpop.eup %10356  ;;  %9502 = vmatprep.mubr.msk.f32.mxu0 %vm996_vm5, %v1093_v27 }
 0x57e   :  { %9503 = vmatmul.mubr.msk.f32.vlgmr.msra.gmra.mxu0 %vm996_vm5, %v1094_v63  ;;  %v1095_v11 = vmul.f32 %v10357_v1, %v11284_v28  ;;  %v8268_v1 = vld [vmem:[%s13284_s1 + $0x32e] ss:$0 sm:$0xff] }
 0x57f   :  { %9529 = vmatpush3.xpose.msk.msra.mxu0 %vm19_vm0, %v11311_v50  ;;  %v10359_v60 = vpop.eup %10358 }
 0x580   :  { %9505 = vmatprep.mubr.msk.f32.mxu0 %vm996_vm5, %v1095_v11  ;;  %9570 = vmatprep.subr.mxu0 %v2568_v24  ;;  %v1098_v47 = vmul.f32 %v10359_v60, %v11288_v30  ;;  %v2567_v30 = vld [vmem:[%s13284_s1 + $0x1e8] sm:$0xff] }
 0x581   :  { %v10361_v42 = vpop.eup %10360 }
 0x582   :  { %9506 = vmatmul.mubr.msk.f32.gmra.mxu0 %vm996_vm5, %v1096_v26  ;;  %v1097_v12 = vmul.f32 %v10361_v42, %v11292_v33  ;;  %v2071_v33 = vld [vmem:[%s13284_s1 + $0x128] sm:$0xff] }
 0x583   :  { %v10363_v14 = vpop.eup %10362  ;;  %9514 = vmatprep.subr.msk.mxu1 %vm19_vm0, %v2071_v33 }
 0x584   :  { %9508 = vmatprep.mubr.msk.f32.mxu0 %vm996_vm5, %v1097_v12  ;;  %v1100_v7 = vmul.f32 %v10363_v14, %v11298_v37  ;;  %v2566_v37 = vld [vmem:[%s13284_s1 + $0x1e0] sm:$0xff] }
 0x585   :  { %v10365_v28 = vpop.eup %10364 }
 0x586   :  { %9509 = vmatmul.mubr.msk.f32.gmra.mxu0 %vm996_vm5, %v1098_v47  ;;  %v1099_v50 = vmul.f32 %v10365_v28, %v11302_v40  ;;  %v2565_v40 = vld [vmem:[%s13284_s1 + $0x1d8] sm:$0xff] }
 0x588   :  { %9511 = vmatprep.mubr.msk.f32.mxu0 %vm996_vm5, %v1099_v50 }
 0x58a   :  { %9512 = vmatmul.mubr.msk.f32.gmra.mxu0 %vm996_vm5, %v1100_v7 }
 0x58b   :  { %9530 = vmatprep.mubr.msk.f32.mxu0 %vm19_vm0, %v10870_v57 }
 0x58e   :  { %9531 = vmatmul.mubr.msk.f32.vlgmr.msra.gmra.mxu0 %vm19_vm0, %v10872_v58 }
 0x58f   :  { %9533 = vmatprep.mubr.msk.f32.mxu0 %vm19_vm0, %v10897_v5  ;;  %9571 = vmatpush3.msra.mxu0 %v2568_v24 }
 0x590   :  { %9572 = vmatprep.subr.mxu0 %v2567_v30 }
 0x591   :  { %9573 = vmatpush3.msra.mxu0 %v2567_v30 }
 0x592   :  { %9534 = vmatmul.mubr.msk.f32.gmra.mxu0 %vm19_vm0, %v10899_v6  ;;  %9574 = vmatprep.subr.mxu0 %v2566_v37 }
 0x593   :  { %9536 = vmatprep.mubr.msk.f32.mxu0 %vm19_vm0, %v10919_v15  ;;  %9575 = vmatpush3.msra.mxu0 %v2566_v37 }
 0x594   :  { %9576 = vmatprep.subr.mxu0 %v2565_v40 }
 0x595   :  { %9577 = vmatpush3.msra.mxu0 %v2565_v40 }
 0x596   :  { %9537 = vmatmul.mubr.msk.f32.gmra.mxu0 %vm19_vm0, %v10921_v16 }
 0x597   :  { %9539 = vmatprep.mubr.msk.f32.mxu0 %vm19_vm0, %v10934_v21 }
 0x59a   :  { %9540 = vmatmul.mubr.f32.gmra.mxu0 %v10664_v9 }
 0x59b   :  { %9578 = vmatprep.mubr.msk.f32.mxu0 %vm19_vm0, %v10870_v57 }
 0x59e   :  { %9579 = vmatmul.mubr.msk.f32.vlgmr.msra.gmra.mxu0 %vm19_vm0, %v10872_v58 }
 0x59f   :  { %9581 = vmatprep.mubr.msk.f32.mxu0 %vm19_vm0, %v10897_v5 }
 0x5a2   :  { %9582 = vmatmul.mubr.msk.f32.gmra.mxu0 %vm19_vm0, %v10899_v6 }
 0x5a3   :  { %9584 = vmatprep.mubr.msk.f32.mxu0 %vm19_vm0, %v10919_v15 }
 0x5a6   :  { %9585 = vmatmul.mubr.msk.f32.gmra.mxu0 %vm19_vm0, %v10921_v16 }
 0x5a7   :  { %9587 = vmatprep.mubr.msk.f32.mxu0 %vm19_vm0, %v10934_v21 }
 0x5aa   :  { %9588 = vmatmul.mubr.f32.gmra.mxu0 %v10664_v9 }
 0x5f6   :  { %v1669_v4 = vpop.xlane.xlu1 %1668 }
 0x5f7   :  { %10366 = vrcp.f32 %v1669_v4 }
 0x5f8   :  { %v1666_v52 = vpop.xlane.xlu0 %1665 }
 0x5f9   :  { %10368 = vrcp.f32 %v1666_v52 }
 0x5fa   :  { %v1675_v36 = vpop.xlane.xlu1 %1674 }
 0x5fb   :  { %10370 = vrcp.f32 %v1675_v36 }
 0x5fc   :  { %v1672_v18 = vpop.xlane.xlu0 %1671 }
 0x5fd   :  { %10372 = vrcp.f32 %v1672_v18  ;;  %v2811_v18 = vld [vmem:[%s13284_s1 + $0x130] sm:$0xff] }
 0x5fe   :  { %v1681_v0 = vpop.xlane.xlu1 %1680 }
 0x5ff   :  { %10374 = vrcp.f32 %v1681_v0 }
 0x600   :  { %v1678_v10 = vpop.xlane.xlu0 %1677 }
 0x601   :  { %10376 = vrcp.f32 %v1678_v10 }
 0x602   :  { %v1687_v13 = vpop.xlane.xlu1 %1686 }
 0x603   :  { %10378 = vrcp.f32 %v1687_v13 }
 0x604   :  { %v1684_v20 = vpop.xlane.xlu0 %1683  ;;  %v10367_v17 = vpop.eup %10366 }
 0x605   :  { %10380 = vrcp.f32 %v1684_v20  ;;  %v1697_v51 = vmul.f32 %v10367_v17, %v11322_v22 }
 0x606   :  { %v10369_v31 = vpop.eup %10368 }
 0x607   :  { %v1696_v19 = vmul.f32 %v10369_v31, %v11326_v8 }
 0x608   :  { %v10371_v48 = vpop.eup %10370 }
 0x609   :  { %9474 = vmatprep.mubr.msk.f32.mxu1 %vm996_vm5, %v1696_v19  ;;  %v1699_v46 = vmul.f32 %v10371_v48, %v11330_v56 }
 0x60a   :  { %v10373_v49 = vpop.eup %10372  ;;  %9475 = vmatmul.mubr.msk.f32.vlgmr.msra.gmra.mxu1 %vm996_vm5, %v1697_v51 }
 0x60b   :  { %9515 = vmatpush3.xpose.msk.msra.mxu1 %vm19_vm0, %v2071_v33  ;;  %v1698_v45 = vmul.f32 %v10373_v49, %v11334_v44  ;;  %v8259_v49 = vld [vmem:[%s13284_s1 + $0x32a] ss:$0 sm:$0xff] }
 0x60c   :  { %v10375_v25 = vpop.eup %10374 }
 0x60d   :  { %9477 = vmatprep.mubr.msk.f32.mxu1 %vm996_vm5, %v1698_v45  ;;  %v1701_v8 = vmul.f32 %v10375_v25, %v11338_v43 }
 0x60e   :  { %v10377_v53 = vpop.eup %10376  ;;  %9478 = vmatmul.mubr.msk.f32.gmra.mxu1 %vm996_vm5, %v1699_v46 }
 0x60f   :  { %v1700_v22 = vmul.f32 %v10377_v53, %v11342_v39 }
 0x610   :  { %v10379_v62 = vpop.eup %10378 }
 0x611   :  { %9480 = vmatprep.mubr.msk.f32.mxu1 %vm996_vm5, %v1700_v22  ;;  %v1703_v56 = vmul.f32 %v10379_v62, %v11346_v34 }
 0x612   :  { %v10381_v32 = vpop.eup %10380  ;;  %9481 = vmatmul.mubr.msk.f32.gmra.mxu1 %vm996_vm5, %v1701_v8 }
 0x613   :  { %v1702_v44 = vmul.f32 %v10381_v32, %v11350_v55 }
 0x615   :  { %9483 = vmatprep.mubr.msk.f32.mxu1 %vm996_vm5, %v1702_v44 }
 0x616   :  { %9484 = vmatmul.mubr.msk.f32.gmra.mxu1 %vm996_vm5, %v1703_v56 }
 0x617   :  { %9516 = vmatprep.mubr.msk.f32.mxu1 %vm19_vm0, %v10870_v57 }
 0x61a   :  { %9517 = vmatmul.mubr.msk.f32.vlgmr.msra.gmra.mxu1 %vm19_vm0, %v10872_v58 }
 0x61b   :  { %9519 = vmatprep.mubr.msk.f32.mxu1 %vm19_vm0, %v10897_v5 }
 0x61e   :  { %9520 = vmatmul.mubr.msk.f32.gmra.mxu1 %vm19_vm0, %v10899_v6 }
 0x61f   :  { %9522 = vmatprep.mubr.msk.f32.mxu1 %vm19_vm0, %v10919_v15 }
 0x622   :  { %9523 = vmatmul.mubr.msk.f32.gmra.mxu1 %vm19_vm0, %v10921_v16 }
 0x623   :  { %9525 = vmatprep.mubr.msk.f32.mxu1 %vm19_vm0, %v10934_v21 }
 0x626   :  { %9526 = vmatmul.mubr.f32.gmra.mxu1 %v10664_v9 }
 0x63e   :  { %v11450_v43 = vpop.f32.mrf.mxu0 }
 0x640   :  { %v11452_v39 = vpop.f32.mrf.mxu0 }
 0x642   :  { %v11454_v35 = vpop.f32.mrf.mxu0 }
 0x644   :  { %v11456_v41 = vpop.f32.mrf.mxu0 }
 0x646   :  { %v11458_v34 = vpop.f32.mrf.mxu0 }
 0x648   :  { %v11460_v29 = vpop.f32.mrf.mxu0 }
 0x64a   :  { %v11462_v54 = vpop.f32.mrf.mxu0 }
 0x64c   :  { %v11464_v38 = vpop.f32.mrf.mxu0 }
 0x64e   :  { %v9532_v55 = vpop.f32.mrf.mxu0 }
 0x64f   :  { %v2266_v52 = vadd.f32 %v9532_v55, %v8268_v1 }
 0x650   :  { %v2260_v59 = vpop.f32.mrf.mxu0 }
 0x651   :  { %v2261_v36 = vadd.f32 %v8268_v1, %v2260_v59 }
 0x652   :  { %v9535_v61 = vpop.f32.mrf.mxu0 }
 0x653   :  { %v2276_v30 = vadd.f32 %v9535_v61, %v8268_v1 }
 0x654   :  { %v2270_v27 = vpop.f32.mrf.mxu0 }
 0x655   :  { %v2271_v4 = vadd.f32 %v8268_v1, %v2270_v27 }
 0x656   :  { %v9538_v2 = vpop.f32.mrf.mxu0 }
 0x657   :  { %v2286_v14 = vadd.f32 %v9538_v2, %v8268_v1 }
 0x658   :  { %v2280_v63 = vpop.f32.mrf.mxu0 }
 0x659   :  { %v2281_v50 = vadd.f32 %v8268_v1, %v2280_v63 }
 0x65a   :  { %v9541_v24 = vpop.f32.mrf.mxu0 }
 0x65b   :  { %v2296_v11 = vadd.f32 %v9541_v24, %v8268_v1 }
 0x65c   :  { %v2290_v60 = vpop.f32.mrf.mxu0 }
 0x65d   :  { %v2291_v26 = vadd.f32 %v8268_v1, %v2290_v60  ;;  %9542 = vmatprep.subr.msk.mxu1 %vm834_vm4, %v2296_v11  ;;  %v11536_v60 = vld [vmem:[%s13285_s2 + $0x8] sm:$0xff] }
 0x65e   :  { %9543 = vmatpush3.xpose.msk.msra.mxu1 %vm834_vm4, %v2296_v11  ;;  %v9580_v42 = vpop.f32.mrf.mxu0 }
 0x65f   :  { %9544 = vmatprep.subr.msk.mxu1 %vm834_vm4, %v2291_v26 }
 0x660   :  { %v2635_v12 = vpop.f32.mrf.mxu0 }
 0x662   :  { %9545 = vmatpush3.xpose.msk.msra.mxu1 %vm834_vm4, %v2291_v26  ;;  %v9583_v47 = vpop.f32.mrf.mxu0 }
 0x663   :  { %9546 = vmatprep.subr.msk.mxu1 %vm834_vm4, %v2286_v14 }
 0x664   :  { %v2645_v28 = vpop.f32.mrf.mxu0 }
 0x666   :  { %9547 = vmatpush3.xpose.msk.msra.mxu1 %vm834_vm4, %v2286_v14  ;;  %v9586_v7 = vpop.f32.mrf.mxu0 }
 0x667   :  { %9548 = vmatprep.subr.msk.mxu1 %vm834_vm4, %v2281_v50 }
 0x668   :  { %v2655_v33 = vpop.f32.mrf.mxu0 }
 0x66a   :  { %9549 = vmatpush3.xpose.msk.msra.mxu1 %vm834_vm4, %v2281_v50  ;;  %v9589_v37 = vpop.f32.mrf.mxu0 }
 0x66b   :  { %9550 = vmatprep.subr.msk.mxu1 %vm834_vm4, %v2276_v30  ;;  %9590 = vmatprep.subr.mxu0 %v9589_v37 }
 0x66c   :  { %v2665_v40 = vpop.f32.mrf.mxu0  ;;  %9591 = vmatpush3.msra.mxu0 %v9589_v37 }
 0x66d   :  { %9592 = vmatprep.subr.mxu0 %v2665_v40 }
 0x66e   :  { %9551 = vmatpush3.xpose.msk.msra.mxu1 %vm834_vm4, %v2276_v30  ;;  %9593 = vmatpush3.msra.mxu0 %v2665_v40  ;;  %v11552_v30 = vld [vmem:[%s13285_s2 + $0x18] sm:$0xff] }
 0x66f   :  { %9552 = vmatprep.subr.msk.mxu1 %vm834_vm4, %v2271_v4  ;;  %9594 = vmatprep.subr.mxu0 %v9586_v7 }
 0x670   :  { %9595 = vmatpush3.msra.mxu0 %v9586_v7 }
 0x671   :  { %9596 = vmatprep.subr.mxu0 %v2655_v33 }
 0x672   :  { %9553 = vmatpush3.xpose.msk.msra.mxu1 %vm834_vm4, %v2271_v4  ;;  %9597 = vmatpush3.msra.mxu0 %v2655_v33 }
 0x673   :  { %9554 = vmatprep.subr.msk.mxu1 %vm834_vm4, %v2266_v52  ;;  %9598 = vmatprep.subr.mxu0 %v9583_v47 }
 0x674   :  { %9599 = vmatpush3.msra.mxu0 %v9583_v47  ;;  %v11544_v47 = vld [vmem:[%s13285_s2] sm:$0xff] }
 0x675   :  { %9600 = vmatprep.subr.mxu0 %v2645_v28 }
 0x676   :  { %9555 = vmatpush3.xpose.msk.msra.mxu1 %vm834_vm4, %v2266_v52  ;;  %9601 = vmatpush3.msra.mxu0 %v2645_v28 }
 0x677   :  { %9556 = vmatprep.subr.msk.mxu1 %vm834_vm4, %v2261_v36  ;;  %9602 = vmatprep.subr.mxu0 %v9580_v42 }
 0x678   :  { %9603 = vmatpush3.msra.mxu0 %v9580_v42 }
 0x679   :  { %9604 = vmatprep.subr.mxu0 %v2635_v12 }
 0x67a   :  { %9557 = vmatpush3.xpose.msk.msra.mxu1 %vm834_vm4, %v2261_v36  ;;  %9605 = vmatpush3.msra.mxu0 %v2635_v12  ;;  %v11560_v36 = vld [vmem:[%s13285_s2 + $0x10] sm:$0xff] }
 0x67b   :  { %9618 = vmatprep.subr.msk.mxu1 %vm19_vm0, %v2811_v18 }
 0x6ca   :  { %v11489_v0 = vpop.f32.mrf.mxu1 }
 0x6cc   :  { %v11491_v10 = vpop.f32.mrf.mxu1 }
 0x6ce   :  { %v11493_v13 = vpop.f32.mrf.mxu1 }
 0x6d0   :  { %v11495_v20 = vpop.f32.mrf.mxu1 }
 0x6d2   :  { %v11497_v17 = vpop.f32.mrf.mxu1 }
 0x6d4   :  { %v11499_v31 = vpop.f32.mrf.mxu1 }
 0x6d6   :  { %v11501_v19 = vpop.f32.mrf.mxu1 }
 0x6d8   :  { %v11503_v51 = vpop.f32.mrf.mxu1 }
 0x6da   :  { %v9518_v48 = vpop.f32.mrf.mxu1 }
 0x6db   :  { %v2154_v25 = vadd.f32 %v9518_v48, %v8259_v49 }
 0x6dc   :  { %v2148_v45 = vpop.f32.mrf.mxu1 }
 0x6dd   :  { %v2149_v46 = vadd.f32 %v8259_v49, %v2148_v45 }
 0x6de   :  { %v9521_v53 = vpop.f32.mrf.mxu1 }
 0x6df   :  { %9558 = vmatprep.mubr.msk.f32.mxu1 %vm834_vm4, %v2149_v46  ;;  %v2164_v62 = vadd.f32 %v9521_v53, %v8259_v49  ;;  %v11568_v46 = vld [vmem:[%s13285_s2 + $0x28] sm:$0xff] }
 0x6e0   :  { %v2158_v22 = vpop.f32.mrf.mxu1  ;;  %9559 = vmatmul.mubr.msk.f32.vlgmr.msra.gmra.mxu1 %vm834_vm4, %v2154_v25 }
 0x6e1   :  { %v2159_v8 = vadd.f32 %v8259_v49, %v2158_v22  ;;  %9619 = vmatpush3.xpose.msk.msra.mxu1 %vm19_vm0, %v2811_v18 }
 0x6e2   :  { %v9524_v32 = vpop.f32.mrf.mxu1 }
 0x6e3   :  { %9561 = vmatprep.mubr.msk.f32.mxu1 %vm834_vm4, %v2159_v8  ;;  %v2174_v55 = vadd.f32 %v9524_v32, %v8259_v49 }
 0x6e4   :  { %v2168_v44 = vpop.f32.mrf.mxu1  ;;  %9562 = vmatmul.mubr.msk.f32.gmra.mxu1 %vm834_vm4, %v2164_v62  ;;  %v11576_v62 = vld [vmem:[%s13285_s2 + $0x20] sm:$0xff] }
 0x6e5   :  { %v2169_v56 = vadd.f32 %v8259_v49, %v2168_v44 }
 0x6e6   :  { %v9527_v59 = vpop.f32.mrf.mxu1 }
 0x6e7   :  { %9564 = vmatprep.mubr.msk.f32.mxu1 %vm834_vm4, %v2169_v56  ;;  %v2184_v2 = vadd.f32 %v9527_v59, %v8259_v49  ;;  %v11584_v59 = vld [vmem:[%s13285_s2 + $0x38] sm:$0xff] }
 0x6e8   :  { %v2178_v61 = vpop.f32.mrf.mxu1  ;;  %9565 = vmatmul.mubr.msk.f32.gmra.mxu1 %vm834_vm4, %v2174_v55 }
 0x6e9   :  { %v2179_v27 = vadd.f32 %v8259_v49, %v2178_v61 }
 0x6eb   :  { %9567 = vmatprep.mubr.msk.f32.mxu1 %vm834_vm4, %v2179_v27 }
 0x6ec   :  { %9568 = vmatmul.mubr.msk.f32.gmra.mxu1 %vm834_vm4, %v2184_v2 }
 0x6ed   :  { %9620 = vmatprep.mubr.msk.f32.mxu1 %vm19_vm0, %v10870_v57 }
 0x6f0   :  { %9621 = vmatmul.mubr.msk.f32.vlgmr.msra.gmra.mxu1 %vm19_vm0, %v10872_v58 }
 0x6f1   :  { %9623 = vmatprep.mubr.msk.f32.mxu1 %vm19_vm0, %v10897_v5 }
 0x6f4   :  { %9624 = vmatmul.mubr.msk.f32.gmra.mxu1 %vm19_vm0, %v10899_v6 }
 0x6f5   :  { %9626 = vmatprep.mubr.msk.f32.mxu1 %vm19_vm0, %v10919_v15 }
 0x6f8   :  { %9627 = vmatmul.mubr.msk.f32.gmra.mxu1 %vm19_vm0, %v10921_v16 }
 0x6f9   :  { %9629 = vmatprep.mubr.msk.f32.mxu1 %vm19_vm0, %v10934_v21 }
 0x6fc   :  { %9630 = vmatmul.mubr.f32.gmra.mxu1 %v10664_v9 }
 0x7a0   :  { %v9560_v63 = vpop.f32.mrf.mxu1 }
 0x7a1   :  { %v2453_v1 = vmul.f32 0.35355338, %v9560_v63  ;;  %v11594_v63 = vld [vmem:[%s13285_s2 + $0x30] sm:$0xff] }
 0x7a2   :  { %v2413_v24 = vpop.f32.mrf.mxu1 }
 0x7a3   :  { %2462 = vst.msk [vmem:[#allocation2 + $0x88] sm:$0xff] %vm996_vm5, %v2453_v1  ;;  %v2452_v11 = vmul.f32 0.35355338, %v2413_v24  ;;  %v2470_v26 = vadd.f32 %v11536_v60, %v2453_v1  ;;  %v11600_v24 = vld [vmem:[%s13284_s1 + $0x32b] ss:$0 sm:$0xff] }
 0x7a4   :  { %v9563_v42 = vpop.f32.mrf.mxu1 }
 0x7a5   :  { %2461 = vst.msk [vmem:[#allocation2 + $0x80] sm:$0xff] %vm996_vm5, %v2452_v11  ;;  %v2455_v12 = vmul.f32 0.35355338, %v9563_v42  ;;  %v2480_v14 = vsel %vm996_vm5, %v2470_v26, -inf  ;;  %v2469_v28 = vadd.f32 %v11544_v47, %v2452_v11 }
 0x7a6   :  { %2481 = vmax.xlane.f32.xlu1 %v2480_v14  ;;  %v2423_v50 = vpop.f32.mrf.mxu1 }
 0x7a7   :  { %2464 = vst.msk [vmem:[#allocation2 + $0x98] sm:$0xff] %vm996_vm5, %v2455_v12  ;;  %v2454_v7 = vmul.f32 0.35355338, %v2423_v50  ;;  %v2477_v33 = vsel %vm996_vm5, %v2469_v28, -inf  ;;  %v2472_v37 = vadd.f32 %v11552_v30, %v2455_v12 }
 0x7a8   :  { %2478 = vmax.xlane.f32.xlu0 %v2477_v33  ;;  %v9566_v40 = vpop.f32.mrf.mxu1 }
 0x7a9   :  { %2463 = vst.msk [vmem:[#allocation2 + $0x90] sm:$0xff] %vm996_vm5, %v2454_v7  ;;  %v2457_v4 = vmul.f32 0.35355338, %v9566_v40  ;;  %v2486_v52 = vsel %vm996_vm5, %v2472_v37, -inf  ;;  %v2471_v18 = vadd.f32 %v11560_v36, %v2454_v7 }
 0x7aa   :  { %2487 = vmax.xlane.f32.xlu1 %v2486_v52  ;;  %v2433_v48 = vpop.f32.mrf.mxu1 }
 0x7ab   :  { %2466 = vst.msk [vmem:[#allocation2 + $0xa8] sm:$0xff] %vm996_vm5, %v2457_v4  ;;  %v2456_v49 = vmul.f32 0.35355338, %v2433_v48  ;;  %v2483_v45 = vsel %vm996_vm5, %v2471_v18, -inf  ;;  %v2474_v25 = vadd.f32 %v11568_v46, %v2457_v4 }
 0x7ac   :  { %2484 = vmax.xlane.f32.xlu0 %v2483_v45  ;;  %v9569_v53 = vpop.f32.mrf.mxu1 }
 0x7ad   :  { %2465 = vst.msk [vmem:[#allocation2 + $0xa0] sm:$0xff] %vm996_vm5, %v2456_v49  ;;  %v2459_v22 = vmul.f32 0.35355338, %v9569_v53  ;;  %v2492_v8 = vsel %vm996_vm5, %v2474_v25, -inf  ;;  %v2473_v32 = vadd.f32 %v11576_v62, %v2456_v49 }
 0x7ae   :  { %2493 = vmax.xlane.f32.xlu1 %v2492_v8  ;;  %v2443_v44 = vpop.f32.mrf.mxu1 }
 0x7af   :  { %2468 = vst.msk [vmem:[#allocation2 + $0xb8] sm:$0xff] %vm996_vm5, %v2459_v22  ;;  %v2458_v56 = vmul.f32 0.35355338, %v2443_v44  ;;  %v2489_v55 = vsel %vm996_vm5, %v2473_v32, -inf  ;;  %v2476_v61 = vadd.f32 %v11584_v59, %v2459_v22 }
 0x7b0   :  { %2490 = vmax.xlane.f32.xlu0 %v2489_v55  ;;  %v11587_v27 = vpop.f32.mrf.mxu1 }
 0x7b1   :  { %2467 = vst.msk [vmem:[#allocation2 + $0xb0] sm:$0xff] %vm996_vm5, %v2458_v56  ;;  %v2498_v2 = vsel %vm996_vm5, %v2476_v61, -inf  ;;  %v2475_v1 = vadd.f32 %v11594_v63, %v2458_v56 }
 0x7b2   :  { %2499 = vmax.xlane.f32.xlu1 %v2498_v2  ;;  %v2888_v11 = vpop.f32.mrf.mxu1 }
 0x7b3   :  { %v2889_v42 = vadd.f32 %v11600_v24, %v2888_v11  ;;  %v2495_v12 = vsel %vm996_vm5, %v2475_v1, -inf }
 0x7b4   :  { %2496 = vmax.xlane.f32.xlu0 %v2495_v12 }
 0x7b5   :  { %9662 = vmatprep.mubr.msk.f32.mxu1 %vm834_vm4, %v2889_v42 }
 0x82f   :  { %v2482_v14 = vpop.xlane.xlu1 %2481 }
 0x830   :  { %v2502_v50 = vsub.f32 %v2470_v26, %v2482_v14 }
 0x831   :  { %v2479_v7 = vpop.xlane.xlu0 %2478 }
 0x832   :  { %v2511_v33 = vmul.f32 1.442695, %v2502_v50  ;;  %v2501_v40 = vsub.f32 %v2469_v28, %v2479_v7 }
 0x833   :  { %v2488_v4 = vpop.xlane.xlu1 %2487 }
 0x834   :  { %10382 = vpow2.f32 %v2511_v33  ;;  %v2509_v52 = vmul.f32 1.442695, %v2501_v40  ;;  %v2504_v48 = vsub.f32 %v2472_v37, %v2488_v4 }
 0x835   :  { %v2485_v49 = vpop.xlane.xlu0 %2484 }
 0x836   :  { %10384 = vpow2.f32 %v2509_v52  ;;  %v2515_v45 = vmul.f32 1.442695, %v2504_v48  ;;  %v2503_v53 = vsub.f32 %v2471_v18, %v2485_v49 }
 0x837   :  { %v2494_v22 = vpop.xlane.xlu1 %2493 }
 0x838   :  { %10386 = vpow2.f32 %v2515_v45  ;;  %v2513_v8 = vmul.f32 1.442695, %v2503_v53  ;;  %v2506_v44 = vsub.f32 %v2474_v25, %v2494_v22 }
 0x839   :  { %v2491_v56 = vpop.xlane.xlu0 %2490 }
 0x83a   :  { %10388 = vpow2.f32 %v2513_v8  ;;  %v2519_v55 = vmul.f32 1.442695, %v2506_v44  ;;  %v2505_v2 = vsub.f32 %v2473_v32, %v2491_v56  ;;  %v2812_v8 = vld [vmem:[%s13284_s1 + $0x170] sm:$0xff] }
 0x83b   :  { %v2500_v26 = vpop.xlane.xlu1 %2499  ;;  %9632 = vmatprep.subr.msk.mxu0 %vm19_vm0, %v2812_v8 }
 0x83c   :  { %10390 = vpow2.f32 %v2519_v55  ;;  %v2517_v11 = vmul.f32 1.442695, %v2505_v2  ;;  %v2508_v28 = vsub.f32 %v2476_v61, %v2500_v26 }
 0x83d   :  { %v2497_v42 = vpop.xlane.xlu0 %2496 }
 0x83e   :  { %10392 = vpow2.f32 %v2517_v11  ;;  %v2523_v12 = vmul.f32 1.442695, %v2508_v28  ;;  %v2507_v37 = vsub.f32 %v2475_v1, %v2497_v42 }
 0x840   :  { %10394 = vpow2.f32 %v2523_v12  ;;  %v2521_v14 = vmul.f32 1.442695, %v2507_v37 }
 0x841   :  { %v10383_v50 = vpop.eup %10382 }
 0x842   :  { %10396 = vpow2.f32 %v2521_v14  ;;  %v2528_v18 = vsel %vm996_vm5, %v10383_v50, 0.0 }
 0x843   :  { %v10385_v7 = vpop.eup %10384  ;;  %2529 = vadd.xlane.f32.xlu1 %v2528_v18 }
 0x844   :  { %v2525_v25 = vsel %vm996_vm5, %v10385_v7, 0.0 }
 0x845   :  { %v10387_v33 = vpop.eup %10386  ;;  %2526 = vadd.xlane.f32.xlu0 %v2525_v25 }
 0x846   :  { %v2534_v32 = vsel %vm996_vm5, %v10387_v33, 0.0 }
 0x847   :  { %v10389_v40 = vpop.eup %10388  ;;  %2535 = vadd.xlane.f32.xlu1 %v2534_v32  ;;  %v3308_v32 = vld [vmem:[%s13284_s1 + $0x210] sm:$0xff] }
 0x848   :  { %v2531_v61 = vsel %vm996_vm5, %v10389_v40, 0.0 }
 0x849   :  { %v10391_v4 = vpop.eup %10390  ;;  %2532 = vadd.xlane.f32.xlu0 %v2531_v61 }
 0x84a   :  { %v2540_v1 = vsel %vm996_vm5, %v10391_v4, 0.0 }
 0x84b   :  { %v10393_v52 = vpop.eup %10392  ;;  %2541 = vadd.xlane.f32.xlu1 %v2540_v1 }
 0x84c   :  { %v2537_v48 = vsel %vm996_vm5, %v10393_v52, 0.0 }
 0x84d   :  { %v10395_v49 = vpop.eup %10394  ;;  %2538 = vadd.xlane.f32.xlu0 %v2537_v48 }
 0x84e   :  { %v2546_v45 = vsel %vm996_vm5, %v10395_v49, 0.0 }
 0x84f   :  { %v10397_v53 = vpop.eup %10396  ;;  %2547 = vadd.xlane.f32.xlu1 %v2546_v45 }
 0x850   :  { %v2543_v22 = vsel %vm996_vm5, %v10397_v53, 0.0 }
 0x851   :  { %2544 = vadd.xlane.f32.xlu0 %v2543_v22 }
 0x8cc   :  { %v2530_v44 = vpop.xlane.xlu1 %2529 }
 0x8cd   :  { %10398 = vrcp.f32 %v2530_v44 }
 0x8ce   :  { %v2527_v56 = vpop.xlane.xlu0 %2526 }
 0x8cf   :  { %10400 = vrcp.f32 %v2527_v56 }
 0x8d0   :  { %v2536_v55 = vpop.xlane.xlu1 %2535 }
 0x8d1   :  { %10402 = vrcp.f32 %v2536_v55 }
 0x8d2   :  { %v2533_v2 = vpop.xlane.xlu0 %2532 }
 0x8d3   :  { %10404 = vrcp.f32 %v2533_v2 }
 0x8d4   :  { %v2542_v26 = vpop.xlane.xlu1 %2541 }
 0x8d5   :  { %10406 = vrcp.f32 %v2542_v26  ;;  %v2048_v26 = vadd.f32 %v11454_v35, %v11493_v13 }
 0x8d6   :  { %v2539_v11 = vpop.xlane.xlu0 %2538 }
 0x8d7   :  { %10408 = vrcp.f32 %v2539_v11 }
 0x8d8   :  { %v2548_v28 = vpop.xlane.xlu1 %2547 }
 0x8d9   :  { %10410 = vrcp.f32 %v2548_v28 }
 0x8da   :  { %v2545_v42 = vpop.xlane.xlu0 %2544  ;;  %v10399_v12 = vpop.eup %10398 }
 0x8db   :  { %10412 = vrcp.f32 %v2545_v42  ;;  %v2558_v18 = vmul.f32 %v10399_v12, %v10383_v50  ;;  %v2058_v12 = vadd.f32 %v11458_v34, %v11497_v17  ;;  %v8317_v34 = vld [vmem:[%s13284_s1 + $0x32f] ss:$0 sm:$0xff] }
 0x8dc   :  { %v10401_v37 = vpop.eup %10400 }
 0x8dd   :  { %v2557_v14 = vmul.f32 %v10401_v37, %v10385_v7 }
 0x8de   :  { %v10403_v25 = vpop.eup %10402 }
 0x8df   :  { %9606 = vmatprep.mubr.msk.f32.mxu0 %vm996_vm5, %v2557_v14  ;;  %v2560_v48 = vmul.f32 %v10403_v25, %v10387_v33  ;;  %v3307_v33 = vld [vmem:[%s13284_s1 + $0x208] sm:$0xff] }
 0x8e0   :  { %v10405_v61 = vpop.eup %10404  ;;  %9607 = vmatmul.mubr.msk.f32.vlgmr.msra.gmra.mxu0 %vm996_vm5, %v2558_v18 }
 0x8e1   :  { %9633 = vmatpush3.xpose.msk.msra.mxu0 %vm19_vm0, %v2812_v8  ;;  %v2559_v1 = vmul.f32 %v10405_v61, %v10389_v40  ;;  %v3306_v40 = vld [vmem:[%s13284_s1 + $0x200] sm:$0xff] }
 0x8e2   :  { %9674 = vmatprep.subr.mxu0 %v3308_v32  ;;  %v10407_v45 = vpop.eup %10406 }
 0x8e3   :  { %9609 = vmatprep.mubr.msk.f32.mxu0 %vm996_vm5, %v2559_v1  ;;  %v2562_v22 = vmul.f32 %v10407_v45, %v10391_v4  ;;  %v3305_v4 = vld [vmem:[%s13284_s1 + $0x1f8] sm:$0xff] }
 0x8e4   :  { %v10409_v7 = vpop.eup %10408  ;;  %9610 = vmatmul.mubr.msk.f32.gmra.mxu0 %vm996_vm5, %v2560_v48 }
 0x8e5   :  { %v2561_v50 = vmul.f32 %v10409_v7, %v10393_v52  ;;  %v2038_v52 = vadd.f32 %v11450_v43, %v11489_v0  ;;  %v2068_v0 = vadd.f32 %v11462_v54, %v11501_v19 }
 0x8e6   :  { %v10411_v44 = vpop.eup %10410 }
 0x8e7   :  { %9612 = vmatprep.mubr.msk.f32.mxu0 %vm996_vm5, %v2561_v50  ;;  %v2564_v2 = vmul.f32 %v10411_v44, %v10395_v49 }
 0x8e8   :  { %v10413_v56 = vpop.eup %10412  ;;  %9613 = vmatmul.mubr.msk.f32.gmra.mxu0 %vm996_vm5, %v2562_v22 }
 0x8e9   :  { %v2563_v55 = vmul.f32 %v10413_v56, %v10397_v53 }
 0x8eb   :  { %9615 = vmatprep.mubr.msk.f32.mxu0 %vm996_vm5, %v2563_v55 }
 0x8ec   :  { %9616 = vmatmul.mubr.msk.f32.gmra.mxu0 %vm996_vm5, %v2564_v2 }
 0x8ed   :  { %9634 = vmatprep.mubr.msk.f32.mxu0 %vm19_vm0, %v10870_v57 }
 0x8f0   :  { %9635 = vmatmul.mubr.msk.f32.vlgmr.msra.gmra.mxu0 %vm19_vm0, %v10872_v58 }
 0x8f1   :  { %9637 = vmatprep.mubr.msk.f32.mxu0 %vm19_vm0, %v10897_v5  ;;  %9675 = vmatpush3.msra.mxu0 %v3308_v32 }
 0x8f2   :  { %9676 = vmatprep.subr.mxu0 %v3307_v33 }
 0x8f3   :  { %9677 = vmatpush3.msra.mxu0 %v3307_v33 }
 0x8f4   :  { %9638 = vmatmul.mubr.msk.f32.gmra.mxu0 %vm19_vm0, %v10899_v6  ;;  %9678 = vmatprep.subr.mxu0 %v3306_v40 }
 0x8f5   :  { %9640 = vmatprep.mubr.msk.f32.mxu0 %vm19_vm0, %v10919_v15  ;;  %9679 = vmatpush3.msra.mxu0 %v3306_v40 }
 0x8f6   :  { %9680 = vmatprep.subr.mxu0 %v3305_v4 }
 0x8f7   :  { %9681 = vmatpush3.msra.mxu0 %v3305_v4 }
 0x8f8   :  { %9641 = vmatmul.mubr.msk.f32.gmra.mxu0 %vm19_vm0, %v10921_v16 }
 0x8f9   :  { %9643 = vmatprep.mubr.msk.f32.mxu0 %vm19_vm0, %v10934_v21 }
 0x8fc   :  { %9644 = vmatmul.mubr.f32.gmra.mxu0 %v10664_v9 }
 0x8fd   :  { %9682 = vmatprep.mubr.msk.f32.mxu0 %vm19_vm0, %v10870_v57 }
 0x900   :  { %9683 = vmatmul.mubr.msk.f32.vlgmr.msra.gmra.mxu0 %vm19_vm0, %v10872_v58 }
 0x901   :  { %9685 = vmatprep.mubr.msk.f32.mxu0 %vm19_vm0, %v10897_v5 }
 0x904   :  { %9686 = vmatmul.mubr.msk.f32.gmra.mxu0 %vm19_vm0, %v10899_v6 }
 0x905   :  { %9688 = vmatprep.mubr.msk.f32.mxu0 %vm19_vm0, %v10919_v15 }
 0x908   :  { %9689 = vmatmul.mubr.msk.f32.gmra.mxu0 %vm19_vm0, %v10921_v16 }
 0x909   :  { %9691 = vmatprep.mubr.msk.f32.mxu0 %vm19_vm0, %v10934_v21 }
 0x90c   :  { %9692 = vmatmul.mubr.f32.gmra.mxu0 %v10664_v9 }
 0x9a0   :  { %v9608_v49 = vpop.f32.mrf.mxu0 }
 0x9a1   :  { %v11670_v53 = vadd.f32 %v9608_v49, %v2038_v52 }
 0x9a2   :  { %v11672_v8 = vpop.f32.mrf.mxu0 }
 0x9a4   :  { %v9611_v11 = vpop.f32.mrf.mxu0 }
 0x9a5   :  { %v11676_v28 = vadd.f32 %v9611_v11, %v2048_v26  ;;  %v9625_v26 = vpop.f32.mrf.mxu1 }
 0x9a6   :  { %v11678_v42 = vpop.f32.mrf.mxu0 }
 0x9a8   :  { %v9614_v37 = vpop.f32.mrf.mxu0 }
 0x9a9   :  { %v11682_v14 = vadd.f32 %v9614_v37, %v2058_v12  ;;  %v2898_v12 = vpop.f32.mrf.mxu1 }
 0x9aa   :  { %v11684_v43 = vpop.f32.mrf.mxu0 }
 0x9ac   :  { %v9617_v18 = vpop.f32.mrf.mxu0 }
 0x9ad   :  { %v11688_v25 = vadd.f32 %v9617_v18, %v2068_v0  ;;  %v9628_v0 = vpop.f32.mrf.mxu1 }
 0x9ae   :  { %v11690_v35 = vpop.f32.mrf.mxu0 }
 0x9b0   :  { %v9636_v13 = vpop.f32.mrf.mxu0 }
 0x9b1   :  { %v3006_v37 = vadd.f32 %v9636_v13, %v8317_v34  ;;  %v2894_v13 = vadd.f32 %v11587_v27, %v11600_v24  ;;  %v2914_v27 = vadd.f32 %v9628_v0, %v11600_v24 }
 0x9b2   :  { %v3000_v32 = vpop.f32.mrf.mxu0 }
 0x9b3   :  { %v3001_v18 = vadd.f32 %v8317_v34, %v3000_v32  ;;  %v2904_v32 = vadd.f32 %v9625_v26, %v11600_v24 }
 0x9b4   :  { %v9639_v61 = vpop.f32.mrf.mxu0 }
 0x9b5   :  { %v3016_v4 = vadd.f32 %v9639_v61, %v8317_v34  ;;  %v2908_v61 = vpop.f32.mrf.mxu1 }
 0x9b6   :  { %v3010_v1 = vpop.f32.mrf.mxu0 }
 0x9b7   :  { %v3011_v11 = vadd.f32 %v8317_v34, %v3010_v1  ;;  %v9631_v1 = vpop.f32.mrf.mxu1 }
 0x9b8   :  { %v9642_v48 = vpop.f32.mrf.mxu0 }
 0x9b9   :  { %v3026_v44 = vadd.f32 %v9642_v48, %v8317_v34  ;;  %v2899_v48 = vadd.f32 %v11600_v24, %v2898_v12 }
 0x9ba   :  { %v3020_v45 = vpop.f32.mrf.mxu0 }
 0x9bb   :  { %v3021_v2 = vadd.f32 %v8317_v34, %v3020_v45  ;;  %v2918_v45 = vpop.f32.mrf.mxu1 }
 0x9bc   :  { %v9645_v17 = vpop.f32.mrf.mxu0 }
 0x9bd   :  { %v3036_v7 = vadd.f32 %v9645_v17, %v8317_v34  ;;  %v2919_v17 = vadd.f32 %v11600_v24, %v2918_v45 }
 0x9be   :  { %v3030_v50 = vpop.f32.mrf.mxu0 }
 0x9bf   :  { %v3031_v22 = vadd.f32 %v8317_v34, %v3030_v50  ;;  %9646 = vmatprep.subr.msk.mxu1 %vm834_vm4, %v3036_v7  ;;  %v2909_v34 = vadd.f32 %v11600_v24, %v2908_v61 }
 0x9c0   :  { %9647 = vmatpush3.xpose.msk.msra.mxu1 %vm834_vm4, %v3036_v7  ;;  %v9684_v54 = vpop.f32.mrf.mxu0  ;;  %v2924_v7 = vadd.f32 %v9631_v1, %v11600_v24 }
 0x9c1   :  { %9648 = vmatprep.subr.msk.mxu1 %vm834_vm4, %v3031_v22 }
 0x9c2   :  { %v3375_v19 = vpop.f32.mrf.mxu0 }
 0x9c4   :  { %9649 = vmatpush3.xpose.msk.msra.mxu1 %vm834_vm4, %v3031_v22  ;;  %v9687_v56 = vpop.f32.mrf.mxu0 }
 0x9c5   :  { %9650 = vmatprep.subr.msk.mxu1 %vm834_vm4, %v3026_v44 }
 0x9c6   :  { %v3385_v55 = vpop.f32.mrf.mxu0 }
 0x9c8   :  { %9651 = vmatpush3.xpose.msk.msra.mxu1 %vm834_vm4, %v3026_v44  ;;  %v9690_v33 = vpop.f32.mrf.mxu0 }
 0x9c9   :  { %9652 = vmatprep.subr.msk.mxu1 %vm834_vm4, %v3021_v2 }
 0x9ca   :  { %v3395_v40 = vpop.f32.mrf.mxu0 }
 0x9cc   :  { %9653 = vmatpush3.xpose.msk.msra.mxu1 %vm834_vm4, %v3021_v2  ;;  %v9693_v52 = vpop.f32.mrf.mxu0 }
 0x9cd   :  { %9654 = vmatprep.subr.msk.mxu1 %vm834_vm4, %v3016_v4  ;;  %9694 = vmatprep.subr.mxu0 %v9693_v52 }
 0x9ce   :  { %v3405_v49 = vpop.f32.mrf.mxu0  ;;  %9695 = vmatpush3.msra.mxu0 %v9693_v52 }
 0x9cf   :  { %9696 = vmatprep.subr.mxu0 %v3405_v49 }
 0x9d0   :  { %9655 = vmatpush3.xpose.msk.msra.mxu1 %vm834_vm4, %v3016_v4  ;;  %9697 = vmatpush3.msra.mxu0 %v3405_v49 }
 0x9d1   :  { %9656 = vmatprep.subr.msk.mxu1 %vm834_vm4, %v3011_v11  ;;  %9698 = vmatprep.subr.mxu0 %v9690_v33 }
 0x9d2   :  { %9699 = vmatpush3.msra.mxu0 %v9690_v33 }
 0x9d3   :  { %9700 = vmatprep.subr.mxu0 %v3395_v40 }
 0x9d4   :  { %9657 = vmatpush3.xpose.msk.msra.mxu1 %vm834_vm4, %v3011_v11  ;;  %9701 = vmatpush3.msra.mxu0 %v3395_v40 }
 0x9d5   :  { %9658 = vmatprep.subr.msk.mxu1 %vm834_vm4, %v3006_v37  ;;  %9702 = vmatprep.subr.mxu0 %v9687_v56 }
 0x9d6   :  { %9703 = vmatpush3.msra.mxu0 %v9687_v56 }
 0x9d7   :  { %9704 = vmatprep.subr.mxu0 %v3385_v55 }
 0x9d8   :  { %9659 = vmatpush3.xpose.msk.msra.mxu1 %vm834_vm4, %v3006_v37  ;;  %9705 = vmatpush3.msra.mxu0 %v3385_v55 }
 0x9d9   :  { %9660 = vmatprep.subr.msk.mxu1 %vm834_vm4, %v3001_v18  ;;  %9706 = vmatprep.subr.mxu0 %v9684_v54 }
 0x9da   :  { %9707 = vmatpush3.msra.mxu0 %v9684_v54 }
 0x9db   :  { %9708 = vmatprep.subr.mxu0 %v3375_v19 }
 0x9dc   :  { %9661 = vmatpush3.xpose.msk.msra.mxu1 %vm834_vm4, %v3001_v18  ;;  %9709 = vmatpush3.msra.mxu0 %v3375_v19 }
 0x9df   :  { %9663 = vmatmul.mubr.msk.f32.vlgmr.msra.gmra.mxu1 %vm834_vm4, %v2894_v13 }
 0x9e0   :  { %9665 = vmatprep.mubr.msk.f32.mxu1 %vm834_vm4, %v2899_v48 }
 0x9e3   :  { %9666 = vmatmul.mubr.msk.f32.gmra.mxu1 %vm834_vm4, %v2904_v32 }
 0x9e4   :  { %9668 = vmatprep.mubr.msk.f32.mxu1 %vm834_vm4, %v2909_v34 }
 0x9e7   :  { %9669 = vmatmul.mubr.msk.f32.gmra.mxu1 %vm834_vm4, %v2914_v27 }
 0x9e8   :  { %9671 = vmatprep.mubr.msk.f32.mxu1 %vm834_vm4, %v2919_v17 }
 0x9eb   :  { %9672 = vmatmul.mubr.msk.f32.gmra.mxu1 %vm834_vm4, %v2924_v7 }
 0xa9f   :  { %v9664_v50 = vpop.f32.mrf.mxu1 }
 0xaa0   :  { %v3193_v22 = vmul.f32 0.35355338, %v9664_v50 }
 0xaa1   :  { %v3153_v54 = vpop.f32.mrf.mxu1 }
 0xaa2   :  { %3202 = vst.msk [vmem:[#allocation2 + $0xc8] sm:$0xff] %vm996_vm5, %v3193_v22  ;;  %v3192_v19 = vmul.f32 0.35355338, %v3153_v54  ;;  %v3210_v44 = vadd.f32 %v11536_v60, %v3193_v22 }
 0xaa3   :  { %v9667_v56 = vpop.f32.mrf.mxu1 }
 0xaa4   :  { %3201 = vst.msk [vmem:[#allocation2 + $0xc0] sm:$0xff] %vm996_vm5, %v3192_v19  ;;  %v3195_v55 = vmul.f32 0.35355338, %v9667_v56  ;;  %v3220_v2 = vsel %vm996_vm5, %v3210_v44, -inf  ;;  %v3209_v33 = vadd.f32 %v11544_v47, %v3192_v19 }
 0xaa5   :  { %3221 = vmax.xlane.f32.xlu1 %v3220_v2  ;;  %v3163_v24 = vpop.f32.mrf.mxu1 }
 0xaa6   :  { %3204 = vst.msk [vmem:[#allocation2 + $0xd8] sm:$0xff] %vm996_vm5, %v3195_v55  ;;  %v3194_v40 = vmul.f32 0.35355338, %v3163_v24  ;;  %v3217_v4 = vsel %vm996_vm5, %v3209_v33, -inf  ;;  %v3212_v52 = vadd.f32 %v11552_v30, %v3195_v55 }
 0xaa7   :  { %3218 = vmax.xlane.f32.xlu0 %v3217_v4  ;;  %v9670_v49 = vpop.f32.mrf.mxu1 }
 0xaa8   :  { %3203 = vst.msk [vmem:[#allocation2 + $0xd0] sm:$0xff] %vm996_vm5, %v3194_v40  ;;  %v3197_v60 = vmul.f32 0.35355338, %v9670_v49  ;;  %v3226_v26 = vsel %vm996_vm5, %v3212_v52, -inf  ;;  %v3211_v11 = vadd.f32 %v11560_v36, %v3194_v40 }
 0xaa9   :  { %3227 = vmax.xlane.f32.xlu1 %v3226_v26  ;;  %v3173_v47 = vpop.f32.mrf.mxu1 }
 0xaaa   :  { %3206 = vst.msk [vmem:[#allocation2 + $0xe8] sm:$0xff] %vm996_vm5, %v3197_v60  ;;  %v3196_v12 = vmul.f32 0.35355338, %v3173_v47  ;;  %v3223_v37 = vsel %vm996_vm5, %v3211_v11, -inf  ;;  %v3214_v0 = vadd.f32 %v11568_v46, %v3197_v60 }
 0xaab   :  { %3224 = vmax.xlane.f32.xlu0 %v3223_v37  ;;  %v9673_v30 = vpop.f32.mrf.mxu1 }
 0xaac   :  { %3205 = vst.msk [vmem:[#allocation2 + $0xe0] sm:$0xff] %vm996_vm5, %v3196_v12  ;;  %v3199_v18 = vmul.f32 0.35355338, %v9673_v30  ;;  %v3232_v61 = vsel %vm996_vm5, %v3214_v0, -inf  ;;  %v3213_v13 = vadd.f32 %v11576_v62, %v3196_v12 }
 0xaad   :  { %3233 = vmax.xlane.f32.xlu1 %v3232_v61  ;;  %v3183_v36 = vpop.f32.mrf.mxu1 }
 0xaae   :  { %3208 = vst.msk [vmem:[#allocation2 + $0xf8] sm:$0xff] %vm996_vm5, %v3199_v18  ;;  %v3198_v1 = vmul.f32 0.35355338, %v3183_v36  ;;  %v3229_v48 = vsel %vm996_vm5, %v3213_v13, -inf  ;;  %v3216_v32 = vadd.f32 %v11584_v59, %v3199_v18 }
 0xaaf   :  { %3230 = vmax.xlane.f32.xlu0 %v3229_v48 }
 0xab0   :  { %3207 = vst.msk [vmem:[#allocation2 + $0xf0] sm:$0xff] %vm996_vm5, %v3198_v1  ;;  %v3238_v46 = vsel %vm996_vm5, %v3216_v32, -inf  ;;  %v3215_v45 = vadd.f32 %v11594_v63, %v3198_v1 }
 0xab1   :  { %3239 = vmax.xlane.f32.xlu1 %v3238_v46 }
 0xab2   :  { %v3235_v34 = vsel %vm996_vm5, %v3215_v45, -inf }
 0xab3   :  { %3236 = vmax.xlane.f32.xlu0 %v3235_v34 }
 0xb2e   :  { %v3222_v62 = vpop.xlane.xlu1 %3221 }
 0xb2f   :  { %v3242_v17 = vsub.f32 %v3210_v44, %v3222_v62 }
 0xb30   :  { %v3219_v27 = vpop.xlane.xlu0 %3218 }
 0xb31   :  { %v3251_v7 = vmul.f32 1.442695, %v3242_v17  ;;  %v3241_v50 = vsub.f32 %v3209_v33, %v3219_v27 }
 0xb32   :  { %v3228_v22 = vpop.xlane.xlu1 %3227 }
 0xb33   :  { %10414 = vpow2.f32 %v3251_v7  ;;  %v3249_v54 = vmul.f32 1.442695, %v3241_v50  ;;  %v3244_v59 = vsub.f32 %v3212_v52, %v3228_v22 }
 0xb34   :  { %v3225_v19 = vpop.xlane.xlu0 %3224 }
 0xb35   :  { %10416 = vpow2.f32 %v3249_v54  ;;  %v3255_v56 = vmul.f32 1.442695, %v3244_v59  ;;  %v3243_v55 = vsub.f32 %v3211_v11, %v3225_v19 }
 0xb36   :  { %v3234_v2 = vpop.xlane.xlu1 %3233 }
 0xb37   :  { %10418 = vpow2.f32 %v3255_v56  ;;  %v3253_v63 = vmul.f32 1.442695, %v3243_v55  ;;  %v3246_v24 = vsub.f32 %v3214_v0, %v3234_v2 }
 0xb38   :  { %v3231_v40 = vpop.xlane.xlu0 %3230 }
 0xb39   :  { %10420 = vpow2.f32 %v3253_v63  ;;  %v3259_v4 = vmul.f32 1.442695, %v3246_v24  ;;  %v3245_v49 = vsub.f32 %v3213_v13, %v3231_v40 }
 0xb3a   :  { %v3240_v44 = vpop.xlane.xlu1 %3239 }
 0xb3b   :  { %10422 = vpow2.f32 %v3259_v4  ;;  %v3257_v60 = vmul.f32 1.442695, %v3245_v49  ;;  %v3248_v33 = vsub.f32 %v3216_v32, %v3240_v44 }
 0xb3c   :  { %v3237_v26 = vpop.xlane.xlu0 %3236 }
 0xb3d   :  { %10424 = vpow2.f32 %v3257_v60  ;;  %v3263_v47 = vmul.f32 1.442695, %v3248_v33  ;;  %v3247_v52 = vsub.f32 %v3215_v45, %v3237_v26 }
 0xb3f   :  { %10426 = vpow2.f32 %v3263_v47  ;;  %v3261_v12 = vmul.f32 1.442695, %v3247_v52 }
 0xb40   :  { %v10415_v37 = vpop.eup %10414 }
 0xb41   :  { %10428 = vpow2.f32 %v3261_v12  ;;  %v3268_v11 = vsel %vm996_vm5, %v10415_v37, 0.0 }
 0xb42   :  { %v10417_v30 = vpop.eup %10416  ;;  %3269 = vadd.xlane.f32.xlu1 %v3268_v11 }
 0xb43   :  { %v3265_v0 = vsel %vm996_vm5, %v10417_v30, 0.0 }
 0xb44   :  { %v10419_v18 = vpop.eup %10418  ;;  %3266 = vadd.xlane.f32.xlu0 %v3265_v0  ;;  %v3659_v0 = vld [vmem:[%s13285_s2 + $0x50] sm:$0xff] }
 0xb45   :  { %v3274_v61 = vsel %vm996_vm5, %v10419_v18, 0.0 }
 0xb46   :  { %v10421_v13 = vpop.eup %10420  ;;  %3275 = vadd.xlane.f32.xlu1 %v3274_v61  ;;  %v3657_v61 = vld [vmem:[%s13285_s2 + $0x40] sm:$0xff] }
 0xb47   :  { %v3271_v36 = vsel %vm996_vm5, %v10421_v13, 0.0 }
 0xb48   :  { %v10423_v1 = vpop.eup %10422  ;;  %3272 = vadd.xlane.f32.xlu0 %v3271_v36 }
 0xb49   :  { %v3280_v48 = vsel %vm996_vm5, %v10423_v1, 0.0 }
 0xb4a   :  { %v10425_v32 = vpop.eup %10424  ;;  %3281 = vadd.xlane.f32.xlu1 %v3280_v48 }
 0xb4b   :  { %v3277_v46 = vsel %vm996_vm5, %v10425_v32, 0.0 }
 0xb4c   :  { %v10427_v45 = vpop.eup %10426  ;;  %3278 = vadd.xlane.f32.xlu0 %v3277_v46 }
 0xb4d   :  { %v3286_v34 = vsel %vm996_vm5, %v10427_v45, 0.0 }
 0xb4e   :  { %v10429_v62 = vpop.eup %10428  ;;  %3287 = vadd.xlane.f32.xlu1 %v3286_v34 }
 0xb4f   :  { %v3283_v17 = vsel %vm996_vm5, %v10429_v62, 0.0 }
 0xb50   :  { %3284 = vadd.xlane.f32.xlu0 %v3283_v17  ;;  %v2043_v17 = vadd.f32 %v11456_v41, %v11495_v20 }
 0xbcb   :  { %v3270_v27 = vpop.xlane.xlu1 %3269 }
 0xbcc   :  { %10430 = vrcp.f32 %v3270_v27 }
 0xbcd   :  { %v3267_v7 = vpop.xlane.xlu0 %3266 }
 0xbce   :  { %10432 = vrcp.f32 %v3267_v7 }
 0xbcf   :  { %v3276_v50 = vpop.xlane.xlu1 %3275 }
 0xbd0   :  { %10434 = vrcp.f32 %v3276_v50  ;;  %v2805_v50 = vadd.f32 %v11678_v42, %v2043_v17 }
 0xbd1   :  { %v3273_v22 = vpop.xlane.xlu0 %3272 }
 0xbd2   :  { %10436 = vrcp.f32 %v3273_v22 }
 0xbd3   :  { %v3282_v54 = vpop.xlane.xlu1 %3281 }
 0xbd4   :  { %10438 = vrcp.f32 %v3282_v54 }
 0xbd5   :  { %v3279_v59 = vpop.xlane.xlu0 %3278 }
 0xbd6   :  { %10440 = vrcp.f32 %v3279_v59 }
 0xbd7   :  { %v3288_v19 = vpop.xlane.xlu1 %3287 }
 0xbd8   :  { %10442 = vrcp.f32 %v3288_v19 }
 0xbd9   :  { %v3285_v56 = vpop.xlane.xlu0 %3284  ;;  %v10431_v55 = vpop.eup %10430 }
 0xbda   :  { %10444 = vrcp.f32 %v3285_v56  ;;  %v3298_v24 = vmul.f32 %v10431_v55, %v10415_v37 }
 0xbdb   :  { %v10433_v2 = vpop.eup %10432 }
 0xbdc   :  { %v3297_v63 = vmul.f32 %v10433_v2, %v10417_v30  ;;  %v3660_v30 = vld [vmem:[%s13285_s2 + $0x58] sm:$0xff] }
 0xbdd   :  { %v10435_v40 = vpop.eup %10434  ;;  %9722 = vmatprep.subr.mxu1 %v3660_v30 }
 0xbde   :  { %9710 = vmatprep.mubr.msk.f32.mxu0 %vm996_vm5, %v3297_v63  ;;  %v3300_v44 = vmul.f32 %v10435_v40, %v10419_v18  ;;  %9723 = vmatpush3.msra.mxu1 %v3660_v30  ;;  %v3658_v18 = vld [vmem:[%s13285_s2 + $0x48] sm:$0xff] }
 0xbdf   :  { %v10437_v4 = vpop.eup %10436  ;;  %9711 = vmatmul.mubr.msk.f32.vlgmr.msra.gmra.mxu0 %vm996_vm5, %v3298_v24  ;;  %9724 = vmatprep.subr.mxu1 %v3659_v0 }
 0xbe0   :  { %v3299_v49 = vmul.f32 %v10437_v4, %v10421_v13  ;;  %9725 = vmatpush3.msra.mxu1 %v3659_v0  ;;  %v3559_v13 = vlaneseq }
 0xbe1   :  { %v10439_v60 = vpop.eup %10438  ;;  %9726 = vmatprep.subr.mxu1 %v3658_v18 }
 0xbe2   :  { %9713 = vmatprep.mubr.msk.f32.mxu0 %vm996_vm5, %v3299_v49  ;;  %v3302_v47 = vmul.f32 %v10439_v60, %v10423_v1  ;;  %9727 = vmatpush3.msra.mxu1 %v3658_v18  ;;  %v11778_v36 = vshrl.u32 %v3559_v13, 7  ;;  %v2033_v1 = vadd.f32 %v11452_v39, %v11491_v10 }
 0xbe3   :  { %v10441_v33 = vpop.eup %10440  ;;  %9714 = vmatmul.mubr.msk.f32.gmra.mxu0 %vm996_vm5, %v3300_v44  ;;  %9728 = vmatprep.subr.mxu1 %v3657_v61 }
 0xbe4   :  { %v3301_v26 = vmul.f32 %v10441_v33, %v10425_v32  ;;  %9729 = vmatpush3.msra.mxu1 %v3657_v61  ;;  %v3561_v48 = vsub.s32 0, %v11778_v36  ;;  %v11786_v32 = vld [vmem:[%s13284_s1 + $0x318] sm:$0xff] }
 0xbe5   :  { %v10443_v52 = vpop.eup %10442 }
 0xbe6   :  { %9716 = vmatprep.mubr.msk.f32.mxu0 %vm996_vm5, %v3301_v26  ;;  %v3304_v11 = vmul.f32 %v10443_v52, %v10427_v45  ;;  %v2803_v45 = vadd.f32 %v11672_v8, %v2033_v1  ;;  %v3562_v39 = vrot.slane %v11786_v32, %v3561_v48 }
 0xbe7   :  { %v10445_v12 = vpop.eup %10444  ;;  %9717 = vmatmul.mubr.msk.f32.gmra.mxu0 %vm996_vm5, %v3302_v47 }
 0xbe8   :  { %v3303_v37 = vmul.f32 %v10445_v12, %v10429_v62 }
 0xbea   :  { %9719 = vmatprep.mubr.msk.f32.mxu0 %vm996_vm5, %v3303_v37 }
 0xbeb   :  { %9720 = vmatmul.mubr.msk.f32.gmra.mxu0 %vm996_vm5, %v3304_v11 }
 0xc9f   :  { %v9712_v46 = vpop.f32.mrf.mxu0 }
 0xca0   :  { %v3544_v34 = vadd.f32 %v9712_v46, %v11670_v53  ;;  %v2053_v53 = vadd.f32 %v11460_v29, %v11499_v31  ;;  %v2063_v29 = vadd.f32 %v11464_v38, %v11503_v51 }
 0xca1   :  { %v3504_v62 = vpop.f32.mrf.mxu0 }
 0xca2   :  { %v3552_v27 = vadd.f32 %v3544_v34, %v10872_v58  ;;  %v3543_v10 = vadd.f32 %v3504_v62, %v2803_v45  ;;  %v2807_v56 = vadd.f32 %v11684_v43, %v2053_v53 }
 0xca3   :  { %v9715_v7 = vpop.f32.mrf.mxu0 }
 0xca4   :  { %v3551_v22 = vadd.f32 %v3543_v10, %v10870_v57  ;;  %v3546_v8 = vadd.f32 %v9715_v7, %v11676_v28  ;;  %v11801_v59 = vadd.f32 %v3562_v39, %v3552_v27 }
 0xca5   :  { %v3514_v54 = vpop.f32.mrf.mxu0 }
 0xca6   :  { %v11803_v41 = vadd.f32 %v3562_v39, %v3551_v22  ;;  %v3554_v58 = vadd.f32 %v3546_v8, %v10899_v6  ;;  %v3545_v20 = vadd.f32 %v3514_v54, %v2805_v50  ;;  %v3572_v6 = vsel %vm19_vm0, %v11801_v59, 0.0 }
 0xca7   :  { %v9718_v19 = vpop.f32.mrf.mxu0 }
 0xca8   :  { %v3571_v42 = vsel %vm19_vm0, %v11803_v41, 0.0  ;;  %v3553_v57 = vadd.f32 %v3545_v20, %v10897_v5  ;;  %v3548_v28 = vadd.f32 %v9718_v19, %v11682_v14  ;;  %v11813_v31 = vadd.f32 %v3562_v39, %v3554_v58 }
 0xca9   :  { %v3524_v55 = vpop.f32.mrf.mxu0  ;;  %v3573_v24 = vadd.f32 %v3572_v6, %v3571_v42  ;;  %v2809_v5 = vadd.f32 %v11690_v35, %v2063_v29 }
 0xcaa   :  { %v11817_v2 = vadd.f32 %v3562_v39, %v3553_v57  ;;  %v3556_v43 = vadd.f32 %v3548_v28, %v10921_v16  ;;  %v3547_v63 = vadd.f32 %v3524_v55, %v2807_v56  ;;  %v3576_v4 = vsel %vm19_vm0, %v11813_v31, 0.0 }
 0xcab   :  { %v9721_v40 = vpop.f32.mrf.mxu0 }
 0xcac   :  { %v3574_v14 = vsel %vm19_vm0, %v11817_v2, 0.0  ;;  %v3555_v38 = vadd.f32 %v3547_v63, %v10919_v15  ;;  %v3550_v51 = vadd.f32 %v9721_v40, %v11688_v25  ;;  %v11827_v60 = vadd.f32 %v3562_v39, %v3556_v43 }
 0xcad   :  { %v3575_v49 = vadd.f32 %v3574_v14, %v3573_v24  ;;  %v3534_v44 = vpop.f32.mrf.mxu0 }
 0xcae   :  { %v11829_v16 = vadd.f32 %v3562_v39, %v3555_v38  ;;  %v11831_v33 = vadd.f32 %v3562_v39, %v3550_v51  ;;  %v3549_v26 = vadd.f32 %v3534_v44, %v2809_v5  ;;  %v3580_v25 = vsel %vm19_vm0, %v11827_v60, 0.0 }
 0xcaf   :  { %v3577_v35 = vadd.f32 %v3576_v4, %v3575_v49 }
 0xcb0   :  { %v3578_v47 = vsel %vm19_vm0, %v11829_v16, 0.0  ;;  %v3557_v15 = vadd.f32 %v3549_v26, %v10934_v21 }
 0xcb1   :  { %v3579_v52 = vadd.f32 %v3578_v47, %v3577_v35 }
 0xcb2   :  { %v11838_v12 = vadd.f32 %v3562_v39, %v3557_v15  ;;  %v13292_v15 = vsub.s32 1, %v11778_v36 }
 0xcb3   :  { %v3581_v37 = vadd.f32 %v3580_v25, %v3579_v52 }
 0xcb4   :  { %v3582_v11 = vsel %vm19_vm0, %v11838_v12, 0.0 }
 0xcb5   :  { %v3583_v30 = vadd.f32 %v3582_v11, %v3581_v37  ;;  %v13291_v11 = vsub.s32 2, %v11778_v36 }
 0xcb7   :  { %v3584_v0 = vrot.slane %v3583_v30, 4 }
 0xcb9   :  { %v3585_v18 = vadd.f32 %v3584_v0, %v3583_v30 }
 0xcbb   :  { %v3586_v61 = vrot.slane %v3585_v18, 2 }
 0xcbd   :  { %v3587_v13 = vadd.f32 %v3586_v61, %v3585_v18 }
 0xcbf   :  { %v3588_v1 = vrot.slane %v3587_v13, 1 }
 0xcc1   :  { %v3589_v46 = vadd.f32 %v3588_v1, %v3587_v13 }
 0xcc3   :  { %v3590_v45 = vmul.f32 0.017857144, %v3589_v46 }
 0xcc5   :  { %v3591_v21 = vsub.f32 %v11803_v41, %v3590_v45  ;;  %v3592_v34 = vsub.f32 %v11801_v59, %v3590_v45  ;;  %v3593_v62 = vsub.f32 %v11817_v2, %v3590_v45  ;;  %v3594_v17 = vsub.f32 %v11813_v31, %v3590_v45 }
 0xcc6   :  { %v3595_v27 = vsub.f32 %v11829_v16, %v3590_v45  ;;  %v3596_v50 = vsub.f32 %v11827_v60, %v3590_v45  ;;  %v3597_v58 = vsub.f32 %v11838_v12, %v3590_v45 }
 0xcc7   :  { %v3598_v39 = vmul.f32 %v3591_v21, %v3591_v21  ;;  %v3599_v10 = vmul.f32 %v3592_v34, %v3592_v34  ;;  %v3600_v7 = vmul.f32 %v3593_v62, %v3593_v62  ;;  %v3601_v22 = vmul.f32 %v3594_v17, %v3594_v17 }
 0xcc8   :  { %v3602_v20 = vmul.f32 %v3595_v27, %v3595_v27  ;;  %v3603_v42 = vmul.f32 %v3596_v50, %v3596_v50  ;;  %v3604_v29 = vmul.f32 %v3597_v58, %v3597_v58  ;;  %v3836_v50 = vld [vmem:[%s13284_s1 + $0x2a0] sm:$0xff] }
 0xcc9   :  { %v3605_v8 = vsel %vm19_vm0, %v3598_v39, 0.0  ;;  %v3606_v53 = vsel %vm19_vm0, %v3599_v10, 0.0  ;;  %v3608_v19 = vsel %vm19_vm0, %v3600_v7, 0.0  ;;  %v3610_v57 = vsel %vm19_vm0, %v3601_v22, 0.0  ;;  %v3839_v39 = vld [vmem:[%s13284_s1 + $0x2b8] sm:$0xff]  ;;  %v3838_v10 = vld [vmem:[%s13284_s1 + $0x2b0] sm:$0xff] }
 0xcca   :  { %v3607_v54 = vadd.f32 %v3606_v53, %v3605_v8  ;;  %v3612_v55 = vsel %vm19_vm0, %v3602_v20, 0.0  ;;  %v3614_v43 = vsel %vm19_vm0, %v3603_v42, 0.0  ;;  %v3616_v24 = vsel %vm19_vm0, %v3604_v29, 0.0  ;;  %v3837_v7 = vld [vmem:[%s13284_s1 + $0x2a8] sm:$0xff]  ;;  %v3835_v22 = vld [vmem:[%s13284_s1 + $0x298] sm:$0xff] }
 0xccb   :  { %v8357_v8 = vld [vmem:[%s13285_s2 + $0x80] ss:$0 sm:$0xff] }
 0xccc   :  { %v3609_v56 = vadd.f32 %v3608_v19, %v3607_v54 }
 0xcce   :  { %v3611_v28 = vadd.f32 %v3610_v57, %v3609_v56 }
 0xcd0   :  { %v3613_v6 = vadd.f32 %v3612_v55, %v3611_v28 }
 0xcd2   :  { %v3615_v63 = vadd.f32 %v3614_v43, %v3613_v6 }
 0xcd4   :  { %v3617_v40 = vadd.f32 %v3616_v24, %v3615_v63 }
 0xcd6   :  { %v3618_v5 = vrot.slane %v3617_v40, 4 }
 0xcd8   :  { %v3619_v14 = vadd.f32 %v3618_v5, %v3617_v40 }
 0xcda   :  { %v3620_v38 = vrot.slane %v3619_v14, 2 }
 0xcdc   :  { %v3621_v51 = vadd.f32 %v3620_v38, %v3619_v14 }
 0xcde   :  { %v3622_v4 = vrot.slane %v3621_v51, 1 }
 0xce0   :  { %v3623_v49 = vadd.f32 %v3622_v4, %v3621_v51 }
 0xce2   :  { %v3624_v44 = vmul.f32 0.017857144, %v3623_v49 }
 0xce4   :  { %v3625_v26 = vadd.f32 1e-05, %v3624_v44 }
 0xce6   :  { %10446 = vrsqrt.f32 %v3625_v26 }
 0xcf3   :  { %v10447_v35 = vpop.eup %10446 }
 0xcf4   :  { %v3627_v47 = vmul.f32 %v10447_v35, %v11786_v32 }
 0xcf6   :  { %v3640_v52 = vmul.f32 %v3627_v47, %v3590_v45  ;;  %v3631_v25 = vrot.slane %v3627_v47, %v13292_v15 }
 0xcf8   :  { %v3642_v37 = vrot.slane %v3640_v52, 7  ;;  %v3632_v0 = vmul.f32 %v3631_v25, %v11803_v41  ;;  %v3633_v61 = vmul.f32 %v3631_v25, %v11801_v59  ;;  %v3634_v46 = vmul.f32 %v3631_v25, %v11817_v2 }
 0xcf9   :  { %v3635_v41 = vmul.f32 %v3631_v25, %v11813_v31  ;;  %v3636_v59 = vmul.f32 %v3631_v25, %v11829_v16  ;;  %v3637_v2 = vmul.f32 %v3631_v25, %v11827_v60  ;;  %v3638_v62 = vmul.f32 %v3631_v25, %v11838_v12  ;;  %v3842_v60 = vld [vmem:[%s13284_s1 + $0x2d0] sm:$0xff]  ;;  %v3841_v12 = vld [vmem:[%s13284_s1 + $0x2c8] sm:$0xff] }
 0xcfa   :  { %v3644_v30 = vsub.f32 %v11786_v32, %v3642_v37  ;;  %v3639_v16 = vmul.f32 %v3631_v25, %v11831_v33  ;;  %9742 = vmatprep.subr.mxu0 %v3842_v60  ;;  %v3840_v33 = vld [vmem:[%s13284_s1 + $0x2c0] sm:$0xff] }
 0xcfb   :  { %9743 = vmatpush3.msra.mxu0 %v3842_v60 }
 0xcfc   :  { %v3648_v18 = vrot.slane %v3644_v30, %v13291_v11  ;;  %9744 = vmatprep.subr.mxu0 %v3841_v12 }
 0xcfd   :  { %9745 = vmatpush3.msra.mxu0 %v3841_v12 }
 0xcfe   :  { %v11866_v13 = vadd.f32 %v3648_v18, %v3632_v0  ;;  %v11868_v1 = vadd.f32 %v3648_v18, %v3633_v61  ;;  %v11873_v45 = vadd.f32 %v3648_v18, %v3634_v46  ;;  %v11881_v21 = vadd.f32 %v3648_v18, %v3635_v41  ;;  %9746 = vmatprep.subr.mxu0 %v3840_v33 }
 0xcff   :  { %v11883_v34 = vadd.f32 %v3648_v18, %v3636_v59  ;;  %v11891_v31 = vadd.f32 %v3648_v18, %v3637_v2  ;;  %v11893_v17 = vadd.f32 %v3648_v18, %v3638_v62  ;;  %v11900_v27 = vadd.f32 %v3648_v18, %v3639_v16  ;;  %9747 = vmatpush3.msra.mxu0 %v3840_v33 }
 0xd00   :  { %9730 = vmatprep.mubr.msk.f32.mxu1 %vm19_vm0, %v11866_v13  ;;  %9748 = vmatprep.subr.mxu0 %v3839_v39 }
 0xd01   :  { %9731 = vmatmul.mubr.msk.f32.vlgmr.msra.gmra.mxu1 %vm19_vm0, %v11868_v1  ;;  %9749 = vmatpush3.msra.mxu0 %v3839_v39 }
 0xd02   :  { %9733 = vmatprep.mubr.msk.f32.mxu1 %vm19_vm0, %v11873_v45  ;;  %9750 = vmatprep.subr.mxu0 %v3838_v10 }
 0xd03   :  { %9751 = vmatpush3.msra.mxu0 %v3838_v10 }
 0xd04   :  { %9752 = vmatprep.subr.mxu0 %v3837_v7 }
 0xd05   :  { %9734 = vmatmul.mubr.msk.f32.gmra.mxu1 %vm19_vm0, %v11881_v21  ;;  %9753 = vmatpush3.msra.mxu0 %v3837_v7 }
 0xd06   :  { %9736 = vmatprep.mubr.msk.f32.mxu1 %vm19_vm0, %v11883_v34  ;;  %9754 = vmatprep.subr.mxu0 %v3836_v50 }
 0xd07   :  { %9755 = vmatpush3.msra.mxu0 %v3836_v50 }
 0xd08   :  { %9756 = vmatprep.subr.mxu0 %v3835_v22 }
 0xd09   :  { %9737 = vmatmul.mubr.msk.f32.gmra.mxu1 %vm19_vm0, %v11891_v31  ;;  %9757 = vmatpush3.msra.mxu0 %v3835_v22 }
 0xd0a   :  { %9739 = vmatprep.mubr.msk.f32.mxu1 %vm19_vm0, %v11893_v17 }
 0xd0d   :  { %9740 = vmatmul.mubr.msk.f32.gmra.mxu1 %vm19_vm0, %v11900_v27 }
 0xdc1   :  { %v9732_v53 = vpop.f32.mrf.mxu1 }
 0xdc2   :  { %v3762_v54 = vadd.f32 %v9732_v53, %v8357_v8 }
 0xdc3   :  { %v3756_v58 = vpop.f32.mrf.mxu1 }
 0xdc4   :  { %v3804_v20 = vmul.f32 0.70710677, %v3762_v54  ;;  %v3757_v19 = vadd.f32 %v8357_v8, %v3756_v58  ;;  %v3796_v0 = vmul.f32 0.5, %v3762_v54 }
 0xdc5   :  { %v9735_v56 = vpop.f32.mrf.mxu1 }
 0xdc6   :  { %10448 = verf.f32 %v3804_v20  ;;  %v3803_v42 = vmul.f32 0.70710677, %v3757_v19  ;;  %v3772_v57 = vadd.f32 %v9735_v56, %v8357_v8  ;;  %v3795_v25 = vmul.f32 0.5, %v3757_v19 }
 0xdc7   :  { %v3766_v28 = vpop.f32.mrf.mxu1 }
 0xdc8   :  { %10450 = verf.f32 %v3803_v42  ;;  %v3806_v29 = vmul.f32 0.70710677, %v3772_v57  ;;  %v3767_v55 = vadd.f32 %v8357_v8, %v3766_v28  ;;  %v3798_v16 = vmul.f32 0.5, %v3772_v57  ;;  %v4072_v28 = vld [vmem:[%s13284_s1 + $0x178] sm:$0xff] }
 0xdc9   :  { %v9738_v6 = vpop.f32.mrf.mxu1  ;;  %9784 = vmatprep.subr.msk.mxu0 %vm19_vm0, %v4072_v28 }
 0xdca   :  { %10452 = verf.f32 %v3806_v29  ;;  %v3805_v43 = vmul.f32 0.70710677, %v3767_v55  ;;  %v3782_v63 = vadd.f32 %v9738_v6, %v8357_v8  ;;  %v3797_v59 = vmul.f32 0.5, %v3767_v55  ;;  %v4071_v29 = vld [vmem:[%s13284_s1 + $0x138] sm:$0xff]  ;;  %v11952_v55 = vld [vmem:[%s13284_s1 + $0x230] sm:$0xff] }
 0xdcb   :  { %v3776_v24 = vpop.f32.mrf.mxu1  ;;  %9770 = vmatprep.subr.msk.mxu1 %vm19_vm0, %v4071_v29  ;;  %v13290_v6 = vsub.s32 3, %v11778_v36 }
 0xdcc   :  { %10454 = verf.f32 %v3805_v43  ;;  %v3808_v40 = vmul.f32 0.70710677, %v3782_v63  ;;  %v3777_v5 = vadd.f32 %v8357_v8, %v3776_v24  ;;  %v3800_v22 = vmul.f32 0.5, %v3782_v63  ;;  %9771 = vmatpush3.xpose.msk.msra.mxu1 %vm19_vm0, %v4071_v29 }
 0xdcd   :  { %v9741_v14 = vpop.f32.mrf.mxu1  ;;  %v3846_v43 = vrot.slane %v11786_v32, %v13290_v6 }
 0xdce   :  { %10456 = verf.f32 %v3808_v40  ;;  %v3807_v38 = vmul.f32 0.70710677, %v3777_v5  ;;  %v3792_v51 = vadd.f32 %v9741_v14, %v8357_v8  ;;  %v3799_v10 = vmul.f32 0.5, %v3777_v5 }
 0xdcf   :  { %v3786_v4 = vpop.f32.mrf.mxu1 }
 0xdd0   :  { %10458 = verf.f32 %v3807_v38  ;;  %v3810_v49 = vmul.f32 0.70710677, %v3792_v51  ;;  %v3787_v44 = vadd.f32 %v8357_v8, %v3786_v4  ;;  %v3802_v56 = vmul.f32 0.5, %v3792_v51 }
 0xdd2   :  { %10460 = verf.f32 %v3810_v49  ;;  %v3809_v26 = vmul.f32 0.70710677, %v3787_v44  ;;  %v3801_v20 = vmul.f32 0.5, %v3787_v44 }
 0xdd3   :  { %v10449_v35 = vpop.eup %10448 }
 0xdd4   :  { %10462 = verf.f32 %v3809_v26  ;;  %v3820_v52 = vadd.f32 1.0, %v10449_v35 }
 0xdd5   :  { %v10451_v47 = vpop.eup %10450 }
 0xdd6   :  { %v3819_v37 = vadd.f32 1.0, %v10451_v47  ;;  %v3828_v46 = vmul.f32 %v3820_v52, %v3796_v0 }
 0xdd7   :  { %v10453_v30 = vpop.eup %10452 }
 0xdd8   :  { %v3827_v18 = vmul.f32 %v3819_v37, %v3795_v25  ;;  %v3822_v41 = vadd.f32 1.0, %v10453_v30 }
 0xdd9   :  { %v10455_v61 = vpop.eup %10454 }
 0xdda   :  { %v3821_v2 = vadd.f32 1.0, %v10455_v61  ;;  %9758 = vmatprep.mubr.msk.f32.mxu0 %vm996_vm5, %v3827_v18  ;;  %v3830_v33 = vmul.f32 %v3822_v41, %v3798_v16 }
 0xddb   :  { %v10457_v62 = vpop.eup %10456  ;;  %9759 = vmatmul.mubr.msk.f32.vlgmr.msra.gmra.mxu0 %vm996_vm5, %v3828_v46 }
 0xddc   :  { %v3829_v60 = vmul.f32 %v3821_v2, %v3797_v59  ;;  %v3824_v39 = vadd.f32 1.0, %v10457_v62  ;;  %9785 = vmatpush3.xpose.msk.msra.mxu0 %vm19_vm0, %v4072_v28 }
 0xddd   :  { %v10459_v12 = vpop.eup %10458  ;;  %9826 = vmatprep.subr.mxu0 %v11952_v55 }
 0xdde   :  { %v3823_v7 = vadd.f32 1.0, %v10459_v12  ;;  %9761 = vmatprep.mubr.msk.f32.mxu0 %vm996_vm5, %v3829_v60  ;;  %v3832_v54 = vmul.f32 %v3824_v39, %v3800_v22 }
 0xddf   :  { %v10461_v50 = vpop.eup %10460  ;;  %9762 = vmatmul.mubr.msk.f32.gmra.mxu0 %vm996_vm5, %v3830_v33 }
 0xde0   :  { %v3831_v8 = vmul.f32 %v3823_v7, %v3799_v10  ;;  %v3826_v58 = vadd.f32 1.0, %v10461_v50 }
 0xde1   :  { %v10463_v53 = vpop.eup %10462 }
 0xde2   :  { %v3825_v19 = vadd.f32 1.0, %v10463_v53  ;;  %9764 = vmatprep.mubr.msk.f32.mxu0 %vm996_vm5, %v3831_v8  ;;  %v3834_v57 = vmul.f32 %v3826_v58, %v3802_v56 }
 0xde3   :  { %9765 = vmatmul.mubr.msk.f32.gmra.mxu0 %vm996_vm5, %v3832_v54 }
 0xde4   :  { %v3833_v42 = vmul.f32 %v3825_v19, %v3801_v20 }
 0xde6   :  { %9767 = vmatprep.mubr.msk.f32.mxu0 %vm996_vm5, %v3833_v42 }
 0xde7   :  { %9768 = vmatmul.mubr.msk.f32.gmra.mxu0 %vm996_vm5, %v3834_v57 }
 0xe9b   :  { %v9760_v63 = vpop.f32.mrf.mxu0 }
 0xe9c   :  { %v3943_v24 = vadd.f32 %v9760_v63, %v3846_v43 }
 0xe9d   :  { %v3937_v40 = vpop.f32.mrf.mxu0 }
 0xe9e   :  { %v3938_v5 = vadd.f32 %v3937_v40, %v3846_v43  ;;  %v11960_v38 = vadd.f32 %v3943_v24, %v11868_v1 }
 0xe9f   :  { %v9763_v14 = vpop.f32.mrf.mxu0 }
 0xea0   :  { %v11963_v51 = vadd.f32 %v3938_v5, %v11866_v13  ;;  %v3953_v4 = vadd.f32 %v9763_v14, %v3846_v43  ;;  %v3985_v47 = vsel %vm19_vm0, %v11960_v38, 0.0 }
 0xea1   :  { %v3947_v49 = vpop.f32.mrf.mxu0 }
 0xea2   :  { %v3984_v44 = vsel %vm19_vm0, %v11963_v51, 0.0  ;;  %v3948_v26 = vadd.f32 %v3947_v49, %v3846_v43  ;;  %v11970_v52 = vadd.f32 %v3953_v4, %v11881_v21 }
 0xea3   :  { %v9766_v35 = vpop.f32.mrf.mxu0  ;;  %v3986_v37 = vadd.f32 %v3985_v47, %v3984_v44 }
 0xea4   :  { %v11973_v25 = vadd.f32 %v3948_v26, %v11873_v45  ;;  %v3963_v1 = vadd.f32 %v9766_v35, %v3846_v43  ;;  %v3989_v46 = vsel %vm19_vm0, %v11970_v52, 0.0 }
 0xea5   :  { %v3957_v13 = vpop.f32.mrf.mxu0 }
 0xea6   :  { %v3987_v30 = vsel %vm19_vm0, %v11973_v25, 0.0  ;;  %v3958_v0 = vadd.f32 %v3957_v13, %v3846_v43  ;;  %v11980_v41 = vadd.f32 %v3963_v1, %v11891_v31 }
 0xea7   :  { %v3988_v18 = vadd.f32 %v3987_v30, %v3986_v37  ;;  %v9769_v61 = vpop.f32.mrf.mxu0 }
 0xea8   :  { %v11983_v21 = vadd.f32 %v3958_v0, %v11883_v34  ;;  %v11985_v45 = vadd.f32 %v9769_v61, %v3846_v43  ;;  %v3993_v12 = vsel %vm19_vm0, %v11980_v41, 0.0 }
 0xea9   :  { %v3990_v59 = vadd.f32 %v3989_v46, %v3988_v18  ;;  %v3967_v2 = vpop.f32.mrf.mxu0 }
 0xeaa   :  { %v3991_v62 = vsel %vm19_vm0, %v11983_v21, 0.0  ;;  %v3968_v16 = vadd.f32 %v3967_v2, %v3846_v43 }
 0xeab   :  { %v3992_v60 = vadd.f32 %v3991_v62, %v3990_v59 }
 0xeac   :  { %v11992_v33 = vadd.f32 %v3968_v16, %v11893_v17 }
 0xead   :  { %v3994_v31 = vadd.f32 %v3993_v12, %v3992_v60 }
 0xeae   :  { %v3995_v34 = vsel %vm19_vm0, %v11992_v33, 0.0 }
 0xeaf   :  { %v3996_v39 = vadd.f32 %v3995_v34, %v3994_v31 }
 0xeb1   :  { %v3997_v10 = vrot.slane %v3996_v39, 4 }
 0xeb3   :  { %v3998_v7 = vadd.f32 %v3997_v10, %v3996_v39  ;;  %v13289_v39 = vsub.s32 4, %v11778_v36 }
 0xeb5   :  { %v3999_v50 = vrot.slane %v3998_v7, 2 }
 0xeb7   :  { %v4000_v22 = vadd.f32 %v3999_v50, %v3998_v7 }
 0xeb9   :  { %v4001_v8 = vrot.slane %v4000_v22, 1 }
 0xebb   :  { %v4002_v53 = vadd.f32 %v4001_v8, %v4000_v22  ;;  %v13288_v22 = vsub.s32 5, %v11778_v36 }
 0xebd   :  { %v4003_v54 = vmul.f32 0.017857144, %v4002_v53 }
 0xebf   :  { %v4004_v58 = vsub.f32 %v11963_v51, %v4003_v54  ;;  %v4005_v20 = vsub.f32 %v11960_v38, %v4003_v54  ;;  %v4006_v19 = vsub.f32 %v11973_v25, %v4003_v54  ;;  %v4007_v17 = vsub.f32 %v11970_v52, %v4003_v54 }
 0xec0   :  { %v4008_v56 = vsub.f32 %v11983_v21, %v4003_v54  ;;  %v4009_v29 = vsub.f32 %v11980_v41, %v4003_v54  ;;  %v4010_v5 = vsub.f32 %v11992_v33, %v4003_v54 }
 0xec1   :  { %v4011_v42 = vmul.f32 %v4004_v58, %v4004_v58  ;;  %v4012_v57 = vmul.f32 %v4005_v20, %v4005_v20  ;;  %v4013_v28 = vmul.f32 %v4006_v19, %v4006_v19  ;;  %v4014_v43 = vmul.f32 %v4007_v17, %v4007_v17 }
 0xec2   :  { %v4015_v14 = vmul.f32 %v4008_v56, %v4008_v56  ;;  %v4016_v44 = vmul.f32 %v4009_v29, %v4009_v29  ;;  %v4017_v47 = vmul.f32 %v4010_v5, %v4010_v5 }
 0xec3   :  { %v4018_v63 = vsel %vm19_vm0, %v4011_v42, 0.0  ;;  %v4019_v24 = vsel %vm19_vm0, %v4012_v57, 0.0  ;;  %v4021_v4 = vsel %vm19_vm0, %v4013_v28, 0.0  ;;  %v4023_v26 = vsel %vm19_vm0, %v4014_v43, 0.0 }
 0xec4   :  { %v4020_v40 = vadd.f32 %v4019_v24, %v4018_v63  ;;  %v4025_v1 = vsel %vm19_vm0, %v4015_v14, 0.0  ;;  %v4027_v13 = vsel %vm19_vm0, %v4016_v44, 0.0  ;;  %v4029_v0 = vsel %vm19_vm0, %v4017_v47, 0.0  ;;  %v12125_v24 = vld [vmem:[%s13284_s1 + $0x330] ss:$0 sm:$0xff] }
 0xec6   :  { %v4022_v49 = vadd.f32 %v4021_v4, %v4020_v40 }
 0xec8   :  { %v4024_v35 = vadd.f32 %v4023_v26, %v4022_v49 }
 0xeca   :  { %v4026_v37 = vadd.f32 %v4025_v1, %v4024_v35  ;;  %v8384_v35 = vld [vmem:[%s13284_s1 + $0x334] ss:$0 sm:$0xff] }
 0xecc   :  { %v4028_v30 = vadd.f32 %v4027_v13, %v4026_v37 }
 0xece   :  { %v4030_v18 = vadd.f32 %v4029_v0, %v4028_v30 }
 0xed0   :  { %v4031_v61 = vrot.slane %v4030_v18, 4 }
 0xed2   :  { %v4032_v46 = vadd.f32 %v4031_v61, %v4030_v18 }
 0xed4   :  { %v4033_v59 = vrot.slane %v4032_v46, 2 }
 0xed6   :  { %v4034_v2 = vadd.f32 %v4033_v59, %v4032_v46 }
 0xed8   :  { %v4035_v62 = vrot.slane %v4034_v2, 1 }
 0xeda   :  { %v4036_v16 = vadd.f32 %v4035_v62, %v4034_v2 }
 0xedc   :  { %v4037_v60 = vmul.f32 0.017857144, %v4036_v16 }
 0xede   :  { %v4038_v12 = vadd.f32 1e-05, %v4037_v60 }
 0xee0   :  { %10464 = vrsqrt.f32 %v4038_v12 }
 0xeed   :  { %v10465_v31 = vpop.eup %10464 }
 0xeee   :  { %v4040_v34 = vmul.f32 %v10465_v31, %v11786_v32  ;;  %v12160_v31 = vld [vmem:[%s13284_s1 + $0x331] ss:$0 sm:$0xff] }
 0xef0   :  { %v4053_v10 = vmul.f32 %v4040_v34, %v4003_v54  ;;  %v4044_v7 = vrot.slane %v4040_v34, %v13289_v39 }
 0xef2   :  { %v4055_v50 = vrot.slane %v4053_v10, 7  ;;  %v4045_v53 = vmul.f32 %v4044_v7, %v11963_v51  ;;  %v4046_v58 = vmul.f32 %v4044_v7, %v11960_v38  ;;  %v4047_v19 = vmul.f32 %v4044_v7, %v11973_v25  ;;  %v4598_v38 = vld [vmem:[%s13284_s1 + $0x228] sm:$0xff] }
 0xef3   :  { %v4049_v51 = vmul.f32 %v4044_v7, %v11983_v21  ;;  %v4050_v42 = vmul.f32 %v4044_v7, %v11980_v41  ;;  %v4597_v21 = vld [vmem:[%s13284_s1 + $0x220] sm:$0xff]  ;;  %v4051_v57 = vmul.f32 %v4044_v7, %v11992_v33  ;;  %v4596_v33 = vld [vmem:[%s13284_s1 + $0x218] sm:$0xff] }
 0xef4   :  { %v4057_v8 = vsub.f32 %v11786_v32, %v4055_v50  ;;  %v4048_v32 = vmul.f32 %v4044_v7, %v11970_v52 }
 0xef6   :  { %v4061_v20 = vrot.slane %v4057_v8, %v13288_v22 }
 0xef8   :  { %v12021_v17 = vadd.f32 %v4061_v20, %v4045_v53  ;;  %v12023_v54 = vadd.f32 %v4061_v20, %v4046_v58  ;;  %v12025_v56 = vadd.f32 %v4061_v20, %v4047_v19  ;;  %v12044_v25 = vadd.f32 %v4061_v20, %v4048_v32 }
 0xef9   :  { %v12047_v52 = vadd.f32 %v4061_v20, %v4049_v51  ;;  %v12064_v41 = vadd.f32 %v4061_v20, %v4050_v42  ;;  %v12066_v28 = vadd.f32 %v4061_v20, %v4051_v57  ;;  %v5209_v57 = vld [vmem:[%s13284_s1 + $0x250] sm:$0xff] }
 0xefa   :  { %9772 = vmatprep.mubr.msk.f32.mxu1 %vm19_vm0, %v12021_v17  ;;  %9786 = vmatprep.mubr.msk.f32.mxu0 %vm19_vm0, %v12021_v17 }
 0xefb   :  { %9773 = vmatmul.mubr.msk.f32.vlgmr.msra.gmra.mxu1 %vm19_vm0, %v12023_v54  ;;  %9787 = vmatmul.mubr.msk.f32.vlgmr.msra.gmra.mxu0 %vm19_vm0, %v12023_v54 }
 0xefc   :  { %9775 = vmatprep.mubr.msk.f32.mxu1 %vm19_vm0, %v12025_v56  ;;  %9789 = vmatprep.mubr.msk.f32.mxu0 %vm19_vm0, %v12025_v56 }
 0xefd   :  { %9827 = vmatpush3.msra.mxu0 %v11952_v55  ;;  %v3983_v55 = vadd.f32 %v11985_v45, %v11900_v27  ;;  %v4705_v45 = vld [vmem:[%s13284_s1 + $0x140] sm:$0xff] }
 0xefe   :  { %9828 = vmatprep.subr.mxu0 %v4598_v38 }
 0xeff   :  { %9776 = vmatmul.mubr.msk.f32.gmra.mxu1 %vm19_vm0, %v12044_v25  ;;  %9790 = vmatmul.mubr.msk.f32.gmra.mxu0 %vm19_vm0, %v12044_v25  ;;  %v4052_v29 = vmul.f32 %v4044_v7, %v3983_v55 }
 0xf00   :  { %9778 = vmatprep.mubr.msk.f32.mxu1 %vm19_vm0, %v12047_v52  ;;  %9792 = vmatprep.mubr.msk.f32.mxu0 %vm19_vm0, %v12047_v52 }
 0xf01   :  { %9829 = vmatpush3.msra.mxu0 %v4598_v38  ;;  %v12079_v27 = vadd.f32 %v4061_v20, %v4052_v29  ;;  %v4706_v38 = vld [vmem:[%s13284_s1 + $0x180] sm:$0xff] }
 0xf02   :  { %9830 = vmatprep.subr.mxu0 %v4597_v21 }
 0xf03   :  { %9779 = vmatmul.mubr.msk.f32.gmra.mxu1 %vm19_vm0, %v12064_v41  ;;  %9793 = vmatmul.mubr.msk.f32.gmra.mxu0 %vm19_vm0, %v12064_v41 }
 0xf04   :  { %9781 = vmatprep.mubr.msk.f32.mxu1 %vm19_vm0, %v12066_v28  ;;  %9795 = vmatprep.mubr.msk.f32.mxu0 %vm19_vm0, %v12066_v28 }
 0xf05   :  { %9831 = vmatpush3.msra.mxu0 %v4597_v21 }
 0xf06   :  { %9832 = vmatprep.subr.mxu0 %v4596_v33 }
 0xf07   :  { %9782 = vmatmul.mubr.msk.f32.gmra.mxu1 %vm19_vm0, %v12079_v27  ;;  %9796 = vmatmul.mubr.msk.f32.gmra.mxu0 %vm19_vm0, %v12079_v27 }
 0xf08   :  { %9834 = vmatprep.mubr.msk.f32.mxu0 %vm19_vm0, %v12021_v17  ;;  %9833 = vmatpush3.msra.mxu0 %v4596_v33 }
 0xf09   :  { %9846 = vmatprep.subr.msk.mxu0 %vm19_vm0, %v4705_v45 }
 0xf0b   :  { %9835 = vmatmul.mubr.msk.f32.vlgmr.msra.gmra.mxu0 %vm19_vm0, %v12023_v54 }
 0xf0c   :  { %9837 = vmatprep.mubr.msk.f32.mxu0 %vm19_vm0, %v12025_v56  ;;  %9847 = vmatpush3.xpose.msk.msra.mxu0 %vm19_vm0, %v4705_v45 }
 0xf0f   :  { %9838 = vmatmul.mubr.msk.f32.gmra.mxu0 %vm19_vm0, %v12044_v25 }
 0xf10   :  { %9840 = vmatprep.mubr.msk.f32.mxu0 %vm19_vm0, %v12047_v52 }
 0xf13   :  { %9841 = vmatmul.mubr.msk.f32.gmra.mxu0 %vm19_vm0, %v12064_v41 }
 0xf14   :  { %9843 = vmatprep.mubr.msk.f32.mxu0 %vm19_vm0, %v12066_v28 }
 0xf17   :  { %9844 = vmatmul.mubr.msk.f32.gmra.mxu0 %vm19_vm0, %v12079_v27 }
 0xf18   :  { %9848 = vmatprep.mubr.msk.f32.mxu0 %vm19_vm0, %v12021_v17 }
 0xf1b   :  { %9849 = vmatmul.mubr.msk.f32.vlgmr.msra.gmra.mxu0 %vm19_vm0, %v12023_v54 }
 0xf1c   :  { %9851 = vmatprep.mubr.msk.f32.mxu0 %vm19_vm0, %v12025_v56 }
 0xf1f   :  { %9852 = vmatmul.mubr.msk.f32.gmra.mxu0 %vm19_vm0, %v12044_v25 }
 0xf20   :  { %9854 = vmatprep.mubr.msk.f32.mxu0 %vm19_vm0, %v12047_v52 }
 0xf23   :  { %9855 = vmatmul.mubr.msk.f32.gmra.mxu0 %vm19_vm0, %v12064_v41 }
 0xf24   :  { %9857 = vmatprep.mubr.msk.f32.mxu0 %vm19_vm0, %v12066_v28 }
 0xf27   :  { %9858 = vmatmul.mubr.msk.f32.gmra.mxu0 %vm19_vm0, %v12079_v27 }
 0xfbb   :  { %v9774_v43 = vpop.f32.mrf.mxu1  ;;  %v9788_v63 = vpop.f32.mrf.mxu0 }
 0xfbc   :  { %v4290_v53 = vadd.f32 %v9788_v63, %v8384_v35  ;;  %v4178_v42 = vadd.f32 %v9774_v43, %v12125_v24 }
 0xfbd   :  { %v4172_v40 = vpop.f32.mrf.mxu1  ;;  %v4284_v5 = vpop.f32.mrf.mxu0 }
 0xfbe   :  { %v4173_v14 = vadd.f32 %v12125_v24, %v4172_v40  ;;  %v4285_v19 = vadd.f32 %v8384_v35, %v4284_v5  ;;  %v5208_v5 = vld [vmem:[%s13284_s1 + $0x248] sm:$0xff] }
 0xfbf   :  { %v9791_v4 = vpop.f32.mrf.mxu0  ;;  %v9777_v34 = vpop.f32.mrf.mxu1 }
 0xfc0   :  { %9814 = vmatprep.mubr.msk.f32.mxu1 %vm834_vm4, %v4173_v14  ;;  %v4300_v16 = vadd.f32 %v9791_v4, %v8384_v35  ;;  %v4188_v29 = vadd.f32 %v9777_v34, %v12125_v24  ;;  %v5206_v14 = vld [vmem:[%s13284_s1 + $0x238] sm:$0xff] }
 0xfc1   :  { %v4294_v49 = vpop.f32.mrf.mxu0  ;;  %v4182_v58 = vpop.f32.mrf.mxu1  ;;  %v4487_v34 = vld [vmem:[#allocation2 + $0x18] sm:$0xff] }
 0xfc2   :  { %v4295_v10 = vadd.f32 %v8384_v35, %v4294_v49  ;;  %v4183_v21 = vadd.f32 %v12125_v24, %v4182_v58  ;;  %v12250_v58 = vld [vmem:[%s13285_s2] sm:$0xff] }
 0xfc3   :  { %v9794_v44 = vpop.f32.mrf.mxu0  ;;  %v9780_v32 = vpop.f32.mrf.mxu1 }
 0xfc4   :  { %v4310_v18 = vadd.f32 %v9794_v44, %v8384_v35  ;;  %v4198_v43 = vadd.f32 %v9780_v32, %v12125_v24  ;;  %v4485_v44 = vld [vmem:[#allocation2 + $0x8] sm:$0xff] }
 0xfc5   :  { %v4304_v26 = vpop.f32.mrf.mxu0  ;;  %v4192_v51 = vpop.f32.mrf.mxu1 }
 0xfc6   :  { %v4305_v59 = vadd.f32 %v8384_v35, %v4304_v26  ;;  %v4193_v33 = vadd.f32 %v12125_v24, %v4192_v51 }
 0xfc7   :  { %v9797_v47 = vpop.f32.mrf.mxu0  ;;  %v9783_v55 = vpop.f32.mrf.mxu1 }
 0xfc8   :  { %v4320_v1 = vadd.f32 %v9797_v47, %v8384_v35  ;;  %v4208_v40 = vadd.f32 %v9783_v55, %v12125_v24  ;;  %v4489_v55 = vld [vmem:[#allocation2 + $0x28] sm:$0xff] }
 0xfc9   :  { %v4314_v37 = vpop.f32.mrf.mxu0  ;;  %v4202_v45 = vpop.f32.mrf.mxu1 }
 0xfca   :  { %v4315_v13 = vadd.f32 %v8384_v35, %v4314_v37  ;;  %9798 = vmatprep.subr.msk.mxu1 %vm834_vm4, %v4320_v1  ;;  %v4203_v63 = vadd.f32 %v12125_v24, %v4202_v45  ;;  %v5207_v24 = vld [vmem:[%s13284_s1 + $0x240] sm:$0xff] }
 0xfcb   :  { %9799 = vmatpush3.xpose.msk.msra.mxu1 %vm834_vm4, %v4320_v1  ;;  %v12134_v30 = vpop.f32.mrf.mxu0  ;;  %v4484_v1 = vld [vmem:[#allocation2] sm:$0xff] }
 0xfcc   :  { %9800 = vmatprep.subr.msk.mxu1 %vm834_vm4, %v4315_v13 }
 0xfcd   :  { %v12137_v0 = vpop.f32.mrf.mxu0 }
 0xfcf   :  { %9801 = vmatpush3.xpose.msk.msra.mxu1 %vm834_vm4, %v4315_v13  ;;  %v12140_v61 = vpop.f32.mrf.mxu0 }
 0xfd0   :  { %9802 = vmatprep.subr.msk.mxu1 %vm834_vm4, %v4310_v18 }
 0xfd1   :  { %v12143_v46 = vpop.f32.mrf.mxu0 }
 0xfd3   :  { %9803 = vmatpush3.xpose.msk.msra.mxu1 %vm834_vm4, %v4310_v18  ;;  %v12146_v2 = vpop.f32.mrf.mxu0 }
 0xfd4   :  { %9804 = vmatprep.subr.msk.mxu1 %vm834_vm4, %v4305_v59 }
 0xfd5   :  { %v12149_v62 = vpop.f32.mrf.mxu0 }
 0xfd7   :  { %9805 = vmatpush3.xpose.msk.msra.mxu1 %vm834_vm4, %v4305_v59  ;;  %v12152_v60 = vpop.f32.mrf.mxu0  ;;  %v12240_v59 = vld [vmem:[%s13285_s2 + $0x8] sm:$0xff] }
 0xfd8   :  { %9806 = vmatprep.subr.msk.mxu1 %vm834_vm4, %v4300_v16 }
 0xfd9   :  { %v12155_v12 = vpop.f32.mrf.mxu0 }
 0xfdb   :  { %9807 = vmatpush3.xpose.msk.msra.mxu1 %vm834_vm4, %v4300_v16  ;;  %v9850_v7 = vpop.f32.mrf.mxu0 }
 0xfdc   :  { %v12164_v50 = vadd.f32 %v9850_v7, %v12160_v31  ;;  %9808 = vmatprep.subr.msk.mxu1 %vm834_vm4, %v4295_v10 }
 0xfdd   :  { %v4782_v8 = vpop.f32.mrf.mxu0 }
 0xfde   :  { %v4783_v20 = vadd.f32 %v12160_v31, %v4782_v8 }
 0xfdf   :  { %9809 = vmatpush3.xpose.msk.msra.mxu1 %vm834_vm4, %v4295_v10 }
 0xfe0   :  { %9810 = vmatprep.subr.msk.mxu1 %vm834_vm4, %v4290_v53  ;;  %9890 = vmatprep.mubr.msk.f32.mxu0 %vm834_vm4, %v4783_v20 }
 0xfe3   :  { %9811 = vmatpush3.xpose.msk.msra.mxu1 %vm834_vm4, %v4290_v53 }
 0xfe4   :  { %9812 = vmatprep.subr.msk.mxu1 %vm834_vm4, %v4285_v19 }
 0xfe7   :  { %9813 = vmatpush3.xpose.msk.msra.mxu1 %vm834_vm4, %v4285_v19  ;;  %v4486_v19 = vld [vmem:[#allocation2 + $0x10] sm:$0xff] }
 0xfe8   :  { %9860 = vmatprep.subr.msk.mxu1 %vm19_vm0, %v4706_v38 }
 0xfea   :  { %9815 = vmatmul.mubr.msk.f32.vlgmr.msra.gmra.mxu1 %vm834_vm4, %v4178_v42 }
 0xfeb   :  { %9817 = vmatprep.mubr.msk.f32.mxu1 %vm834_vm4, %v4183_v21  ;;  %9861 = vmatpush3.xpose.msk.msra.mxu1 %vm19_vm0, %v4706_v38  ;;  %v12260_v21 = vld [vmem:[%s13285_s2 + $0x18] sm:$0xff] }
 0xfec   :  { %9902 = vmatprep.subr.mxu1 %v5209_v57 }
 0xfee   :  { %9818 = vmatmul.mubr.msk.f32.gmra.mxu1 %vm834_vm4, %v4188_v29 }
 0xfef   :  { %9820 = vmatprep.mubr.msk.f32.mxu1 %vm834_vm4, %v4193_v33 }
 0xff2   :  { %9821 = vmatmul.mubr.msk.f32.gmra.mxu1 %vm834_vm4, %v4198_v43 }
 0xff3   :  { %9823 = vmatprep.mubr.msk.f32.mxu1 %vm834_vm4, %v4203_v63  ;;  %v12270_v63 = vld [vmem:[%s13285_s2 + $0x10] sm:$0xff] }
 0xff6   :  { %9824 = vmatmul.mubr.msk.f32.gmra.mxu1 %vm834_vm4, %v4208_v40 }
 0xff7   :  { %9862 = vmatprep.mubr.msk.f32.mxu1 %vm19_vm0, %v12021_v17 }
 0xffa   :  { %9863 = vmatmul.mubr.msk.f32.vlgmr.msra.gmra.mxu1 %vm19_vm0, %v12023_v54 }
 0xffb   :  { %9865 = vmatprep.mubr.msk.f32.mxu1 %vm19_vm0, %v12025_v56  ;;  %9903 = vmatpush3.msra.mxu1 %v5209_v57 }
 0xffc   :  { %9904 = vmatprep.subr.mxu1 %v5208_v5 }
 0xffd   :  { %9905 = vmatpush3.msra.mxu1 %v5208_v5  ;;  %v4488_v5 = vld [vmem:[#allocation2 + $0x20] sm:$0xff] }
 0xffe   :  { %9866 = vmatmul.mubr.msk.f32.gmra.mxu1 %vm19_vm0, %v12044_v25  ;;  %9906 = vmatprep.subr.mxu1 %v5207_v24 }
 0xfff   :  { %9868 = vmatprep.mubr.msk.f32.mxu1 %vm19_vm0, %v12047_v52  ;;  %9907 = vmatpush3.msra.mxu1 %v5207_v24 }
0x1000   :  { %9908 = vmatprep.subr.mxu1 %v5206_v14 }
0x1001   :  { %9909 = vmatpush3.msra.mxu1 %v5206_v14 }
0x1002   :  { %9869 = vmatmul.mubr.msk.f32.gmra.mxu1 %vm19_vm0, %v12064_v41 }
0x1003   :  { %9871 = vmatprep.mubr.msk.f32.mxu1 %vm19_vm0, %v12066_v28 }
0x1006   :  { %9872 = vmatmul.mubr.msk.f32.gmra.mxu1 %vm19_vm0, %v12079_v27 }
0x1007   :  { %9910 = vmatprep.mubr.msk.f32.mxu1 %vm19_vm0, %v12021_v17 }
0x100a   :  { %9911 = vmatmul.mubr.msk.f32.vlgmr.msra.gmra.mxu1 %vm19_vm0, %v12023_v54 }
0x100b   :  { %9913 = vmatprep.mubr.msk.f32.mxu1 %vm19_vm0, %v12025_v56 }
0x100e   :  { %9914 = vmatmul.mubr.msk.f32.gmra.mxu1 %vm19_vm0, %v12044_v25 }
0x100f   :  { %9916 = vmatprep.mubr.msk.f32.mxu1 %vm19_vm0, %v12047_v52 }
0x1012   :  { %9917 = vmatmul.mubr.msk.f32.gmra.mxu1 %vm19_vm0, %v12064_v41 }
0x1013   :  { %9919 = vmatprep.mubr.msk.f32.mxu1 %vm19_vm0, %v12066_v28 }
0x1016   :  { %9920 = vmatmul.mubr.msk.f32.gmra.mxu1 %vm19_vm0, %v12079_v27 }
0x10aa   :  { %v9816_v4 = vpop.f32.mrf.mxu1 }
0x10ab   :  { %v4477_v49 = vmul.f32 0.35355338, %v9816_v4 }
0x10ac   :  { %v4437_v26 = vpop.f32.mrf.mxu1 }
0x10ad   :  { %v4493_v35 = vadd.f32 %v4485_v44, %v4477_v49  ;;  %v4476_v47 = vmul.f32 0.35355338, %v4437_v26  ;;  %v12280_v44 = vld [vmem:[%s13285_s2 + $0x28] sm:$0xff] }
0x10ae   :  { %v9819_v37 = vpop.f32.mrf.mxu1 }
0x10af   :  { %v4492_v13 = vadd.f32 %v4484_v1, %v4476_v47  ;;  %v4479_v18 = vmul.f32 0.35355338, %v9819_v37  ;;  %v12243_v16 = vadd.f32 %v12240_v59, %v4493_v35  ;;  %v4491_v35 = vld [vmem:[#allocation2 + $0x38] sm:$0xff] }
0x10b0   :  { %v4447_v10 = vpop.f32.mrf.mxu1 }
0x10b1   :  { %v4495_v7 = vadd.f32 %v4487_v34, %v4479_v18  ;;  %v4478_v8 = vmul.f32 0.35355338, %v4447_v10  ;;  %v4511_v53 = vsel %vm996_vm5, %v12243_v16, -inf  ;;  %v12253_v20 = vadd.f32 %v12250_v58, %v4492_v13  ;;  %v12290_v18 = vld [vmem:[%s13285_s2 + $0x20] sm:$0xff]  ;;  %v4490_v10 = vld [vmem:[#allocation2 + $0x30] sm:$0xff] }
0x10b2   :  { %4512 = vmax.xlane.f32.xlu1 %v4511_v53  ;;  %v9822_v32 = vpop.f32.mrf.mxu1 }
0x10b3   :  { %v4494_v38 = vadd.f32 %v4486_v19, %v4478_v8  ;;  %v4481_v51 = vmul.f32 0.35355338, %v9822_v32  ;;  %v4508_v42 = vsel %vm996_vm5, %v12253_v20, -inf  ;;  %v12263_v57 = vadd.f32 %v12260_v21, %v4495_v7  ;;  %v12300_v19 = vld [vmem:[%s13285_s2 + $0x38] sm:$0xff] }
0x10b4   :  { %4509 = vmax.xlane.f32.xlu0 %v4508_v42  ;;  %v4457_v29 = vpop.f32.mrf.mxu1  ;;  %v12310_v42 = vld [vmem:[%s13285_s2 + $0x30] sm:$0xff] }
0x10b5   :  { %v4497_v33 = vadd.f32 %v4489_v55, %v4481_v51  ;;  %v4480_v45 = vmul.f32 0.35355338, %v4457_v29  ;;  %v4517_v43 = vsel %vm996_vm5, %v12263_v57, -inf  ;;  %v12273_v40 = vadd.f32 %v12270_v63, %v4494_v38 }
0x10b6   :  { %4518 = vmax.xlane.f32.xlu1 %v4517_v43  ;;  %v9825_v24 = vpop.f32.mrf.mxu1 }
0x10b7   :  { %v4496_v14 = vadd.f32 %v4488_v5, %v4480_v45  ;;  %v4483_v4 = vmul.f32 0.35355338, %v9825_v24  ;;  %v4514_v49 = vsel %vm996_vm5, %v12273_v40, -inf  ;;  %v12283_v26 = vadd.f32 %v12280_v44, %v4497_v33  ;;  %v8428_v24 = vld [vmem:[%s13284_s1 + $0x335] ss:$0 sm:$0xff] }
0x10b8   :  { %4515 = vmax.xlane.f32.xlu0 %v4514_v49  ;;  %v4467_v47 = vpop.f32.mrf.mxu1 }
0x10b9   :  { %v4499_v1 = vadd.f32 %v4491_v35, %v4483_v4  ;;  %v4482_v37 = vmul.f32 0.35355338, %v4467_v47  ;;  %v4523_v13 = vsel %vm996_vm5, %v12283_v26, -inf  ;;  %v12293_v34 = vadd.f32 %v12290_v18, %v4496_v14 }
0x10ba   :  { %4524 = vmax.xlane.f32.xlu1 %v4523_v13  ;;  %v9864_v7 = vpop.f32.mrf.mxu1 }
0x10bb   :  { %v4498_v8 = vadd.f32 %v4490_v10, %v4482_v37  ;;  %v4520_v53 = vsel %vm996_vm5, %v12293_v34, -inf  ;;  %v12303_v32 = vadd.f32 %v12300_v19, %v4499_v1 }
0x10bc   :  { %4521 = vmax.xlane.f32.xlu0 %v4520_v53  ;;  %v4894_v38 = vpop.f32.mrf.mxu1 }
0x10bd   :  { %v4529_v51 = vsel %vm996_vm5, %v12303_v32, -inf  ;;  %v12313_v55 = vadd.f32 %v12310_v42, %v4498_v8 }
0x10be   :  { %4530 = vmax.xlane.f32.xlu1 %v4529_v51  ;;  %v9867_v29 = vpop.f32.mrf.mxu1 }
0x10bf   :  { %v4526_v33 = vsel %vm996_vm5, %v12313_v55, -inf }
0x10c0   :  { %v4904_v45 = vpop.f32.mrf.mxu1  ;;  %4527 = vmax.xlane.f32.xlu0 %v4526_v33  ;;  %v4910_v33 = vadd.f32 %v9867_v29, %v8428_v24  ;;  %v4900_v29 = vadd.f32 %v9864_v7, %v8428_v24 }
0x10c2   :  { %v9870_v43 = vpop.f32.mrf.mxu1 }
0x10c3   :  { %v4920_v37 = vadd.f32 %v9870_v43, %v8428_v24 }
0x10c4   :  { %v4914_v5 = vpop.f32.mrf.mxu1 }
0x10c5   :  { %v4915_v8 = vadd.f32 %v8428_v24, %v4914_v5 }
0x10c6   :  { %v9873_v14 = vpop.f32.mrf.mxu1 }
0x10c7   :  { %v4930_v4 = vadd.f32 %v9873_v14, %v8428_v24 }
0x10c8   :  { %v4924_v49 = vpop.f32.mrf.mxu1 }
0x10c9   :  { %v4925_v35 = vadd.f32 %v8428_v24, %v4924_v49  ;;  %9874 = vmatprep.subr.msk.mxu0 %vm834_vm4, %v4930_v4  ;;  %v4905_v49 = vadd.f32 %v8428_v24, %v4904_v45  ;;  %v4895_v45 = vadd.f32 %v8428_v24, %v4894_v38 }
0x10ca   :  { %9875 = vmatpush3.xpose.msk.msra.mxu0 %vm834_vm4, %v4930_v4  ;;  %v9912_v47 = vpop.f32.mrf.mxu1  ;;  %v9853_v4 = vpop.f32.mrf.mxu0 }
0x10cb   :  { %9876 = vmatprep.subr.msk.mxu0 %vm834_vm4, %v4925_v35  ;;  %v4798_v38 = vadd.f32 %v9853_v4, %v12160_v31 }
0x10cc   :  { %v5276_v1 = vpop.f32.mrf.mxu1  ;;  %v4792_v5 = vpop.f32.mrf.mxu0 }
0x10cd   :  { %v4793_v7 = vadd.f32 %v12160_v31, %v4792_v5 }
0x10ce   :  { %9877 = vmatpush3.xpose.msk.msra.mxu0 %vm834_vm4, %v4925_v35  ;;  %v9915_v13 = vpop.f32.mrf.mxu1  ;;  %v9856_v35 = vpop.f32.mrf.mxu0 }
0x10cf   :  { %9878 = vmatprep.subr.msk.mxu0 %vm834_vm4, %v4920_v37 }
0x10d0   :  { %v5286_v10 = vpop.f32.mrf.mxu1 }
0x10d2   :  { %9879 = vmatpush3.xpose.msk.msra.mxu0 %vm834_vm4, %v4920_v37  ;;  %v9918_v53 = vpop.f32.mrf.mxu1  ;;  %v4802_v37 = vpop.f32.mrf.mxu0 }
0x10d3   :  { %9880 = vmatprep.subr.msk.mxu0 %vm834_vm4, %v4915_v8  ;;  %v4803_v24 = vadd.f32 %v12160_v31, %v4802_v37 }
0x10d4   :  { %v5296_v51 = vpop.f32.mrf.mxu1 }
0x10d6   :  { %9881 = vmatpush3.xpose.msk.msra.mxu0 %vm834_vm4, %v4915_v8  ;;  %v9921_v14 = vpop.f32.mrf.mxu1 }
0x10d7   :  { %9882 = vmatprep.subr.msk.mxu0 %vm834_vm4, %v4910_v33  ;;  %9922 = vmatprep.subr.mxu1 %v9921_v14 }
0x10d8   :  { %v5306_v43 = vpop.f32.mrf.mxu1  ;;  %9923 = vmatpush3.msra.mxu1 %v9921_v14  ;;  %v5095_v14 = vld [vmem:[#allocation2 + $0x48] sm:$0xff] }
0x10d9   :  { %9924 = vmatprep.subr.mxu1 %v5306_v43 }
0x10da   :  { %9883 = vmatpush3.xpose.msk.msra.mxu0 %vm834_vm4, %v4910_v33  ;;  %9925 = vmatpush3.msra.mxu1 %v5306_v43 }
0x10db   :  { %9884 = vmatprep.subr.msk.mxu0 %vm834_vm4, %v4905_v49  ;;  %9926 = vmatprep.subr.mxu1 %v9918_v53 }
0x10dc   :  { %9927 = vmatpush3.msra.mxu1 %v9918_v53 }
0x10dd   :  { %9928 = vmatprep.subr.mxu1 %v5296_v51 }
0x10de   :  { %9885 = vmatpush3.xpose.msk.msra.mxu0 %vm834_vm4, %v4905_v49  ;;  %9929 = vmatpush3.msra.mxu1 %v5296_v51 }
0x10df   :  { %9886 = vmatprep.subr.msk.mxu0 %vm834_vm4, %v4900_v29  ;;  %9930 = vmatprep.subr.mxu1 %v9915_v13 }
0x10e0   :  { %9931 = vmatpush3.msra.mxu1 %v9915_v13  ;;  %v9859_v13 = vpop.f32.mrf.mxu0 }
0x10e1   :  { %9932 = vmatprep.subr.mxu1 %v5286_v10 }
0x10e2   :  { %9887 = vmatpush3.xpose.msk.msra.mxu0 %vm834_vm4, %v4900_v29  ;;  %9933 = vmatpush3.msra.mxu1 %v5286_v10  ;;  %v5094_v29 = vld [vmem:[#allocation2 + $0x40] sm:$0xff] }
0x10e3   :  { %9888 = vmatprep.subr.msk.mxu0 %vm834_vm4, %v4895_v45  ;;  %9934 = vmatprep.subr.mxu1 %v9912_v47 }
0x10e4   :  { %9935 = vmatpush3.msra.mxu1 %v9912_v47  ;;  %v4812_v47 = vpop.f32.mrf.mxu0 }
0x10e5   :  { %9936 = vmatprep.subr.mxu1 %v5276_v1 }
0x10e6   :  { %9889 = vmatpush3.xpose.msk.msra.mxu0 %vm834_vm4, %v4895_v45  ;;  %9937 = vmatpush3.msra.mxu1 %v5276_v1 }
0x10e7   :  { %9950 = vmatprep.subr.mxu0 %v12152_v60 }
0x10e9   :  { %9891 = vmatmul.mubr.msk.f32.vlgmr.msra.gmra.mxu0 %vm834_vm4, %v12164_v50  ;;  %v4808_v50 = vadd.f32 %v9856_v35, %v12160_v31 }
0x10ea   :  { %9893 = vmatprep.mubr.msk.f32.mxu0 %vm834_vm4, %v4793_v7  ;;  %9951 = vmatpush3.msra.mxu0 %v12152_v60  ;;  %v4813_v60 = vadd.f32 %v12160_v31, %v4812_v47 }
0x10eb   :  { %9952 = vmatprep.subr.mxu0 %v12155_v12 }
0x10ec   :  { %9953 = vmatpush3.msra.mxu0 %v12155_v12  ;;  %v4818_v12 = vadd.f32 %v9859_v13, %v12160_v31 }
0x10ed   :  { %9894 = vmatmul.mubr.msk.f32.gmra.mxu0 %vm834_vm4, %v4798_v38  ;;  %9954 = vmatprep.subr.mxu0 %v12146_v2 }
0x10ee   :  { %9896 = vmatprep.mubr.msk.f32.mxu0 %vm834_vm4, %v4803_v24  ;;  %9955 = vmatpush3.msra.mxu0 %v12146_v2 }
0x10ef   :  { %9956 = vmatprep.subr.mxu0 %v12149_v62 }
0x10f0   :  { %9957 = vmatpush3.msra.mxu0 %v12149_v62 }
0x10f1   :  { %9897 = vmatmul.mubr.msk.f32.gmra.mxu0 %vm834_vm4, %v4808_v50  ;;  %9958 = vmatprep.subr.mxu0 %v12140_v61 }
0x10f2   :  { %9899 = vmatprep.mubr.msk.f32.mxu0 %vm834_vm4, %v4813_v60  ;;  %9959 = vmatpush3.msra.mxu0 %v12140_v61 }
0x10f3   :  { %9960 = vmatprep.subr.mxu0 %v12143_v46 }
0x10f4   :  { %9961 = vmatpush3.msra.mxu0 %v12143_v46 }
0x10f5   :  { %9900 = vmatmul.mubr.msk.f32.gmra.mxu0 %vm834_vm4, %v4818_v12  ;;  %9962 = vmatprep.subr.mxu0 %v12134_v30  ;;  %v5096_v12 = vld [vmem:[#allocation2 + $0x50] sm:$0xff] }
0x10f6   :  { %9963 = vmatpush3.msra.mxu0 %v12134_v30 }
0x10f7   :  { %9964 = vmatprep.subr.mxu0 %v12137_v0 }
0x10f8   :  { %9965 = vmatpush3.msra.mxu0 %v12137_v0 }
0x113b   :  { %v4513_v2 = vpop.xlane.xlu1 %4512 }
0x113c   :  { %v4533_v31 = vsub.f32 %v12243_v16, %v4513_v2 }
0x113d   :  { %v4510_v62 = vpop.xlane.xlu0 %4509 }
0x113e   :  { %v4532_v10 = vsub.f32 %v12253_v20, %v4510_v62  ;;  %v4542_v51 = vmul.f32 1.442695, %v4533_v31 }
0x113f   :  { %v4519_v1 = vpop.xlane.xlu1 %4518 }
0x1140   :  { %v4535_v33 = vsub.f32 %v12263_v57, %v4519_v1  ;;  %v4540_v0 = vmul.f32 1.442695, %v4532_v10  ;;  %10466 = vpow2.f32 %v4542_v51  ;;  %v5097_v57 = vld [vmem:[#allocation2 + $0x58] sm:$0xff] }
0x1141   :  { %v4516_v61 = vpop.xlane.xlu0 %4515 }
0x1142   :  { %v4534_v5 = vsub.f32 %v12273_v40, %v4516_v61  ;;  %v4546_v37 = vmul.f32 1.442695, %v4535_v33  ;;  %10468 = vpow2.f32 %v4540_v0 }
0x1143   :  { %v4525_v46 = vpop.xlane.xlu1 %4524 }
0x1144   :  { %v4537_v7 = vsub.f32 %v12283_v26, %v4525_v46  ;;  %v4544_v60 = vmul.f32 1.442695, %v4534_v5  ;;  %10470 = vpow2.f32 %v4546_v37  ;;  %v5100_v37 = vld [vmem:[#allocation2 + $0x70] sm:$0xff] }
0x1145   :  { %v4522_v43 = vpop.xlane.xlu0 %4521 }
0x1146   :  { %v4550_v10 = vmul.f32 1.442695, %v4537_v7  ;;  %10472 = vpow2.f32 %v4544_v60 }
0x1147   :  { %v4531_v38 = vpop.xlane.xlu1 %4530 }
0x1148   :  { %10474 = vpow2.f32 %v4550_v10 }
0x1149   :  { %v4528_v62 = vpop.xlane.xlu0 %4527 }
0x11a9   :  { %v9892_v8 = vpop.f32.mrf.mxu0 }
0x11aa   :  { %v5087_v53 = vmul.f32 0.35355338, %v9892_v8  ;;  %v5099_v8 = vld [vmem:[#allocation2 + $0x68] sm:$0xff] }
0x11ab   :  { %v5047_v30 = vpop.f32.mrf.mxu0 }
0x11ac   :  { %v5103_v4 = vadd.f32 %v5095_v14, %v5087_v53  ;;  %v5086_v49 = vmul.f32 0.35355338, %v5047_v30  ;;  %v5098_v30 = vld [vmem:[#allocation2 + $0x60] sm:$0xff] }
0x11ad   :  { %v9895_v35 = vpop.f32.mrf.mxu0 }
0x11ae   :  { %v5102_v45 = vadd.f32 %v5094_v29, %v5086_v49  ;;  %v5089_v16 = vmul.f32 0.35355338, %v9895_v35  ;;  %v12371_v20 = vadd.f32 %v12240_v59, %v5103_v4  ;;  %v4536_v59 = vsub.f32 %v12293_v34, %v4522_v43  ;;  %v5101_v29 = vld [vmem:[#allocation2 + $0x78] sm:$0xff] }
0x11af   :  { %v5057_v13 = vpop.f32.mrf.mxu0 }
0x11b0   :  { %v5105_v24 = vadd.f32 %v5097_v57, %v5089_v16  ;;  %v5088_v47 = vmul.f32 0.35355338, %v5057_v13  ;;  %v5121_v50 = vsel %vm996_vm5, %v12371_v20, -inf  ;;  %v12377_v40 = vadd.f32 %v12250_v58, %v5102_v45 }
0x11b1   :  { %5122 = vmax.xlane.f32.xlu1 %v5121_v50  ;;  %v9898_v2 = vpop.f32.mrf.mxu0  ;;  %v4539_v58 = vsub.f32 %v12303_v32, %v4531_v38  ;;  %v4548_v14 = vmul.f32 1.442695, %v4536_v59  ;;  %v12405_v38 = vpop.eup %10466 }
0x11b2   :  { %v5104_v26 = vadd.f32 %v5096_v12, %v5088_v47  ;;  %v5091_v1 = vmul.f32 0.35355338, %v9898_v2  ;;  %v5118_v61 = vsel %vm996_vm5, %v12377_v40, -inf  ;;  %v12383_v31 = vadd.f32 %v12260_v21, %v5105_v24 }
0x11b3   :  { %v5067_v46 = vpop.f32.mrf.mxu0  ;;  %5119 = vmax.xlane.f32.xlu0 %v5118_v61  ;;  %v4538_v21 = vsub.f32 %v12313_v55, %v4528_v62  ;;  %v4554_v5 = vmul.f32 1.442695, %v4539_v58  ;;  %10476 = vpow2.f32 %v4548_v14 }
0x11b4   :  { %v5107_v34 = vadd.f32 %v5099_v8, %v5091_v1  ;;  %v5090_v53 = vmul.f32 0.35355338, %v5067_v46  ;;  %v5127_v51 = vsel %vm996_vm5, %v12383_v31, -inf  ;;  %v12389_v33 = vadd.f32 %v12270_v63, %v5104_v26 }
0x11b5   :  { %5128 = vmax.xlane.f32.xlu1 %v5127_v51  ;;  %v9901_v43 = vpop.f32.mrf.mxu0  ;;  %v4552_v7 = vmul.f32 1.442695, %v4538_v21  ;;  %10478 = vpow2.f32 %v4554_v5 }
0x11b6   :  { %v5106_v4 = vadd.f32 %v5098_v30, %v5090_v53  ;;  %v5093_v32 = vmul.f32 0.35355338, %v9901_v43  ;;  %v5124_v49 = vsel %vm996_vm5, %v12389_v33, -inf  ;;  %v12395_v0 = vadd.f32 %v12280_v44, %v5107_v34  ;;  %v12443_v34 = vld [vmem:[%s13284_s1 + $0x188] sm:$0xff] }
0x11b7   :  { %v5077_v63 = vpop.f32.mrf.mxu0  ;;  %5125 = vmax.xlane.f32.xlu0 %v5124_v49  ;;  %10480 = vpow2.f32 %v4552_v7  ;;  %9992 = vmatprep.subr.msk.mxu0 %vm19_vm0, %v12443_v34 }
0x11b8   :  { %v5109_v35 = vadd.f32 %v5101_v29, %v5093_v32  ;;  %v5092_v45 = vmul.f32 0.35355338, %v5077_v63  ;;  %v5133_v55 = vsel %vm996_vm5, %v12395_v0, -inf  ;;  %v12400_v16 = vadd.f32 %v12290_v18, %v5106_v4  ;;  %v12409_v18 = vpop.eup %10468 }
0x11b9   :  { %5134 = vmax.xlane.f32.xlu1 %v5133_v55  ;;  %v12412_v60 = vpop.eup %10470  ;;  %v4556_v12 = vsel %vm996_vm5, %v12409_v18, 0.0 }
0x11ba   :  { %v5108_v57 = vadd.f32 %v5100_v37, %v5092_v45  ;;  %v5130_v44 = vsel %vm996_vm5, %v12400_v16, -inf  ;;  %v5117_v13 = vadd.f32 %v12300_v19, %v5109_v35  ;;  %v4559_v19 = vsel %vm996_vm5, %v12405_v38, 0.0  ;;  %v12416_v59 = vpop.eup %10472 }
0x11bb   :  { %5131 = vmax.xlane.f32.xlu0 %v5130_v44  ;;  %v4565_v2 = vsel %vm996_vm5, %v12412_v60, 0.0  ;;  %v4562_v26 = vsel %vm996_vm5, %v12416_v59, 0.0 }
0x11bc   :  { %v5139_v24 = vsel %vm996_vm5, %v5117_v13, -inf  ;;  %v5116_v47 = vadd.f32 %v12310_v42, %v5108_v57  ;;  %v12420_v42 = vpop.eup %10474 }
0x11bd   :  { %5140 = vmax.xlane.f32.xlu1 %v5139_v24  ;;  %v4571_v1 = vsel %vm996_vm5, %v12420_v42, 0.0 }
0x11be   :  { %v5136_v50 = vsel %vm996_vm5, %v5116_v47, -inf }
0x11bf   :  { %5137 = vmax.xlane.f32.xlu0 %v5136_v50 }
0x11c0   :  { %v12424_v62 = vpop.eup %10476 }
0x11c1   :  { %4560 = vadd.xlane.f32.xlu1 %v4559_v19  ;;  %v4568_v10 = vsel %vm996_vm5, %v12424_v62, 0.0 }
0x11c2   :  { %v12430_v61 = vpop.eup %10478 }
0x11c3   :  { %4557 = vadd.xlane.f32.xlu0 %v4556_v12  ;;  %v4577_v8 = vsel %vm996_vm5, %v12430_v61, 0.0 }
0x11c4   :  { %v12434_v58 = vpop.eup %10480 }
0x11c5   :  { %4566 = vadd.xlane.f32.xlu1 %v4565_v2  ;;  %v4574_v46 = vsel %vm996_vm5, %v12434_v58, 0.0 }
0x11c7   :  { %4563 = vadd.xlane.f32.xlu0 %v4562_v26 }
0x11c9   :  { %4572 = vadd.xlane.f32.xlu1 %v4571_v1 }
0x11cb   :  { %4569 = vadd.xlane.f32.xlu0 %v4568_v10 }
0x11cd   :  { %4578 = vadd.xlane.f32.xlu1 %v4577_v8 }
0x11cf   :  { %4575 = vadd.xlane.f32.xlu0 %v4574_v46 }
0x123a   :  { %v5123_v53 = vpop.xlane.xlu1 %5122 }
0x123b   :  { %v5143_v51 = vsub.f32 %v12371_v20, %v5123_v53 }
0x123c   :  { %v5120_v14 = vpop.xlane.xlu0 %5119 }
0x123d   :  { %v5152_v21 = vmul.f32 1.442695, %v5143_v51  ;;  %v5142_v30 = vsub.f32 %v12377_v40, %v5120_v14 }
0x123e   :  { %v5129_v43 = vpop.xlane.xlu1 %5128 }
0x123f   :  { %10482 = vpow2.f32 %v5152_v21  ;;  %v5150_v4 = vmul.f32 1.442695, %v5142_v30  ;;  %v5145_v32 = vsub.f32 %v12383_v31, %v5129_v43 }
0x1240   :  { %v5126_v49 = vpop.xlane.xlu0 %5125 }
0x1241   :  { %10484 = vpow2.f32 %v5150_v4  ;;  %v5156_v5 = vmul.f32 1.442695, %v5145_v32  ;;  %v5144_v29 = vsub.f32 %v12389_v33, %v5126_v49 }
0x1242   :  { %v5135_v63 = vpop.xlane.xlu1 %5134 }
0x1243   :  { %10486 = vpow2.f32 %v5156_v5  ;;  %v5154_v35 = vmul.f32 1.442695, %v5144_v29  ;;  %v5147_v45 = vsub.f32 %v12395_v0, %v5135_v63 }
0x1244   :  { %v5132_v20 = vpop.xlane.xlu0 %5131 }
0x1245   :  { %10488 = vpow2.f32 %v5154_v35  ;;  %v5160_v55 = vmul.f32 1.442695, %v5147_v45  ;;  %v5146_v40 = vsub.f32 %v12400_v16, %v5132_v20 }
0x1246   :  { %v5141_v37 = vpop.xlane.xlu1 %5140 }
0x1247   :  { %10490 = vpow2.f32 %v5160_v55  ;;  %v5158_v7 = vmul.f32 1.442695, %v5146_v40  ;;  %v5149_v57 = vsub.f32 %v5117_v13, %v5141_v37  ;;  %v6077_v37 = vld [vmem:[%s13284_s1 + $0x270] sm:$0xff] }
0x1248   :  { %v5138_v31 = vpop.xlane.xlu0 %5137 }
0x1249   :  { %10492 = vpow2.f32 %v5158_v7  ;;  %v5164_v44 = vmul.f32 1.442695, %v5149_v57  ;;  %v5148_v24 = vsub.f32 %v5116_v47, %v5138_v31 }
0x124a   :  { %v4561_v50 = vpop.xlane.xlu1 %4560 }
0x124b   :  { %10494 = vpow2.f32 %v5164_v44  ;;  %v5162_v33 = vmul.f32 1.442695, %v5148_v24 }
0x124c   :  { %v12453_v19 = vpop.eup %10482  ;;  %10496 = vrcp.f32 %v4561_v50  ;;  %v4558_v0 = vpop.xlane.xlu0 %4557 }
0x124d   :  { %10498 = vpow2.f32 %v5162_v33  ;;  %v5169_v12 = vsel %vm996_vm5, %v12453_v19, 0.0 }
0x124e   :  { %v12457_v16 = vpop.eup %10484  ;;  %10500 = vrcp.f32 %v4558_v0  ;;  %5170 = vadd.xlane.f32.xlu1 %v5169_v12  ;;  %v4567_v13 = vpop.xlane.xlu1 %4566 }
0x124f   :  { %v5166_v2 = vsel %vm996_vm5, %v12457_v16, 0.0  ;;  %10502 = vrcp.f32 %v4567_v13 }
0x1250   :  { %v12461_v47 = vpop.eup %10486  ;;  %5167 = vadd.xlane.f32.xlu0 %v5166_v2  ;;  %v4564_v26 = vpop.xlane.xlu0 %4563 }
0x1251   :  { %10504 = vrcp.f32 %v4564_v26  ;;  %v5175_v1 = vsel %vm996_vm5, %v12461_v47, 0.0 }
0x1252   :  { %v12465_v10 = vpop.eup %10488  ;;  %5176 = vadd.xlane.f32.xlu1 %v5175_v1  ;;  %v4573_v8 = vpop.xlane.xlu1 %4572 }
0x1253   :  { %v5172_v46 = vsel %vm996_vm5, %v12465_v10, 0.0  ;;  %10506 = vrcp.f32 %v4573_v8 }
0x1254   :  { %v12469_v53 = vpop.eup %10490  ;;  %5173 = vadd.xlane.f32.xlu0 %v5172_v46  ;;  %v4570_v51 = vpop.xlane.xlu0 %4569 }
0x1255   :  { %10508 = vrcp.f32 %v4570_v51  ;;  %v5181_v14 = vsel %vm996_vm5, %v12469_v53, 0.0 }
0x1256   :  { %v12473_v21 = vpop.eup %10492  ;;  %5182 = vadd.xlane.f32.xlu1 %v5181_v14  ;;  %v4579_v30 = vpop.xlane.xlu1 %4578 }
0x1257   :  { %v5178_v43 = vsel %vm996_vm5, %v12473_v21, 0.0  ;;  %10510 = vrcp.f32 %v4579_v30 }
0x1258   :  { %v12477_v4 = vpop.eup %10494  ;;  %5179 = vadd.xlane.f32.xlu0 %v5178_v43  ;;  %v4576_v32 = vpop.xlane.xlu0 %4575 }
0x1259   :  { %v10497_v49 = vpop.eup %10496  ;;  %10512 = vrcp.f32 %v4576_v32  ;;  %v5187_v5 = vsel %vm996_vm5, %v12477_v4, 0.0 }
0x125a   :  { %v12481_v29 = vpop.eup %10498  ;;  %5188 = vadd.xlane.f32.xlu1 %v5187_v5  ;;  %v4589_v55 = vmul.f32 %v10497_v49, %v12405_v38 }
0x125b   :  { %v10501_v63 = vpop.eup %10500  ;;  %v5184_v35 = vsel %vm996_vm5, %v12481_v29, 0.0 }
0x125c   :  { %5185 = vadd.xlane.f32.xlu0 %v5184_v35  ;;  %v4588_v45 = vmul.f32 %v10501_v63, %v12409_v18  ;;  %v10503_v20 = vpop.eup %10502 }
0x125d   :  { %v4591_v18 = vmul.f32 %v10503_v20, %v12412_v60 }
0x125e   :  { %v10505_v40 = vpop.eup %10504  ;;  %9966 = vmatprep.mubr.msk.f32.mxu0 %vm996_vm5, %v4588_v45 }
0x125f   :  { %9967 = vmatmul.mubr.msk.f32.vlgmr.msra.gmra.mxu0 %vm996_vm5, %v4589_v55  ;;  %v4590_v7 = vmul.f32 %v10505_v40, %v12416_v59 }
0x1260   :  { %9993 = vmatpush3.xpose.msk.msra.mxu0 %vm19_vm0, %v12443_v34  ;;  %v10507_v57 = vpop.eup %10506 }
0x1261   :  { %9969 = vmatprep.mubr.msk.f32.mxu0 %vm996_vm5, %v4590_v7  ;;  %10034 = vmatprep.subr.mxu0 %v6077_v37  ;;  %v4593_v24 = vmul.f32 %v10507_v57, %v12420_v42  ;;  %v6076_v42 = vld [vmem:[%s13284_s1 + $0x268] sm:$0xff] }
0x1262   :  { %v10509_v38 = vpop.eup %10508 }
0x1263   :  { %9970 = vmatmul.mubr.msk.f32.gmra.mxu0 %vm996_vm5, %v4591_v18  ;;  %v4592_v31 = vmul.f32 %v10509_v38, %v12424_v62  ;;  %v5573_v62 = vld [vmem:[%s13284_s1 + $0x148] sm:$0xff] }
0x1264   :  { %v10511_v44 = vpop.eup %10510  ;;  %9978 = vmatprep.subr.msk.mxu1 %vm19_vm0, %v5573_v62 }
0x1265   :  { %9972 = vmatprep.mubr.msk.f32.mxu0 %vm996_vm5, %v4592_v31  ;;  %v4595_v60 = vmul.f32 %v10511_v44, %v12430_v61  ;;  %v6075_v61 = vld [vmem:[%s13284_s1 + $0x260] sm:$0xff] }
0x1266   :  { %v10513_v59 = vpop.eup %10512 }
0x1267   :  { %9973 = vmatmul.mubr.msk.f32.gmra.mxu0 %vm996_vm5, %v4593_v24  ;;  %v4594_v34 = vmul.f32 %v10513_v59, %v12434_v58  ;;  %v6074_v58 = vld [vmem:[%s13284_s1 + $0x258] sm:$0xff]  ;;  %v8488_v24 = vld [vmem:[%s13284_s1 + $0x336] ss:$0 sm:$0xff] }
0x1269   :  { %9975 = vmatprep.mubr.msk.f32.mxu0 %vm996_vm5, %v4594_v34 }
0x126b   :  { %9976 = vmatmul.mubr.msk.f32.gmra.mxu0 %vm996_vm5, %v4595_v60 }
0x126c   :  { %9994 = vmatprep.mubr.msk.f32.mxu0 %vm19_vm0, %v12021_v17 }
0x126f   :  { %9995 = vmatmul.mubr.msk.f32.vlgmr.msra.gmra.mxu0 %vm19_vm0, %v12023_v54 }
0x1270   :  { %9997 = vmatprep.mubr.msk.f32.mxu0 %vm19_vm0, %v12025_v56  ;;  %10035 = vmatpush3.msra.mxu0 %v6077_v37 }
0x1271   :  { %10036 = vmatprep.subr.mxu0 %v6076_v42 }
0x1272   :  { %10037 = vmatpush3.msra.mxu0 %v6076_v42 }
0x1273   :  { %9998 = vmatmul.mubr.msk.f32.gmra.mxu0 %vm19_vm0, %v12044_v25  ;;  %10038 = vmatprep.subr.mxu0 %v6075_v61 }
0x1274   :  { %10000 = vmatprep.mubr.msk.f32.mxu0 %vm19_vm0, %v12047_v52  ;;  %10039 = vmatpush3.msra.mxu0 %v6075_v61 }
0x1275   :  { %10040 = vmatprep.subr.mxu0 %v6074_v58 }
0x1276   :  { %10041 = vmatpush3.msra.mxu0 %v6074_v58 }
0x1277   :  { %10001 = vmatmul.mubr.msk.f32.gmra.mxu0 %vm19_vm0, %v12064_v41 }
0x1278   :  { %10003 = vmatprep.mubr.msk.f32.mxu0 %vm19_vm0, %v12066_v28 }
0x127b   :  { %10004 = vmatmul.mubr.msk.f32.gmra.mxu0 %vm19_vm0, %v12079_v27 }
0x127c   :  { %10042 = vmatprep.mubr.msk.f32.mxu0 %vm19_vm0, %v12021_v17 }
0x127f   :  { %10043 = vmatmul.mubr.msk.f32.vlgmr.msra.gmra.mxu0 %vm19_vm0, %v12023_v54 }
0x1280   :  { %10045 = vmatprep.mubr.msk.f32.mxu0 %vm19_vm0, %v12025_v56 }
0x1283   :  { %10046 = vmatmul.mubr.msk.f32.gmra.mxu0 %vm19_vm0, %v12044_v25 }
0x1284   :  { %10048 = vmatprep.mubr.msk.f32.mxu0 %vm19_vm0, %v12047_v52 }
0x1287   :  { %10049 = vmatmul.mubr.msk.f32.gmra.mxu0 %vm19_vm0, %v12064_v41 }
0x1288   :  { %10051 = vmatprep.mubr.msk.f32.mxu0 %vm19_vm0, %v12066_v28 }
0x128b   :  { %10052 = vmatmul.mubr.msk.f32.gmra.mxu0 %vm19_vm0, %v12079_v27 }
0x12d7   :  { %v5171_v50 = vpop.xlane.xlu1 %5170 }
0x12d8   :  { %10514 = vrcp.f32 %v5171_v50 }
0x12d9   :  { %v5168_v33 = vpop.xlane.xlu0 %5167 }
0x12da   :  { %10516 = vrcp.f32 %v5168_v33 }
0x12db   :  { %v5177_v0 = vpop.xlane.xlu1 %5176 }
0x12dc   :  { %10518 = vrcp.f32 %v5177_v0 }
0x12dd   :  { %v5174_v12 = vpop.xlane.xlu0 %5173 }
0x12de   :  { %10520 = vrcp.f32 %v5174_v12 }
0x12df   :  { %v5183_v13 = vpop.xlane.xlu1 %5182 }
0x12e0   :  { %10522 = vrcp.f32 %v5183_v13 }
0x12e1   :  { %v5180_v2 = vpop.xlane.xlu0 %5179 }
0x12e2   :  { %10524 = vrcp.f32 %v5180_v2 }
0x12e3   :  { %v5189_v26 = vpop.xlane.xlu1 %5188 }
0x12e4   :  { %10526 = vrcp.f32 %v5189_v26 }
0x12e5   :  { %v5186_v1 = vpop.xlane.xlu0 %5185  ;;  %v10515_v8 = vpop.eup %10514 }
0x12e6   :  { %10528 = vrcp.f32 %v5186_v1  ;;  %v5199_v14 = vmul.f32 %v10515_v8, %v12453_v19 }
0x12e7   :  { %v10517_v46 = vpop.eup %10516 }
0x12e8   :  { %v5198_v51 = vmul.f32 %v10517_v46, %v12457_v16 }
0x12e9   :  { %v10519_v30 = vpop.eup %10518 }
0x12ea   :  { %9938 = vmatprep.mubr.msk.f32.mxu1 %vm996_vm5, %v5198_v51  ;;  %v5201_v49 = vmul.f32 %v10519_v30, %v12461_v47 }
0x12eb   :  { %v10521_v43 = vpop.eup %10520  ;;  %9939 = vmatmul.mubr.msk.f32.vlgmr.msra.gmra.mxu1 %vm996_vm5, %v5199_v14  ;;  %v6320_v14 = vld [vmem:[%s13284_s1 + $0x150] sm:$0xff] }
0x12ec   :  { %9979 = vmatpush3.xpose.msk.msra.mxu1 %vm19_vm0, %v5573_v62  ;;  %v5200_v32 = vmul.f32 %v10521_v43, %v12465_v10 }
0x12ed   :  { %v10523_v5 = vpop.eup %10522 }
0x12ee   :  { %9941 = vmatprep.mubr.msk.f32.mxu1 %vm996_vm5, %v5200_v32  ;;  %v5203_v16 = vmul.f32 %v10523_v5, %v12469_v53 }
0x12ef   :  { %v10525_v63 = vpop.eup %10524  ;;  %9942 = vmatmul.mubr.msk.f32.gmra.mxu1 %vm996_vm5, %v5201_v49 }
0x12f0   :  { %v5202_v19 = vmul.f32 %v10525_v63, %v12473_v21 }
0x12f1   :  { %v10527_v35 = vpop.eup %10526 }
0x12f2   :  { %9944 = vmatprep.mubr.msk.f32.mxu1 %vm996_vm5, %v5202_v19  ;;  %v5205_v47 = vmul.f32 %v10527_v35, %v12477_v4 }
0x12f3   :  { %v10529_v45 = vpop.eup %10528  ;;  %9945 = vmatmul.mubr.msk.f32.gmra.mxu1 %vm996_vm5, %v5203_v16 }
0x12f4   :  { %v5204_v10 = vmul.f32 %v10529_v45, %v12481_v29  ;;  %v8478_v45 = vld [vmem:[%s13284_s1 + $0x332] ss:$0 sm:$0xff] }
0x12f6   :  { %9947 = vmatprep.mubr.msk.f32.mxu1 %vm996_vm5, %v5204_v10 }
0x12f7   :  { %9948 = vmatmul.mubr.msk.f32.gmra.mxu1 %vm996_vm5, %v5205_v47 }
0x12f8   :  { %9980 = vmatprep.mubr.msk.f32.mxu1 %vm19_vm0, %v12021_v17 }
0x12fb   :  { %9981 = vmatmul.mubr.msk.f32.vlgmr.msra.gmra.mxu1 %vm19_vm0, %v12023_v54 }
0x12fc   :  { %9983 = vmatprep.mubr.msk.f32.mxu1 %vm19_vm0, %v12025_v56 }
0x12ff   :  { %9984 = vmatmul.mubr.msk.f32.gmra.mxu1 %vm19_vm0, %v12044_v25 }
0x1300   :  { %9986 = vmatprep.mubr.msk.f32.mxu1 %vm19_vm0, %v12047_v52 }
0x1303   :  { %9987 = vmatmul.mubr.msk.f32.gmra.mxu1 %vm19_vm0, %v12064_v41 }
0x1304   :  { %9989 = vmatprep.mubr.msk.f32.mxu1 %vm19_vm0, %v12066_v28 }
0x1307   :  { %9990 = vmatmul.mubr.msk.f32.gmra.mxu1 %vm19_vm0, %v12079_v27 }
0x131f   :  { %v12584_v53 = vpop.f32.mrf.mxu0 }
0x1321   :  { %v12586_v21 = vpop.f32.mrf.mxu0 }
0x1323   :  { %v12588_v4 = vpop.f32.mrf.mxu0 }
0x1325   :  { %v12590_v29 = vpop.f32.mrf.mxu0 }
0x1327   :  { %v12592_v20 = vpop.f32.mrf.mxu0 }
0x1329   :  { %v12594_v55 = vpop.f32.mrf.mxu0 }
0x132b   :  { %v12596_v40 = vpop.f32.mrf.mxu0 }
0x132d   :  { %v12598_v37 = vpop.f32.mrf.mxu0 }
0x132f   :  { %v9996_v7 = vpop.f32.mrf.mxu0 }
0x1330   :  { %v5768_v46 = vadd.f32 %v9996_v7, %v8488_v24 }
0x1331   :  { %v5762_v57 = vpop.f32.mrf.mxu0 }
0x1332   :  { %v5763_v51 = vadd.f32 %v8488_v24, %v5762_v57 }
0x1333   :  { %v9999_v18 = vpop.f32.mrf.mxu0 }
0x1334   :  { %v5778_v2 = vadd.f32 %v9999_v18, %v8488_v24 }
0x1335   :  { %v5772_v38 = vpop.f32.mrf.mxu0 }
0x1336   :  { %v5773_v8 = vadd.f32 %v8488_v24, %v5772_v38 }
0x1337   :  { %v10002_v31 = vpop.f32.mrf.mxu0 }
0x1338   :  { %v5788_v58 = vadd.f32 %v10002_v31, %v8488_v24 }
0x1339   :  { %v5782_v44 = vpop.f32.mrf.mxu0 }
0x133a   :  { %v5783_v0 = vadd.f32 %v8488_v24, %v5782_v44 }
0x133b   :  { %v10005_v59 = vpop.f32.mrf.mxu0 }
0x133c   :  { %v5798_v34 = vadd.f32 %v10005_v59, %v8488_v24 }
0x133d   :  { %v5792_v60 = vpop.f32.mrf.mxu0 }
0x133e   :  { %v5793_v62 = vadd.f32 %v8488_v24, %v5792_v60  ;;  %10006 = vmatprep.subr.msk.mxu1 %vm834_vm4, %v5798_v34 }
0x133f   :  { %10007 = vmatpush3.xpose.msk.msra.mxu1 %vm834_vm4, %v5798_v34  ;;  %v10044_v42 = vpop.f32.mrf.mxu0 }
0x1340   :  { %10008 = vmatprep.subr.msk.mxu1 %vm834_vm4, %v5793_v62 }
0x1341   :  { %v6144_v61 = vpop.f32.mrf.mxu0 }
0x1343   :  { %10009 = vmatpush3.xpose.msk.msra.mxu1 %vm834_vm4, %v5793_v62  ;;  %v10047_v50 = vpop.f32.mrf.mxu0 }
0x1344   :  { %10010 = vmatprep.subr.msk.mxu1 %vm834_vm4, %v5788_v58 }
0x1345   :  { %v6154_v33 = vpop.f32.mrf.mxu0 }
0x1347   :  { %10011 = vmatpush3.xpose.msk.msra.mxu1 %vm834_vm4, %v5788_v58  ;;  %v10050_v12 = vpop.f32.mrf.mxu0 }
0x1348   :  { %10012 = vmatprep.subr.msk.mxu1 %vm834_vm4, %v5783_v0 }
0x1349   :  { %v6164_v13 = vpop.f32.mrf.mxu0 }
0x134b   :  { %10013 = vmatpush3.xpose.msk.msra.mxu1 %vm834_vm4, %v5783_v0  ;;  %v10053_v26 = vpop.f32.mrf.mxu0 }
0x134c   :  { %10014 = vmatprep.subr.msk.mxu1 %vm834_vm4, %v5778_v2  ;;  %10054 = vmatprep.subr.mxu0 %v10053_v26 }
0x134d   :  { %v6174_v1 = vpop.f32.mrf.mxu0  ;;  %10055 = vmatpush3.msra.mxu0 %v10053_v26 }
0x134e   :  { %10056 = vmatprep.subr.mxu0 %v6174_v1 }
0x134f   :  { %10015 = vmatpush3.xpose.msk.msra.mxu1 %vm834_vm4, %v5778_v2  ;;  %10057 = vmatpush3.msra.mxu0 %v6174_v1  ;;  %v5962_v2 = vld [vmem:[#allocation2 + $0x80] sm:$0xff] }
0x1350   :  { %10016 = vmatprep.subr.msk.mxu1 %vm834_vm4, %v5773_v8  ;;  %10058 = vmatprep.subr.mxu0 %v10050_v12 }
0x1351   :  { %10059 = vmatpush3.msra.mxu0 %v10050_v12 }
0x1352   :  { %10060 = vmatprep.subr.mxu0 %v6164_v13 }
0x1353   :  { %10017 = vmatpush3.xpose.msk.msra.mxu1 %vm834_vm4, %v5773_v8  ;;  %10061 = vmatpush3.msra.mxu0 %v6164_v13 }
0x1354   :  { %10018 = vmatprep.subr.msk.mxu1 %vm834_vm4, %v5768_v46  ;;  %10062 = vmatprep.subr.mxu0 %v10047_v50 }
0x1355   :  { %10063 = vmatpush3.msra.mxu0 %v10047_v50 }
0x1356   :  { %10064 = vmatprep.subr.mxu0 %v6154_v33 }
0x1357   :  { %10019 = vmatpush3.xpose.msk.msra.mxu1 %vm834_vm4, %v5768_v46  ;;  %10065 = vmatpush3.msra.mxu0 %v6154_v33  ;;  %v5963_v33 = vld [vmem:[#allocation2 + $0x88] sm:$0xff] }
0x1358   :  { %10020 = vmatprep.subr.msk.mxu1 %vm834_vm4, %v5763_v51  ;;  %10066 = vmatprep.subr.mxu0 %v10044_v42  ;;  %v12670_v46 = vld [vmem:[%s13285_s2 + $0x8] sm:$0xff] }
0x1359   :  { %10067 = vmatpush3.msra.mxu0 %v10044_v42 }
0x135a   :  { %10068 = vmatprep.subr.mxu0 %v6144_v61 }
0x135b   :  { %10021 = vmatpush3.xpose.msk.msra.mxu1 %vm834_vm4, %v5763_v51  ;;  %10069 = vmatpush3.msra.mxu0 %v6144_v61 }
0x135c   :  { %10082 = vmatprep.subr.msk.mxu1 %vm19_vm0, %v6320_v14 }
0x13ab   :  { %v12623_v30 = vpop.f32.mrf.mxu1 }
0x13ad   :  { %v12625_v43 = vpop.f32.mrf.mxu1 }
0x13af   :  { %v12627_v32 = vpop.f32.mrf.mxu1 }
0x13b1   :  { %v12629_v49 = vpop.f32.mrf.mxu1 }
0x13b3   :  { %v12631_v5 = vpop.f32.mrf.mxu1 }
0x13b5   :  { %v12633_v63 = vpop.f32.mrf.mxu1 }
0x13b7   :  { %v12635_v19 = vpop.f32.mrf.mxu1 }
0x13b9   :  { %v12637_v16 = vpop.f32.mrf.mxu1 }
0x13bb   :  { %v9982_v35 = vpop.f32.mrf.mxu1 }
0x13bc   :  { %v5656_v7 = vadd.f32 %v9982_v35, %v8478_v45 }
0x13bd   :  { %v5650_v10 = vpop.f32.mrf.mxu1 }
0x13be   :  { %v5651_v47 = vadd.f32 %v8478_v45, %v5650_v10 }
0x13bf   :  { %v9985_v57 = vpop.f32.mrf.mxu1 }
0x13c0   :  { %10022 = vmatprep.mubr.msk.f32.mxu1 %vm834_vm4, %v5651_v47  ;;  %v5666_v31 = vadd.f32 %v9985_v57, %v8478_v45 }
0x13c1   :  { %v5660_v18 = vpop.f32.mrf.mxu1  ;;  %10023 = vmatmul.mubr.msk.f32.vlgmr.msra.gmra.mxu1 %vm834_vm4, %v5656_v7  ;;  %v12677_v7 = vld [vmem:[%s13285_s2] sm:$0xff] }
0x13c2   :  { %v5661_v38 = vadd.f32 %v8478_v45, %v5660_v18  ;;  %10083 = vmatpush3.xpose.msk.msra.mxu1 %vm19_vm0, %v6320_v14  ;;  %v5965_v14 = vld [vmem:[#allocation2 + $0x98] sm:$0xff]  ;;  %v5964_v18 = vld [vmem:[#allocation2 + $0x90] sm:$0xff] }
0x13c3   :  { %v9988_v44 = vpop.f32.mrf.mxu1 }
0x13c4   :  { %10025 = vmatprep.mubr.msk.f32.mxu1 %vm834_vm4, %v5661_v38  ;;  %v5676_v34 = vadd.f32 %v9988_v44, %v8478_v45 }
0x13c5   :  { %v5670_v24 = vpop.f32.mrf.mxu1  ;;  %10026 = vmatmul.mubr.msk.f32.gmra.mxu1 %vm834_vm4, %v5666_v31 }
0x13c6   :  { %v5671_v59 = vadd.f32 %v8478_v45, %v5670_v24 }
0x13c7   :  { %v9991_v60 = vpop.f32.mrf.mxu1 }
0x13c8   :  { %10028 = vmatprep.mubr.msk.f32.mxu1 %vm834_vm4, %v5671_v59  ;;  %v5686_v61 = vadd.f32 %v9991_v60, %v8478_v45  ;;  %v12684_v59 = vld [vmem:[%s13285_s2 + $0x18] sm:$0xff]  ;;  %v5967_v60 = vld [vmem:[#allocation2 + $0xa8] sm:$0xff] }
0x13c9   :  { %v5680_v62 = vpop.f32.mrf.mxu1  ;;  %10029 = vmatmul.mubr.msk.f32.gmra.mxu1 %vm834_vm4, %v5676_v34 }
0x13ca   :  { %v5681_v42 = vadd.f32 %v8478_v45, %v5680_v62 }
0x13cc   :  { %10031 = vmatprep.mubr.msk.f32.mxu1 %vm834_vm4, %v5681_v42 }
0x13cd   :  { %10032 = vmatmul.mubr.msk.f32.gmra.mxu1 %vm834_vm4, %v5686_v61 }
0x13ce   :  { %10084 = vmatprep.mubr.msk.f32.mxu1 %vm19_vm0, %v12021_v17 }
0x13d1   :  { %10085 = vmatmul.mubr.msk.f32.vlgmr.msra.gmra.mxu1 %vm19_vm0, %v12023_v54 }
0x13d2   :  { %10087 = vmatprep.mubr.msk.f32.mxu1 %vm19_vm0, %v12025_v56 }
0x13d5   :  { %10088 = vmatmul.mubr.msk.f32.gmra.mxu1 %vm19_vm0, %v12044_v25 }
0x13d6   :  { %10090 = vmatprep.mubr.msk.f32.mxu1 %vm19_vm0, %v12047_v52 }
0x13d9   :  { %10091 = vmatmul.mubr.msk.f32.gmra.mxu1 %vm19_vm0, %v12064_v41 }
0x13da   :  { %10093 = vmatprep.mubr.msk.f32.mxu1 %vm19_vm0, %v12066_v28 }
0x13dd   :  { %10094 = vmatmul.mubr.msk.f32.gmra.mxu1 %vm19_vm0, %v12079_v27 }
0x1481   :  { %v10024_v58 = vpop.f32.mrf.mxu1 }
0x1482   :  { %v5955_v50 = vmul.f32 0.35355338, %v10024_v58 }
0x1483   :  { %v5915_v0 = vpop.f32.mrf.mxu1 }
0x1484   :  { %v5971_v12 = vadd.f32 %v5963_v33, %v5955_v50  ;;  %v5954_v13 = vmul.f32 0.35355338, %v5915_v0  ;;  %v12691_v50 = vld [vmem:[%s13285_s2 + $0x10] sm:$0xff]  ;;  %v5966_v0 = vld [vmem:[#allocation2 + $0xa0] sm:$0xff] }
0x1485   :  { %v10027_v26 = vpop.f32.mrf.mxu1 }
0x1486   :  { %v5970_v1 = vadd.f32 %v5962_v2, %v5954_v13  ;;  %v5957_v8 = vmul.f32 0.35355338, %v10027_v26  ;;  %v5979_v51 = vadd.f32 %v12670_v46, %v5971_v12 }
0x1487   :  { %v5925_v35 = vpop.f32.mrf.mxu1 }
0x1488   :  { %v5973_v45 = vadd.f32 %v5965_v14, %v5957_v8  ;;  %v5956_v10 = vmul.f32 0.35355338, %v5925_v35  ;;  %v5989_v47 = vsel %vm996_vm5, %v5979_v51, -inf  ;;  %v5978_v57 = vadd.f32 %v12677_v7, %v5970_v1  ;;  %v12698_v1 = vld [vmem:[%s13285_s2 + $0x28] sm:$0xff]  ;;  %v5969_v14 = vld [vmem:[#allocation2 + $0xb8] sm:$0xff] }
0x1489   :  { %5990 = vmax.xlane.f32.xlu1 %v5989_v47  ;;  %v10030_v38 = vpop.f32.mrf.mxu1 }
0x148a   :  { %v5972_v31 = vadd.f32 %v5964_v18, %v5956_v10  ;;  %v5959_v44 = vmul.f32 0.35355338, %v10030_v38  ;;  %v5986_v24 = vsel %vm996_vm5, %v5978_v57, -inf  ;;  %v5981_v34 = vadd.f32 %v12684_v59, %v5973_v45  ;;  %v12704_v45 = vld [vmem:[%s13284_s1 + $0x333] ss:$0 sm:$0xff]  ;;  %v12710_v38 = vld [vmem:[%s13285_s2 + $0x20] sm:$0xff] }
0x148b   :  { %5987 = vmax.xlane.f32.xlu0 %v5986_v24  ;;  %v5935_v62 = vpop.f32.mrf.mxu1 }
0x148c   :  { %v5975_v42 = vadd.f32 %v5967_v60, %v5959_v44  ;;  %v5958_v61 = vmul.f32 0.35355338, %v5935_v62  ;;  %v5995_v58 = vsel %vm996_vm5, %v5981_v34, -inf  ;;  %v5980_v33 = vadd.f32 %v12691_v50, %v5972_v31  ;;  %v5968_v44 = vld [vmem:[#allocation2 + $0xb0] sm:$0xff] }
0x148d   :  { %5996 = vmax.xlane.f32.xlu1 %v5995_v58  ;;  %v10033_v12 = vpop.f32.mrf.mxu1 }
0x148e   :  { %v5974_v13 = vadd.f32 %v5966_v0, %v5958_v61  ;;  %v5961_v2 = vmul.f32 0.35355338, %v10033_v12  ;;  %v5992_v26 = vsel %vm996_vm5, %v5980_v33, -inf  ;;  %v5983_v8 = vadd.f32 %v12698_v1, %v5975_v42  ;;  %v12720_v61 = vld [vmem:[%s13285_s2 + $0x38] sm:$0xff] }
0x148f   :  { %5993 = vmax.xlane.f32.xlu0 %v5992_v26  ;;  %v5945_v35 = vpop.f32.mrf.mxu1 }
0x1490   :  { %v5977_v10 = vadd.f32 %v5969_v14, %v5961_v2  ;;  %v5960_v47 = vmul.f32 0.35355338, %v5945_v35  ;;  %v6001_v18 = vsel %vm996_vm5, %v5983_v8, -inf  ;;  %v5982_v31 = vadd.f32 %v12710_v38, %v5974_v13  ;;  %v12728_v2 = vld [vmem:[%s13285_s2 + $0x30] sm:$0xff] }
0x1491   :  { %6002 = vmax.xlane.f32.xlu1 %v6001_v18  ;;  %v10086_v24 = vpop.f32.mrf.mxu1 }
0x1492   :  { %v5976_v60 = vadd.f32 %v5968_v44, %v5960_v47  ;;  %v12714_v62 = vadd.f32 %v10086_v24, %v12704_v45  ;;  %v5998_v42 = vsel %vm996_vm5, %v5982_v31, -inf  ;;  %v5985_v58 = vadd.f32 %v12720_v61, %v5977_v10 }
0x1493   :  { %5999 = vmax.xlane.f32.xlu0 %v5998_v42  ;;  %v6397_v0 = vpop.f32.mrf.mxu1 }
0x1494   :  { %v6398_v12 = vadd.f32 %v12704_v45, %v6397_v0  ;;  %v6007_v13 = vsel %vm996_vm5, %v5985_v58, -inf  ;;  %v5984_v26 = vadd.f32 %v12728_v2, %v5976_v60 }
0x1495   :  { %6008 = vmax.xlane.f32.xlu1 %v6007_v13 }
0x1496   :  { %10126 = vmatprep.mubr.msk.f32.mxu1 %vm834_vm4, %v6398_v12  ;;  %v6004_v14 = vsel %vm996_vm5, %v5984_v26, -inf }
0x1497   :  { %6005 = vmax.xlane.f32.xlu0 %v6004_v14 }
0x1512   :  { %v5991_v35 = vpop.xlane.xlu1 %5990 }
0x1513   :  { %v6011_v10 = vsub.f32 %v5979_v51, %v5991_v35 }
0x1514   :  { %v5988_v47 = vpop.xlane.xlu0 %5987 }
0x1515   :  { %v6020_v18 = vmul.f32 1.442695, %v6011_v10  ;;  %v6010_v44 = vsub.f32 %v5978_v57, %v5988_v47 }
0x1516   :  { %v5997_v24 = vpop.xlane.xlu1 %5996 }
0x1517   :  { %10530 = vpow2.f32 %v6020_v18  ;;  %v6018_v42 = vmul.f32 1.442695, %v6010_v44  ;;  %v6013_v0 = vsub.f32 %v5981_v34, %v5997_v24 }
0x1518   :  { %v5994_v22 = vpop.xlane.xlu0 %5993 }
0x1519   :  { %10532 = vpow2.f32 %v6018_v42  ;;  %v6024_v39 = vmul.f32 1.442695, %v6013_v0  ;;  %v6012_v6 = vsub.f32 %v5980_v33, %v5994_v22 }
0x151a   :  { %v6003_v60 = vpop.xlane.xlu1 %6002 }
0x151b   :  { %10534 = vpow2.f32 %v6024_v39  ;;  %v6022_v13 = vmul.f32 1.442695, %v6012_v6  ;;  %v6015_v12 = vsub.f32 %v5983_v8, %v6003_v60 }
0x151c   :  { %v6000_v11 = vpop.xlane.xlu0 %5999 }
0x151d   :  { %10536 = vpow2.f32 %v6022_v13  ;;  %v6028_v14 = vmul.f32 1.442695, %v6015_v12  ;;  %v6014_v15 = vsub.f32 %v5982_v31, %v6000_v11  ;;  %v6321_v12 = vld [vmem:[%s13284_s1 + $0x190] sm:$0xff] }
0x151e   :  { %v6009_v51 = vpop.xlane.xlu1 %6008  ;;  %10096 = vmatprep.subr.msk.mxu0 %vm19_vm0, %v6321_v12 }
0x151f   :  { %10538 = vpow2.f32 %v6028_v14  ;;  %v6026_v35 = vmul.f32 1.442695, %v6014_v15  ;;  %v6017_v57 = vsub.f32 %v5985_v58, %v6009_v51 }
0x1520   :  { %v6006_v10 = vpop.xlane.xlu0 %6005 }
0x1521   :  { %10540 = vpow2.f32 %v6026_v35  ;;  %v6032_v47 = vmul.f32 1.442695, %v6017_v57  ;;  %v6016_v34 = vsub.f32 %v5984_v26, %v6006_v10 }
0x1523   :  { %10542 = vpow2.f32 %v6032_v47  ;;  %v6030_v18 = vmul.f32 1.442695, %v6016_v34 }
0x1524   :  { %v10531_v44 = vpop.eup %10530 }
0x1525   :  { %10544 = vpow2.f32 %v6030_v18  ;;  %v6037_v39 = vsel %vm996_vm5, %v10531_v44, 0.0 }
0x1526   :  { %v10533_v6 = vpop.eup %10532  ;;  %6038 = vadd.xlane.f32.xlu1 %v6037_v39 }
0x1527   :  { %v6034_v22 = vsel %vm996_vm5, %v10533_v6, 0.0 }
0x1528   :  { %v10535_v33 = vpop.eup %10534  ;;  %6035 = vadd.xlane.f32.xlu0 %v6034_v22 }
0x1529   :  { %v6043_v11 = vsel %vm996_vm5, %v10535_v33, 0.0 }
0x152a   :  { %v10537_v15 = vpop.eup %10536  ;;  %6044 = vadd.xlane.f32.xlu1 %v6043_v11 }
0x152b   :  { %v6040_v8 = vsel %vm996_vm5, %v10537_v15, 0.0 }
0x152c   :  { %v10539_v31 = vpop.eup %10538  ;;  %6041 = vadd.xlane.f32.xlu0 %v6040_v8 }
0x152d   :  { %v6049_v58 = vsel %vm996_vm5, %v10539_v31, 0.0 }
0x152e   :  { %v10541_v26 = vpop.eup %10540  ;;  %6050 = vadd.xlane.f32.xlu1 %v6049_v58 }
0x152f   :  { %v6046_v24 = vsel %vm996_vm5, %v10541_v26, 0.0 }
0x1530   :  { %v10543_v42 = vpop.eup %10542  ;;  %6047 = vadd.xlane.f32.xlu0 %v6046_v24  ;;  %v6824_v24 = vld [vmem:[%s13284_s1 + $0x290] sm:$0xff] }
0x1531   :  { %v6055_v0 = vsel %vm996_vm5, %v10543_v42, 0.0 }
0x1532   :  { %v10545_v60 = vpop.eup %10544  ;;  %6056 = vadd.xlane.f32.xlu1 %v6055_v0 }
0x1533   :  { %v6052_v13 = vsel %vm996_vm5, %v10545_v60, 0.0 }
0x1534   :  { %6053 = vadd.xlane.f32.xlu0 %v6052_v13 }
0x15af   :  { %v6039_v14 = vpop.xlane.xlu1 %6038 }
0x15b0   :  { %10546 = vrcp.f32 %v6039_v14 }
0x15b1   :  { %v6036_v51 = vpop.xlane.xlu0 %6035 }
0x15b2   :  { %10548 = vrcp.f32 %v6036_v51 }
0x15b3   :  { %v6045_v35 = vpop.xlane.xlu1 %6044 }
0x15b4   :  { %10550 = vrcp.f32 %v6045_v35 }
0x15b5   :  { %v6042_v57 = vpop.xlane.xlu0 %6041 }
0x15b6   :  { %10552 = vrcp.f32 %v6042_v57 }
0x15b7   :  { %v6051_v10 = vpop.xlane.xlu1 %6050 }
0x15b8   :  { %10554 = vrcp.f32 %v6051_v10 }
0x15b9   :  { %v6048_v47 = vpop.xlane.xlu0 %6047 }
0x15ba   :  { %10556 = vrcp.f32 %v6048_v47 }
0x15bb   :  { %v6057_v34 = vpop.xlane.xlu1 %6056 }
0x15bc   :  { %10558 = vrcp.f32 %v6057_v34 }
0x15bd   :  { %v6054_v18 = vpop.xlane.xlu0 %6053  ;;  %v10547_v39 = vpop.eup %10546 }
0x15be   :  { %10560 = vrcp.f32 %v6054_v18  ;;  %v6067_v8 = vmul.f32 %v10547_v39, %v10531_v44  ;;  %v5550_v39 = vadd.f32 %v12588_v4, %v12627_v32  ;;  %v5570_v32 = vadd.f32 %v12596_v40, %v12635_v19  ;;  %v8540_v40 = vld [vmem:[%s13284_s1 + $0x337] ss:$0 sm:$0xff] }
0x15bf   :  { %v10549_v22 = vpop.eup %10548 }
0x15c0   :  { %v6066_v11 = vmul.f32 %v10549_v22, %v10533_v6 }
0x15c1   :  { %v10551_v58 = vpop.eup %10550 }
0x15c2   :  { %10070 = vmatprep.mubr.msk.f32.mxu0 %vm996_vm5, %v6066_v11  ;;  %v6069_v14 = vmul.f32 %v10551_v58, %v10535_v33  ;;  %v6823_v33 = vld [vmem:[%s13284_s1 + $0x288] sm:$0xff] }
0x15c3   :  { %v10553_v0 = vpop.eup %10552  ;;  %10071 = vmatmul.mubr.msk.f32.vlgmr.msra.gmra.mxu0 %vm996_vm5, %v6067_v8  ;;  %v5545_v8 = vadd.f32 %v12590_v29, %v12629_v49  ;;  %v5565_v49 = vadd.f32 %v12598_v37, %v12637_v16 }
0x15c4   :  { %10097 = vmatpush3.xpose.msk.msra.mxu0 %vm19_vm0, %v6321_v12  ;;  %v6068_v13 = vmul.f32 %v10553_v0, %v10537_v15  ;;  %v6822_v15 = vld [vmem:[%s13284_s1 + $0x280] sm:$0xff] }
0x15c5   :  { %10138 = vmatprep.subr.mxu0 %v6824_v24  ;;  %v10555_v51 = vpop.eup %10554 }
0x15c6   :  { %10073 = vmatprep.mubr.msk.f32.mxu0 %vm996_vm5, %v6068_v13  ;;  %v6071_v35 = vmul.f32 %v10555_v51, %v10539_v31  ;;  %v6821_v31 = vld [vmem:[%s13284_s1 + $0x278] sm:$0xff] }
0x15c7   :  { %v10557_v6 = vpop.eup %10556  ;;  %10074 = vmatmul.mubr.msk.f32.gmra.mxu0 %vm996_vm5, %v6069_v14 }
0x15c8   :  { %v6070_v44 = vmul.f32 %v10557_v6, %v10541_v26  ;;  %v5540_v26 = vadd.f32 %v12584_v53, %v12623_v30  ;;  %v5560_v53 = vadd.f32 %v12592_v20, %v12631_v5 }
0x15c9   :  { %v10559_v57 = vpop.eup %10558 }
0x15ca   :  { %10076 = vmatprep.mubr.msk.f32.mxu0 %vm996_vm5, %v6070_v44  ;;  %v6073_v34 = vmul.f32 %v10559_v57, %v10543_v42 }
0x15cb   :  { %v10561_v10 = vpop.eup %10560  ;;  %10077 = vmatmul.mubr.msk.f32.gmra.mxu0 %vm996_vm5, %v6071_v35 }
0x15cc   :  { %v6072_v47 = vmul.f32 %v10561_v10, %v10545_v60  ;;  %v5535_v60 = vadd.f32 %v12586_v21, %v12625_v43  ;;  %v5555_v43 = vadd.f32 %v12594_v55, %v12633_v63 }
0x15ce   :  { %10079 = vmatprep.mubr.msk.f32.mxu0 %vm996_vm5, %v6072_v47 }
0x15cf   :  { %10080 = vmatmul.mubr.msk.f32.gmra.mxu0 %vm996_vm5, %v6073_v34 }
0x15d0   :  { %10098 = vmatprep.mubr.msk.f32.mxu0 %vm19_vm0, %v12021_v17 }
0x15d3   :  { %10099 = vmatmul.mubr.msk.f32.vlgmr.msra.gmra.mxu0 %vm19_vm0, %v12023_v54 }
0x15d4   :  { %10101 = vmatprep.mubr.msk.f32.mxu0 %vm19_vm0, %v12025_v56  ;;  %10139 = vmatpush3.msra.mxu0 %v6824_v24 }
0x15d5   :  { %10140 = vmatprep.subr.mxu0 %v6823_v33 }
0x15d6   :  { %10141 = vmatpush3.msra.mxu0 %v6823_v33 }
0x15d7   :  { %10102 = vmatmul.mubr.msk.f32.gmra.mxu0 %vm19_vm0, %v12044_v25  ;;  %10142 = vmatprep.subr.mxu0 %v6822_v15 }
0x15d8   :  { %10104 = vmatprep.mubr.msk.f32.mxu0 %vm19_vm0, %v12047_v52  ;;  %10143 = vmatpush3.msra.mxu0 %v6822_v15 }
0x15d9   :  { %10144 = vmatprep.subr.mxu0 %v6821_v31 }
0x15da   :  { %10145 = vmatpush3.msra.mxu0 %v6821_v31 }
0x15db   :  { %10105 = vmatmul.mubr.msk.f32.gmra.mxu0 %vm19_vm0, %v12064_v41 }
0x15dc   :  { %10107 = vmatprep.mubr.msk.f32.mxu0 %vm19_vm0, %v12066_v28 }
0x15df   :  { %10108 = vmatmul.mubr.msk.f32.gmra.mxu0 %vm19_vm0, %v12079_v27 }
0x15e0   :  { %10146 = vmatprep.mubr.msk.f32.mxu0 %vm19_vm0, %v12021_v17 }
0x15e3   :  { %10147 = vmatmul.mubr.msk.f32.vlgmr.msra.gmra.mxu0 %vm19_vm0, %v12023_v54 }
0x15e4   :  { %10149 = vmatprep.mubr.msk.f32.mxu0 %vm19_vm0, %v12025_v56 }
0x15e7   :  { %10150 = vmatmul.mubr.msk.f32.gmra.mxu0 %vm19_vm0, %v12044_v25 }
0x15e8   :  { %10152 = vmatprep.mubr.msk.f32.mxu0 %vm19_vm0, %v12047_v52 }
0x15eb   :  { %10153 = vmatmul.mubr.msk.f32.gmra.mxu0 %vm19_vm0, %v12064_v41 }
0x15ec   :  { %10155 = vmatprep.mubr.msk.f32.mxu0 %vm19_vm0, %v12066_v28 }
0x15ef   :  { %10156 = vmatmul.mubr.msk.f32.gmra.mxu0 %vm19_vm0, %v12079_v27 }
0x1683   :  { %v10072_v42 = vpop.f32.mrf.mxu0 }
0x1684   :  { %v12802_v12 = vadd.f32 %v10072_v42, %v5540_v26 }
0x1685   :  { %v6273_v18 = vpop.f32.mrf.mxu0 }
0x1686   :  { %v12806_v22 = vadd.f32 %v6273_v18, %v5535_v60 }
0x1687   :  { %v10075_v11 = vpop.f32.mrf.mxu0 }
0x1688   :  { %v12810_v58 = vadd.f32 %v10075_v11, %v5550_v39  ;;  %v10089_v11 = vpop.f32.mrf.mxu1 }
0x1689   :  { %v6283_v24 = vpop.f32.mrf.mxu0 }
0x168a   :  { %v12814_v30 = vadd.f32 %v6283_v24, %v5545_v8  ;;  %v6407_v24 = vpop.f32.mrf.mxu1 }
0x168b   :  { %v10078_v21 = vpop.f32.mrf.mxu0 }
0x168c   :  { %v12818_v0 = vadd.f32 %v10078_v21, %v5560_v53  ;;  %v10092_v21 = vpop.f32.mrf.mxu1 }
0x168d   :  { %v6293_v4 = vpop.f32.mrf.mxu0 }
0x168e   :  { %v12822_v13 = vadd.f32 %v6293_v4, %v5555_v43  ;;  %v6417_v4 = vpop.f32.mrf.mxu1 }
0x168f   :  { %v10081_v29 = vpop.f32.mrf.mxu0 }
0x1690   :  { %v12826_v14 = vadd.f32 %v10081_v29, %v5570_v32  ;;  %v6408_v32 = vadd.f32 %v12704_v45, %v6407_v24  ;;  %v10095_v29 = vpop.f32.mrf.mxu1 }
0x1691   :  { %v6303_v20 = vpop.f32.mrf.mxu0 }
0x1692   :  { %v12828_v5 = vadd.f32 %v6303_v20, %v5565_v49  ;;  %v6413_v49 = vadd.f32 %v10089_v11, %v12704_v45  ;;  %v6418_v20 = vadd.f32 %v12704_v45, %v6417_v4 }
0x1693   :  { %v10100_v51 = vpop.f32.mrf.mxu0 }
0x1694   :  { %v6515_v53 = vadd.f32 %v10100_v51, %v8540_v40  ;;  %v6427_v51 = vpop.f32.mrf.mxu1 }
0x1695   :  { %v6509_v6 = vpop.f32.mrf.mxu0 }
0x1696   :  { %v6510_v43 = vadd.f32 %v8540_v40, %v6509_v6  ;;  %v6423_v6 = vadd.f32 %v10092_v21, %v12704_v45 }
0x1697   :  { %v10103_v55 = vpop.f32.mrf.mxu0 }
0x1698   :  { %v6525_v60 = vadd.f32 %v10103_v55, %v8540_v40  ;;  %v6428_v55 = vadd.f32 %v12704_v45, %v6427_v51 }
0x1699   :  { %v6519_v63 = vpop.f32.mrf.mxu0 }
0x169a   :  { %v6520_v8 = vadd.f32 %v8540_v40, %v6519_v63 }
0x169b   :  { %v10106_v44 = vpop.f32.mrf.mxu0 }
0x169c   :  { %v6535_v34 = vadd.f32 %v10106_v44, %v8540_v40 }
0x169d   :  { %v6529_v35 = vpop.f32.mrf.mxu0 }
0x169e   :  { %v6530_v31 = vadd.f32 %v8540_v40, %v6529_v35  ;;  %v6710_v35 = vld [vmem:[#allocation2 + $0xc8] sm:$0xff] }
0x169f   :  { %v10109_v19 = vpop.f32.mrf.mxu0 }
0x16a0   :  { %v6545_v57 = vadd.f32 %v10109_v19, %v8540_v40 }
0x16a1   :  { %v6539_v10 = vpop.f32.mrf.mxu0 }
0x16a2   :  { %v6540_v47 = vadd.f32 %v8540_v40, %v6539_v10  ;;  %10110 = vmatprep.subr.msk.mxu1 %vm834_vm4, %v6545_v57  ;;  %v6709_v10 = vld [vmem:[#allocation2 + $0xc0] sm:$0xff] }
0x16a3   :  { %10111 = vmatpush3.xpose.msk.msra.mxu1 %vm834_vm4, %v6545_v57  ;;  %v10148_v37 = vpop.f32.mrf.mxu0 }
0x16a4   :  { %10112 = vmatprep.subr.msk.mxu1 %vm834_vm4, %v6540_v47 }
0x16a5   :  { %v6891_v16 = vpop.f32.mrf.mxu0 }
0x16a7   :  { %10113 = vmatpush3.xpose.msk.msra.mxu1 %vm834_vm4, %v6540_v47  ;;  %v10151_v33 = vpop.f32.mrf.mxu0 }
0x16a8   :  { %10114 = vmatprep.subr.msk.mxu1 %vm834_vm4, %v6535_v34 }
0x16a9   :  { %v6901_v15 = vpop.f32.mrf.mxu0 }
0x16ab   :  { %10115 = vmatpush3.xpose.msk.msra.mxu1 %vm834_vm4, %v6535_v34  ;;  %v10154_v26 = vpop.f32.mrf.mxu0 }
0x16ac   :  { %10116 = vmatprep.subr.msk.mxu1 %vm834_vm4, %v6530_v31 }
0x16ad   :  { %v6911_v42 = vpop.f32.mrf.mxu0 }
0x16af   :  { %10117 = vmatpush3.xpose.msk.msra.mxu1 %vm834_vm4, %v6530_v31  ;;  %v10157_v18 = vpop.f32.mrf.mxu0 }
0x16b0   :  { %10118 = vmatprep.subr.msk.mxu1 %vm834_vm4, %v6525_v60  ;;  %10158 = vmatprep.subr.mxu0 %v10157_v18 }
0x16b1   :  { %v6921_v39 = vpop.f32.mrf.mxu0  ;;  %10159 = vmatpush3.msra.mxu0 %v10157_v18 }
0x16b2   :  { %10160 = vmatprep.subr.mxu0 %v6921_v39 }
0x16b3   :  { %10119 = vmatpush3.xpose.msk.msra.mxu1 %vm834_vm4, %v6525_v60  ;;  %10161 = vmatpush3.msra.mxu0 %v6921_v39  ;;  %v6711_v60 = vld [vmem:[#allocation2 + $0xd0] sm:$0xff] }
0x16b4   :  { %10120 = vmatprep.subr.msk.mxu1 %vm834_vm4, %v6520_v8  ;;  %10162 = vmatprep.subr.mxu0 %v10154_v26 }
0x16b5   :  { %10163 = vmatpush3.msra.mxu0 %v10154_v26 }
0x16b6   :  { %10164 = vmatprep.subr.mxu0 %v6911_v42 }
0x16b7   :  { %10121 = vmatpush3.xpose.msk.msra.mxu1 %vm834_vm4, %v6520_v8  ;;  %10165 = vmatpush3.msra.mxu0 %v6911_v42 }
0x16b8   :  { %10122 = vmatprep.subr.msk.mxu1 %vm834_vm4, %v6515_v53  ;;  %10166 = vmatprep.subr.mxu0 %v10151_v33 }
0x16b9   :  { %10167 = vmatpush3.msra.mxu0 %v10151_v33  ;;  %v6712_v33 = vld [vmem:[#allocation2 + $0xd8] sm:$0xff] }
0x16ba   :  { %10168 = vmatprep.subr.mxu0 %v6901_v15 }
0x16bb   :  { %10123 = vmatpush3.xpose.msk.msra.mxu1 %vm834_vm4, %v6515_v53  ;;  %10169 = vmatpush3.msra.mxu0 %v6901_v15  ;;  %v6714_v53 = vld [vmem:[#allocation2 + $0xe8] sm:$0xff] }
0x16bc   :  { %10124 = vmatprep.subr.msk.mxu1 %vm834_vm4, %v6510_v43  ;;  %10170 = vmatprep.subr.mxu0 %v10148_v37 }
0x16bd   :  { %10171 = vmatpush3.msra.mxu0 %v10148_v37 }
0x16be   :  { %10172 = vmatprep.subr.mxu0 %v6891_v16 }
0x16bf   :  { %10125 = vmatpush3.xpose.msk.msra.mxu1 %vm834_vm4, %v6510_v43  ;;  %10173 = vmatpush3.msra.mxu0 %v6891_v16 }
0x16c2   :  { %10127 = vmatmul.mubr.msk.f32.vlgmr.msra.gmra.mxu1 %vm834_vm4, %v12714_v62  ;;  %v6433_v62 = vadd.f32 %v10095_v29, %v12704_v45  ;;  %v6713_v29 = vld [vmem:[#allocation2 + $0xe0] sm:$0xff] }
0x16c3   :  { %10129 = vmatprep.mubr.msk.f32.mxu1 %vm834_vm4, %v6408_v32 }
0x16c6   :  { %10130 = vmatmul.mubr.msk.f32.gmra.mxu1 %vm834_vm4, %v6413_v49 }
0x16c7   :  { %10132 = vmatprep.mubr.msk.f32.mxu1 %vm834_vm4, %v6418_v20 }
0x16ca   :  { %10133 = vmatmul.mubr.msk.f32.gmra.mxu1 %vm834_vm4, %v6423_v6 }
0x16cb   :  { %10135 = vmatprep.mubr.msk.f32.mxu1 %vm834_vm4, %v6428_v55  ;;  %v6716_v55 = vld [vmem:[#allocation2 + $0xf8] sm:$0xff] }
0x16ce   :  { %10136 = vmatmul.mubr.msk.f32.gmra.mxu1 %vm834_vm4, %v6433_v62 }
0x1782   :  { %v10128_v63 = vpop.f32.mrf.mxu1 }
0x1783   :  { %v6702_v44 = vmul.f32 0.35355338, %v10128_v63 }
0x1784   :  { %v6662_v40 = vpop.f32.mrf.mxu1 }
0x1785   :  { %v6718_v19 = vadd.f32 %v6710_v35, %v6702_v44  ;;  %v6701_v57 = vmul.f32 0.35355338, %v6662_v40  ;;  %v6715_v40 = vld [vmem:[#allocation2 + $0xf0] sm:$0xff] }
0x1786   :  { %v10131_v47 = vpop.f32.mrf.mxu1 }
0x1787   :  { %v6717_v37 = vadd.f32 %v6709_v10, %v6701_v57  ;;  %v6704_v16 = vmul.f32 0.35355338, %v10131_v47  ;;  %v6726_v34 = vadd.f32 %v12670_v46, %v6718_v19 }
0x1788   :  { %v6672_v15 = vpop.f32.mrf.mxu1 }
0x1789   :  { %v6720_v31 = vadd.f32 %v6712_v33, %v6704_v16  ;;  %v6703_v26 = vmul.f32 0.35355338, %v6672_v15  ;;  %v6736_v45 = vsel %vm996_vm5, %v6726_v34, -inf  ;;  %v6725_v42 = vadd.f32 %v12677_v7, %v6717_v37 }
0x178a   :  { %6737 = vmax.xlane.f32.xlu1 %v6736_v45  ;;  %v10134_v18 = vpop.f32.mrf.mxu1 }
0x178b   :  { %v6719_v39 = vadd.f32 %v6711_v60, %v6703_v26  ;;  %v6706_v11 = vmul.f32 0.35355338, %v10134_v18  ;;  %v6733_v8 = vsel %vm996_vm5, %v6725_v42, -inf  ;;  %v6728_v24 = vadd.f32 %v12684_v59, %v6720_v31 }
0x178c   :  { %6734 = vmax.xlane.f32.xlu0 %v6733_v8  ;;  %v6682_v46 = vpop.f32.mrf.mxu1 }
0x178d   :  { %v6722_v21 = vadd.f32 %v6714_v53, %v6706_v11  ;;  %v6705_v43 = vmul.f32 0.35355338, %v6682_v46  ;;  %v6742_v4 = vsel %vm996_vm5, %v6728_v24, -inf  ;;  %v6727_v32 = vadd.f32 %v12691_v50, %v6719_v39 }
0x178e   :  { %6743 = vmax.xlane.f32.xlu1 %v6742_v4  ;;  %v10137_v7 = vpop.f32.mrf.mxu1 }
0x178f   :  { %v6721_v49 = vadd.f32 %v6713_v29, %v6705_v43  ;;  %v6708_v20 = vmul.f32 0.35355338, %v10137_v7  ;;  %v6739_v51 = vsel %vm996_vm5, %v6727_v32, -inf  ;;  %v6730_v6 = vadd.f32 %v12698_v1, %v6722_v21 }
0x1790   :  { %6740 = vmax.xlane.f32.xlu0 %v6739_v51  ;;  %v6692_v59 = vpop.f32.mrf.mxu1 }
0x1791   :  { %v6724_v62 = vadd.f32 %v6716_v55, %v6708_v20  ;;  %v6707_v63 = vmul.f32 0.35355338, %v6692_v59  ;;  %v6748_v44 = vsel %vm996_vm5, %v6730_v6, -inf  ;;  %v6729_v35 = vadd.f32 %v12710_v38, %v6721_v49 }
0x1792   :  { %6749 = vmax.xlane.f32.xlu1 %v6748_v44 }
0x1793   :  { %v6723_v50 = vadd.f32 %v6715_v40, %v6707_v63  ;;  %v6745_v19 = vsel %vm996_vm5, %v6729_v35, -inf  ;;  %v6732_v57 = vadd.f32 %v12720_v61, %v6724_v62 }
0x1794   :  { %6746 = vmax.xlane.f32.xlu0 %v6745_v19 }
0x1795   :  { %v6754_v10 = vsel %vm996_vm5, %v6732_v57, -inf  ;;  %v6731_v1 = vadd.f32 %v12728_v2, %v6723_v50 }
0x1796   :  { %6755 = vmax.xlane.f32.xlu1 %v6754_v10 }
0x1797   :  { %v6751_v47 = vsel %vm996_vm5, %v6731_v1, -inf }
0x1798   :  { %6752 = vmax.xlane.f32.xlu0 %v6751_v47 }
0x1813   :  { %v6738_v37 = vpop.xlane.xlu1 %6737 }
0x1814   :  { %v6758_v16 = vsub.f32 %v6726_v34, %v6738_v37 }
0x1815   :  { %v6735_v33 = vpop.xlane.xlu0 %6734 }
0x1816   :  { %v6767_v38 = vmul.f32 1.442695, %v6758_v16  ;;  %v6757_v15 = vsub.f32 %v6725_v42, %v6735_v33 }
0x1817   :  { %v6744_v31 = vpop.xlane.xlu1 %6743 }
0x1818   :  { %10562 = vpow2.f32 %v6767_v38  ;;  %v6765_v26 = vmul.f32 1.442695, %v6757_v15  ;;  %v6760_v45 = vsub.f32 %v6728_v24, %v6744_v31 }
0x1819   :  { %v6741_v60 = vpop.xlane.xlu0 %6740 }
0x181a   :  { %10564 = vpow2.f32 %v6765_v26  ;;  %v6771_v61 = vmul.f32 1.442695, %v6760_v45  ;;  %v6759_v18 = vsub.f32 %v6727_v32, %v6741_v60 }
0x181b   :  { %v6750_v39 = vpop.xlane.xlu1 %6749 }
0x181c   :  { %10566 = vpow2.f32 %v6771_v61  ;;  %v6769_v2 = vmul.f32 1.442695, %v6759_v18  ;;  %v6762_v11 = vsub.f32 %v6730_v6, %v6750_v39 }
0x181d   :  { %v6747_v8 = vpop.xlane.xlu0 %6746 }
0x181e   :  { %10568 = vpow2.f32 %v6769_v2  ;;  %v6775_v53 = vmul.f32 1.442695, %v6762_v11  ;;  %v6761_v46 = vsub.f32 %v6729_v35, %v6747_v8 }
0x181f   :  { %v6756_v34 = vpop.xlane.xlu1 %6755 }
0x1820   :  { %10570 = vpow2.f32 %v6775_v53  ;;  %v6773_v21 = vmul.f32 1.442695, %v6761_v46  ;;  %v6764_v42 = vsub.f32 %v6732_v57, %v6756_v34 }
0x1821   :  { %v6753_v43 = vpop.xlane.xlu0 %6752 }
0x1822   :  { %10572 = vpow2.f32 %v6773_v21  ;;  %v6779_v4 = vmul.f32 1.442695, %v6764_v42  ;;  %v6763_v24 = vsub.f32 %v6731_v1, %v6753_v43 }
0x1824   :  { %10574 = vpow2.f32 %v6779_v4  ;;  %v6777_v29 = vmul.f32 1.442695, %v6763_v24  ;;  %v7176_v4 = vld [vmem:[%s13285_s2 + $0x78] sm:$0xff]  ;;  %v7175_v24 = vld [vmem:[%s13285_s2 + $0x70] sm:$0xff] }
0x1825   :  { %v10563_v7 = vpop.eup %10562  ;;  %10186 = vmatprep.subr.mxu1 %v7176_v4 }
0x1826   :  { %10576 = vpow2.f32 %v6777_v29  ;;  %v6784_v32 = vsel %vm996_vm5, %v10563_v7, 0.0  ;;  %10187 = vmatpush3.msra.mxu1 %v7176_v4  ;;  %v7174_v29 = vld [vmem:[%s13285_s2 + $0x68] sm:$0xff] }
0x1827   :  { %v10565_v49 = vpop.eup %10564  ;;  %6785 = vadd.xlane.f32.xlu1 %v6784_v32  ;;  %10188 = vmatprep.subr.mxu1 %v7175_v24  ;;  %v12911_v32 = vld [vmem:[%s13284_s1 + $0x320] sm:$0xff] }
0x1828   :  { %v6781_v20 = vsel %vm996_vm5, %v10565_v49, 0.0  ;;  %10189 = vmatpush3.msra.mxu1 %v7175_v24 }
0x1829   :  { %v10567_v51 = vpop.eup %10566  ;;  %6782 = vadd.xlane.f32.xlu0 %v6781_v20  ;;  %10190 = vmatprep.subr.mxu1 %v7174_v29 }
0x182a   :  { %v6790_v6 = vsel %vm996_vm5, %v10567_v51, 0.0  ;;  %10191 = vmatpush3.msra.mxu1 %v7174_v29 }
0x182b   :  { %v10569_v55 = vpop.eup %10568  ;;  %6791 = vadd.xlane.f32.xlu1 %v6790_v6 }
0x182c   :  { %v6787_v59 = vsel %vm996_vm5, %v10569_v55, 0.0 }
0x182d   :  { %v10571_v62 = vpop.eup %10570  ;;  %6788 = vadd.xlane.f32.xlu0 %v6787_v59 }
0x182e   :  { %v6796_v63 = vsel %vm996_vm5, %v10571_v62, 0.0 }
0x182f   :  { %v10573_v44 = vpop.eup %10572  ;;  %6797 = vadd.xlane.f32.xlu1 %v6796_v63 }
0x1830   :  { %v6793_v35 = vsel %vm996_vm5, %v10573_v44, 0.0 }
0x1831   :  { %v10575_v40 = vpop.eup %10574  ;;  %6794 = vadd.xlane.f32.xlu0 %v6793_v35 }
0x1832   :  { %v6802_v50 = vsel %vm996_vm5, %v10575_v40, 0.0 }
0x1833   :  { %v10577_v19 = vpop.eup %10576  ;;  %6803 = vadd.xlane.f32.xlu1 %v6802_v50 }
0x1834   :  { %v6799_v57 = vsel %vm996_vm5, %v10577_v19, 0.0 }
0x1835   :  { %6800 = vadd.xlane.f32.xlu0 %v6799_v57 }
0x18b0   :  { %v6786_v10 = vpop.xlane.xlu1 %6785 }
0x18b1   :  { %10578 = vrcp.f32 %v6786_v10 }
0x18b2   :  { %v6783_v1 = vpop.xlane.xlu0 %6782 }
0x18b3   :  { %10580 = vrcp.f32 %v6783_v1 }
0x18b4   :  { %v6792_v47 = vpop.xlane.xlu1 %6791 }
0x18b5   :  { %10582 = vrcp.f32 %v6792_v47 }
0x18b6   :  { %v6789_v37 = vpop.xlane.xlu0 %6788 }
0x18b7   :  { %10584 = vrcp.f32 %v6789_v37 }
0x18b8   :  { %v6798_v16 = vpop.xlane.xlu1 %6797 }
0x18b9   :  { %10586 = vrcp.f32 %v6798_v16 }
0x18ba   :  { %v6795_v33 = vpop.xlane.xlu0 %6794 }
0x18bb   :  { %10588 = vrcp.f32 %v6795_v33 }
0x18bc   :  { %v6804_v38 = vpop.xlane.xlu1 %6803 }
0x18bd   :  { %10590 = vrcp.f32 %v6804_v38 }
0x18be   :  { %v6801_v15 = vpop.xlane.xlu0 %6800  ;;  %v10579_v31 = vpop.eup %10578 }
0x18bf   :  { %10592 = vrcp.f32 %v6801_v15  ;;  %v6814_v60 = vmul.f32 %v10579_v31, %v10563_v7  ;;  %v7173_v7 = vld [vmem:[%s13285_s2 + $0x60] sm:$0xff] }
0x18c0   :  { %v10581_v26 = vpop.eup %10580  ;;  %10192 = vmatprep.subr.mxu1 %v7173_v7 }
0x18c1   :  { %v6813_v45 = vmul.f32 %v10581_v26, %v10565_v49  ;;  %10193 = vmatpush3.msra.mxu1 %v7173_v7 }
0x18c2   :  { %v10583_v61 = vpop.eup %10582  ;;  %10234 = vmatprep.subr.mxu1 %v10664_v9 }
0x18c3   :  { %10174 = vmatprep.mubr.msk.f32.mxu0 %vm996_vm5, %v6813_v45  ;;  %v6816_v2 = vmul.f32 %v10583_v61, %v10567_v51 }
0x18c4   :  { %v10585_v18 = vpop.eup %10584  ;;  %10175 = vmatmul.mubr.msk.f32.vlgmr.msra.gmra.mxu0 %vm996_vm5, %v6814_v60 }
0x18c5   :  { %v6815_v39 = vmul.f32 %v10585_v18, %v10569_v55  ;;  %v7078_v55 = vrot.slane %v12911_v32, %v3561_v48 }
0x18c6   :  { %v10587_v11 = vpop.eup %10586 }
0x18c7   :  { %10177 = vmatprep.mubr.msk.f32.mxu0 %vm996_vm5, %v6815_v39  ;;  %v6818_v46 = vmul.f32 %v10587_v11, %v10571_v62 }
0x18c8   :  { %v10589_v8 = vpop.eup %10588  ;;  %10178 = vmatmul.mubr.msk.f32.gmra.mxu0 %vm996_vm5, %v6816_v2 }
0x18c9   :  { %v6817_v53 = vmul.f32 %v10589_v8, %v10573_v44 }
0x18ca   :  { %v10591_v34 = vpop.eup %10590 }
0x18cb   :  { %10180 = vmatprep.mubr.msk.f32.mxu0 %vm996_vm5, %v6817_v53  ;;  %v6820_v43 = vmul.f32 %v10591_v34, %v10575_v40 }
0x18cc   :  { %v10593_v21 = vpop.eup %10592  ;;  %10181 = vmatmul.mubr.msk.f32.gmra.mxu0 %vm996_vm5, %v6818_v46 }
0x18cd   :  { %v6819_v42 = vmul.f32 %v10593_v21, %v10577_v19 }
0x18cf   :  { %10183 = vmatprep.mubr.msk.f32.mxu0 %vm996_vm5, %v6819_v42 }
0x18d0   :  { %10184 = vmatmul.mubr.msk.f32.gmra.mxu0 %vm996_vm5, %v6820_v43 }
0x1984   :  { %v10176_v49 = vpop.f32.mrf.mxu0 }
0x1985   :  { %v7060_v20 = vadd.f32 %v10176_v49, %v12802_v12 }
0x1986   :  { %v7020_v51 = vpop.f32.mrf.mxu0 }
0x1987   :  { %v7068_v6 = vadd.f32 %v7060_v20, %v12023_v54  ;;  %v7059_v59 = vadd.f32 %v7020_v51, %v12806_v22 }
0x1988   :  { %v10179_v62 = vpop.f32.mrf.mxu0 }
0x1989   :  { %v7067_v63 = vadd.f32 %v7059_v59, %v12021_v17  ;;  %v7062_v44 = vadd.f32 %v10179_v62, %v12810_v58  ;;  %v12921_v40 = vadd.f32 %v7078_v55, %v7068_v6 }
0x198a   :  { %v7030_v35 = vpop.f32.mrf.mxu0 }
0x198b   :  { %v12923_v50 = vadd.f32 %v7078_v55, %v7067_v63  ;;  %v7070_v12 = vadd.f32 %v7062_v44, %v12044_v25  ;;  %v7061_v54 = vadd.f32 %v7030_v35, %v12814_v30  ;;  %v7088_v10 = vsel %vm19_vm0, %v12921_v40, 0.0 }
0x198c   :  { %v10182_v19 = vpop.f32.mrf.mxu0 }
0x198d   :  { %v7087_v48 = vsel %vm19_vm0, %v12923_v50, 0.0  ;;  %v7069_v22 = vadd.f32 %v7061_v54, %v12025_v56  ;;  %v7064_v57 = vadd.f32 %v10182_v19, %v12818_v0  ;;  %v12931_v17 = vadd.f32 %v7078_v55, %v7070_v12 }
0x198e   :  { %v7040_v58 = vpop.f32.mrf.mxu0  ;;  %v7089_v47 = vadd.f32 %v7088_v10, %v7087_v48 }
0x198f   :  { %v12935_v1 = vadd.f32 %v7078_v55, %v7069_v22  ;;  %v7072_v25 = vadd.f32 %v7064_v57, %v12064_v41  ;;  %v7063_v30 = vadd.f32 %v7040_v58, %v12822_v13  ;;  %v7092_v33 = vsel %vm19_vm0, %v12931_v17, 0.0 }
0x1990   :  { %v10185_v37 = vpop.f32.mrf.mxu0 }
0x1991   :  { %v7090_v16 = vsel %vm19_vm0, %v12935_v1, 0.0  ;;  %v7071_v56 = vadd.f32 %v7063_v30, %v12047_v52  ;;  %v7066_v0 = vadd.f32 %v10185_v37, %v12826_v14  ;;  %v12945_v31 = vadd.f32 %v7078_v55, %v7072_v25 }
0x1992   :  { %v7091_v38 = vadd.f32 %v7090_v16, %v7089_v47  ;;  %v7050_v15 = vpop.f32.mrf.mxu0 }
0x1993   :  { %v12947_v26 = vadd.f32 %v7078_v55, %v7071_v56  ;;  %v7074_v41 = vadd.f32 %v7066_v0, %v12079_v27  ;;  %v7065_v13 = vadd.f32 %v7050_v15, %v12828_v5  ;;  %v7096_v18 = vsel %vm19_vm0, %v12945_v31, 0.0 }
0x1994   :  { %v7093_v45 = vadd.f32 %v7092_v33, %v7091_v38 }
0x1995   :  { %v7094_v60 = vsel %vm19_vm0, %v12947_v26, 0.0  ;;  %v12953_v52 = vadd.f32 %v7078_v55, %v7074_v41  ;;  %v7073_v14 = vadd.f32 %v7065_v13, %v12066_v28 }
0x1996   :  { %v7095_v61 = vadd.f32 %v7094_v60, %v7093_v45 }
0x1997   :  { %v12958_v39 = vadd.f32 %v7078_v55, %v7073_v14  ;;  %v13293_v14 = vsub.s32 1, %v11778_v36 }
0x1998   :  { %v7097_v2 = vadd.f32 %v7096_v18, %v7095_v61 }
0x1999   :  { %v7098_v27 = vsel %vm19_vm0, %v12958_v39, 0.0 }
0x199a   :  { %v7099_v11 = vadd.f32 %v7098_v27, %v7097_v2 }
0x199c   :  { %v7100_v5 = vrot.slane %v7099_v11, 4 }
0x199e   :  { %v7101_v8 = vadd.f32 %v7100_v5, %v7099_v11  ;;  %v13294_v11 = vsub.s32 2, %v11778_v36 }
0x19a0   :  { %v7102_v53 = vrot.slane %v7101_v8, 2 }
0x19a2   :  { %v7103_v46 = vadd.f32 %v7102_v53, %v7101_v8 }
0x19a4   :  { %v7104_v34 = vrot.slane %v7103_v46, 1 }
0x19a6   :  { %v7105_v21 = vadd.f32 %v7104_v34, %v7103_v46 }
0x19a8   :  { %v7106_v42 = vmul.f32 0.017857144, %v7105_v21 }
0x19aa   :  { %v7107_v28 = vsub.f32 %v12923_v50, %v7106_v42  ;;  %v7108_v43 = vsub.f32 %v12921_v40, %v7106_v42  ;;  %v7109_v4 = vsub.f32 %v12935_v1, %v7106_v42  ;;  %v7110_v24 = vsub.f32 %v12931_v17, %v7106_v42 }
0x19ab   :  { %v7111_v29 = vsub.f32 %v12947_v26, %v7106_v42  ;;  %v7112_v51 = vsub.f32 %v12945_v31, %v7106_v42  ;;  %v7113_v63 = vsub.f32 %v12958_v39, %v7106_v42 }
0x19ac   :  { %v7114_v7 = vmul.f32 %v7107_v28, %v7107_v28  ;;  %v7115_v49 = vmul.f32 %v7108_v43, %v7108_v43  ;;  %v7116_v20 = vmul.f32 %v7109_v4, %v7109_v4  ;;  %v7117_v6 = vmul.f32 %v7110_v24, %v7110_v24 }
0x19ad   :  { %v7118_v44 = vmul.f32 %v7111_v29, %v7111_v29  ;;  %v7119_v54 = vmul.f32 %v7112_v51, %v7112_v51  ;;  %v7120_v22 = vmul.f32 %v7113_v63, %v7113_v63  ;;  %v7355_v29 = vld [vmem:[%s13284_s1 + $0x2f8] sm:$0xff] }
0x19ae   :  { %v7121_v55 = vsel %vm19_vm0, %v7114_v7, 0.0  ;;  %v7122_v59 = vsel %vm19_vm0, %v7115_v49, 0.0  ;;  %v7124_v35 = vsel %vm19_vm0, %v7116_v20, 0.0  ;;  %v7126_v19 = vsel %vm19_vm0, %v7117_v6, 0.0  ;;  %v7354_v7 = vld [vmem:[%s13284_s1 + $0x2f0] sm:$0xff]  ;;  %v7353_v49 = vld [vmem:[%s13284_s1 + $0x2e8] sm:$0xff] }
0x19af   :  { %v7123_v62 = vadd.f32 %v7122_v59, %v7121_v55  ;;  %v7128_v57 = vsel %vm19_vm0, %v7118_v44, 0.0  ;;  %v7130_v10 = vsel %vm19_vm0, %v7119_v54, 0.0  ;;  %v7132_v30 = vsel %vm19_vm0, %v7120_v22, 0.0  ;;  %v7352_v20 = vld [vmem:[%s13284_s1 + $0x2e0] sm:$0xff]  ;;  %v7351_v51 = vld [vmem:[%s13284_s1 + $0x2d8] sm:$0xff] }
0x19b0   :  { %v8582_v6 = vld [vmem:[%s13285_s2 + $0x88] ss:$0 sm:$0xff] }
0x19b1   :  { %v7125_v12 = vadd.f32 %v7124_v35, %v7123_v62 }
0x19b3   :  { %v7127_v48 = vadd.f32 %v7126_v19, %v7125_v12 }
0x19b5   :  { %v7129_v58 = vadd.f32 %v7128_v57, %v7127_v48 }
0x19b7   :  { %v7131_v25 = vadd.f32 %v7130_v10, %v7129_v58 }
0x19b9   :  { %v7133_v47 = vadd.f32 %v7132_v30, %v7131_v25 }
0x19bb   :  { %v7134_v37 = vrot.slane %v7133_v47, 4 }
0x19bd   :  { %v7135_v16 = vadd.f32 %v7134_v37, %v7133_v47 }
0x19bf   :  { %v7136_v56 = vrot.slane %v7135_v16, 2 }
0x19c1   :  { %v7137_v0 = vadd.f32 %v7136_v56, %v7135_v16 }
0x19c3   :  { %v7138_v33 = vrot.slane %v7137_v0, 1 }
0x19c5   :  { %v7139_v38 = vadd.f32 %v7138_v33, %v7137_v0 }
0x19c7   :  { %v7140_v15 = vmul.f32 0.017857144, %v7139_v38 }
0x19c9   :  { %v7141_v41 = vadd.f32 1e-05, %v7140_v15 }
0x19cb   :  { %10594 = vrsqrt.f32 %v7141_v41 }
0x19d8   :  { %v10595_v13 = vpop.eup %10594 }
0x19d9   :  { %v7143_v45 = vmul.f32 %v10595_v13, %v12911_v32 }
0x19db   :  { %v7156_v60 = vmul.f32 %v7143_v45, %v7106_v42  ;;  %v7147_v61 = vrot.slane %v7143_v45, %v13293_v14 }
0x19dd   :  { %v7158_v18 = vrot.slane %v7156_v60, 7  ;;  %v7148_v27 = vmul.f32 %v7147_v61, %v12923_v50  ;;  %v7149_v8 = vmul.f32 %v7147_v61, %v12921_v40  ;;  %v7150_v34 = vmul.f32 %v7147_v61, %v12935_v1 }
0x19de   :  { %v7151_v50 = vmul.f32 %v7147_v61, %v12931_v17  ;;  %v7152_v40 = vmul.f32 %v7147_v61, %v12947_v26  ;;  %v7153_v1 = vmul.f32 %v7147_v61, %v12945_v31  ;;  %v7154_v43 = vmul.f32 %v7147_v61, %v12958_v39  ;;  %v7358_v31 = vld [vmem:[%s13284_s1 + $0x310] sm:$0xff]  ;;  %v7357_v39 = vld [vmem:[%s13284_s1 + $0x308] sm:$0xff] }
0x19df   :  { %v7160_v2 = vsub.f32 %v12911_v32, %v7158_v18  ;;  %v7155_v26 = vmul.f32 %v7147_v61, %v12953_v52  ;;  %10206 = vmatprep.subr.mxu0 %v7358_v31  ;;  %v7356_v52 = vld [vmem:[%s13284_s1 + $0x300] sm:$0xff] }
0x19e0   :  { %10207 = vmatpush3.msra.mxu0 %v7358_v31 }
0x19e1   :  { %v7164_v5 = vrot.slane %v7160_v2, %v13294_v11  ;;  %10208 = vmatprep.subr.mxu0 %v7357_v39 }
0x19e2   :  { %10209 = vmatpush3.msra.mxu0 %v7357_v39 }
0x19e3   :  { %v12984_v53 = vadd.f32 %v7164_v5, %v7148_v27  ;;  %v12986_v46 = vadd.f32 %v7164_v5, %v7149_v8  ;;  %v12991_v21 = vadd.f32 %v7164_v5, %v7150_v34  ;;  %v12999_v42 = vadd.f32 %v7164_v5, %v7151_v50  ;;  %10210 = vmatprep.subr.mxu0 %v7356_v52 }
0x19e4   :  { %v13001_v28 = vadd.f32 %v7164_v5, %v7152_v40  ;;  %v13009_v17 = vadd.f32 %v7164_v5, %v7153_v1  ;;  %v13011_v4 = vadd.f32 %v7164_v5, %v7154_v43  ;;  %v7172_v24 = vadd.f32 %v7164_v5, %v7155_v26  ;;  %10211 = vmatpush3.msra.mxu0 %v7356_v52 }
0x19e5   :  { %10194 = vmatprep.mubr.msk.f32.mxu1 %vm19_vm0, %v12984_v53  ;;  %10212 = vmatprep.subr.mxu0 %v7355_v29 }
0x19e6   :  { %10195 = vmatmul.mubr.msk.f32.vlgmr.msra.gmra.mxu1 %vm19_vm0, %v12986_v46  ;;  %10213 = vmatpush3.msra.mxu0 %v7355_v29 }
0x19e7   :  { %10197 = vmatprep.mubr.msk.f32.mxu1 %vm19_vm0, %v12991_v21  ;;  %10214 = vmatprep.subr.mxu0 %v7354_v7 }
0x19e8   :  { %10215 = vmatpush3.msra.mxu0 %v7354_v7 }
0x19e9   :  { %10216 = vmatprep.subr.mxu0 %v7353_v49 }
0x19ea   :  { %10198 = vmatmul.mubr.msk.f32.gmra.mxu1 %vm19_vm0, %v12999_v42  ;;  %10217 = vmatpush3.msra.mxu0 %v7353_v49 }
0x19eb   :  { %10200 = vmatprep.mubr.msk.f32.mxu1 %vm19_vm0, %v13001_v28  ;;  %10218 = vmatprep.subr.mxu0 %v7352_v20 }
0x19ec   :  { %10219 = vmatpush3.msra.mxu0 %v7352_v20 }
0x19ed   :  { %10220 = vmatprep.subr.mxu0 %v7351_v51 }
0x19ee   :  { %10201 = vmatmul.mubr.msk.f32.gmra.mxu1 %vm19_vm0, %v13009_v17  ;;  %10221 = vmatpush3.msra.mxu0 %v7351_v51 }
0x19ef   :  { %10203 = vmatprep.mubr.msk.f32.mxu1 %vm19_vm0, %v13011_v4  ;;  %10245 = vmatprep.subr.mxu0 %v10664_v9 }
0x19f2   :  { %10204 = vmatmul.mubr.msk.f32.gmra.mxu1 %vm19_vm0, %v7172_v24 }
0x19f3   :  { %10242 = vmatprep.mubr.msk.f32.mxu1 %vm10665_vm1, %v10664_v9 }
0x1aa6   :  { %v10196_v55 = vpop.f32.mrf.mxu1 }
0x1aa7   :  { %v7278_v59 = vadd.f32 %v10196_v55, %v8582_v6 }
0x1aa8   :  { %v7272_v62 = vpop.f32.mrf.mxu1 }
0x1aa9   :  { %v7320_v63 = vmul.f32 0.70710677, %v7278_v59  ;;  %v7273_v44 = vadd.f32 %v8582_v6, %v7272_v62  ;;  %v7312_v18 = vmul.f32 0.5, %v7278_v59 }
0x1aaa   :  { %v10199_v35 = vpop.f32.mrf.mxu1 }
0x1aab   :  { %10596 = verf.f32 %v7320_v63  ;;  %v7319_v12 = vmul.f32 0.70710677, %v7273_v44  ;;  %v7288_v54 = vadd.f32 %v10199_v35, %v8582_v6  ;;  %v7311_v60 = vmul.f32 0.5, %v7273_v44  ;;  %v7586_v44 = vld [vmem:[%s13286_s3 + $0x18] sm:$0xff] }
0x1aac   :  { %v7282_v19 = vpop.f32.mrf.mxu1  ;;  %v7668_v35 = vld [vmem:[%s13286_s3 + $0x38] sm:$0xff]  ;;  %10235 = vmatpush3.msra.mxu1 %v7586_v44 }
0x1aad   :  { %10598 = verf.f32 %v7319_v12  ;;  %v7322_v48 = vmul.f32 0.70710677, %v7288_v54  ;;  %v7283_v22 = vadd.f32 %v8582_v6, %v7282_v19  ;;  %v7314_v40 = vmul.f32 0.5, %v7288_v54  ;;  %10236 = vmatprep.subr.mxu1 %v10664_v9  ;;  %v7585_v12 = vld [vmem:[%s13286_s3 + $0x10] sm:$0xff]  ;;  %v7584_v19 = vld [vmem:[%s13286_s3 + $0x8] sm:$0xff] }
0x1aae   :  { %v10202_v57 = vpop.f32.mrf.mxu1  ;;  %v7667_v54 = vld [vmem:[%s13286_s3 + $0x30] sm:$0xff]  ;;  %10237 = vmatpush3.msra.mxu1 %v7585_v12 }
0x1aaf   :  { %10600 = verf.f32 %v7322_v48  ;;  %v7321_v58 = vmul.f32 0.70710677, %v7283_v22  ;;  %v7298_v10 = vadd.f32 %v10202_v57, %v8582_v6  ;;  %v7313_v8 = vmul.f32 0.5, %v7283_v22  ;;  %10238 = vmatprep.subr.mxu1 %v10664_v9  ;;  %v7666_v48 = vld [vmem:[%s13286_s3 + $0x28] sm:$0xff]  ;;  %v7583_v22 = vld [vmem:[%s13286_s3] sm:$0xff] }
0x1ab0   :  { %v7292_v25 = vpop.f32.mrf.mxu1  ;;  %10239 = vmatpush3.msra.mxu1 %v7584_v19  ;;  %v7665_v57 = vld [vmem:[%s13286_s3 + $0x20] sm:$0xff] }
0x1ab1   :  { %10602 = verf.f32 %v7321_v58  ;;  %v7324_v30 = vmul.f32 0.70710677, %v7298_v10  ;;  %v7293_v47 = vadd.f32 %v8582_v6, %v7292_v25  ;;  %v7316_v29 = vmul.f32 0.5, %v7298_v10  ;;  %10240 = vmatprep.subr.mxu1 %v10664_v9 }
0x1ab2   :  { %v10205_v37 = vpop.f32.mrf.mxu1  ;;  %10241 = vmatpush3.msra.mxu1 %v7583_v22  ;;  %v13295_v58 = vsub.s32 3, %v11778_v36 }
0x1ab3   :  { %10604 = verf.f32 %v7324_v30  ;;  %v7323_v16 = vmul.f32 0.70710677, %v7293_v47  ;;  %v7308_v56 = vadd.f32 %v10205_v37, %v8582_v6  ;;  %v7315_v31 = vmul.f32 0.5, %v7293_v47  ;;  %10256 = vmatprep.subr.mxu1 %v10664_v9 }
0x1ab4   :  { %v7302_v0 = vpop.f32.mrf.mxu1  ;;  %v7362_v10 = vrot.slane %v12911_v32, %v13295_v58 }
0x1ab5   :  { %10606 = verf.f32 %v7323_v16  ;;  %v7326_v33 = vmul.f32 0.70710677, %v7308_v56  ;;  %v7303_v38 = vadd.f32 %v8582_v6, %v7302_v0  ;;  %v7318_v59 = vmul.f32 0.5, %v7308_v56 }
0x1ab7   :  { %10608 = verf.f32 %v7326_v33  ;;  %v7325_v15 = vmul.f32 0.70710677, %v7303_v38  ;;  %v7317_v6 = vmul.f32 0.5, %v7303_v38 }
0x1ab8   :  { %v10597_v41 = vpop.eup %10596 }
0x1ab9   :  { %10610 = verf.f32 %v7325_v15  ;;  %v7336_v45 = vadd.f32 1.0, %v10597_v41 }
0x1aba   :  { %v10599_v13 = vpop.eup %10598 }
0x1abb   :  { %v7335_v14 = vadd.f32 1.0, %v10599_v13  ;;  %v7344_v11 = vmul.f32 %v7336_v45, %v7312_v18 }
0x1abc   :  { %v10601_v61 = vpop.eup %10600 }
0x1abd   :  { %v7343_v2 = vmul.f32 %v7335_v14, %v7311_v60  ;;  %v7338_v5 = vadd.f32 1.0, %v10601_v61 }
0x1abe   :  { %v10603_v27 = vpop.eup %10602 }
0x1abf   :  { %v7337_v34 = vadd.f32 1.0, %v10603_v27  ;;  %10222 = vmatprep.mubr.msk.f32.mxu0 %vm996_vm5, %v7343_v2  ;;  %v7346_v26 = vmul.f32 %v7338_v5, %v7314_v40 }
0x1ac0   :  { %v10605_v50 = vpop.eup %10604  ;;  %10223 = vmatmul.mubr.msk.f32.vlgmr.msra.gmra.mxu0 %vm996_vm5, %v7344_v11 }
0x1ac1   :  { %v7345_v1 = vmul.f32 %v7337_v34, %v7313_v8  ;;  %v7340_v24 = vadd.f32 1.0, %v10605_v50  ;;  %10246 = vmatpush3.msra.mxu0 %v7668_v35 }
0x1ac2   :  { %v10607_v43 = vpop.eup %10606  ;;  %10247 = vmatprep.subr.mxu0 %v10664_v9 }
0x1ac3   :  { %v7339_v39 = vadd.f32 1.0, %v10607_v43  ;;  %10225 = vmatprep.mubr.msk.f32.mxu0 %vm996_vm5, %v7345_v1  ;;  %v7348_v20 = vmul.f32 %v7340_v24, %v7316_v29  ;;  %10248 = vmatpush3.msra.mxu0 %v7667_v54 }
0x1ac4   :  { %v10609_v52 = vpop.eup %10608  ;;  %10226 = vmatmul.mubr.msk.f32.gmra.mxu0 %vm996_vm5, %v7346_v26  ;;  %10249 = vmatprep.subr.mxu0 %v10664_v9 }
0x1ac5   :  { %v7347_v7 = vmul.f32 %v7339_v39, %v7315_v31  ;;  %v7342_v51 = vadd.f32 1.0, %v10609_v52  ;;  %10250 = vmatpush3.msra.mxu0 %v7666_v48 }
0x1ac6   :  { %v10611_v49 = vpop.eup %10610  ;;  %10251 = vmatprep.subr.mxu0 %v10664_v9 }
0x1ac7   :  { %v7341_v55 = vadd.f32 1.0, %v10611_v49  ;;  %10228 = vmatprep.mubr.msk.f32.mxu0 %vm996_vm5, %v7347_v7  ;;  %v7350_v63 = vmul.f32 %v7342_v51, %v7318_v59  ;;  %10252 = vmatpush3.msra.mxu0 %v7665_v57 }
0x1ac8   :  { %10229 = vmatmul.mubr.msk.f32.gmra.mxu0 %vm996_vm5, %v7348_v20  ;;  %10267 = vmatprep.subr.mxu0 %v10664_v9 }
0x1ac9   :  { %v7349_v62 = vmul.f32 %v7341_v55, %v7317_v6 }
0x1acb   :  { %10231 = vmatprep.mubr.msk.f32.mxu0 %vm996_vm5, %v7349_v62 }
0x1acc   :  { %10232 = vmatmul.mubr.msk.f32.gmra.mxu0 %vm996_vm5, %v7350_v63 }
0x1acd   :  { %10253 = vmatprep.mubr.msk.f32.mxu0 %vm10665_vm1, %v10664_v9 }
0x1b80   :  { %v10224_v25 = vpop.f32.mrf.mxu0 }
0x1b81   :  { %v7459_v30 = vadd.f32 %v10224_v25, %v7362_v10 }
0x1b82   :  { %v7453_v47 = vpop.f32.mrf.mxu0 }
0x1b83   :  { %v7454_v37 = vadd.f32 %v7453_v47, %v7362_v10  ;;  %v13095_v56 = vadd.f32 %v7459_v30, %v12986_v46 }
0x1b84   :  { %v10227_v16 = vpop.f32.mrf.mxu0 }
0x1b85   :  { %v13098_v0 = vadd.f32 %v7454_v37, %v12984_v53  ;;  %v7469_v33 = vadd.f32 %v10227_v16, %v7362_v10  ;;  %v7499_v45 = vsel %vm19_vm0, %v13095_v56, 0.0 }
0x1b86   :  { %v7463_v38 = vpop.f32.mrf.mxu0 }
0x1b87   :  { %v7498_v15 = vsel %vm19_vm0, %v13098_v0, 0.0  ;;  %v7464_v41 = vadd.f32 %v7463_v38, %v7362_v10  ;;  %v13105_v60 = vadd.f32 %v7469_v33, %v12999_v42 }
0x1b88   :  { %v10230_v13 = vpop.f32.mrf.mxu0  ;;  %v7500_v61 = vadd.f32 %v7499_v45, %v7498_v15 }
0x1b89   :  { %v13108_v14 = vadd.f32 %v7464_v41, %v12991_v21  ;;  %v7479_v46 = vadd.f32 %v10230_v13, %v7362_v10  ;;  %v7503_v5 = vsel %vm19_vm0, %v13105_v60, 0.0 }
0x1b8a   :  { %v7473_v53 = vpop.f32.mrf.mxu0 }
0x1b8b   :  { %v7501_v18 = vsel %vm19_vm0, %v13108_v14, 0.0  ;;  %v7474_v2 = vadd.f32 %v7473_v53, %v7362_v10  ;;  %v13115_v8 = vadd.f32 %v7479_v46, %v13009_v17 }
0x1b8c   :  { %v7502_v27 = vadd.f32 %v7501_v18, %v7500_v61  ;;  %v10233_v11 = vpop.f32.mrf.mxu0 }
0x1b8d   :  { %v13118_v42 = vadd.f32 %v7474_v2, %v13001_v28  ;;  %v7507_v43 = vsel %vm19_vm0, %v13115_v8, 0.0 }
0x1b8e   :  { %v7504_v21 = vadd.f32 %v7503_v5, %v7502_v27  ;;  %v7483_v34 = vpop.f32.mrf.mxu0 }
0x1b8f   :  { %v7505_v50 = vsel %vm19_vm0, %v13118_v42, 0.0  ;;  %v7484_v40 = vadd.f32 %v7483_v34, %v7362_v10 }
0x1b90   :  { %v7506_v1 = vadd.f32 %v7505_v50, %v7504_v21  ;;  %v13296_v50 = vsub.s32 4, %v11778_v36 }
0x1b91   :  { %v13125_v26 = vadd.f32 %v7484_v40, %v13011_v4 }
0x1b92   :  { %v7508_v24 = vadd.f32 %v7507_v43, %v7506_v1 }
0x1b93   :  { %v7509_v17 = vsel %vm19_vm0, %v13125_v26, 0.0 }
0x1b94   :  { %v7510_v31 = vadd.f32 %v7509_v17, %v7508_v24  ;;  %v13297_v24 = vsub.s32 5, %v11778_v36  ;;  %v7824_v36 = vld [vmem:[%s13286_s3 + $0x78] sm:$0xff] }
0x1b96   :  { %v7511_v28 = vrot.slane %v7510_v31, 4 }
0x1b98   :  { %v7512_v39 = vadd.f32 %v7511_v28, %v7510_v31 }
0x1b9a   :  { %v7513_v52 = vrot.slane %v7512_v39, 2 }
0x1b9c   :  { %v7514_v29 = vadd.f32 %v7513_v52, %v7512_v39 }
0x1b9e   :  { %v7515_v7 = vrot.slane %v7514_v29, 1 }
0x1ba0   :  { %v7516_v49 = vadd.f32 %v7515_v7, %v7514_v29  ;;  %v7746_v29 = vld [vmem:[%s13286_s3 + $0x58] sm:$0xff]  ;;  %v7822_v7 = vld [vmem:[%s13286_s3 + $0x68] sm:$0xff] }
0x1ba2   :  { %v7517_v20 = vmul.f32 0.017857144, %v7516_v49  ;;  %v7743_v49 = vld [vmem:[%s13286_s3 + $0x40] sm:$0xff] }
0x1ba4   :  { %v7518_v51 = vsub.f32 %v13098_v0, %v7517_v20  ;;  %v7519_v6 = vsub.f32 %v13095_v56, %v7517_v20  ;;  %v7520_v55 = vsub.f32 %v13108_v14, %v7517_v20  ;;  %v7521_v4 = vsub.f32 %v13105_v60, %v7517_v20 }
0x1ba5   :  { %v7522_v59 = vsub.f32 %v13118_v42, %v7517_v20  ;;  %v7523_v35 = vsub.f32 %v13115_v8, %v7517_v20  ;;  %v7524_v22 = vsub.f32 %v13125_v26, %v7517_v20 }
0x1ba6   :  { %v7525_v62 = vmul.f32 %v7518_v51, %v7518_v51  ;;  %v7526_v63 = vmul.f32 %v7519_v6, %v7519_v6  ;;  %v7527_v44 = vmul.f32 %v7520_v55, %v7520_v55  ;;  %v7528_v12 = vmul.f32 %v7521_v4, %v7521_v4 }
0x1ba7   :  { %v7529_v57 = vmul.f32 %v7522_v59, %v7522_v59  ;;  %v7530_v25 = vmul.f32 %v7523_v35, %v7523_v35  ;;  %v7531_v37 = vmul.f32 %v7524_v22, %v7524_v22  ;;  %v7901_v59 = vld [vmem:[%s13286_s3 + $0x90] sm:$0xff]  ;;  %v7899_v35 = vld [vmem:[%s13286_s3 + $0x80] sm:$0xff] }
0x1ba8   :  { %v7532_v54 = vsel %vm19_vm0, %v7525_v62, 0.0  ;;  %v7533_v19 = vsel %vm19_vm0, %v7526_v63, 0.0  ;;  %v7535_v58 = vsel %vm19_vm0, %v7527_v44, 0.0  ;;  %v7537_v30 = vsel %vm19_vm0, %v7528_v12, 0.0  ;;  %v7979_v62 = vld [vmem:[%s13286_s3 + $0xb0] sm:$0xff]  ;;  %v7900_v63 = vld [vmem:[%s13286_s3 + $0x88] sm:$0xff] }
0x1ba9   :  { %v7534_v48 = vadd.f32 %v7533_v19, %v7532_v54  ;;  %v7539_v16 = vsel %vm19_vm0, %v7529_v57, 0.0  ;;  %v7541_v38 = vsel %vm19_vm0, %v7530_v25, 0.0  ;;  %v7543_v41 = vsel %vm19_vm0, %v7531_v37, 0.0  ;;  %v7978_v44 = vld [vmem:[%s13286_s3 + $0xa8] sm:$0xff]  ;;  %v7977_v12 = vld [vmem:[%s13286_s3 + $0xa0] sm:$0xff] }
0x1baa   :  { %v8056_v57 = vld [vmem:[%s13286_s3 + $0xc8] sm:$0xff] }
0x1bab   :  { %v7536_v10 = vadd.f32 %v7535_v58, %v7534_v48 }
0x1bad   :  { %v7538_v47 = vadd.f32 %v7537_v30, %v7536_v10  ;;  %v8055_v10 = vld [vmem:[%s13286_s3 + $0xc0] sm:$0xff] }
0x1baf   :  { %v7540_v33 = vadd.f32 %v7539_v16, %v7538_v47 }
0x1bb1   :  { %v7542_v15 = vadd.f32 %v7541_v38, %v7540_v33 }
0x1bb3   :  { %v7544_v13 = vadd.f32 %v7543_v41, %v7542_v15 }
0x1bb5   :  { %v7545_v45 = vrot.slane %v7544_v13, 4 }
0x1bb7   :  { %v7546_v46 = vadd.f32 %v7545_v45, %v7544_v13 }
0x1bb9   :  { %v7547_v61 = vrot.slane %v7546_v46, 2 }
0x1bbb   :  { %v7548_v53 = vadd.f32 %v7547_v61, %v7546_v46 }
0x1bbd   :  { %v7549_v18 = vrot.slane %v7548_v53, 1 }
0x1bbf   :  { %v7550_v2 = vadd.f32 %v7549_v18, %v7548_v53 }
0x1bc1   :  { %v7551_v27 = vmul.f32 0.017857144, %v7550_v2 }
0x1bc3   :  { %v7552_v11 = vadd.f32 1e-05, %v7551_v27 }
0x1bc5   :  { %10612 = vrsqrt.f32 %v7552_v11 }
0x1bd2   :  { %v10613_v5 = vpop.eup %10612 }
0x1bd3   :  { %v7554_v21 = vmul.f32 %v10613_v5, %v12911_v32 }
0x1bd5   :  { %v7566_v34 = vmul.f32 %v7554_v21, %v7517_v20  ;;  %v13146_v40 = vrot.slane %v7554_v21, %v13296_v50  ;;  %v7821_v20 = vld [vmem:[%s13286_s3 + $0x60] sm:$0xff] }
0x1bd7   :  { %v7568_v1 = vrot.slane %v7566_v34, 7  ;;  %v7559_v31 = vmul.f32 %v13146_v40, %v13098_v0  ;;  %v7560_v28 = vmul.f32 %v13146_v40, %v13095_v56  ;;  %v7823_v56 = vld [vmem:[%s13286_s3 + $0x70] sm:$0xff]  ;;  %v7744_v0 = vld [vmem:[%s13286_s3 + $0x48] sm:$0xff]  ;;  %v7561_v51 = vmul.f32 %v13146_v40, %v13108_v14  ;;  %v7980_v14 = vld [vmem:[%s13286_s3 + $0xb8] sm:$0xff] }
0x1bd8   :  { %v7562_v6 = vmul.f32 %v13146_v40, %v13105_v60  ;;  %v7902_v60 = vld [vmem:[%s13286_s3 + $0x98] sm:$0xff]  ;;  %v7563_v54 = vmul.f32 %v13146_v40, %v13118_v42  ;;  %v7564_v19 = vmul.f32 %v13146_v40, %v13115_v8  ;;  %v8057_v42 = vld [vmem:[%s13286_s3 + $0xd0] sm:$0xff]  ;;  %v7565_v58 = vmul.f32 %v13146_v40, %v13125_v26  ;;  %v8600_v26 = vld [vmem:[%s13286_s3 + $0xe0] ss:$0 sm:$0xff] }
0x1bd9   :  { %v7570_v43 = vsub.f32 %v12911_v32, %v7568_v1  ;;  %v7745_v32 = vld [vmem:[%s13286_s3 + $0x50] sm:$0xff]  ;;  %v8058_v8 = vld [vmem:[%s13286_s3 + $0xd8] sm:$0xff] }
0x1bdb   :  { %v13151_v17 = vrot.slane %v7570_v43, %v13297_v24  ;;  %v10641_v43 = vld [vmem:[%s13286_s3 + $0xf0] sm:$0xff] }
0x1bdd   :  { %v7575_v39 = vadd.f32 %v13151_v17, %v7559_v31  ;;  %v7576_v52 = vadd.f32 %v13151_v17, %v7560_v28  ;;  %v7577_v55 = vadd.f32 %v13151_v17, %v7561_v51  ;;  %v7578_v4 = vadd.f32 %v13151_v17, %v7562_v6 }
0x1bde   :  { %v7579_v48 = vadd.f32 %v13151_v17, %v7563_v54  ;;  %v7580_v22 = vadd.f32 %v13151_v17, %v7564_v19  ;;  %v7581_v25 = vadd.f32 %v13151_v17, %v7565_v58 }
0x1bdf   :  { %10243 = vmatmul.mubr.msk.f32.vlgmr.msra.gmra.mxu1 %vm19_vm0, %v7575_v39  ;;  %10254 = vmatmul.mubr.msk.f32.vlgmr.msra.gmra.mxu0 %vm19_vm0, %v7576_v52 }
0x1be0   :  { %10257 = vmatpush3.msra.mxu1 %v7746_v29  ;;  %10268 = vmatpush3.msra.mxu0 %v7824_v36 }
0x1be1   :  { %10258 = vmatprep.subr.mxu1 %v10664_v9  ;;  %10269 = vmatprep.subr.mxu0 %v10664_v9 }
0x1be2   :  { %10259 = vmatpush3.msra.mxu1 %v7745_v32  ;;  %10270 = vmatpush3.msra.mxu0 %v7823_v56 }
0x1be3   :  { %10260 = vmatprep.subr.mxu1 %v10664_v9  ;;  %10271 = vmatprep.subr.mxu0 %v10664_v9 }
0x1be4   :  { %10261 = vmatpush3.msra.mxu1 %v7744_v0  ;;  %10272 = vmatpush3.msra.mxu0 %v7822_v7 }
0x1be5   :  { %10262 = vmatprep.subr.mxu1 %v10664_v9  ;;  %10273 = vmatprep.subr.mxu0 %v10664_v9 }
0x1be6   :  { %10263 = vmatpush3.msra.mxu1 %v7743_v49  ;;  %10264 = vmatprep.mubr.msk.f32.mxu1 %vm10665_vm1, %v10664_v9 }
0x1be7   :  { %10274 = vmatpush3.msra.mxu0 %v7821_v20  ;;  %10275 = vmatprep.mubr.msk.f32.mxu0 %vm10665_vm1, %v10664_v9 }
0x1be8   :  { %10265 = vmatmul.mubr.msk.f32.vlgmr.msra.gmra.mxu1 %vm19_vm0, %v7577_v55  ;;  %10276 = vmatmul.mubr.msk.f32.vlgmr.msra.gmra.mxu0 %vm19_vm0, %v7578_v4 }
0x1be9   :  { %10278 = vmatprep.subr.mxu1 %v10664_v9  ;;  %10289 = vmatprep.subr.mxu0 %v10664_v9 }
0x1bea   :  { %10279 = vmatpush3.msra.mxu1 %v7902_v60  ;;  %10290 = vmatpush3.msra.mxu0 %v7980_v14 }
0x1beb   :  { %10280 = vmatprep.subr.mxu1 %v10664_v9  ;;  %10291 = vmatprep.subr.mxu0 %v10664_v9 }
0x1bec   :  { %10281 = vmatpush3.msra.mxu1 %v7901_v59  ;;  %10292 = vmatpush3.msra.mxu0 %v7979_v62 }
0x1bed   :  { %10282 = vmatprep.subr.mxu1 %v10664_v9  ;;  %10293 = vmatprep.subr.mxu0 %v10664_v9 }
0x1bee   :  { %10283 = vmatpush3.msra.mxu1 %v7900_v63  ;;  %10294 = vmatpush3.msra.mxu0 %v7978_v44 }
0x1bef   :  { %10284 = vmatprep.subr.mxu1 %v10664_v9  ;;  %10295 = vmatprep.subr.mxu0 %v10664_v9 }
0x1bf0   :  { %10285 = vmatpush3.msra.mxu1 %v7899_v35  ;;  %10286 = vmatprep.mubr.msk.f32.mxu1 %vm10665_vm1, %v10664_v9 }
0x1bf1   :  { %10296 = vmatpush3.msra.mxu0 %v7977_v12  ;;  %10297 = vmatprep.mubr.msk.f32.mxu0 %vm10665_vm1, %v10664_v9 }
0x1bf2   :  { %10287 = vmatmul.mubr.msk.f32.vlgmr.msra.gmra.mxu1 %vm19_vm0, %v7579_v48  ;;  %10298 = vmatmul.mubr.msk.f32.vlgmr.msra.gmra.mxu0 %vm19_vm0, %v7580_v22 }
0x1bf3   :  { %10300 = vmatprep.subr.mxu1 %v10664_v9  ;;  %10308 = vmatprep.mubr.msk.f32.mxu1 %vm10665_vm1, %v10664_v9 }
0x1bf4   :  { %10301 = vmatpush3.msra.mxu1 %v8058_v8 }
0x1bf5   :  { %10302 = vmatprep.subr.mxu1 %v10664_v9 }
0x1bf6   :  { %10303 = vmatpush3.msra.mxu1 %v8057_v42 }
0x1bf7   :  { %10304 = vmatprep.subr.mxu1 %v10664_v9 }
0x1bf8   :  { %10305 = vmatpush3.msra.mxu1 %v8056_v57 }
0x1bf9   :  { %10306 = vmatprep.subr.mxu1 %v10664_v9  ;;  %v10640_v9 = vld [vmem:[%s13286_s3 + $0xe8] sm:$0xff] }
0x1bfa   :  { %10307 = vmatpush3.msra.mxu1 %v8055_v10  ;;  %v8134_v45 = vadd.f32 1e-10, %v10640_v9 }
0x1bfb   :  { %10309 = vmatmul.mubr.msk.f32.vlgmr.msra.gmra.mxu1 %vm19_vm0, %v7581_v25 }
0x1bfc   :  { %10614 = vrcp.f32 %v8134_v45 }
0x1c09   :  { %v10615_v40 = vpop.eup %10614 }
0x1c9f   :  { %v7656_v30 = vpop.f32.mrf.mxu1  ;;  %v7738_v47 = vpop.f32.mrf.mxu0 }
0x1ca0   :  { %v7664_v15 = vadd.f32 %v8600_v26, %v7656_v30 }
0x1ca1   :  { %v10244_v37 = vpop.f32.mrf.mxu1  ;;  %v10255_v16 = vpop.f32.mrf.mxu0 }
0x1ca2   :  { %v7742_v46 = vadd.f32 %v7738_v47, %v7664_v15 }
0x1ca8   :  { %v7816_v33 = vpop.f32.mrf.mxu1  ;;  %v7894_v38 = vpop.f32.mrf.mxu0 }
0x1ca9   :  { %v7820_v61 = vadd.f32 %v7816_v33, %v7742_v46 }
0x1caa   :  { %v10266_v41 = vpop.f32.mrf.mxu1  ;;  %v10277_v13 = vpop.f32.mrf.mxu0 }
0x1cab   :  { %v7898_v2 = vadd.f32 %v7894_v38, %v7820_v61 }
0x1cb2   :  { %v7972_v53 = vpop.f32.mrf.mxu1  ;;  %v8050_v18 = vpop.f32.mrf.mxu0 }
0x1cb3   :  { %v7976_v5 = vadd.f32 %v7972_v53, %v7898_v2 }
0x1cb4   :  { %v10288_v27 = vpop.f32.mrf.mxu1  ;;  %v10299_v11 = vpop.f32.mrf.mxu0 }
0x1cb5   :  { %v8054_v21 = vadd.f32 %v8050_v18, %v7976_v5 }
0x1cbb   :  { %v8128_v34 = vpop.f32.mrf.mxu1 }
0x1cbc   :  { %v8132_v50 = vadd.f32 %v8128_v34, %v8054_v21 }
0x1cbd   :  { %v10310_v1 = vpop.f32.mrf.mxu1 }
0x1cbe   :  { %v8133_v24 = vsub.f32 %v8132_v50, %v10641_v43 }
0x1cc0   :  { %v8136_v17 = vmul.f32 %v10615_v40, %v8133_v24 }
0x1cc2   :  { %v8137_v31 = vmul.f32 %v8136_v17, %v10738_v23 }
0x1cc4   :  { %v8138_v28 = vadd.f32 %v8137_v31, %v10696_v3 }
0x1cc6   :  { %8139 = vst [vmem:[#allocation3] sm:$0xff] %v8138_v28 }
0x1cc7   :  { %10653 = shalt.err (!%p10650_p4)
}
0x1cc8   :  { %8149 = dma.vmem_to_hbm [thread:$0]  %s8147_s18, 128, %s13287_s4, [#allocation4]  }
0x1cc9   :  { %10662 = dma.done.wait [#allocation4], 128  }
0x1cca   :  { %10663 = vsyncadd [#allocation4], 4294967168 }
0x1ccb   :  { %8153 = vsyncpa [#allocation4], 1 }

</bundles_post_ra>
